<compile_context>
chip_gen: v6e
topology: v6e:2x2x1
jax: 0.10.0
libtpu: 0.0.40
codegen_flags: <defaults>
</compile_context>

<pallas_src>
import jax
import jax.numpy as jnp
from jax.experimental import pallas as pl
from jax.experimental.pallas import tpu as pltpu

EPS = 1e-5
LANE = 128


def _round_up(n, m):
    return (n + m - 1) // m * m


def _gen_block(h_f32, w_bf16, gamma, beta):
    """Linear (bias-free; BN cancels it) -> BatchNorm1d (batch stats) -> ReLU.
    Matmul inputs in bf16 (native MXU rate); accumulation + BN math in f32."""
    y = jnp.dot(h_f32.astype(jnp.bfloat16), w_bf16,
                preferred_element_type=jnp.float32)
    mean = jnp.mean(y, axis=0, keepdims=True)
    var = jnp.mean((y - mean) * (y - mean), axis=0, keepdims=True)  # biased var
    y_hat = (y - mean) * jax.lax.rsqrt(var + EPS)
    return jnp.maximum(y_hat * gamma + beta, 0.0)                   # ReLU


def _make_generator_kernel(segments):
    """segments: name -> (lane-aligned offset, width) into the packed vector."""
    def kernel(x_ref, w0, w1, w2, w3, w4, pack_ref, out_ref):
        def vec(name):
            off, width = segments[name]
            return pack_ref[:, off:off + width]

        h = x_ref[...].astype(jnp.float32)
        h = _gen_block(h, w0[...], vec("g0"), vec("be0"))   # z      -> h
        h = _gen_block(h, w1[...], vec("g1"), vec("be1"))   # h      -> 2h
        h = _gen_block(h, w2[...], vec("g2"), vec("be2"))   # 2h     -> 4h
        h = _gen_block(h, w3[...], vec("g3"), vec("be3"))   # 4h     -> 8h
        # Final Linear + Sigmoid; w4/b4 columns are padded to a lane-dense
        # width with zeros (padded lanes give sigmoid(0)=0.5, sliced off in
        # the wrapper), so the output store is an unmasked vst.
        y = jnp.dot(h.astype(jnp.bfloat16), w4[...],
                    preferred_element_type=jnp.float32) + vec("b4")
        out_ref[...] = 1.0 / (1.0 + jnp.exp(-y))
    return kernel


def init_generator_params(key, z_dim, im_dim, hidden_dim):
    """PyTorch-style default init: Linear W,b ~ U(-1/sqrt(fan_in), 1/sqrt(fan_in));
    BatchNorm gamma=1, beta=0.  Weights stored transposed: (in, out).
    Returns 5 layer tuples: 4x (w, b, gamma, beta) and 1x (w, b)."""
    dims = [z_dim, hidden_dim, hidden_dim * 2, hidden_dim * 4, hidden_dim * 8, im_dim]
    layers = []
    for i in range(5):
        fan_in, fan_out = dims[i], dims[i + 1]
        key, kw, kb = jax.random.split(key, 3)
        bound = 1.0 / (fan_in ** 0.5)
        w = jax.random.uniform(kw, (fan_in, fan_out), jnp.float32, -bound, bound)
        b = jax.random.uniform(kb, (1, fan_out), jnp.float32, -bound, bound)
        if i < 4:  # blocks with BatchNorm
            g = jnp.ones((1, fan_out), jnp.float32)
            beta = jnp.zeros((1, fan_out), jnp.float32)
            layers.append((w, b, g, beta))
        else:      # final Linear
            layers.append((w, b))
    return layers


def _prepare_params(layers, im_dim):
    """bf16-cast weights, lane-pad the final layer, and pack the nine tiny
    per-feature vectors into a single lane-aligned f32 array."""
    (w0, _, g0, be0), (w1, _, g1, be1), (w2, _, g2, be2), \
        (w3, _, g3, be3), (w4, b4) = layers
    im_pad = _round_up(im_dim, LANE)
    w4p = jnp.pad(w4, ((0, 0), (0, im_pad - im_dim)))
    b4p = jnp.pad(b4, ((0, 0), (0, im_pad - im_dim)))
    weights = [w.astype(jnp.bfloat16) for w in (w0, w1, w2, w3, w4p)]

    names = ("g0", "be0", "g1", "be1", "g2", "be2", "g3", "be3", "b4")
    vecs = (g0, be0, g1, be1, g2, be2, g3, be3, b4p)
    segments, cols, off = {}, [], 0
    for name, v in zip(names, vecs):
        width = v.shape[1]
        seg_w = _round_up(width, LANE)          # keep every offset lane-aligned
        segments[name] = (off, width)
        cols.append(jnp.pad(v, ((0, 0), (0, seg_w - width))))
        off += seg_w
    packed = jnp.concatenate(cols, axis=1)
    return weights, packed, segments, im_pad


def generator_forward(noise, layers):
    """noise: (B, z)    -> single BN batch, exact module semantics, or
             (G, B, z)  -> G independent forward passes (each group is its own
                           BatchNorm batch), one kernel call, weights resident
                           in VMEM across the grid."""
    squeeze = noise.ndim == 2
    if squeeze:
        noise = noise[None]
    G, B, z_dim = noise.shape
    im_dim = layers[4][0].shape[1]

    weights, packed, segments, im_pad = _prepare_params(layers, im_dim)
    w0, w1, w2, w3, w4p = weights
    kernel = _make_generator_kernel(segments)

    const = lambda g: (0, 0)   # same block every grid step -> DMA'd once
    out = pl.pallas_call(
        kernel,
        out_shape=jax.ShapeDtypeStruct((G, B, im_pad), jnp.float32),
        grid_spec=pltpu.PrefetchScalarGridSpec(
            num_scalar_prefetch=0,
            grid=(G,),
            in_specs=[
                pl.BlockSpec((None, B, z_dim), lambda g: (g, 0, 0)),  # noise
                pl.BlockSpec(w0.shape, const),
                pl.BlockSpec(w1.shape, const),
                pl.BlockSpec(w2.shape, const),
                pl.BlockSpec(w3.shape, const),
                pl.BlockSpec(w4p.shape, const),
                pl.BlockSpec(packed.shape, const),                    # packed vecs
            ],
            out_specs=pl.BlockSpec((None, B, im_pad), lambda g: (g, 0, 0)),
        ),
        compiler_params=pltpu.CompilerParams(
            dimension_semantics=("parallel",),   # shard groups across v7x TCs
        ),
    )(noise, w0, w1, w2, w3, w4p, packed)

    out = out[..., :im_dim]                      # drop lane padding
    return out[0] if squeeze else out


def _reference_forward(noise, layers):
    """Pure-JAX f32 reference of the original module (with BN-layer biases)."""
    h = noise
    for i in range(4):
        w, b, g, beta = layers[i]
        y = h @ w + b
        mean = jnp.mean(y, axis=0, keepdims=True)
        var = jnp.mean((y - mean) ** 2, axis=0, keepdims=True)
        h = jnp.maximum((y - mean) / jnp.sqrt(var + EPS) * g + beta, 0.0)
    w, b = layers[4]
    return jax.nn.sigmoid(h @ w + b)


if __name__ == "__main__":
    key = jax.random.PRNGKey(0)
    G, B = 2, 128     # 2 independent BN batches of 128 rows each (one grid step each)
    z_dim = 32        # stand-in for X_train.shape[1] (t2[1])
    im_dim = z_dim    # module sets im_dim = t2[1] as well
    hidden_dim = 128

    key, knoise, kparams = jax.random.split(key, 3)
    noise = jax.random.normal(knoise, (G, B, z_dim), jnp.float32)
    layers = init_generator_params(kparams, z_dim, im_dim, hidden_dim)

    out = generator_forward(noise, layers)
    out = jax.block_until_ready(out)
    assert out.shape == (G, B, im_dim)

    # Per-group f32 reference (each group is its own BatchNorm batch).
    ref = jnp.stack([_reference_forward(noise[g], layers) for g in range(G)])
    # bf16 weights/matmul inputs in the kernel -> relaxed tolerance vs f32 ref.
    assert jnp.max(jnp.abs(out - ref)) < 2e-2, "mismatch vs JAX reference"

    print("KERNEL_OK")
</pallas_src>

<mosaic_0001>
module attributes {stable_mosaic.version = 11 : i64} {
  func.func @kernel(%arg0: i32, %arg1: memref<1x128x32xf32, #tpu.memory_space<vmem>>, %arg2: memref<32x128xbf16, #tpu.memory_space<vmem>>, %arg3: memref<128x256xbf16, #tpu.memory_space<vmem>>, %arg4: memref<256x512xbf16, #tpu.memory_space<vmem>>, %arg5: memref<512x1024xbf16, #tpu.memory_space<vmem>>, %arg6: memref<1024x128xbf16, #tpu.memory_space<vmem>>, %arg7: memref<1x3968xf32, #tpu.memory_space<vmem>>, %arg8: memref<1x128x128xf32, #tpu.memory_space<vmem>>) attributes {dimension_semantics = [#tpu.dimension_semantics<parallel>], iteration_bounds = array<i64: 2>, scalar_prefetch = 0 : i64, scratch_operands = 0 : i64, tpu.core_type = #tpu.core_type<tc>, window_params = [{transform_indices = @transform_0, window_bounds = array<i64: 1, 128, 32>}, {pipeline_mode = #tpu.pipeline_mode<synchronous>, transform_indices = @transform_1, window_bounds = array<i64: 32, 128>}, {pipeline_mode = #tpu.pipeline_mode<synchronous>, transform_indices = @transform_2, window_bounds = array<i64: 128, 256>}, {pipeline_mode = #tpu.pipeline_mode<synchronous>, transform_indices = @transform_3, window_bounds = array<i64: 256, 512>}, {pipeline_mode = #tpu.pipeline_mode<synchronous>, transform_indices = @transform_4, window_bounds = array<i64: 512, 1024>}, {pipeline_mode = #tpu.pipeline_mode<synchronous>, transform_indices = @transform_5, window_bounds = array<i64: 1024, 128>}, {pipeline_mode = #tpu.pipeline_mode<synchronous>, transform_indices = @transform_6, window_bounds = array<i64: 1, 3968>}, {transform_indices = @transform_7, window_bounds = array<i64: 1, 128, 128>}]} {
    %c0 = arith.constant 0 : index
    %c0_0 = arith.constant 0 : index
    %c0_1 = arith.constant 0 : index
    %0 = vector.load %arg1[%c0, %c0_0, %c0_1] : memref<1x128x32xf32, #tpu.memory_space<vmem>>, vector<1x128x32xf32>
    %1 = vector.shape_cast %0 : vector<1x128x32xf32> to vector<128x32xf32>
    %c0_2 = arith.constant 0 : index
    %c0_3 = arith.constant 0 : index
    %2 = vector.load %arg2[%c0_2, %c0_3] : memref<32x128xbf16, #tpu.memory_space<vmem>>, vector<32x128xbf16>
    %c0_4 = arith.constant 0 : index
    %c0_5 = arith.constant 0 : index
    %3 = vector.load %arg7[%c0_4, %c0_5] : memref<1x3968xf32, #tpu.memory_space<vmem>>, vector<1x128xf32>
    %c0_6 = arith.constant 0 : index
    %c128 = arith.constant 128 : index
    %4 = vector.load %arg7[%c0_6, %c128] : memref<1x3968xf32, #tpu.memory_space<vmem>>, vector<1x128xf32>
    %5 = arith.truncf %1 : vector<128x32xf32> to vector<128x32xbf16>
    %cst = arith.constant dense<0.000000e+00> : vector<128x128xf32>
    %6 = tpu.matmul %5, %2, %cst {dimension_numbers = #tpu.dot_dimension_numbers<[1], [0], [0], [1], [0, 0, 1, 1], [], []>} : vector<128x32xbf16>, vector<32x128xbf16>, vector<128x128xf32> -> vector<128x128xf32>
    %cst_7 = arith.constant dense<0.000000e+00> : vector<128xf32>
    %7 = vector.multi_reduction <add>, %6, %cst_7 [0] : vector<128x128xf32> to vector<128xf32>
    %8 = vector.shape_cast %7 : vector<128xf32> to vector<1x128xf32>
    %cst_8 = arith.constant 1.280000e+02 : f32
    %9 = vector.broadcast %cst_8 : f32 to vector<1x128xf32>
    %10 = arith.divf %8, %9 : vector<1x128xf32>
    %11 = vector.broadcast %10 : vector<1x128xf32> to vector<128x128xf32>
    %12 = arith.subf %6, %11 : vector<128x128xf32>
    %13 = vector.broadcast %10 : vector<1x128xf32> to vector<128x128xf32>
    %14 = arith.subf %6, %13 : vector<128x128xf32>
    %15 = arith.mulf %12, %14 : vector<128x128xf32>
    %cst_9 = arith.constant dense<0.000000e+00> : vector<128xf32>
    %16 = vector.multi_reduction <add>, %15, %cst_9 [0] : vector<128x128xf32> to vector<128xf32>
    %17 = vector.shape_cast %16 : vector<128xf32> to vector<1x128xf32>
    %cst_10 = arith.constant 1.280000e+02 : f32
    %18 = vector.broadcast %cst_10 : f32 to vector<1x128xf32>
    %19 = arith.divf %17, %18 : vector<1x128xf32>
    %20 = vector.broadcast %10 : vector<1x128xf32> to vector<128x128xf32>
    %21 = arith.subf %6, %20 : vector<128x128xf32>
    %cst_11 = arith.constant 9.99999974E-6 : f32
    %22 = vector.broadcast %cst_11 : f32 to vector<1x128xf32>
    %23 = arith.addf %19, %22 : vector<1x128xf32>
    %24 = math.rsqrt %23 : vector<1x128xf32>
    %25 = vector.broadcast %24 : vector<1x128xf32> to vector<128x128xf32>
    %26 = arith.mulf %21, %25 : vector<128x128xf32>
    %27 = vector.broadcast %3 : vector<1x128xf32> to vector<128x128xf32>
    %28 = arith.mulf %26, %27 : vector<128x128xf32>
    %29 = vector.broadcast %4 : vector<1x128xf32> to vector<128x128xf32>
    %30 = arith.addf %28, %29 : vector<128x128xf32>
    %cst_12 = arith.constant 0.000000e+00 : f32
    %31 = vector.broadcast %cst_12 : f32 to vector<128x128xf32>
    %32 = arith.maximumf %30, %31 : vector<128x128xf32>
    %c0_13 = arith.constant 0 : index
    %c0_14 = arith.constant 0 : index
    %33 = vector.load %arg3[%c0_13, %c0_14] : memref<128x256xbf16, #tpu.memory_space<vmem>>, vector<128x256xbf16>
    %c0_15 = arith.constant 0 : index
    %c256 = arith.constant 256 : index
    %34 = vector.load %arg7[%c0_15, %c256] : memref<1x3968xf32, #tpu.memory_space<vmem>>, vector<1x256xf32>
    %c0_16 = arith.constant 0 : index
    %c512 = arith.constant 512 : index
    %35 = vector.load %arg7[%c0_16, %c512] : memref<1x3968xf32, #tpu.memory_space<vmem>>, vector<1x256xf32>
    %36 = arith.truncf %32 : vector<128x128xf32> to vector<128x128xbf16>
    %cst_17 = arith.constant dense<0.000000e+00> : vector<128x256xf32>
    %37 = tpu.matmul %36, %33, %cst_17 {dimension_numbers = #tpu.dot_dimension_numbers<[1], [0], [0], [1], [0, 0, 1, 1], [], []>} : vector<128x128xbf16>, vector<128x256xbf16>, vector<128x256xf32> -> vector<128x256xf32>
    %cst_18 = arith.constant dense<0.000000e+00> : vector<256xf32>
    %38 = vector.multi_reduction <add>, %37, %cst_18 [0] : vector<128x256xf32> to vector<256xf32>
    %39 = vector.shape_cast %38 : vector<256xf32> to vector<1x256xf32>
    %cst_19 = arith.constant 1.280000e+02 : f32
    %40 = vector.broadcast %cst_19 : f32 to vector<1x256xf32>
    %41 = arith.divf %39, %40 : vector<1x256xf32>
    %42 = vector.broadcast %41 : vector<1x256xf32> to vector<128x256xf32>
    %43 = arith.subf %37, %42 : vector<128x256xf32>
    %44 = vector.broadcast %41 : vector<1x256xf32> to vector<128x256xf32>
    %45 = arith.subf %37, %44 : vector<128x256xf32>
    %46 = arith.mulf %43, %45 : vector<128x256xf32>
    %cst_20 = arith.constant dense<0.000000e+00> : vector<256xf32>
    %47 = vector.multi_reduction <add>, %46, %cst_20 [0] : vector<128x256xf32> to vector<256xf32>
    %48 = vector.shape_cast %47 : vector<256xf32> to vector<1x256xf32>
    %cst_21 = arith.constant 1.280000e+02 : f32
    %49 = vector.broadcast %cst_21 : f32 to vector<1x256xf32>
    %50 = arith.divf %48, %49 : vector<1x256xf32>
    %51 = vector.broadcast %41 : vector<1x256xf32> to vector<128x256xf32>
    %52 = arith.subf %37, %51 : vector<128x256xf32>
    %cst_22 = arith.constant 9.99999974E-6 : f32
    %53 = vector.broadcast %cst_22 : f32 to vector<1x256xf32>
    %54 = arith.addf %50, %53 : vector<1x256xf32>
    %55 = math.rsqrt %54 : vector<1x256xf32>
    %56 = vector.broadcast %55 : vector<1x256xf32> to vector<128x256xf32>
    %57 = arith.mulf %52, %56 : vector<128x256xf32>
    %58 = vector.broadcast %34 : vector<1x256xf32> to vector<128x256xf32>
    %59 = arith.mulf %57, %58 : vector<128x256xf32>
    %60 = vector.broadcast %35 : vector<1x256xf32> to vector<128x256xf32>
    %61 = arith.addf %59, %60 : vector<128x256xf32>
    %cst_23 = arith.constant 0.000000e+00 : f32
    %62 = vector.broadcast %cst_23 : f32 to vector<128x256xf32>
    %63 = arith.maximumf %61, %62 : vector<128x256xf32>
    %c0_24 = arith.constant 0 : index
    %c0_25 = arith.constant 0 : index
    %64 = vector.load %arg4[%c0_24, %c0_25] : memref<256x512xbf16, #tpu.memory_space<vmem>>, vector<256x512xbf16>
    %c0_26 = arith.constant 0 : index
    %c768 = arith.constant 768 : index
    %65 = vector.load %arg7[%c0_26, %c768] : memref<1x3968xf32, #tpu.memory_space<vmem>>, vector<1x512xf32>
    %c0_27 = arith.constant 0 : index
    %c1280 = arith.constant 1280 : index
    %66 = vector.load %arg7[%c0_27, %c1280] : memref<1x3968xf32, #tpu.memory_space<vmem>>, vector<1x512xf32>
    %67 = arith.truncf %63 : vector<128x256xf32> to vector<128x256xbf16>
    %cst_28 = arith.constant dense<0.000000e+00> : vector<128x512xf32>
    %68 = tpu.matmul %67, %64, %cst_28 {dimension_numbers = #tpu.dot_dimension_numbers<[1], [0], [0], [1], [0, 0, 1, 1], [], []>} : vector<128x256xbf16>, vector<256x512xbf16>, vector<128x512xf32> -> vector<128x512xf32>
    %cst_29 = arith.constant dense<0.000000e+00> : vector<512xf32>
    %69 = vector.multi_reduction <add>, %68, %cst_29 [0] : vector<128x512xf32> to vector<512xf32>
    %70 = vector.shape_cast %69 : vector<512xf32> to vector<1x512xf32>
    %cst_30 = arith.constant 1.280000e+02 : f32
    %71 = vector.broadcast %cst_30 : f32 to vector<1x512xf32>
    %72 = arith.divf %70, %71 : vector<1x512xf32>
    %73 = vector.broadcast %72 : vector<1x512xf32> to vector<128x512xf32>
    %74 = arith.subf %68, %73 : vector<128x512xf32>
    %75 = vector.broadcast %72 : vector<1x512xf32> to vector<128x512xf32>
    %76 = arith.subf %68, %75 : vector<128x512xf32>
    %77 = arith.mulf %74, %76 : vector<128x512xf32>
    %cst_31 = arith.constant dense<0.000000e+00> : vector<512xf32>
    %78 = vector.multi_reduction <add>, %77, %cst_31 [0] : vector<128x512xf32> to vector<512xf32>
    %79 = vector.shape_cast %78 : vector<512xf32> to vector<1x512xf32>
    %cst_32 = arith.constant 1.280000e+02 : f32
    %80 = vector.broadcast %cst_32 : f32 to vector<1x512xf32>
    %81 = arith.divf %79, %80 : vector<1x512xf32>
    %82 = vector.broadcast %72 : vector<1x512xf32> to vector<128x512xf32>
    %83 = arith.subf %68, %82 : vector<128x512xf32>
    %cst_33 = arith.constant 9.99999974E-6 : f32
    %84 = vector.broadcast %cst_33 : f32 to vector<1x512xf32>
    %85 = arith.addf %81, %84 : vector<1x512xf32>
    %86 = math.rsqrt %85 : vector<1x512xf32>
    %87 = vector.broadcast %86 : vector<1x512xf32> to vector<128x512xf32>
    %88 = arith.mulf %83, %87 : vector<128x512xf32>
    %89 = vector.broadcast %65 : vector<1x512xf32> to vector<128x512xf32>
    %90 = arith.mulf %88, %89 : vector<128x512xf32>
    %91 = vector.broadcast %66 : vector<1x512xf32> to vector<128x512xf32>
    %92 = arith.addf %90, %91 : vector<128x512xf32>
    %cst_34 = arith.constant 0.000000e+00 : f32
    %93 = vector.broadcast %cst_34 : f32 to vector<128x512xf32>
    %94 = arith.maximumf %92, %93 : vector<128x512xf32>
    %c0_35 = arith.constant 0 : index
    %c0_36 = arith.constant 0 : index
    %95 = vector.load %arg5[%c0_35, %c0_36] : memref<512x1024xbf16, #tpu.memory_space<vmem>>, vector<512x1024xbf16>
    %c0_37 = arith.constant 0 : index
    %c1792 = arith.constant 1792 : index
    %96 = vector.load %arg7[%c0_37, %c1792] : memref<1x3968xf32, #tpu.memory_space<vmem>>, vector<1x1024xf32>
    %c0_38 = arith.constant 0 : index
    %c2816 = arith.constant 2816 : index
    %97 = vector.load %arg7[%c0_38, %c2816] : memref<1x3968xf32, #tpu.memory_space<vmem>>, vector<1x1024xf32>
    %98 = arith.truncf %94 : vector<128x512xf32> to vector<128x512xbf16>
    %cst_39 = arith.constant dense<0.000000e+00> : vector<128x1024xf32>
    %99 = tpu.matmul %98, %95, %cst_39 {dimension_numbers = #tpu.dot_dimension_numbers<[1], [0], [0], [1], [0, 0, 1, 1], [], []>} : vector<128x512xbf16>, vector<512x1024xbf16>, vector<128x1024xf32> -> vector<128x1024xf32>
    %cst_40 = arith.constant dense<0.000000e+00> : vector<1024xf32>
    %100 = vector.multi_reduction <add>, %99, %cst_40 [0] : vector<128x1024xf32> to vector<1024xf32>
    %101 = vector.shape_cast %100 : vector<1024xf32> to vector<1x1024xf32>
    %cst_41 = arith.constant 1.280000e+02 : f32
    %102 = vector.broadcast %cst_41 : f32 to vector<1x1024xf32>
    %103 = arith.divf %101, %102 : vector<1x1024xf32>
    %104 = vector.broadcast %103 : vector<1x1024xf32> to vector<128x1024xf32>
    %105 = arith.subf %99, %104 : vector<128x1024xf32>
    %106 = vector.broadcast %103 : vector<1x1024xf32> to vector<128x1024xf32>
    %107 = arith.subf %99, %106 : vector<128x1024xf32>
    %108 = arith.mulf %105, %107 : vector<128x1024xf32>
    %cst_42 = arith.constant dense<0.000000e+00> : vector<1024xf32>
    %109 = vector.multi_reduction <add>, %108, %cst_42 [0] : vector<128x1024xf32> to vector<1024xf32>
    %110 = vector.shape_cast %109 : vector<1024xf32> to vector<1x1024xf32>
    %cst_43 = arith.constant 1.280000e+02 : f32
    %111 = vector.broadcast %cst_43 : f32 to vector<1x1024xf32>
    %112 = arith.divf %110, %111 : vector<1x1024xf32>
    %113 = vector.broadcast %103 : vector<1x1024xf32> to vector<128x1024xf32>
    %114 = arith.subf %99, %113 : vector<128x1024xf32>
    %cst_44 = arith.constant 9.99999974E-6 : f32
    %115 = vector.broadcast %cst_44 : f32 to vector<1x1024xf32>
    %116 = arith.addf %112, %115 : vector<1x1024xf32>
    %117 = math.rsqrt %116 : vector<1x1024xf32>
    %118 = vector.broadcast %117 : vector<1x1024xf32> to vector<128x1024xf32>
    %119 = arith.mulf %114, %118 : vector<128x1024xf32>
    %120 = vector.broadcast %96 : vector<1x1024xf32> to vector<128x1024xf32>
    %121 = arith.mulf %119, %120 : vector<128x1024xf32>
    %122 = vector.broadcast %97 : vector<1x1024xf32> to vector<128x1024xf32>
    %123 = arith.addf %121, %122 : vector<128x1024xf32>
    %cst_45 = arith.constant 0.000000e+00 : f32
    %124 = vector.broadcast %cst_45 : f32 to vector<128x1024xf32>
    %125 = arith.maximumf %123, %124 : vector<128x1024xf32>
    %126 = arith.truncf %125 : vector<128x1024xf32> to vector<128x1024xbf16>
    %c0_46 = arith.constant 0 : index
    %c0_47 = arith.constant 0 : index
    %127 = vector.load %arg6[%c0_46, %c0_47] : memref<1024x128xbf16, #tpu.memory_space<vmem>>, vector<1024x128xbf16>
    %cst_48 = arith.constant dense<0.000000e+00> : vector<128x128xf32>
    %128 = tpu.matmul %126, %127, %cst_48 {dimension_numbers = #tpu.dot_dimension_numbers<[1], [0], [0], [1], [0, 0, 1, 1], [], []>} : vector<128x1024xbf16>, vector<1024x128xbf16>, vector<128x128xf32> -> vector<128x128xf32>
    %c0_49 = arith.constant 0 : index
    %c3840 = arith.constant 3840 : index
    %129 = vector.load %arg7[%c0_49, %c3840] : memref<1x3968xf32, #tpu.memory_space<vmem>>, vector<1x128xf32>
    %130 = vector.broadcast %129 : vector<1x128xf32> to vector<128x128xf32>
    %131 = arith.addf %128, %130 : vector<128x128xf32>
    %cst_50 = arith.constant 0.000000e+00 : f32
    %132 = vector.broadcast %cst_50 : f32 to vector<128x128xf32>
    %133 = arith.subf %132, %131 : vector<128x128xf32>
    %134 = math.exp %133 : vector<128x128xf32>
    %cst_51 = arith.constant 1.000000e+00 : f32
    %135 = vector.broadcast %cst_51 : f32 to vector<128x128xf32>
    %136 = arith.addf %135, %134 : vector<128x128xf32>
    %cst_52 = arith.constant 1.000000e+00 : f32
    %137 = vector.broadcast %cst_52 : f32 to vector<128x128xf32>
    %138 = arith.divf %137, %136 : vector<128x128xf32>
    %c0_53 = arith.constant 0 : index
    %c0_54 = arith.constant 0 : index
    %c0_55 = arith.constant 0 : index
    %139 = vector.load %arg8[%c0_53, %c0_54, %c0_55] : memref<1x128x128xf32, #tpu.memory_space<vmem>>, vector<1x128x128xf32>
    %140 = vector.shape_cast %139 : vector<1x128x128xf32> to vector<128x128xf32>
    %141 = vector.shape_cast %138 : vector<128x128xf32> to vector<1x128x128xf32>
    tpu.vector_store %arg8[%c0_53, %c0_54, %c0_55], %141 {strides = array<i32>} : memref<1x128x128xf32, #tpu.memory_space<vmem>>, vector<1x128x128xf32>,
    return
  }
  func.func @transform_0(%arg0: i32) -> (i32, i32, i32) {
    %c0_i32 = arith.constant 0 : i32
    %c0_i32_0 = arith.constant 0 : i32
    %c0_i32_1 = arith.constant 0 : i32
    return %arg0, %c0_i32, %c0_i32_0 : i32, i32, i32
  }
  func.func @transform_1(%arg0: i32) -> (i32, i32) {
    %c0_i32 = arith.constant 0 : i32
    %c0_i32_0 = arith.constant 0 : i32
    %c0_i32_1 = arith.constant 0 : i32
    return %c0_i32, %c0_i32_0 : i32, i32
  }
  func.func @transform_2(%arg0: i32) -> (i32, i32) {
    %c0_i32 = arith.constant 0 : i32
    %c0_i32_0 = arith.constant 0 : i32
    %c0_i32_1 = arith.constant 0 : i32
    return %c0_i32, %c0_i32_0 : i32, i32
  }
  func.func @transform_3(%arg0: i32) -> (i32, i32) {
    %c0_i32 = arith.constant 0 : i32
    %c0_i32_0 = arith.constant 0 : i32
    %c0_i32_1 = arith.constant 0 : i32
    return %c0_i32, %c0_i32_0 : i32, i32
  }
  func.func @transform_4(%arg0: i32) -> (i32, i32) {
    %c0_i32 = arith.constant 0 : i32
    %c0_i32_0 = arith.constant 0 : i32
    %c0_i32_1 = arith.constant 0 : i32
    return %c0_i32, %c0_i32_0 : i32, i32
  }
  func.func @transform_5(%arg0: i32) -> (i32, i32) {
    %c0_i32 = arith.constant 0 : i32
    %c0_i32_0 = arith.constant 0 : i32
    %c0_i32_1 = arith.constant 0 : i32
    return %c0_i32, %c0_i32_0 : i32, i32
  }
  func.func @transform_6(%arg0: i32) -> (i32, i32) {
    %c0_i32 = arith.constant 0 : i32
    %c0_i32_0 = arith.constant 0 : i32
    %c0_i32_1 = arith.constant 0 : i32
    return %c0_i32, %c0_i32_0 : i32, i32
  }
  func.func @transform_7(%arg0: i32) -> (i32, i32, i32) {
    %c0_i32 = arith.constant 0 : i32
    %c0_i32_0 = arith.constant 0 : i32
    %c0_i32_1 = arith.constant 0 : i32
    return %arg0, %c0_i32, %c0_i32_0 : i32, i32, i32
  }
}

</mosaic_0001>

<bundles_post_ra>
// kernel: tpu_custom_call.1
= control target key start
LH: loop header
LB: loop body
LE: loop exit
PB: predicated region body
PF: predicated region fallthrough
CT: control target
= control target key end

     0   :  { %12 = vsyncpa [#allocation3], 0  ;;  %s13550_s0 = inlined_call_operand.vmem [shape: f32[2,128,32], index: 0, kind: input, shape index: {}]   ;;  %s13551_s1 = inlined_call_operand.vmem [shape: bf16[32,128], index: 1, kind: input, shape index: {}]   ;;  %s13552_s2 = inlined_call_operand.vmem [shape: bf16[128,256], index: 2, kind: input, shape index: {}]   ;;  %s13553_s3 = inlined_call_operand.hbm [shape: bf16[256,512], index: 3, kind: input, shape index: {}]   ;;  %s13554_s4 = inlined_call_operand.hbm [shape: bf16[512,1024], index: 4, kind: input, shape index: {}]   ;;  %s13555_s5 = inlined_call_operand.hbm [shape: bf16[1024,128], index: 5, kind: input, shape index: {}]   ;;  %s13556_s6 = inlined_call_operand.vmem [shape: f32[1,3968], index: 6, kind: input, shape index: {}]   ;;  %s13557_s7 = inlined_call_operand.hbm [shape: f32[2,128,128], index: 7, kind: output, shape index: {}]  }
   0x1   :  { %13 = vsyncpa [#allocation6], 0 }
   0x2   :  { %14 = vsyncpa [#allocation4], 0 }
   0x3   :  { %16 = vsyncpa [#allocation4 + $0x1], 0  ;;  %s8584_s24 = smov 0   ;;  %s8586_s25 = smov 0  }
   0x4   :  { %s8588_s26 = smov 0   ;;  %s8590_s27 = smov 0  }
   0x5 LB: > { %s8605_s28 = sadd.s32 4294967295, %s8529_s27   ;;  %s7286_s29 = sadd.s32 4294967294, %s8529_s27   ;;  %s8529_s27 = sphi %s8590_s27, %s14539_s27   ;;  %s8525_s26 = sphi %s8588_s26, %s14538_s26   ;;  %s8521_s25 = sphi %s8586_s25, %s14537_s25   ;;  %s8517_s24 = sphi %s8584_s24, %s14536_s24  }
   0x6   : > { %s8609_s30 = sadd.s32 1, %s8529_s27   ;;  %s181_s8 = sadd.s32 1, %s8525_s26 }
   0x7   : > { %s178_s9 = ssub.s32 %s8529_s27, %s8609_s30  ;;  %p191_p0 = scmp.ne.s32.totalorder %s8525_s26, %s8521_s25 }
   0x8   : > { %p179_p1 = scmp.eq.s32.totalorder %s178_s9, 0  ;;  %p192_p2 = scmp.eq.s32.totalorder %s8605_s28, 1 }
   0x9   : > { %p197_p3 = scmp.ne.s32.totalorder %s8521_s25, %s8517_s24  ;;  %p198_p4 = scmp.eq.s32.totalorder %s7286_s29, 1 }
   0xa   : > { %s8620_s10 = scalar_select %p179_p1, %s8525_s26, %s181_s8  }
   0xb   : > { %p8622_p5 = por %p192_p2, %p191_p0  ;;  %p8626_p6 = por %p198_p4, %p197_p3 }
   0xc   : > { %p7287_p7 = scmp.ge.s32.totalorder %s8529_s27, 1  ;;  %p205_p8 = scmp.lt.s32.totalorder %s8529_s27, 3 }
   0xd   : > { %s13860_s12 = scalar_select %p8626_p6, 1, 0 }
   0xe   : > { %p13558_p9 = scmp.eq.s32.totalorder %s8605_s28, 0  ;;  %p8633_p10 = pnand %p7287_p7, %p205_p8 }
   0xf   : > { %s8531_s14 = smov [#allocation5]   ;;  %s8532_s17 = smov [#allocation2]  }
  0x10   : > { %s236_s15 = sshll.u32 %s8531_s14, 4  ;;  %p8035_p11 = pneg %p8633_p10  ;;  %s237_s15 = int_to_ptr.vmem [resolvable:$true] %s236_s15 }
  0x11   : > { %s223_s18 = sshll.u32 %s8532_s17, 4  ;;  %s8394_s19 = scalar_lea.vmem %s237_s15, 32768  ;;  %s224_s18 = int_to_ptr.vmem [resolvable:$true] %s223_s18 }
  0x12   : > { %p8641_p12 = pnand %p13558_p9, %p8035_p11  ;;  %p8395_p0 = scmp.ne.s32.totalorder %s237_s15, %s8394_s19 }
  0x13   : > { %p8402_p3 = scmp.lt.s32.totalorder %s237_s15, %s237_s15  ;;  %p8403_p4 = scmp.lt.s32.totalorder %s8394_s19, %s8394_s19 }
  0x14   : > { %p8385_p13 = pneg %p8641_p12 }
  0x15   : > { %p8404_p7 = por %p8403_p4, %p8402_p3 }
  0x16   : > { %p8397_p1 = pnand %p8395_p0, %p8385_p13 }
  0x18   : > { %p8398_p2 = pneg %p8397_p1 }
  0x1a   : > { %p8405_p8 = pnand %p8404_p7, %p8398_p2 }
  0x1c   : > { %8408 = shalt.err (!%p8405_p8)
}
  0x1d   : > { %s8533_s20 = smov 512   ;;  %s8534_s21 = smov 32  }
  0x1e   : > { %8041 = dma.hbm_to_vmem [thread:$0]  (!%p8641_p12), %s13554_s4, 32768, %s237_s15, [#allocation6], %s8533_s20, %s8533_s20, %s8534_s21  }
  0x1f   : > { %s8420_s29 = scalar_lea.vmem %s224_s18, 8192  ;;  %p8428_p9 = scmp.lt.s32.totalorder %s224_s18, %s224_s18 }
  0x20   : > { %p8421_p11 = scmp.ne.s32.totalorder %s224_s18, %s8420_s29  ;;  %p8429_p6 = scmp.lt.s32.totalorder %s8420_s29, %s8420_s29 }
  0x22   : > { %p8423_p0 = pnand %p8421_p11, %p8385_p13  ;;  %p8430_p3 = por %p8429_p6, %p8428_p9 }
  0x24   : > { %p8424_p1 = pneg %p8423_p0 }
  0x26   : > { %p8431_p2 = pnand %p8430_p3, %p8424_p1 }
  0x28   : > { %8434 = shalt.err (!%p8431_p2)
}
  0x29   : > { %s8535_s8 = smov 256   ;;  %s8536_s9 = smov 16  }
  0x2a   : > { %8038 = dma.hbm_to_vmem [thread:$0]  (!%p8641_p12), %s13553_s3, 8192, %s224_s18, [#allocation3], %s8535_s8, %s8535_s8, %s8536_s9  }
  0x2b   : > { %s8537_s15 = smov [#allocation7]  }
  0x2c   : > { %s249_s19 = sshll.u32 %s8537_s15, 4  ;;  %s250_s19 = int_to_ptr.vmem [resolvable:$true] %s249_s19 }
  0x2d   : > { %s8446_s20 = scalar_lea.vmem %s250_s19, 8192  ;;  %p8454_p9 = scmp.lt.s32.totalorder %s250_s19, %s250_s19 }
  0x2e   : > { %p8447_p4 = scmp.ne.s32.totalorder %s250_s19, %s8446_s20  ;;  %p8455_p8 = scmp.lt.s32.totalorder %s8446_s20, %s8446_s20 }
  0x30   : > { %p8449_p7 = pnand %p8447_p4, %p8385_p13  ;;  %p8456_p11 = por %p8455_p8, %p8454_p9 }
  0x32   : > { %p8450_p6 = pneg %p8449_p7 }
  0x34   : > { %p8457_p0 = pnand %p8456_p11, %p8450_p6 }
  0x36   : > { %8460 = shalt.err (!%p8457_p0)
}
  0x37   : > { %s8538_s21 = smov 64   ;;  %s8539_s22 = smov 4  }
  0x38   : > { %8044 = dma.hbm_to_vmem [thread:$0]  (!%p8641_p12), %s13555_s5, 8192, %s250_s19, [#allocation6], %s8538_s21, %s8538_s21, %s8539_s22  }
  0x39   : > { %276 = sbr.rel (%p8633_p10) target bundleno = 2037 (0x7f5), region = 48 }
  0x3e   : > { %p13863_p1 = scmp.eq.s32.totalorder %s8605_s28, 0 }
  0x40   : > { %8504 = dma.done.wait (%p13863_p1), [#allocation3], 8192   ;;  %p13864_p13 = pmov %p13863_p1 }
  0x41   : > { %p13865_p3 = pmov %p13863_p1 }
  0x42   : > { %8506 = vsyncadd (%p13864_p13), [#allocation3], 4294959104 }
  0x43   : > { %8508 = dma.done.wait (%p13865_p3), [#allocation6], 40960   ;;  %p13866_p2 = pmov %p13863_p1 }
  0x44   : > { %p316_p4 = scmp.lt.s32.totalorder %s8605_s28, 1  ;;  %v8100_v0 = vld [vmem:[%s13551_s1 + $0x8] sm:$0xff]   ;;  %v8101_v1 = vld [vmem:[%s13551_s1] sm:$0xff]   ;;  %vm364_vm0 = vcmask 261120   ;;  %v8102_v26 = vld [vmem:[%s13552_s2 + $0x74] ss:$8 sps:$4 sm:$0xff]  }
  0x45   : > { %8510 = vsyncadd (%p13866_p2), [#allocation6], 4294926336  ;;  %7985 = vmatprep.subr.bf16.mxu0 %v8100_v0  ;;  %v8104_v27 = vld [vmem:[%s13552_s2 + $0x70] ss:$8 sps:$4 sm:$0xff]   ;;  %747 = vmatprep.subr.bf16.mxu1 %v8102_v26  ;;  %v8105_v28 = vld [vmem:[%s13552_s2 + $0x64] ss:$8 sps:$4 sm:$0xff]  }
  0x46   : > { %s317_s16 = scalar_select %p316_p4, %s8605_s28, 1  ;;  %7986 = vmatpush3.bf16.msra.mxu0 %v8100_v0  ;;  %748 = vmatpush1.bf16.msra.mxu1 %v8104_v27  ;;  %v8107_v29 = vld [vmem:[%s13552_s2 + $0x60] ss:$8 sps:$4 sm:$0xff]   ;;  %v8108_v30 = vld [vmem:[%s13552_s2 + $0x54] ss:$8 sps:$4 sm:$0xff]   ;;  %v8540_v42 = vmov 0  }
  0x47   : > { %7987 = vmatprep.subr.bf16.mxu0 %v8101_v1  ;;  %749 = vmatprep.subr.bf16.mxu1 %v8105_v28  ;;  %v8110_v31 = vld [vmem:[%s13552_s2 + $0x50] ss:$8 sps:$4 sm:$0xff]   ;;  %v8111_v32 = vld [vmem:[%s13552_s2 + $0x44] ss:$8 sps:$4 sm:$0xff]   ;;  %v8113_v33 = vld [vmem:[%s13552_s2 + $0x40] ss:$8 sps:$4 sm:$0xff]  }
  0x48   : > { %s7717_s29 = sshll.u32 %s317_s16, 7  ;;  %v8114_v34 = vld [vmem:[%s13552_s2 + $0x34] ss:$8 sps:$4 sm:$0xff]   ;;  %v8116_v35 = vld [vmem:[%s13552_s2 + $0x30] ss:$8 sps:$4 sm:$0xff]   ;;  %779 = vmatprep.mubr.bf16.mxu1 %v8540_v42  ;;  %s313_s20 = sand.u32 1, %s8521_s25  }
  0x49   : > { %s8686_s9 = scalar_lea.vmem %s13550_s0, %s7717_s29  ;;  %v8117_v36 = vld [vmem:[%s13552_s2 + $0x24] ss:$8 sps:$4 sm:$0xff]   ;;  %v8119_v37 = vld [vmem:[%s13552_s2 + $0x20] ss:$8 sps:$4 sm:$0xff]   ;;  %v8120_v38 = vld [vmem:[%s13552_s2 + $0x14] ss:$8 sps:$4 sm:$0xff]  }
  0x4a   : > { %v322_v2 = vld [vmem:[%s8686_s9] sm:$0xff]  ;;  %v323_v3 = vld [vmem:[%s8686_s9 + $0x8] sm:$0xff]  ;;  %v324_v5 = vld [vmem:[%s8686_s9 + $0x10] sm:$0xff]  ;;  %7988 = vmatpush3.bf16.msra.mxu0 %v8101_v1  ;;  %750 = vmatpush1.bf16.msra.mxu1 %v8107_v29  ;;  %s7296_s21 = sshll.u32 %s313_s20, 7  ;;  %s7718_s23 = sshll.u32 %s8605_s28, 11 }
  0x4b   : > { %v344_v4 = vpack.c.bf16 %v323_v3, %v322_v2  ;;  %v325_v6 = vld [vmem:[%s8686_s9 + $0x18] sm:$0xff]  ;;  %v326_v7 = vld [vmem:[%s8686_s9 + $0x20] sm:$0xff]  ;;  %v327_v8 = vld [vmem:[%s8686_s9 + $0x28] sm:$0xff]  ;;  %751 = vmatprep.subr.bf16.mxu1 %v8108_v30  ;;  %s13464_s22 = scalar_lea.vmem [#allocation8], %s7296_s21  ;;  %s13503_s8 = scalar_lea.hbm %s13557_s7, %s7718_s23 }
  0x4c   : > { %v345_v9 = vpack.c.bf16 %v325_v6, %v324_v5  ;;  %v346_v10 = vpack.c.bf16 %v327_v8, %v326_v7  ;;  %v328_v11 = vld [vmem:[%s8686_s9 + $0x30] sm:$0xff]  ;;  %v329_v12 = vld [vmem:[%s8686_s9 + $0x38] sm:$0xff]  ;;  %v330_v13 = vld [vmem:[%s8686_s9 + $0x40] sm:$0xff]  ;;  %s7193_s18 = sshll.u32 %s13464_s22, 4  ;;  %s13510_s13 = scalar_lea.sflag [#allocation4], %s313_s20  ;;  %s13505_s18 = int_to_ptr.vmem [resolvable:$true] %s7193_s18 }
  0x4d   : > { %7989 = vmatprep.mubr.msk.bf16.mxu0 %vm364_vm0, %v344_v4  ;;  %v331_v14 = vld [vmem:[%s8686_s9 + $0x48] sm:$0xff]  ;;  %v347_v15 = vpack.c.bf16 %v329_v12, %v328_v11  ;;  %v332_v17 = vld [vmem:[%s8686_s9 + $0x50] sm:$0xff]  ;;  %v333_v18 = vld [vmem:[%s8686_s9 + $0x58] sm:$0xff]  ;;  %s8541_s28 = smov [#allocation8]  }
  0x4e   : > { %7990 = vmatmul.mubr.msk.bf16.vlgmr.msra.gmra.mxu0 %vm364_vm0, %v345_v9  ;;  %v348_v16 = vpack.c.bf16 %v331_v14, %v330_v13  ;;  %v334_v19 = vld [vmem:[%s8686_s9 + $0x60] sm:$0xff]  ;;  %v335_v20 = vld [vmem:[%s8686_s9 + $0x68] sm:$0xff]  ;;  %v349_v21 = vpack.c.bf16 %v333_v18, %v332_v17  ;;  %v336_v23 = vld [vmem:[%s8686_s9 + $0x70] sm:$0xff]  ;;  %752 = vmatpush1.bf16.msra.mxu1 %v8110_v31  ;;  %s8465_s14 = sshll.u32 %s8541_s28, 4  ;;  %s8466_s14 = int_to_ptr.vmem [resolvable:$false] %s8465_s14 }
  0x4f   : > { %7993 = vmatprep.mubr.msk.bf16.mxu0 %vm364_vm0, %v346_v10  ;;  %v350_v22 = vpack.c.bf16 %v335_v20, %v334_v19  ;;  %v337_v24 = vld [vmem:[%s8686_s9 + $0x78] sm:$0xff]  ;;  %753 = vmatprep.subr.bf16.mxu1 %v8111_v32  ;;  %v8123_v40 = vld [vmem:[%s13552_s2 + $0x4] ss:$8 sps:$4 sm:$0xff]   ;;  %v8125_v41 = vld [vmem:[%s13552_s2] ss:$8 sps:$4 sm:$0xff]   ;;  %s8461_s9 = scalar_lea.vmem %s13505_s18, 2048  ;;  %p8468_p6 = scmp.lt.s32.totalorder %s13505_s18, %s8466_s14 }
  0x50   : > { %v351_v25 = vpack.c.bf16 %v337_v24, %v336_v23  ;;  %v8122_v39 = vld [vmem:[%s13552_s2 + $0x10] ss:$8 sps:$4 sm:$0xff]   ;;  %p8462_p10 = scmp.ne.s32.totalorder %s13505_s18, %s8461_s9  ;;  %s8467_s17 = scalar_lea.vmem %s8466_s14, 4096 }
  0x51   : > { %p8469_p9 = scmp.lt.s32.totalorder %s8467_s17, %s8461_s9 }
  0x52   : > { %754 = vmatpush1.bf16.msra.mxu1 %v8113_v33  ;;  %p8463_p12 = pnand %p8462_p10, %p8622_p5 }
  0x53   : > { %755 = vmatprep.subr.bf16.mxu1 %v8114_v34  ;;  %p8470_p8 = por %p8469_p9, %p8468_p6 }
  0x54   : > { %p8464_p7 = pneg %p8463_p12 }
  0x56   : > { %7994 = vmatmul.mubr.msk.bf16.gmra.mxu0 %vm364_vm0, %v347_v15  ;;  %756 = vmatpush1.bf16.msra.mxu1 %v8116_v35  ;;  %p8471_p11 = pnand %p8470_p8, %p8464_p7 }
  0x57   : > { %7997 = vmatprep.mubr.msk.bf16.mxu0 %vm364_vm0, %v348_v16  ;;  %757 = vmatprep.subr.bf16.mxu1 %v8117_v36 }
  0x5a   : > { %758 = vmatpush1.bf16.msra.mxu1 %v8119_v37 }
  0x5b   : > { %759 = vmatprep.subr.bf16.mxu1 %v8120_v38 }
  0x5e   : > { %7998 = vmatmul.mubr.msk.bf16.gmra.mxu0 %vm364_vm0, %v349_v21  ;;  %760 = vmatpush1.bf16.msra.mxu1 %v8122_v39 }
  0x5f   : > { %8001 = vmatprep.mubr.msk.bf16.mxu0 %vm364_vm0, %v350_v22  ;;  %761 = vmatprep.subr.bf16.mxu1 %v8123_v40 }
  0x62   : > { %762 = vmatpush1.bf16.msra.mxu1 %v8125_v41 }
  0x66   : > { %8002 = vmatmul.mubr.msk.bf16.gmra.mxu0 %vm364_vm0, %v351_v25 }
 0x10e   : > { %v7991_v43 = vpop.f32.mrf.mxu0 }
 0x110   : > { %v423_v44 = vpop.f32.mrf.mxu0 }
 0x112   : > { %v7992_v45 = vpop.f32.mrf.mxu0 }
 0x114   : > { %v426_v46 = vpop.f32.mrf.mxu0 }
 0x115   : > { %v486_v47 = vadd.f32 %v426_v46, %v423_v44 }
 0x116   : > { %v7995_v48 = vpop.f32.mrf.mxu0 }
 0x117   : > { %v487_v49 = vadd.f32 %v7991_v43, %v486_v47 }
 0x118   : > { %v439_v50 = vpop.f32.mrf.mxu0 }
 0x119   : > { %v488_v51 = vadd.f32 %v7992_v45, %v487_v49 }
 0x11a   : > { %v7996_v52 = vpop.f32.mrf.mxu0 }
 0x11b   : > { %v489_v53 = vadd.f32 %v488_v51, %v439_v50 }
 0x11c   : > { %v442_v54 = vpop.f32.mrf.mxu0 }
 0x11d   : > { %v490_v55 = vadd.f32 %v489_v53, %v442_v54 }
 0x11e   : > { %v7999_v56 = vpop.f32.mrf.mxu0 }
 0x11f   : > { %v491_v57 = vadd.f32 %v7995_v48, %v490_v55 }
 0x120   : > { %v455_v58 = vpop.f32.mrf.mxu0 }
 0x121   : > { %v492_v59 = vadd.f32 %v7996_v52, %v491_v57 }
 0x122   : > { %v8000_v60 = vpop.f32.mrf.mxu0 }
 0x123   : > { %v493_v61 = vadd.f32 %v492_v59, %v455_v58 }
 0x124   : > { %v458_v62 = vpop.f32.mrf.mxu0 }
 0x125   : > { %v494_v63 = vadd.f32 %v493_v61, %v458_v62 }
 0x126   : > { %v8003_v0 = vpop.f32.mrf.mxu0 }
 0x127   : > { %v495_v1 = vadd.f32 %v7999_v56, %v494_v63 }
 0x128   : > { %v471_v2 = vpop.f32.mrf.mxu0 }
 0x129   : > { %v496_v3 = vadd.f32 %v8000_v60, %v495_v1 }
 0x12a   : > { %v8004_v4 = vpop.f32.mrf.mxu0 }
 0x12b   : > { %v497_v5 = vadd.f32 %v496_v3, %v471_v2 }
 0x12c   : > { %v474_v6 = vpop.f32.mrf.mxu0 }
 0x12d   : > { %v498_v7 = vadd.f32 %v497_v5, %v474_v6 }
 0x12f   : > { %v499_v8 = vadd.f32 %v8003_v0, %v498_v7 }
 0x131   : > { %v500_v9 = vadd.f32 %v8004_v4, %v499_v8 }
 0x133   : > { %v501_v10 = vrot.slane %v500_v9, 4 }
 0x135   : > { %v502_v11 = vadd.f32 %v501_v10, %v500_v9  ;;  %v8812_v10 = vld [vmem:[%s13556_s6] ss:$0 sm:$0xff] }
 0x137   : > { %v503_v12 = vrot.slane %v502_v11, 2 }
 0x139   : > { %v504_v13 = vadd.f32 %v503_v12, %v502_v11 }
 0x13b   : > { %v505_v14 = vrot.slane %v504_v13, 1 }
 0x13d   : > { %v506_v15 = vadd.f32 %v505_v14, %v504_v13  ;;  %v8820_v14 = vld [vmem:[%s13556_s6 + $0x1] ss:$0 sm:$0xff] }
 0x13f   : > { %v508_v16 = vmul.f32 0.0078125, %v506_v15 }
 0x141   : > { %v509_v17 = vsub.f32 %v423_v44, %v508_v16  ;;  %v510_v18 = vsub.f32 %v426_v46, %v508_v16  ;;  %v511_v19 = vsub.f32 %v7991_v43, %v508_v16  ;;  %v512_v22 = vsub.f32 %v7992_v45, %v508_v16 }
 0x142   : > { %v513_v23 = vsub.f32 %v439_v50, %v508_v16  ;;  %v514_v26 = vsub.f32 %v442_v54, %v508_v16  ;;  %v8767_v29 = vsub.f32 %v7995_v48, %v508_v16  ;;  %v8769_v32 = vsub.f32 %v7996_v52, %v508_v16 }
 0x143   : > { %v525_v20 = vmul.f32 %v509_v17, %v509_v17  ;;  %v526_v21 = vmul.f32 %v510_v18, %v510_v18  ;;  %v527_v24 = vmul.f32 %v511_v19, %v511_v19  ;;  %v528_v27 = vmul.f32 %v512_v22, %v512_v22 }
 0x144   : > { %v529_v30 = vmul.f32 %v513_v23, %v513_v23  ;;  %v530_v33 = vmul.f32 %v514_v26, %v514_v26  ;;  %v8771_v35 = vsub.f32 %v455_v58, %v508_v16  ;;  %v531_v36 = vmul.f32 %v8767_v29, %v8767_v29 }
 0x145   : > { %v541_v25 = vadd.f32 %v526_v21, %v525_v20  ;;  %v8775_v38 = vsub.f32 %v458_v62, %v508_v16  ;;  %v532_v39 = vmul.f32 %v8769_v32, %v8769_v32  ;;  %v8779_v41 = vsub.f32 %v7999_v56, %v508_v16 }
 0x146   : > { %v533_v43 = vmul.f32 %v8771_v35, %v8771_v35  ;;  %v8783_v45 = vsub.f32 %v8000_v60, %v508_v16  ;;  %v8787_v48 = vsub.f32 %v471_v2, %v508_v16  ;;  %v8791_v51 = vsub.f32 %v474_v6, %v508_v16 }
 0x147   : > { %v542_v28 = vadd.f32 %v541_v25, %v527_v24  ;;  %v534_v46 = vmul.f32 %v8775_v38, %v8775_v38  ;;  %v535_v49 = vmul.f32 %v8779_v41, %v8779_v41  ;;  %v8795_v54 = vsub.f32 %v8003_v0, %v508_v16 }
 0x148   : > { %v536_v52 = vmul.f32 %v8783_v45, %v8783_v45  ;;  %v537_v55 = vmul.f32 %v8787_v48, %v8787_v48  ;;  %v8799_v57 = vsub.f32 %v8004_v4, %v508_v16  ;;  %v538_v58 = vmul.f32 %v8791_v51, %v8791_v51 }
 0x149   : > { %v543_v31 = vadd.f32 %v542_v28, %v528_v27  ;;  %v539_v60 = vmul.f32 %v8795_v54, %v8795_v54 }
 0x14a   : > { %v540_v62 = vmul.f32 %v8799_v57, %v8799_v57 }
 0x14b   : > { %v544_v34 = vadd.f32 %v543_v31, %v529_v30 }
 0x14d   : > { %v545_v37 = vadd.f32 %v544_v34, %v530_v33 }
 0x14f   : > { %v546_v40 = vadd.f32 %v545_v37, %v531_v36 }
 0x151   : > { %v547_v44 = vadd.f32 %v546_v40, %v532_v39 }
 0x153   : > { %v548_v47 = vadd.f32 %v547_v44, %v533_v43 }
 0x155   : > { %v549_v50 = vadd.f32 %v548_v47, %v534_v46 }
 0x157   : > { %v550_v53 = vadd.f32 %v549_v50, %v535_v49 }
 0x159   : > { %v551_v56 = vadd.f32 %v550_v53, %v536_v52 }
 0x15b   : > { %v552_v59 = vadd.f32 %v551_v56, %v537_v55 }
 0x15d   : > { %v553_v61 = vadd.f32 %v552_v59, %v538_v58 }
 0x15f   : > { %v554_v63 = vadd.f32 %v553_v61, %v539_v60 }
 0x161   : > { %v555_v0 = vadd.f32 %v554_v63, %v540_v62 }
 0x163   : > { %v556_v1 = vrot.slane %v555_v0, 4 }
 0x165   : > { %v557_v2 = vadd.f32 %v556_v1, %v555_v0 }
 0x167   : > { %v558_v3 = vrot.slane %v557_v2, 2 }
 0x169   : > { %v559_v5 = vadd.f32 %v558_v3, %v557_v2 }
 0x16b   : > { %v560_v6 = vrot.slane %v559_v5, 1 }
 0x16d   : > { %v561_v4 = vadd.f32 %v560_v6, %v559_v5 }
 0x16f   : > { %v562_v7 = vmul.f32 0.0078125, %v561_v4 }
 0x171   : > { %v563_v8 = vadd.f32 1e-05, %v562_v7 }
 0x173   : > { %8286 = vrsqrt.f32 %v563_v8 }
 0x180   : > { %v8807_v9 = vpop.eup %8286 }
 0x181   : > { %v565_v11 = vmul.f32 %v8807_v9, %v509_v17  ;;  %v566_v12 = vmul.f32 %v8807_v9, %v510_v18  ;;  %v567_v13 = vmul.f32 %v8807_v9, %v511_v19  ;;  %v568_v15 = vmul.f32 %v8807_v9, %v512_v22 }
 0x182   : > { %v569_v16 = vmul.f32 %v8807_v9, %v513_v23  ;;  %v570_v20 = vmul.f32 %v8807_v9, %v514_v26  ;;  %v571_v46 = vmul.f32 %v8807_v9, %v8767_v29  ;;  %v572_v47 = vmul.f32 %v8807_v9, %v8769_v32 }
 0x183   : > { %v587_v21 = vmul.f32 %v8812_v10, %v565_v11  ;;  %v588_v24 = vmul.f32 %v8812_v10, %v566_v12  ;;  %v589_v27 = vmul.f32 %v8812_v10, %v567_v13  ;;  %v590_v22 = vmul.f32 %v8812_v10, %v568_v15 }
 0x184   : > { %v591_v17 = vmul.f32 %v8812_v10, %v569_v16  ;;  %v592_v18 = vmul.f32 %v8812_v10, %v570_v20  ;;  %v593_v49 = vmul.f32 %v8812_v10, %v571_v46  ;;  %v594_v50 = vmul.f32 %v8812_v10, %v572_v47  ;;  %v8153_v46 = vld [vmem:[#allocation2 + $0x60] ss:$16 sps:$4 sm:$0xff]   ;;  %v8158_v47 = vld [vmem:[#allocation2 + $0x4c] ss:$16 sps:$4 sm:$0xff]  }
 0x185   : > { %v609_v19 = vadd.f32 %v8820_v14, %v587_v21  ;;  %v610_v25 = vadd.f32 %v8820_v14, %v588_v24  ;;  %v611_v36 = vadd.f32 %v8820_v14, %v589_v27  ;;  %v612_v37 = vadd.f32 %v8820_v14, %v590_v22  ;;  %v8131_v27 = vld [vmem:[#allocation2 + $0xe4] ss:$16 sps:$4 sm:$0xff]   ;;  %v8126_v22 = vld [vmem:[#allocation2 + $0xe8] ss:$16 sps:$4 sm:$0xff]  }
 0x186   : > { %v613_v23 = vadd.f32 %v8820_v14, %v591_v17  ;;  %v614_v26 = vadd.f32 %v8820_v14, %v592_v18  ;;  %v615_v52 = vadd.f32 %v8820_v14, %v593_v49  ;;  %v616_v53 = vadd.f32 %v8820_v14, %v594_v50  ;;  %1568 = vmatprep.subr.bf16.mxu0 %v8131_v27  ;;  %v8161_v49 = vld [vmem:[#allocation2 + $0x44] ss:$16 sps:$4 sm:$0xff]   ;;  %v8156_v50 = vld [vmem:[#allocation2 + $0x48] ss:$16 sps:$4 sm:$0xff]  }
 0x187   : > { %v625_v28 = vmax.f32 %v609_v19, 0.0  ;;  %v626_v30 = vmax.f32 %v610_v25, 0.0  ;;  %v627_v40 = vmax.f32 %v611_v36, 0.0  ;;  %v628_v43 = vmax.f32 %v612_v37, 0.0  ;;  %v8149_v36 = vld [vmem:[#allocation2 + $0x84] ss:$16 sps:$4 sm:$0xff]  }
 0x188   : > { %v629_v31 = vmax.f32 %v613_v23, 0.0  ;;  %v630_v33 = vmax.f32 %v614_v26, 0.0  ;;  %v573_v55 = vmul.f32 %v8807_v9, %v8771_v35  ;;  %v574_v29 = vmul.f32 %v8807_v9, %v8775_v38  ;;  %v8129_v23 = vld [vmem:[#allocation2 + $0xe0] ss:$16 sps:$4 sm:$0xff]   ;;  %v8137_v26 = vld [vmem:[#allocation2 + $0xc4] ss:$16 sps:$4 sm:$0xff]  }
 0x189   : > { %v659_v34 = vpack.c.bf16 %v626_v30, %v625_v28  ;;  %v660_v44 = vpack.c.bf16 %v628_v43, %v627_v40  ;;  %v631_v32 = vmax.f32 %v615_v52, 0.0  ;;  %v632_v56 = vmax.f32 %v616_v53, 0.0  ;;  %1569 = vmatpush1.bf16.msra.mxu0 %v8129_v23  ;;  %v8132_v28 = vld [vmem:[#allocation2 + $0xc8] ss:$16 sps:$4 sm:$0xff]   ;;  %v8135_v30 = vld [vmem:[#allocation2 + $0xc0] ss:$16 sps:$4 sm:$0xff]  }
 0x18a   : > { %v661_v39 = vpack.c.bf16 %v630_v33, %v629_v31  ;;  %v595_v58 = vmul.f32 %v8812_v10, %v573_v55  ;;  %v596_v59 = vmul.f32 %v8812_v10, %v574_v29  ;;  %v575_v60 = vmul.f32 %v8807_v9, %v8779_v41  ;;  %1570 = vmatprep.subr.bf16.mxu0 %v8137_v26  ;;  %v8138_v31 = vld [vmem:[#allocation2 + $0xa8] ss:$16 sps:$4 sm:$0xff]   ;;  %v8141_v33 = vld [vmem:[#allocation2 + $0xa0] ss:$16 sps:$4 sm:$0xff]   ;;  %v8152_v40 = vld [vmem:[#allocation2 + $0x6c] ss:$16 sps:$4 sm:$0xff]  }
 0x18b   : > { %780 = vmatmul.mubr.bf16.vlgmr.msra.gmra.mxu1 %v659_v34  ;;  %v662_v61 = vpack.c.bf16 %v632_v56, %v631_v32  ;;  %v576_v38 = vmul.f32 %v8807_v9, %v8783_v45  ;;  %v578_v41 = vmul.f32 %v8807_v9, %v8791_v51  ;;  %v577_v45 = vmul.f32 %v8807_v9, %v8787_v48  ;;  %v8146_v34 = vld [vmem:[#allocation2 + $0x8c] ss:$16 sps:$4 sm:$0xff]   ;;  %v8144_v37 = vld [vmem:[#allocation2 + $0x88] ss:$16 sps:$4 sm:$0xff]   ;;  %v8155_v43 = vld [vmem:[#allocation2 + $0x64] ss:$16 sps:$4 sm:$0xff]  }
 0x18c   : > { %789 = vmatprep.mubr.bf16.mxu1 %v8540_v42  ;;  %v617_v62 = vadd.f32 %v8820_v14, %v595_v58  ;;  %v618_v35 = vadd.f32 %v8820_v14, %v596_v59  ;;  %v597_v1 = vmul.f32 %v8812_v10, %v575_v60  ;;  %v579_v15 = vmul.f32 %v8807_v9, %v8795_v54  ;;  %v8159_v52 = vld [vmem:[#allocation2 + $0x40] ss:$16 sps:$4 sm:$0xff]   ;;  %v8164_v53 = vld [vmem:[#allocation2 + $0x2c] ss:$16 sps:$4 sm:$0xff]   ;;  %v8167_v55 = vld [vmem:[#allocation2 + $0x24] ss:$16 sps:$4 sm:$0xff]  }
 0x18d   : > { %v598_v2 = vmul.f32 %v8812_v10, %v576_v38  ;;  %v600_v4 = vmul.f32 %v8812_v10, %v578_v41  ;;  %v599_v11 = vmul.f32 %v8812_v10, %v577_v45  ;;  %v580_v48 = vmul.f32 %v8807_v9, %v8799_v57  ;;  %v8128_v9 = vld [vmem:[#allocation2 + $0xec] ss:$16 sps:$4 sm:$0xff]   ;;  %1571 = vmatpush1.bf16.msra.mxu0 %v8135_v30  ;;  %v8162_v32 = vld [vmem:[#allocation2 + $0x28] ss:$16 sps:$4 sm:$0xff]   ;;  %v8165_v56 = vld [vmem:[#allocation2 + $0x20] ss:$16 sps:$4 sm:$0xff]  }
 0x18e   : > { %v633_v63 = vmax.f32 %v617_v62, 0.0  ;;  %v634_v0 = vmax.f32 %v618_v35, 0.0  ;;  %v619_v5 = vadd.f32 %v8820_v14, %v597_v1  ;;  %v601_v21 = vmul.f32 %v8812_v10, %v579_v15  ;;  %1681 = vmatprep.subr.bf16.mxu1 %v8128_v9  ;;  %v8170_v59 = vld [vmem:[#allocation2 + $0xc] ss:$16 sps:$4 sm:$0xff]   ;;  %v8173_v60 = vld [vmem:[#allocation2 + $0x4] ss:$16 sps:$4 sm:$0xff]  }
 0x18f   : > { %v620_v6 = vadd.f32 %v8820_v14, %v598_v2  ;;  %v622_v12 = vadd.f32 %v8820_v14, %v600_v4  ;;  %v621_v13 = vadd.f32 %v8820_v14, %v599_v11  ;;  %v602_v24 = vmul.f32 %v8812_v10, %v580_v48  ;;  %1682 = vmatpush1.bf16.msra.mxu1 %v8126_v22  ;;  %v8134_v10 = vld [vmem:[#allocation2 + $0xcc] ss:$16 sps:$4 sm:$0xff]   ;;  %v8168_v62 = vld [vmem:[#allocation2 + $0x8] ss:$16 sps:$4 sm:$0xff]   ;;  %v8171_v35 = vld [vmem:[#allocation2] ss:$16 sps:$4 sm:$0xff]  }
 0x190   : > { %v663_v3 = vpack.c.bf16 %v634_v0, %v633_v63  ;;  %v635_v7 = vmax.f32 %v619_v5, 0.0  ;;  %v623_v18 = vadd.f32 %v8820_v14, %v601_v21  ;;  %1683 = vmatprep.subr.bf16.mxu1 %v8134_v10  ;;  %v8176_v63 = vld [vmem:[#allocation2 + $0x1ec] ss:$16 sps:$4 sm:$0xff]   ;;  %v8179_v0 = vld [vmem:[#allocation2 + $0x1e4] ss:$16 sps:$4 sm:$0xff]  }
 0x191   : > { %v636_v8 = vmax.f32 %v620_v6, 0.0  ;;  %v637_v16 = vmax.f32 %v621_v13, 0.0  ;;  %v638_v20 = vmax.f32 %v622_v12, 0.0  ;;  %v624_v19 = vadd.f32 %v8820_v14, %v602_v24  ;;  %v8143_v14 = vld [vmem:[#allocation2 + $0xa4] ss:$16 sps:$4 sm:$0xff]  }
 0x192   : > { %v639_v54 = vmax.f32 %v623_v18, 0.0  ;;  %1572 = vmatprep.subr.bf16.mxu0 %v8143_v14  ;;  %v8174_v2 = vld [vmem:[#allocation2 + $0x1e8] ss:$16 sps:$4 sm:$0xff]   ;;  %v8177_v41 = vld [vmem:[#allocation2 + $0x1e0] ss:$16 sps:$4 sm:$0xff]  }
 0x193   : > { %790 = vmatmul.mubr.bf16.gmra.mxu1 %v660_v44  ;;  %v664_v51 = vpack.c.bf16 %v636_v8, %v635_v7  ;;  %v665_v17 = vpack.c.bf16 %v638_v20, %v637_v16  ;;  %v640_v25 = vmax.f32 %v624_v19, 0.0  ;;  %1573 = vmatpush1.bf16.msra.mxu0 %v8141_v33  ;;  %v8150_v44 = vld [vmem:[#allocation2 + $0x68] ss:$16 sps:$4 sm:$0xff]   ;;  %v8182_v5 = vld [vmem:[#allocation2 + $0x1cc] ss:$16 sps:$4 sm:$0xff]  }
 0x194   : > { %799 = vmatprep.mubr.bf16.mxu1 %v8540_v42  ;;  %1684 = vmatpush1.bf16.msra.mxu1 %v8132_v28  ;;  %v8185_v6 = vld [vmem:[#allocation2 + $0x1c4] ss:$16 sps:$4 sm:$0xff]   ;;  %v8180_v4 = vld [vmem:[#allocation2 + $0x1c8] ss:$16 sps:$4 sm:$0xff]   ;;  %v8183_v7 = vld [vmem:[#allocation2 + $0x1c0] ss:$16 sps:$4 sm:$0xff]  }
 0x195   : > { %v666_v57 = vpack.c.bf16 %v640_v25, %v639_v54  ;;  %1574 = vmatprep.subr.bf16.mxu0 %v8149_v36  ;;  %v8188_v11 = vld [vmem:[#allocation2 + $0x1ac] ss:$16 sps:$4 sm:$0xff]   ;;  %v8191_v12 = vld [vmem:[#allocation2 + $0x1a4] ss:$16 sps:$4 sm:$0xff]   ;;  %v8186_v13 = vld [vmem:[#allocation2 + $0x1a8] ss:$16 sps:$4 sm:$0xff]  }
 0x196   : > { %v8189_v15 = vld [vmem:[#allocation2 + $0x1a0] ss:$16 sps:$4 sm:$0xff]   ;;  %v8194_v16 = vld [vmem:[#allocation2 + $0x18c] ss:$16 sps:$4 sm:$0xff]   ;;  %v8197_v20 = vld [vmem:[#allocation2 + $0x184] ss:$16 sps:$4 sm:$0xff]  }
 0x197   : > { %v8192_v24 = vld [vmem:[#allocation2 + $0x188] ss:$16 sps:$4 sm:$0xff]   ;;  %v8200_v19 = vld [vmem:[#allocation2 + $0x16c] ss:$16 sps:$4 sm:$0xff]   ;;  %v8203_v54 = vld [vmem:[#allocation2 + $0x164] ss:$16 sps:$4 sm:$0xff]  }
 0x198   : > { %v8201_v9 = vld [vmem:[#allocation2 + $0x160] ss:$16 sps:$4 sm:$0xff]   ;;  %v8206_v22 = vld [vmem:[#allocation2 + $0x14c] ss:$16 sps:$4 sm:$0xff]   ;;  %v8209_v23 = vld [vmem:[#allocation2 + $0x144] ss:$16 sps:$4 sm:$0xff]  }
 0x199   : > { %v8204_v26 = vld [vmem:[#allocation2 + $0x148] ss:$16 sps:$4 sm:$0xff]   ;;  %v8207_v28 = vld [vmem:[#allocation2 + $0x140] ss:$16 sps:$4 sm:$0xff]   ;;  %v8212_v14 = vld [vmem:[#allocation2 + $0x12c] ss:$16 sps:$4 sm:$0xff]  }
 0x19a   : > { %v8215_v33 = vld [vmem:[#allocation2 + $0x124] ss:$16 sps:$4 sm:$0xff]  }
 0x19b   : > { %800 = vmatmul.mubr.bf16.gmra.mxu1 %v661_v39  ;;  %v8147_v39 = vld [vmem:[#allocation2 + $0x80] ss:$16 sps:$4 sm:$0xff]  }
 0x19c   : > { %809 = vmatprep.mubr.bf16.mxu1 %v8540_v42  ;;  %1575 = vmatpush1.bf16.msra.mxu0 %v8147_v39 }
 0x19d   : > { %1576 = vmatprep.subr.bf16.mxu0 %v8155_v43  ;;  %v8216_v43 = vld [vmem:[#allocation2 + $0x108] ss:$16 sps:$4 sm:$0xff]  }
 0x1a0   : > { %1577 = vmatpush1.bf16.msra.mxu0 %v8153_v46 }
 0x1a1   : > { %1578 = vmatprep.subr.bf16.mxu0 %v8161_v49 }
 0x1a3   : > { %810 = vmatmul.mubr.bf16.gmra.mxu1 %v662_v61 }
 0x1a4   : > { %819 = vmatprep.mubr.bf16.mxu1 %v8540_v42  ;;  %1579 = vmatpush1.bf16.msra.mxu0 %v8159_v52 }
 0x1a5   : > { %1580 = vmatprep.subr.bf16.mxu0 %v8167_v55 }
 0x1a8   : > { %1581 = vmatpush1.bf16.msra.mxu0 %v8165_v56 }
 0x1a9   : > { %1582 = vmatprep.subr.bf16.mxu0 %v8173_v60 }
 0x1ab   : > { %820 = vmatmul.mubr.bf16.gmra.mxu1 %v663_v3 }
 0x1ac   : > { %829 = vmatprep.mubr.bf16.mxu1 %v8540_v42  ;;  %1583 = vmatpush1.bf16.msra.mxu0 %v8171_v35 }
 0x1ad   : > { %1584 = vmatprep.subr.bf16.mxu0 %v8179_v0 }
 0x1b0   : > { %1585 = vmatpush2.bf16.msra.mxu0 %v8177_v41 }
 0x1b1   : > { %1586 = vmatprep.subr.bf16.mxu0 %v8185_v6 }
 0x1b3   : > { %830 = vmatmul.mubr.bf16.gmra.mxu1 %v664_v51 }
 0x1b4   : > { %839 = vmatprep.mubr.bf16.mxu1 %v8540_v42  ;;  %1587 = vmatpush2.bf16.msra.mxu0 %v8183_v7 }
 0x1b5   : > { %1588 = vmatprep.subr.bf16.mxu0 %v8191_v12 }
 0x1b8   : > { %1589 = vmatpush2.bf16.msra.mxu0 %v8189_v15 }
 0x1b9   : > { %1590 = vmatprep.subr.bf16.mxu0 %v8197_v20 }
 0x1bb   : > { %840 = vmatmul.mubr.bf16.gmra.mxu1 %v665_v17  ;;  %v8195_v17 = vld [vmem:[#allocation2 + $0x180] ss:$16 sps:$4 sm:$0xff]  }
 0x1bc   : > { %849 = vmatprep.mubr.bf16.mxu1 %v8540_v42  ;;  %v8140_v42 = vld [vmem:[#allocation2 + $0xac] ss:$16 sps:$4 sm:$0xff]   ;;  %1591 = vmatpush2.bf16.msra.mxu0 %v8195_v17 }
 0x1bd   : > { %1685 = vmatprep.subr.bf16.mxu1 %v8140_v42  ;;  %1592 = vmatprep.subr.bf16.mxu0 %v8203_v54  ;;  %v8210_v42 = vld [vmem:[#allocation2 + $0x128] ss:$16 sps:$4 sm:$0xff]  }
 0x1be   : > { %1686 = vmatpush1.bf16.msra.mxu1 %v8138_v31  ;;  %v8213_v31 = vld [vmem:[#allocation2 + $0x120] ss:$16 sps:$4 sm:$0xff]  }
 0x1bf   : > { %1687 = vmatprep.subr.bf16.mxu1 %v8146_v34  ;;  %v8218_v34 = vld [vmem:[#allocation2 + $0x10c] ss:$16 sps:$4 sm:$0xff]  }
 0x1c0   : > { %1593 = vmatpush2.bf16.msra.mxu0 %v8201_v9 }
 0x1c1   : > { %1594 = vmatprep.subr.bf16.mxu0 %v8209_v23 }
 0x1c2   : > { %1688 = vmatpush1.bf16.msra.mxu1 %v8144_v37  ;;  %v8221_v37 = vld [vmem:[#allocation2 + $0x104] ss:$16 sps:$4 sm:$0xff]  }
 0x1c3   : > { %850 = vmatmul.mubr.bf16.gmra.mxu1 %v666_v57  ;;  %1689 = vmatprep.subr.bf16.mxu1 %v8152_v40  ;;  %v8198_v57 = vld [vmem:[#allocation2 + $0x168] ss:$16 sps:$4 sm:$0xff]  }
 0x1c4   : > { %1595 = vmatpush2.bf16.msra.mxu0 %v8207_v28 }
 0x1c5   : > { %1596 = vmatprep.subr.bf16.mxu0 %v8215_v33 }
 0x1c6   : > { %1690 = vmatpush1.bf16.msra.mxu1 %v8150_v44  ;;  %v8219_v44 = vld [vmem:[#allocation2 + $0x100] ss:$16 sps:$4 sm:$0xff]  }
 0x1c7   : > { %1691 = vmatprep.subr.bf16.mxu1 %v8158_v47 }
 0x1c8   : > { %1597 = vmatpush2.bf16.msra.mxu0 %v8213_v31 }
 0x1c9   : > { %1598 = vmatprep.subr.bf16.mxu0 %v8221_v37 }
 0x1ca   : > { %1692 = vmatpush1.bf16.msra.mxu1 %v8156_v50 }
 0x1cb   : > { %1693 = vmatprep.subr.bf16.mxu1 %v8164_v53 }
 0x1cc   : > { %1599 = vmatpush2.bf16.msra.mxu0 %v8219_v44 }
 0x1ce   : > { %1694 = vmatpush1.bf16.msra.mxu1 %v8162_v32 }
 0x1cf   : > { %1695 = vmatprep.subr.bf16.mxu1 %v8170_v59 }
 0x1d2   : > { %1696 = vmatpush1.bf16.msra.mxu1 %v8168_v62 }
 0x1d3   : > { %1697 = vmatprep.subr.bf16.mxu1 %v8176_v63 }
 0x1d6   : > { %1698 = vmatpush2.bf16.msra.mxu1 %v8174_v2 }
 0x1d7   : > { %1699 = vmatprep.subr.bf16.mxu1 %v8182_v5 }
 0x1da   : > { %1700 = vmatpush2.bf16.msra.mxu1 %v8180_v4 }
 0x1db   : > { %1701 = vmatprep.subr.bf16.mxu1 %v8188_v11 }
 0x1de   : > { %1702 = vmatpush2.bf16.msra.mxu1 %v8186_v13 }
 0x1df   : > { %1703 = vmatprep.subr.bf16.mxu1 %v8194_v16 }
 0x1e2   : > { %1704 = vmatpush2.bf16.msra.mxu1 %v8192_v24 }
 0x1e3   : > { %1705 = vmatprep.subr.bf16.mxu1 %v8200_v19 }
 0x1e6   : > { %1706 = vmatpush2.bf16.msra.mxu1 %v8198_v57 }
 0x1e7   : > { %1707 = vmatprep.subr.bf16.mxu1 %v8206_v22 }
 0x1ea   : > { %1708 = vmatpush2.bf16.msra.mxu1 %v8204_v26 }
 0x1eb   : > { %1709 = vmatprep.subr.bf16.mxu1 %v8212_v14 }
 0x1ee   : > { %1710 = vmatpush2.bf16.msra.mxu1 %v8210_v42 }
 0x1ef   : > { %1711 = vmatprep.subr.bf16.mxu1 %v8218_v34 }
 0x1f2   : > { %1712 = vmatpush2.bf16.msra.mxu1 %v8216_v43 }
 0x24b   : > { %v8884_v29 = vpop.f32.mrf.mxu1 }
 0x24d   : > { %v8886_v58 = vpop.f32.mrf.mxu1 }
 0x24f   : > { %v8888_v61 = vpop.f32.mrf.mxu1 }
 0x250   : > { %v860_v39 = vadd.f32 %v8888_v61, %v8884_v29 }
 0x251   : > { %v8890_v38 = vpop.f32.mrf.mxu1 }
 0x252   : > { %v881_v46 = vadd.f32 %v8890_v38, %v8886_v58 }
 0x253   : > { %v8892_v1 = vpop.f32.mrf.mxu1 }
 0x254   : > { %v861_v47 = vadd.f32 %v860_v39, %v8892_v1 }
 0x255   : > { %v8894_v3 = vpop.f32.mrf.mxu1 }
 0x256   : > { %v882_v50 = vadd.f32 %v881_v46, %v8894_v3 }
 0x257   : > { %v8896_v45 = vpop.f32.mrf.mxu1 }
 0x258   : > { %v862_v52 = vadd.f32 %v861_v47, %v8896_v45 }
 0x259   : > { %v8898_v8 = vpop.f32.mrf.mxu1 }
 0x25a   : > { %v883_v55 = vadd.f32 %v882_v50, %v8898_v8 }
 0x25b   : > { %v8900_v51 = vpop.f32.mrf.mxu1 }
 0x25c   : > { %v863_v32 = vadd.f32 %v862_v52, %v8900_v51 }
 0x25d   : > { %v8902_v48 = vpop.f32.mrf.mxu1 }
 0x25e   : > { %v884_v59 = vadd.f32 %v883_v55, %v8902_v48 }
 0x25f   : > { %v8904_v21 = vpop.f32.mrf.mxu1 }
 0x260   : > { %v864_v60 = vadd.f32 %v863_v32, %v8904_v21 }
 0x261   : > { %v8906_v18 = vpop.f32.mrf.mxu1 }
 0x262   : > { %v885_v35 = vadd.f32 %v884_v59, %v8906_v18 }
 0x263   : > { %v8908_v25 = vpop.f32.mrf.mxu1 }
 0x264   : > { %v865_v63 = vadd.f32 %v864_v60, %v8908_v25 }
 0x265   : > { %v8910_v27 = vpop.f32.mrf.mxu1 }
 0x266   : > { %v886_v2 = vadd.f32 %v885_v35, %v8910_v27 }
 0x267   : > { %v8912_v10 = vpop.f32.mrf.mxu1 }
 0x268   : > { %v866_v41 = vadd.f32 %v865_v63, %v8912_v10 }
 0x269   : > { %v8914_v30 = vpop.f32.mrf.mxu1 }
 0x26a   : > { %v887_v6 = vadd.f32 %v886_v2, %v8914_v30 }
 0x26b   : > { %v8916_v36 = vpop.f32.mrf.mxu1 }
 0x26c   : > { %v867_v4 = vadd.f32 %v866_v41, %v8916_v36 }
 0x26d   : > { %v8920_v40 = vpop.f32.mrf.mxu1 }
 0x26e   : > { %v888_v11 = vadd.f32 %v887_v6, %v8920_v40 }
 0x26f   : > { %v8925_v49 = vpop.f32.mrf.mxu1 }
 0x270   : > { %v868_v12 = vadd.f32 %v867_v4, %v8925_v49 }
 0x271   : > { %v8929_v53 = vpop.f32.mrf.mxu1 }
 0x272   : > { %v889_v15 = vadd.f32 %v888_v11, %v8929_v53 }
 0x273   : > { %v8933_v56 = vpop.f32.mrf.mxu1 }
 0x274   : > { %v869_v16 = vadd.f32 %v868_v12, %v8933_v56 }
 0x275   : > { %v8937_v62 = vpop.f32.mrf.mxu1 }
 0x276   : > { %v890_v24 = vadd.f32 %v889_v15, %v8937_v62 }
 0x277   : > { %v8941_v0 = vpop.f32.mrf.mxu1 }
 0x278   : > { %v870_v17 = vadd.f32 %v869_v16, %v8941_v0 }
 0x279   : > { %v8945_v5 = vpop.f32.mrf.mxu1 }
 0x27a   : > { %v891_v54 = vadd.f32 %v890_v24, %v8945_v5 }
 0x27b   : > { %v8949_v7 = vpop.f32.mrf.mxu1 }
 0x27c   : > { %v871_v57 = vadd.f32 %v870_v17, %v8949_v7 }
 0x27d   : > { %v8953_v13 = vpop.f32.mrf.mxu1 }
 0x27e   : > { %v892_v22 = vadd.f32 %v891_v54, %v8953_v13 }
 0x27f   : > { %v8957_v20 = vpop.f32.mrf.mxu1 }
 0x280   : > { %v872_v23 = vadd.f32 %v871_v57, %v8957_v20 }
 0x281   : > { %v8961_v19 = vpop.f32.mrf.mxu1 }
 0x282   : > { %v893_v28 = vadd.f32 %v892_v22, %v8961_v19 }
 0x283   : > { %v8965_v9 = vpop.f32.mrf.mxu1 }
 0x284   : > { %v873_v42 = vadd.f32 %v872_v23, %v8965_v9 }
 0x285   : > { %v8969_v26 = vpop.f32.mrf.mxu1 }
 0x286   : > { %v894_v31 = vadd.f32 %v893_v28, %v8969_v26 }
 0x287   : > { %v8973_v14 = vpop.f32.mrf.mxu1 }
 0x288   : > { %v874_v33 = vadd.f32 %v873_v42, %v8973_v14 }
 0x289   : > { %v8977_v34 = vpop.f32.mrf.mxu1 }
 0x28a   : > { %v875_v37 = vrot.slane %v874_v33, 4  ;;  %v895_v39 = vadd.f32 %v894_v31, %v8977_v34 }
 0x28c   : > { %v876_v43 = vadd.f32 %v875_v37, %v874_v33  ;;  %v896_v44 = vrot.slane %v895_v39, 4 }
 0x28e   : > { %v877_v46 = vrot.slane %v876_v43, 2  ;;  %v897_v47 = vadd.f32 %v896_v44, %v895_v39 }
 0x290   : > { %v878_v50 = vadd.f32 %v877_v46, %v876_v43  ;;  %v898_v52 = vrot.slane %v897_v47, 2 }
 0x292   : > { %v879_v55 = vrot.slane %v878_v50, 1  ;;  %v899_v59 = vadd.f32 %v898_v52, %v897_v47 }
 0x294   : > { %v880_v32 = vadd.f32 %v879_v55, %v878_v50  ;;  %v900_v2 = vrot.slane %v899_v59, 1 }
 0x296   : > { %v8980_v60 = vmul.f32 0.0078125, %v880_v32  ;;  %v901_v11 = vadd.f32 %v900_v2, %v899_v59 }
 0x298   : > { %v8984_v35 = vsub.f32 %v8884_v29, %v8980_v60  ;;  %v8988_v63 = vsub.f32 %v8888_v61, %v8980_v60  ;;  %v8992_v41 = vsub.f32 %v8892_v1, %v8980_v60  ;;  %v9000_v29 = vsub.f32 %v8896_v45, %v8980_v60 }
 0x299   : > { %v9004_v61 = vsub.f32 %v8900_v51, %v8980_v60  ;;  %v9008_v15 = vmul.f32 0.0078125, %v901_v11  ;;  %v9012_v16 = vsub.f32 %v8904_v21, %v8980_v60  ;;  %v9026_v54 = vsub.f32 %v8908_v25, %v8980_v60 }
 0x29a   : > { %v936_v6 = vmul.f32 %v8984_v35, %v8984_v35  ;;  %v938_v4 = vmul.f32 %v8988_v63, %v8988_v63  ;;  %v940_v12 = vmul.f32 %v8992_v41, %v8992_v41  ;;  %v942_v24 = vmul.f32 %v9000_v29, %v9000_v29 }
 0x29b   : > { %v9018_v45 = vsub.f32 %v8886_v58, %v9008_v15  ;;  %v9022_v51 = vsub.f32 %v8890_v38, %v9008_v15  ;;  %v944_v21 = vmul.f32 %v9004_v61, %v9004_v61  ;;  %v9032_v22 = vsub.f32 %v8912_v10, %v8980_v60 }
 0x29c   : > { %v968_v1 = vadd.f32 %v938_v4, %v936_v6  ;;  %v946_v58 = vmul.f32 %v9012_v16, %v9012_v16  ;;  %v9038_v38 = vsub.f32 %v8894_v3, %v9008_v15  ;;  %v9046_v42 = vsub.f32 %v8916_v36, %v8980_v60 }
 0x29d   : > { %v937_v25 = vmul.f32 %v9018_v45, %v9018_v45  ;;  %v939_v28 = vmul.f32 %v9022_v51, %v9022_v51  ;;  %v948_v10 = vmul.f32 %v9026_v54, %v9026_v54  ;;  %v9052_v33 = vsub.f32 %v8898_v8, %v9008_v15 }
 0x29e   : > { %v969_v17 = vadd.f32 %v968_v1, %v940_v12  ;;  %v9056_v3 = vsub.f32 %v8925_v49, %v8980_v60  ;;  %v950_v37 = vmul.f32 %v9032_v22, %v9032_v22  ;;  %v9062_v36 = vsub.f32 %v8902_v48, %v9008_v15 }
 0x29f   : > { %v941_v43 = vmul.f32 %v9038_v38, %v9038_v38  ;;  %v989_v44 = vadd.f32 %v939_v28, %v937_v25  ;;  %v9068_v8 = vsub.f32 %v8933_v56, %v8980_v60  ;;  %v952_v49 = vmul.f32 %v9046_v42, %v9046_v42 }
 0x2a0   : > { %v970_v57 = vadd.f32 %v969_v17, %v942_v24  ;;  %v9074_v47 = vsub.f32 %v8906_v18, %v9008_v15  ;;  %v943_v48 = vmul.f32 %v9052_v33, %v9052_v33  ;;  %v9080_v52 = vsub.f32 %v8941_v0, %v8980_v60 }
 0x2a1   : > { %v990_v50 = vadd.f32 %v989_v44, %v941_v43  ;;  %v954_v56 = vmul.f32 %v9056_v3, %v9056_v3  ;;  %v9086_v32 = vsub.f32 %v8910_v27, %v9008_v15  ;;  %v945_v18 = vmul.f32 %v9062_v36, %v9062_v36 }
 0x2a2   : > { %v971_v23 = vadd.f32 %v970_v57, %v944_v21  ;;  %v9092_v2 = vsub.f32 %v8949_v7, %v8980_v60  ;;  %v956_v0 = vmul.f32 %v9068_v8, %v9068_v8  ;;  %v9098_v4 = vsub.f32 %v8914_v30, %v9008_v15 }
 0x2a3   : > { %v991_v59 = vadd.f32 %v990_v50, %v943_v48  ;;  %v947_v27 = vmul.f32 %v9074_v47, %v9074_v47  ;;  %v9104_v12 = vsub.f32 %v8957_v20, %v8980_v60  ;;  %v958_v7 = vmul.f32 %v9080_v52, %v9080_v52 }
 0x2a4   : > { %v972_v31 = vadd.f32 %v971_v23, %v946_v58  ;;  %v9110_v24 = vsub.f32 %v8920_v40, %v9008_v15  ;;  %v949_v30 = vmul.f32 %v9086_v32, %v9086_v32  ;;  %v9116_v21 = vsub.f32 %v8965_v9, %v8980_v60 }
 0x2a5   : > { %v992_v11 = vadd.f32 %v991_v59, %v945_v18  ;;  %v960_v20 = vmul.f32 %v9092_v2, %v9092_v2  ;;  %v9122_v58 = vsub.f32 %v8929_v53, %v9008_v15  ;;  %v951_v40 = vmul.f32 %v9098_v4, %v9098_v4 }
 0x2a6   : > { %v973_v39 = vadd.f32 %v972_v31, %v948_v10  ;;  %v934_v25 = vsub.f32 %v8973_v14, %v8980_v60  ;;  %v962_v28 = vmul.f32 %v9104_v12, %v9104_v12  ;;  %v9132_v10 = vsub.f32 %v8937_v62, %v9008_v15 }
 0x2a7   : > { %v993_v17 = vadd.f32 %v992_v11, %v947_v27  ;;  %v953_v31 = vmul.f32 %v9110_v24, %v9110_v24  ;;  %v9140_v43 = vsub.f32 %v8945_v5, %v9008_v15  ;;  %v955_v14 = vmul.f32 %v9122_v58, %v9122_v58 }
 0x2a8   : > { %v974_v46 = vadd.f32 %v973_v39, %v950_v37  ;;  %v964_v37 = vmul.f32 %v9116_v21, %v9116_v21  ;;  %v966_v44 = vmul.f32 %v934_v25, %v934_v25  ;;  %v9146_v62 = vsub.f32 %v8953_v13, %v9008_v15 }
 0x2a9   : > { %v994_v23 = vadd.f32 %v993_v17, %v949_v30  ;;  %v959_v5 = vmul.f32 %v9140_v43, %v9140_v43  ;;  %v9158_v59 = vsub.f32 %v8969_v26, %v9008_v15  ;;  %v9164_v27 = vsub.f32 %v8977_v34, %v9008_v15 }
 0x2aa   : > { %v975_v55 = vadd.f32 %v974_v46, %v952_v49  ;;  %v957_v46 = vmul.f32 %v9132_v10, %v9132_v10  ;;  %v961_v13 = vmul.f32 %v9146_v62, %v9146_v62 }
 0x2ab   : > { %v995_v53 = vadd.f32 %v994_v23, %v951_v40  ;;  %v967_v17 = vmul.f32 %v9164_v27, %v9164_v27 }
 0x2ac   : > { %v976_v6 = vadd.f32 %v975_v55, %v954_v56  ;;  %v9152_v56 = vsub.f32 %v8961_v19, %v9008_v15 }
 0x2ad   : > { %v996_v60 = vadd.f32 %v995_v53, %v953_v31  ;;  %v1049_v53 = vlaneseq }
 0x2ae   : > { %v977_v1 = vadd.f32 %v976_v6, %v956_v0  ;;  %v963_v19 = vmul.f32 %v9152_v56, %v9152_v56 }
 0x2af   : > { %v997_v48 = vadd.f32 %v996_v60, %v955_v14  ;;  %v9172_v14 = vshrl.u32 %v1049_v53, 7 }
 0x2b0   : > { %v978_v57 = vadd.f32 %v977_v1, %v958_v7  ;;  %v965_v1 = vmul.f32 %v9158_v59, %v9158_v59 }
 0x2b1   : > { %v998_v55 = vadd.f32 %v997_v48, %v957_v46  ;;  %13867 = vst [vmem:[#allocation12_spill] sm:$0xff] %v9172_v14  ;;  %v657_v46 = vld [vmem:[%s13556_s6 + $0x2] sm:$0x3] }
 0x2b2   : > { %v979_v9 = vadd.f32 %v978_v57, %v960_v20 }
 0x2b3   : > { %v999_v0 = vadd.f32 %v998_v55, %v959_v5 }
 0x2b4   : > { %v980_v39 = vadd.f32 %v979_v9, %v962_v28 }
 0x2b5   : > { %v1000_v11 = vadd.f32 %v999_v0, %v961_v13 }
 0x2b6   : > { %v981_v49 = vadd.f32 %v980_v39, %v964_v37 }
 0x2b7   : > { %v1001_v30 = vadd.f32 %v1000_v11, %v963_v19 }
 0x2b8   : > { %v982_v50 = vadd.f32 %v981_v49, %v966_v44  ;;  %v9175_v49 = vsub.s32 0, %v9172_v14 }
 0x2b9   : > { %v1002_v20 = vadd.f32 %v1001_v30, %v965_v1 }
 0x2ba   : > { %v983_v18 = vrot.slane %v982_v50, 4  ;;  %13868 = vst [vmem:[#allocation13_spill] sm:$0xff] %v9175_v49  ;;  %v9184_v5 = vrot.slane %v657_v46, %v9175_v49 }
 0x2bb   : > { %v1003_v40 = vadd.f32 %v1002_v20, %v967_v17 }
 0x2bc   : > { %v984_v6 = vadd.f32 %v983_v18, %v982_v50  ;;  %v658_v50 = vld [vmem:[%s13556_s6 + $0x4] sm:$0x3] }
 0x2bd   : > { %v1004_v28 = vrot.slane %v1003_v40, 4  ;;  %v9192_v13 = vrot.slane %v658_v50, %v9175_v49 }
 0x2be   : > { %v985_v7 = vrot.slane %v984_v6, 2 }
 0x2bf   : > { %v1005_v15 = vadd.f32 %v1004_v28, %v1003_v40 }
 0x2c0   : > { %v986_v26 = vadd.f32 %v985_v7, %v984_v6 }
 0x2c1   : > { %v1006_v31 = vrot.slane %v1005_v15, 2 }
 0x2c2   : > { %v987_v57 = vrot.slane %v986_v26, 1 }
 0x2c3   : > { %v1007_v37 = vadd.f32 %v1006_v31, %v1005_v15 }
 0x2c4   : > { %v988_v23 = vadd.f32 %v987_v57, %v986_v26 }
 0x2c5   : > { %v1008_v39 = vrot.slane %v1007_v37, 1 }
 0x2c6   : > { %v1010_v34 = vmul.f32 0.0078125, %v988_v23 }
 0x2c7   : > { %v1009_v60 = vadd.f32 %v1008_v39, %v1007_v37 }
 0x2c8   : > { %v1012_v9 = vadd.f32 1e-05, %v1010_v34 }
 0x2c9   : > { %v1011_v44 = vmul.f32 0.0078125, %v1009_v60 }
 0x2ca   : > { %8288 = vrsqrt.f32 %v1012_v9 }
 0x2cb   : > { %v1013_v48 = vadd.f32 1e-05, %v1011_v44 }
 0x2cd   : > { %8290 = vrsqrt.f32 %v1013_v48 }
 0x2d7   : > { %v9186_v55 = vpop.eup %8288 }
 0x2d8   : > { %v9189_v18 = vmul.f32 %v9186_v55, %v934_v25  ;;  %v1020_v0 = vmul.f32 %v9186_v55, %v8992_v41  ;;  %v1022_v6 = vmul.f32 %v9186_v55, %v9000_v29  ;;  %v1024_v19 = vmul.f32 %v9186_v55, %v9004_v61 }
 0x2d9   : > { %v1026_v11 = vmul.f32 %v9186_v55, %v9012_v16  ;;  %v1028_v7 = vmul.f32 %v9186_v55, %v9026_v54  ;;  %v1030_v29 = vmul.f32 %v9186_v55, %v9032_v22  ;;  %v1016_v61 = vmul.f32 %v9186_v55, %v8984_v35 }
 0x2da   : > { %v1063_v25 = vmul.f32 %v9184_v5, %v1020_v0  ;;  %v1065_v1 = vmul.f32 %v9184_v5, %v1022_v6  ;;  %v1067_v30 = vmul.f32 %v9184_v5, %v1024_v19  ;;  %v1018_v16 = vmul.f32 %v9186_v55, %v8988_v63  ;;  %v9230_v37 = vpop.eup %8290 }
 0x2db   : > { %v1069_v41 = vmul.f32 %v9184_v5, %v1026_v11  ;;  %v9216_v54 = vsub.s32 1, %v9172_v14  ;;  %v1071_v22 = vmul.f32 %v9184_v5, %v1028_v7  ;;  %v1073_v34 = vmul.f32 %v9184_v5, %v1030_v29 }
 0x2dc   : > { %v1106_v26 = vadd.f32 %v9192_v13, %v1063_v25  ;;  %v1108_v17 = vadd.f32 %v9192_v13, %v1065_v1  ;;  %v1110_v20 = vadd.f32 %v9192_v13, %v1067_v30  ;;  %v1059_v63 = vmul.f32 %v9184_v5, %v1016_v61 }
 0x2dd   : > { %13869 = vst [vmem:[#allocation14_spill] sm:$0xff] %v9216_v54  ;;  %v1112_v57 = vadd.f32 %v9192_v13, %v1069_v41  ;;  %v1061_v15 = vmul.f32 %v9184_v5, %v1018_v16  ;;  %v9226_v9 = vrot.slane %v657_v46, %v9216_v54  ;;  %v9233_v39 = vrot.slane %v658_v50, %v9216_v54 }
 0x2de   : > { %v1138_v40 = vmax.f32 %v1106_v26, 0.0  ;;  %v1140_v23 = vmax.f32 %v1108_v17, 0.0  ;;  %v1142_v28 = vmax.f32 %v1110_v20, 0.0  ;;  %v1114_v60 = vadd.f32 %v9192_v13, %v1071_v22 }
 0x2df   : > { %v1144_v35 = vmax.f32 %v1112_v57, 0.0  ;;  %v1017_v44 = vmul.f32 %v9230_v37, %v9018_v45  ;;  %v1019_v48 = vmul.f32 %v9230_v37, %v9022_v51  ;;  %v1021_v46 = vmul.f32 %v9230_v37, %v9038_v38 }
 0x2e0   : > { %v1234_v31 = vpack.c.bf16 %v1140_v23, %v1138_v40  ;;  %v1116_v0 = vadd.f32 %v9192_v13, %v1073_v34  ;;  %v1102_v6 = vadd.f32 %v9192_v13, %v1059_v63  ;;  %v1104_v19 = vadd.f32 %v9192_v13, %v1061_v15 }
 0x2e1   : > { %v9228_v53 = vpack.c.bf16 %v1144_v35, %v1142_v28  ;;  %v1023_v50 = vmul.f32 %v9230_v37, %v9052_v33  ;;  %v1025_v11 = vmul.f32 %v9230_v37, %v9062_v36  ;;  %v1060_v45 = vmul.f32 %v9226_v9, %v1017_v44 }
 0x2e2   : > { %v1062_v7 = vmul.f32 %v9226_v9, %v1019_v48  ;;  %v1064_v51 = vmul.f32 %v9226_v9, %v1021_v46  ;;  %v1027_v38 = vmul.f32 %v9230_v37, %v9074_v47  ;;  %v1146_v1 = vmax.f32 %v1114_v60, 0.0 }
 0x2e3   : > { %v1066_v25 = vmul.f32 %v9226_v9, %v1023_v50  ;;  %v1103_v30 = vadd.f32 %v9233_v39, %v1060_v45  ;;  %v1148_v29 = vmax.f32 %v1116_v0, 0.0  ;;  %v1134_v36 = vmax.f32 %v1102_v6, 0.0 }
 0x2e4   : > { %v1105_v41 = vadd.f32 %v9233_v39, %v1062_v7  ;;  %v1107_v33 = vadd.f32 %v9233_v39, %v1064_v51  ;;  %v1136_v61 = vmax.f32 %v1104_v19, 0.0  ;;  %v1068_v26 = vmul.f32 %v9226_v9, %v1025_v11 }
 0x2e5   : > { %v1109_v16 = vadd.f32 %v9233_v39, %v1066_v25  ;;  %v1135_v17 = vmax.f32 %v1103_v30, 0.0  ;;  %v1070_v47 = vmul.f32 %v9226_v9, %v1027_v38  ;;  %v9261_v23 = vpack.c.bf16 %v1148_v29, %v1146_v1 }
 0x2e6   : > { %v1137_v20 = vmax.f32 %v1105_v41, 0.0  ;;  %v1139_v57 = vmax.f32 %v1107_v33, 0.0  ;;  %v1232_v28 = vpack.c.bf16 %v1136_v61, %v1134_v36  ;;  %v1029_v35 = vmul.f32 %v9230_v37, %v9086_v32 }
 0x2e7   : > { %v1141_v40 = vmax.f32 %v1109_v16, 0.0  ;;  %v1031_v34 = vmul.f32 %v9230_v37, %v9098_v4  ;;  %v1111_v15 = vadd.f32 %v9233_v39, %v1068_v26  ;;  %v1113_v60 = vadd.f32 %v9233_v39, %v1070_v47 }
 0x2e8   : > { %v1233_v22 = vpack.c.bf16 %v1137_v20, %v1135_v17  ;;  %v1072_v44 = vmul.f32 %v9226_v9, %v1029_v35  ;;  %v1089_v6 = vmul.f32 %v9184_v5, %v9189_v18  ;;  %v1033_v50 = vmul.f32 %v9230_v37, %v9110_v24 }
 0x2e9   : > { %v1235_v63 = vpack.c.bf16 %v1141_v40, %v1139_v57  ;;  %v1074_v48 = vmul.f32 %v9226_v9, %v1031_v34  ;;  %v1143_v46 = vmax.f32 %v1111_v15, 0.0  ;;  %v1145_v32 = vmax.f32 %v1113_v60, 0.0 }
 0x2ea   : > { %1600 = vmatprep.mubr.bf16.mxu0 %v1233_v22  ;;  %1713 = vmatprep.mubr.bf16.mxu1 %v1233_v22  ;;  %v1115_v0 = vadd.f32 %v9233_v39, %v1072_v44  ;;  %v1035_v11 = vmul.f32 %v9230_v37, %v9122_v58  ;;  %v1044_v51 = vmul.f32 %v9186_v55, %v9116_v21 }
 0x2eb   : > { %1601 = vmatmul.mubr.bf16.vlgmr.msra.gmra.mxu0 %v1232_v28  ;;  %1714 = vmatmul.mubr.bf16.vlgmr.msra.gmra.mxu1 %v1232_v28  ;;  %v1117_v4 = vadd.f32 %v9233_v39, %v1074_v48  ;;  %v1237_v19 = vpack.c.bf16 %v1145_v32, %v1143_v46  ;;  %v1076_v38 = vmul.f32 %v9226_v9, %v1033_v50 }
 0x2ec   : > { %1610 = vmatprep.mubr.bf16.mxu0 %v1235_v63  ;;  %1723 = vmatprep.mubr.bf16.mxu1 %v1235_v63  ;;  %v1147_v45 = vmax.f32 %v1115_v0, 0.0  ;;  %v1078_v18 = vmul.f32 %v9226_v9, %v1035_v11  ;;  %v1132_v25 = vadd.f32 %v9192_v13, %v1089_v6  ;;  %v1087_v24 = vmul.f32 %v9184_v5, %v1044_v51 }
 0x2ed   : > { %v1149_v7 = vmax.f32 %v1117_v4, 0.0  ;;  %v1032_v58 = vmul.f32 %v9186_v55, %v9046_v42  ;;  %v1119_v21 = vadd.f32 %v9233_v39, %v1076_v38  ;;  %v1037_v29 = vmul.f32 %v9230_v37, %v9132_v10 }
 0x2ee   : > { %v1130_v30 = vadd.f32 %v9192_v13, %v1087_v24  ;;  %v1164_v41 = vmax.f32 %v1132_v25, 0.0  ;;  %v1121_v33 = vadd.f32 %v9233_v39, %v1078_v18  ;;  %v1039_v36 = vmul.f32 %v9230_v37, %v9140_v43 }
 0x2ef   : > { %v1239_v1 = vpack.c.bf16 %v1149_v7, %v1147_v45  ;;  %v1151_v26 = vmax.f32 %v1119_v21, 0.0  ;;  %v1080_v10 = vmul.f32 %v9226_v9, %v1037_v29  ;;  %v1036_v43 = vmul.f32 %v9186_v55, %v9068_v8  ;;  %v2588_v21 = vld [vmem:[#allocation5 + $0x5c0] sm:$0xff] }
 0x2f0   : > { %v1162_v42 = vmax.f32 %v1130_v30, 0.0  ;;  %v1153_v17 = vmax.f32 %v1121_v33, 0.0  ;;  %v1082_v20 = vmul.f32 %v9226_v9, %v1039_v36  ;;  %v1038_v47 = vmul.f32 %v9186_v55, %v9080_v52  ;;  %v2592_v29 = vld [vmem:[#allocation5 + $0x5e0] sm:$0xff] }
 0x2f1   : > { %v1041_v40 = vmul.f32 %v9230_v37, %v9146_v62  ;;  %v1123_v28 = vadd.f32 %v9233_v39, %v1080_v10  ;;  %v1043_v34 = vmul.f32 %v9230_v37, %v9152_v56  ;;  %v1079_v52 = vmul.f32 %v9184_v5, %v1036_v43  ;;  %v2456_v10 = vld [vmem:[#allocation5 + $0x1a0] sm:$0xff] }
 0x2f2   : > { %v9300_v16 = vpack.c.bf16 %v1164_v41, %v1162_v42  ;;  %v1241_v22 = vpack.c.bf16 %v1153_v17, %v1151_v26  ;;  %v1125_v35 = vadd.f32 %v9233_v39, %v1082_v20  ;;  %v1081_v62 = vmul.f32 %v9184_v5, %v1038_v47  ;;  %v2452_v17 = vld [vmem:[#allocation5 + $0x180] sm:$0xff] }
 0x2f3   : > { %1611 = vmatmul.mubr.bf16.gmra.mxu0 %v1234_v31  ;;  %1724 = vmatmul.mubr.bf16.gmra.mxu1 %v1234_v31  ;;  %v1034_v31 = vmul.f32 %v9186_v55, %v9056_v3  ;;  %v1075_v3 = vmul.f32 %v9184_v5, %v1032_v58  ;;  %v1155_v15 = vmax.f32 %v1123_v28, 0.0  ;;  %v1084_v44 = vmul.f32 %v9226_v9, %v1041_v40  ;;  %v2580_v20 = vld [vmem:[#allocation5 + $0x580] sm:$0xff] }
 0x2f4   : > { %1620 = vmatprep.mubr.bf16.mxu0 %v1237_v19  ;;  %1733 = vmatprep.mubr.bf16.mxu1 %v1237_v19  ;;  %v1157_v60 = vmax.f32 %v1125_v35, 0.0  ;;  %v1086_v48 = vmul.f32 %v9226_v9, %v1043_v34  ;;  %v1047_v56 = vmul.f32 %v9230_v37, %v9164_v27  ;;  %v1122_v32 = vadd.f32 %v9192_v13, %v1079_v52  ;;  %v2444_v34 = vld [vmem:[#allocation5 + $0x140] sm:$0xff] }
 0x2f5   : > { %v1077_v61 = vmul.f32 %v9184_v5, %v1034_v31  ;;  %v1124_v0 = vadd.f32 %v9192_v13, %v1081_v62  ;;  %v1042_v4 = vmul.f32 %v9186_v55, %v9104_v12  ;;  %v1127_v19 = vadd.f32 %v9233_v39, %v1084_v44 }
 0x2f6   : > { %v1243_v6 = vpack.c.bf16 %v1157_v60, %v1155_v15  ;;  %v1129_v50 = vadd.f32 %v9233_v39, %v1086_v48  ;;  %v1045_v11 = vmul.f32 %v9230_v37, %v9158_v59  ;;  %v1090_v12 = vmul.f32 %v9226_v9, %v1047_v56  ;;  %v2576_v60 = vld [vmem:[#allocation5 + $0x560] sm:$0xff] }
 0x2f7   : > { %v1120_v57 = vadd.f32 %v9192_v13, %v1077_v61  ;;  %v1156_v27 = vmax.f32 %v1124_v0, 0.0  ;;  %v1085_v7 = vmul.f32 %v9184_v5, %v1042_v4  ;;  %v7575_v42 = vcombine.low %v2588_v21, %v2592_v29  ;;  %v2440_v0 = vld [vmem:[#allocation5 + $0x120] sm:$0xff] }
 0x2f8   : > { %v1161_v51 = vmax.f32 %v1129_v50, 0.0  ;;  %v1088_v38 = vmul.f32 %v9226_v9, %v1045_v11  ;;  %v1133_v58 = vadd.f32 %v9233_v39, %v1090_v12  ;;  %v7439_v47 = vcombine.low %v2452_v17, %v2456_v10  ;;  %v2564_v4 = vld [vmem:[#allocation5 + $0x500] sm:$0xff] }
 0x2f9   : > { %v1152_v63 = vmax.f32 %v1120_v57, 0.0  ;;  %v1128_v59 = vadd.f32 %v9192_v13, %v1085_v7  ;;  %v2584_v57 = vld [vmem:[#allocation5 + $0x5a0] sm:$0xff] }
 0x2fa   : > { %v1131_v24 = vadd.f32 %v9233_v39, %v1088_v38  ;;  %v1165_v30 = vmax.f32 %v1133_v58, 0.0  ;;  %v2464_v39 = vld [vmem:[#allocation5 + $0x1e0] sm:$0xff]  ;;  %v7567_v40 = vcombine.low %v2580_v20, %v2584_v57 }
 0x2fb   : > { %1621 = vmatmul.mubr.bf16.gmra.mxu0 %v9228_v53  ;;  %1734 = vmatmul.mubr.bf16.gmra.mxu1 %v9228_v53  ;;  %v1118_v53 = vadd.f32 %v9192_v13, %v1075_v3  ;;  %v7576_v3 = vcombine.high %v2588_v21, %v2592_v29  ;;  %v2568_v11 = vld [vmem:[#allocation5 + $0x520] sm:$0xff] }
 0x2fc   : > { %1630 = vmatprep.mubr.bf16.mxu0 %v1239_v1  ;;  %1743 = vmatprep.mubr.bf16.mxu1 %v1239_v1  ;;  %v1160_v1 = vmax.f32 %v1128_v59, 0.0  ;;  %v1163_v31 = vmax.f32 %v1131_v24, 0.0  ;;  %v7552_v12 = vcombine.high %v2564_v4, %v2568_v11  ;;  %v2556_v38 = vld [vmem:[#allocation5 + $0x4c0] sm:$0xff] }
 0x2fd   : > { %v1150_v8 = vmax.f32 %v1118_v53, 0.0  ;;  %4087 = vmatprep.subr.bf16.mxu1 %v7576_v3  ;;  %v7440_v53 = vcombine.high %v2452_v17, %v2456_v10  ;;  %v2412_v10 = vld [vmem:[#allocation5 + $0x40] sm:$0xff] }
 0x2fe   : > { %v1247_v9 = vpack.c.bf16 %v1165_v30, %v1163_v31  ;;  %4088 = vmatpush1.bf16.msra.mxu1 %v7575_v42  ;;  %v2420_v30 = vld [vmem:[#allocation5 + $0x80] sm:$0xff] }
 0x2ff   : > { %v1240_v46 = vpack.c.bf16 %v1152_v63, %v1150_v8  ;;  %v2448_v8 = vld [vmem:[#allocation5 + $0x160] sm:$0xff] }
 0x300   : > { %v2572_v63 = vld [vmem:[#allocation5 + $0x540] sm:$0xff]  ;;  %v7432_v15 = vcombine.high %v2444_v34, %v2448_v8  ;;  %v7431_v44 = vcombine.low %v2444_v34, %v2448_v8 }
 0x301   : > { %v7559_v48 = vcombine.low %v2572_v63, %v2576_v60 }
 0x303   : > { %1631 = vmatmul.mubr.bf16.gmra.mxu0 %v9261_v23  ;;  %1744 = vmatmul.mubr.bf16.gmra.mxu1 %v9261_v23  ;;  %v1040_v23 = vmul.f32 %v9186_v55, %v9092_v2  ;;  %v1154_v2 = vmax.f32 %v1122_v32, 0.0  ;;  %v1159_v55 = vmax.f32 %v1127_v19, 0.0  ;;  %v2436_v32 = vld [vmem:[#allocation5 + $0x100] sm:$0xff] }
 0x304   : > { %1640 = vmatprep.mubr.bf16.mxu0 %v1241_v22  ;;  %1753 = vmatprep.mubr.bf16.mxu1 %v1241_v22  ;;  %v7568_v22 = vcombine.high %v2580_v20, %v2584_v57  ;;  %v7424_v50 = vcombine.high %v2436_v32, %v2440_v0  ;;  %v2416_v20 = vld [vmem:[#allocation5 + $0x60] sm:$0xff] }
 0x305   : > { %v1083_v45 = vmul.f32 %v9184_v5, %v1040_v23  ;;  %v1242_v18 = vpack.c.bf16 %v1156_v27, %v1154_v2  ;;  %v1245_v37 = vpack.c.bf16 %v1161_v51, %v1159_v55  ;;  %v7423_v2 = vcombine.low %v2436_v32, %v2440_v0  ;;  %v2428_v55 = vld [vmem:[#allocation5 + $0xc0] sm:$0xff] }
 0x306   : > { %4089 = vmatprep.subr.bf16.mxu1 %v7568_v22  ;;  %v7551_v27 = vcombine.low %v2564_v4, %v2568_v11  ;;  %v2432_v51 = vld [vmem:[#allocation5 + $0xe0] sm:$0xff]  ;;  %v7399_v34 = vcombine.low %v2412_v10, %v2416_v20 }
 0x307   : > { %v1126_v25 = vadd.f32 %v9192_v13, %v1083_v45  ;;  %v2460_v13 = vld [vmem:[#allocation5 + $0x1c0] sm:$0xff]  ;;  %4090 = vmatpush1.bf16.msra.mxu1 %v7567_v40  ;;  %v7416_v59 = vcombine.high %v2428_v55, %v2432_v51  ;;  %v7415_v24 = vcombine.low %v2428_v55, %v2432_v51  ;;  %v7400_v40 = vcombine.high %v2412_v10, %v2416_v20 }
 0x308   : > { %v7448_v33 = vcombine.high %v2460_v13, %v2464_v39  ;;  %v7447_v36 = vcombine.low %v2460_v13, %v2464_v39  ;;  %v2544_v22 = vld [vmem:[#allocation5 + $0x460] sm:$0xff] }
 0x309   : > { %v1158_v5 = vmax.f32 %v1126_v25, 0.0  ;;  %v2524_v51 = vld [vmem:[#allocation5 + $0x3c0] sm:$0xff] }
 0x30a   : > { %3974 = vmatprep.subr.bf16.mxu0 %v7448_v33  ;;  %v2552_v33 = vld [vmem:[#allocation5 + $0x4a0] sm:$0xff] }
 0x30b   : > { %1641 = vmatmul.mubr.bf16.gmra.mxu0 %v1240_v46  ;;  %1754 = vmatmul.mubr.bf16.gmra.mxu1 %v1240_v46  ;;  %v1244_v41 = vpack.c.bf16 %v1160_v1, %v1158_v5  ;;  %v7560_v46 = vcombine.high %v2572_v63, %v2576_v60  ;;  %v2520_v10 = vld [vmem:[#allocation5 + $0x3a0] sm:$0xff] }
 0x30c   : > { %1650 = vmatprep.mubr.bf16.mxu0 %v1243_v6  ;;  %1763 = vmatprep.mubr.bf16.mxu1 %v1243_v6  ;;  %v2644_v20 = vld [vmem:[#allocation5 + $0x780] sm:$0xff] }
 0x30d   : > { %3975 = vmatpush1.bf16.msra.mxu0 %v7447_v36  ;;  %4091 = vmatprep.subr.bf16.mxu1 %v7560_v46  ;;  %v2532_v46 = vld [vmem:[#allocation5 + $0x400] sm:$0xff] }
 0x30e   : > { %3976 = vmatprep.subr.bf16.mxu0 %v7440_v53  ;;  %4092 = vmatpush1.bf16.msra.mxu1 %v7559_v48  ;;  %v2540_v53 = vld [vmem:[#allocation5 + $0x440] sm:$0xff] }
 0x30f   : > { %4093 = vmatprep.subr.bf16.mxu1 %v7552_v12  ;;  %v7527_v8 = vcombine.low %v2540_v53, %v2544_v22  ;;  %v7528_v60 = vcombine.high %v2540_v53, %v2544_v22  ;;  %v2408_v48 = vld [vmem:[#allocation5 + $0x20] sm:$0xff] }
 0x311   : > { %3977 = vmatpush1.bf16.msra.mxu0 %v7439_v47 }
 0x312   : > { %3978 = vmatprep.subr.bf16.mxu0 %v7432_v15  ;;  %4094 = vmatpush1.bf16.msra.mxu1 %v7551_v27 }
 0x313   : > { %1651 = vmatmul.mubr.bf16.gmra.mxu0 %v1242_v18  ;;  %1764 = vmatmul.mubr.bf16.gmra.mxu1 %v1242_v18 }
 0x314   : > { %1660 = vmatprep.mubr.bf16.mxu0 %v1245_v37  ;;  %1773 = vmatprep.mubr.bf16.mxu1 %v1245_v37  ;;  %v2560_v37 = vld [vmem:[#allocation5 + $0x4e0] sm:$0xff] }
 0x315   : > { %3979 = vmatpush1.bf16.msra.mxu0 %v7431_v44  ;;  %v7543_v58 = vcombine.low %v2556_v38, %v2560_v37  ;;  %v7544_v31 = vcombine.high %v2556_v38, %v2560_v37  ;;  %v2404_v44 = vld [vmem:[#allocation5] sm:$0xff] }
 0x316   : > { %3980 = vmatprep.subr.bf16.mxu0 %v7424_v50  ;;  %v7392_v4 = vcombine.high %v2404_v44, %v2408_v48  ;;  %v2536_v50 = vld [vmem:[#allocation5 + $0x420] sm:$0xff]  ;;  %v7391_v11 = vcombine.low %v2404_v44, %v2408_v48 }
 0x317   : > { %4095 = vmatprep.subr.bf16.mxu1 %v7544_v31  ;;  %v7520_v55 = vcombine.high %v2532_v46, %v2536_v50  ;;  %v2528_v38 = vld [vmem:[#allocation5 + $0x3e0] sm:$0xff] }
 0x318   : > { %4096 = vmatpush1.bf16.msra.mxu1 %v7543_v58  ;;  %v7512_v58 = vcombine.high %v2524_v51, %v2528_v38  ;;  %v2656_v31 = vld [vmem:[#allocation5 + $0x7e0] sm:$0xff] }
 0x319   : > { %3981 = vmatpush1.bf16.msra.mxu0 %v7423_v2  ;;  %v7519_v2 = vcombine.low %v2532_v46, %v2536_v50 }
 0x31a   : > { %3982 = vmatprep.subr.bf16.mxu0 %v7416_v59  ;;  %v2652_v59 = vld [vmem:[#allocation5 + $0x7c0] sm:$0xff] }
 0x31b   : > { %1661 = vmatmul.mubr.bf16.gmra.mxu0 %v1244_v41  ;;  %1774 = vmatmul.mubr.bf16.gmra.mxu1 %v1244_v41  ;;  %v2424_v41 = vld [vmem:[#allocation5 + $0xa0] sm:$0xff] }
 0x31c   : > { %1670 = vmatprep.mubr.bf16.mxu0 %v1247_v9  ;;  %1783 = vmatprep.mubr.bf16.mxu1 %v1247_v9  ;;  %v2548_v9 = vld [vmem:[#allocation5 + $0x480] sm:$0xff]  ;;  %v7408_v21 = vcombine.high %v2420_v30, %v2424_v41  ;;  %v7407_v29 = vcombine.low %v2420_v30, %v2424_v41  ;;  %v7511_v30 = vcombine.low %v2524_v51, %v2528_v38 }
 0x31d   : > { %3983 = vmatpush1.bf16.msra.mxu0 %v7415_v24  ;;  %v7535_v3 = vcombine.low %v2548_v9, %v2552_v33  ;;  %v7536_v17 = vcombine.high %v2548_v9, %v2552_v33  ;;  %v7639_v41 = vcombine.low %v2652_v59, %v2656_v31  ;;  %v7640_v33 = vcombine.high %v2652_v59, %v2656_v31  ;;  %v2512_v51 = vld [vmem:[#allocation5 + $0x360] sm:$0xff] }
 0x31e   : > { %3984 = vmatprep.subr.bf16.mxu0 %v7408_v21  ;;  %v2636_v38 = vld [vmem:[#allocation5 + $0x740] sm:$0xff] }
 0x31f   : > { %4097 = vmatprep.subr.bf16.mxu1 %v7536_v17  ;;  %v2516_v17 = vld [vmem:[#allocation5 + $0x380] sm:$0xff] }
 0x320   : > { %4098 = vmatpush1.bf16.msra.mxu1 %v7535_v3  ;;  %v7504_v22 = vcombine.high %v2516_v17, %v2520_v10  ;;  %v7503_v44 = vcombine.low %v2516_v17, %v2520_v10 }
 0x321   : > { %3985 = vmatpush1.bf16.msra.mxu0 %v7407_v29  ;;  %4099 = vmatprep.subr.bf16.mxu1 %v7528_v60 }
 0x322   : > { %3986 = vmatprep.subr.bf16.mxu0 %v7400_v40 }
 0x323   : > { %1671 = vmatmul.mubr.bf16.gmra.mxu0 %v9300_v16  ;;  %1784 = vmatmul.mubr.bf16.gmra.mxu1 %v9300_v16 }
 0x324   : > { %4100 = vmatpush1.bf16.msra.mxu1 %v7527_v8 }
 0x325   : > { %3987 = vmatpush1.bf16.msra.mxu0 %v7399_v34  ;;  %4101 = vmatprep.subr.bf16.mxu1 %v7520_v55  ;;  %v2648_v34 = vld [vmem:[#allocation5 + $0x7a0] sm:$0xff] }
 0x326   : > { %3988 = vmatprep.subr.bf16.mxu0 %v7392_v4  ;;  %v7631_v48 = vcombine.low %v2644_v20, %v2648_v34  ;;  %v7632_v50 = vcombine.high %v2644_v20, %v2648_v34  ;;  %v2508_v55 = vld [vmem:[#allocation5 + $0x340] sm:$0xff] }
 0x328   : > { %4102 = vmatpush1.bf16.msra.mxu1 %v7519_v2 }
 0x329   : > { %3989 = vmatpush1.bf16.msra.mxu0 %v7391_v11  ;;  %4103 = vmatprep.subr.bf16.mxu1 %v7640_v33 }
 0x32a   : > { %3990 = vmatprep.subr.bf16.mxu0 %v7512_v58 }
 0x32c   : > { %4104 = vmatpush2.bf16.msra.mxu1 %v7639_v41  ;;  %v2640_v41 = vld [vmem:[#allocation5 + $0x760] sm:$0xff] }
 0x32d   : > { %3991 = vmatpush2.bf16.msra.mxu0 %v7511_v30  ;;  %4105 = vmatprep.subr.bf16.mxu1 %v7632_v50  ;;  %v7496_v30 = vcombine.high %v2508_v55, %v2512_v51  ;;  %v7623_v17 = vcombine.low %v2636_v38, %v2640_v41  ;;  %v2500_v50 = vld [vmem:[#allocation5 + $0x300] sm:$0xff] }
 0x32e   : > { %3992 = vmatprep.subr.bf16.mxu0 %v7504_v22 }
 0x330   : > { %4106 = vmatpush2.bf16.msra.mxu1 %v7631_v48  ;;  %v2504_v48 = vld [vmem:[#allocation5 + $0x320] sm:$0xff] }
 0x331   : > { %3993 = vmatpush2.bf16.msra.mxu0 %v7503_v44  ;;  %v7488_v54 = vcombine.high %v2500_v50, %v2504_v48 }
 0x332   : > { %3994 = vmatprep.subr.bf16.mxu0 %v7496_v30  ;;  %v2632_v30 = vld [vmem:[#allocation5 + $0x720] sm:$0xff] }
 0x3ab   : > { %v9344_v61 = vpop.f32.mrf.mxu0  ;;  %v9346_v26 = vpop.f32.mrf.mxu1 }
 0x3ad   : > { %v9348_v43 = vpop.f32.mrf.mxu0  ;;  %v9350_v16 = vpop.f32.mrf.mxu1 }
 0x3ae   : > { %13870 = vst [vmem:[#allocation15_spill] sm:$0xff] %v9350_v16 }
 0x3af   : > { %v9352_v28 = vpop.f32.mrf.mxu0  ;;  %v9354_v35 = vpop.f32.mrf.mxu1 }
 0x3b0   : > { %v1794_v29 = vadd.f32 %v9352_v28, %v9344_v61  ;;  %v1836_v3 = vadd.f32 %v9354_v35, %v9346_v26 }
 0x3b1   : > { %v9356_v52 = vpop.f32.mrf.mxu0  ;;  %v9358_v62 = vpop.f32.mrf.mxu1 }
 0x3b2   : > { %13871 = vst [vmem:[#allocation16_spill] sm:$0xff] %v9358_v62  ;;  %v1815_v59 = vadd.f32 %v9356_v52, %v9348_v43  ;;  %v1857_v10 = vadd.f32 %v9358_v62, %v9350_v16 }
 0x3b3   : > { %v9360_v56 = vpop.f32.mrf.mxu0  ;;  %v9362_v23 = vpop.f32.mrf.mxu1 }
 0x3b4   : > { %v1795_v8 = vadd.f32 %v1794_v29, %v9360_v56  ;;  %v1837_v60 = vadd.f32 %v1836_v3, %v9362_v23  ;;  %v7495_v3 = vcombine.low %v2508_v55, %v2512_v51 }
 0x3b5   : > { %v9364_v6 = vpop.f32.mrf.mxu0  ;;  %v9366_v19 = vpop.f32.mrf.mxu1 }
 0x3b6   : > { %13872 = vst [vmem:[#allocation17_spill] sm:$0xff] %v9366_v19  ;;  %v1816_v20 = vadd.f32 %v1815_v59, %v9364_v6  ;;  %3995 = vmatpush2.bf16.msra.mxu0 %v7495_v3 }
 0x3b7   : > { %v9368_v45 = vpop.f32.mrf.mxu0  ;;  %v9370_v7 = vpop.f32.mrf.mxu1  ;;  %3996 = vmatprep.subr.bf16.mxu0 %v7488_v54  ;;  %v2624_v54 = vld [vmem:[#allocation5 + $0x6e0] sm:$0xff] }
 0x3b8   : > { %v1796_v11 = vadd.f32 %v1795_v8, %v9368_v45  ;;  %v1838_v2 = vadd.f32 %v1837_v60, %v9370_v7  ;;  %v7624_v8 = vcombine.high %v2636_v38, %v2640_v41 }
 0x3b9   : > { %v9372_v18 = vpop.f32.mrf.mxu0  ;;  %v9374_v25 = vpop.f32.mrf.mxu1 }
 0x3ba   : > { %13873 = vst [vmem:[#allocation18_spill] sm:$0xff] %v9374_v25  ;;  %v1817_v55 = vadd.f32 %v1816_v20, %v9372_v18  ;;  %4107 = vmatprep.subr.bf16.mxu1 %v7624_v8 }
 0x3bb   : > { %v9376_v5 = vpop.f32.mrf.mxu0  ;;  %v9378_v1 = vpop.f32.mrf.mxu1  ;;  %4108 = vmatpush2.bf16.msra.mxu1 %v7623_v17  ;;  %v2620_v17 = vld [vmem:[#allocation5 + $0x6c0] sm:$0xff] }
 0x3bc   : > { %v1797_v33 = vadd.f32 %v1796_v11, %v9376_v5  ;;  %v1839_v29 = vadd.f32 %v1838_v2, %v9378_v1  ;;  %v2628_v11 = vld [vmem:[#allocation5 + $0x700] sm:$0xff]  ;;  %v1858_v2 = vadd.f32 %v1857_v10, %v9366_v19 }
 0x3bd   : > { %v9380_v13 = vpop.f32.mrf.mxu0  ;;  %v9382_v39 = vpop.f32.mrf.mxu1  ;;  %v7616_v62 = vcombine.high %v2628_v11, %v2632_v30 }
 0x3be   : > { %13874 = vst [vmem:[#allocation19_spill] sm:$0xff] %v9380_v13  ;;  %13875 = vst [vmem:[#allocation20_spill] sm:$0xff] %v9382_v39  ;;  %v1859_v3 = vadd.f32 %v1858_v2, %v9374_v25  ;;  %v1818_v10 = vadd.f32 %v1817_v55, %v9380_v13 }
 0x3bf   : > { %v9384_v36 = vpop.f32.mrf.mxu0  ;;  %v9386_v42 = vpop.f32.mrf.mxu1  ;;  %4109 = vmatprep.subr.bf16.mxu1 %v7616_v62 }
 0x3c0   : > { %v1798_v60 = vadd.f32 %v1797_v33, %v9384_v36  ;;  %v1840_v44 = vadd.f32 %v1839_v29, %v9386_v42  ;;  %v7487_v33 = vcombine.low %v2500_v50, %v2504_v48  ;;  %v7615_v29 = vcombine.low %v2628_v11, %v2632_v30 }
 0x3c1   : > { %v9388_v57 = vpop.f32.mrf.mxu0  ;;  %v9390_v47 = vpop.f32.mrf.mxu1  ;;  %v1860_v50 = vadd.f32 %v1859_v3, %v9382_v39 }
 0x3c2   : > { %13876 = vst [vmem:[#allocation21_spill] sm:$0xff] %v9388_v57  ;;  %13877 = vst [vmem:[#allocation22_spill] sm:$0xff] %v9390_v47  ;;  %3997 = vmatpush2.bf16.msra.mxu0 %v7487_v33  ;;  %v1819_v48 = vadd.f32 %v1818_v10, %v9388_v57  ;;  %4110 = vmatpush2.bf16.msra.mxu1 %v7615_v29  ;;  %v7608_v57 = vcombine.high %v2620_v17, %v2624_v54  ;;  %v2612_v29 = vld [vmem:[#allocation5 + $0x680] sm:$0xff] }
 0x3c3   : > { %v9392_v63 = vpop.f32.mrf.mxu0  ;;  %v9394_v15 = vpop.f32.mrf.mxu1  ;;  %v1861_v33 = vadd.f32 %v1860_v50, %v9390_v47 }
 0x3c4   : > { %v1799_v38 = vadd.f32 %v1798_v60, %v9392_v63  ;;  %v1841_v41 = vadd.f32 %v1840_v44, %v9394_v15  ;;  %v2492_v60 = vld [vmem:[#allocation5 + $0x2c0] sm:$0xff]  ;;  %4111 = vmatprep.subr.bf16.mxu1 %v7608_v57 }
 0x3c5   : > { %v9396_v32 = vpop.f32.mrf.mxu0  ;;  %v9398_v0 = vpop.f32.mrf.mxu1  ;;  %v2496_v44 = vld [vmem:[#allocation5 + $0x2e0] sm:$0xff] }
 0x3c6   : > { %13878 = vst [vmem:[#allocation23_spill] sm:$0xff] %v9396_v32  ;;  %13879 = vst [vmem:[#allocation24_spill] sm:$0xff] %v9398_v0  ;;  %v7480_v25 = vcombine.high %v2492_v60, %v2496_v44  ;;  %v1820_v3 = vadd.f32 %v1819_v48, %v9396_v32 }
 0x3c7   : > { %v9400_v27 = vpop.f32.mrf.mxu0  ;;  %v9402_v12 = vpop.f32.mrf.mxu1 }
 0x3c8   : > { %v1800_v8 = vadd.f32 %v1799_v38, %v9400_v27  ;;  %v1842_v16 = vadd.f32 %v1841_v41, %v9402_v12  ;;  %v7479_v38 = vcombine.low %v2492_v60, %v2496_v44  ;;  %v7607_v41 = vcombine.low %v2620_v17, %v2624_v54  ;;  %3998 = vmatprep.subr.bf16.mxu0 %v7480_v25  ;;  %v2616_v25 = vld [vmem:[#allocation5 + $0x6a0] sm:$0xff] }
 0x3c9   : > { %v9404_v37 = vpop.f32.mrf.mxu0  ;;  %v9406_v24 = vpop.f32.mrf.mxu1  ;;  %v1862_v60 = vadd.f32 %v1861_v33, %v9398_v0  ;;  %v7599_v0 = vcombine.low %v2612_v29, %v2616_v25 }
 0x3ca   : > { %13880 = vst [vmem:[#allocation25_spill] sm:$0xff] %v9404_v37  ;;  %13881 = vst [vmem:[#allocation26_spill] sm:$0xff] %v9406_v24  ;;  %3999 = vmatpush2.bf16.msra.mxu0 %v7479_v38  ;;  %v1821_v44 = vadd.f32 %v1820_v3, %v9404_v37  ;;  %4112 = vmatpush2.bf16.msra.mxu1 %v7607_v41  ;;  %v7600_v37 = vcombine.high %v2612_v29, %v2616_v25  ;;  %v2604_v41 = vld [vmem:[#allocation5 + $0x640] sm:$0xff] }
 0x3cb   : > { %v9408_v9 = vpop.f32.mrf.mxu0  ;;  %v9410_v21 = vpop.f32.mrf.mxu1 }
 0x3cc   : > { %v1801_v11 = vadd.f32 %v1800_v8, %v9408_v9  ;;  %v1843_v30 = vadd.f32 %v1842_v16, %v9410_v21  ;;  %v2484_v8 = vld [vmem:[#allocation5 + $0x280] sm:$0xff]  ;;  %4113 = vmatprep.subr.bf16.mxu1 %v7600_v37 }
 0x3cd   : > { %v9416_v53 = vpop.f32.mrf.mxu0  ;;  %v9418_v40 = vpop.f32.mrf.mxu1  ;;  %v2488_v16 = vld [vmem:[#allocation5 + $0x2a0] sm:$0xff] }
 0x3ce   : > { %13882 = vst [vmem:[#allocation27_spill] sm:$0xff] %v9416_v53  ;;  %13883 = vst [vmem:[#allocation28_spill] sm:$0xff] %v9418_v40  ;;  %v7472_v47 = vcombine.high %v2484_v8, %v2488_v16  ;;  %v1822_v38 = vadd.f32 %v1821_v44, %v9416_v53  ;;  %4114 = vmatpush2.bf16.msra.mxu1 %v7599_v0  ;;  %v2472_v53 = vld [vmem:[#allocation5 + $0x220] sm:$0xff] }
 0x3cf   : > { %v9422_v46 = vpop.f32.mrf.mxu0  ;;  %v9424_v4 = vpop.f32.mrf.mxu1 }
 0x3d0   : > { %v1802_v62 = vadd.f32 %v1801_v11, %v9422_v46  ;;  %v1844_v13 = vadd.f32 %v1843_v30, %v9424_v4  ;;  %v7471_v11 = vcombine.low %v2484_v8, %v2488_v16  ;;  %v1863_v30 = vadd.f32 %v1862_v60, %v9406_v24  ;;  %4000 = vmatprep.subr.bf16.mxu0 %v7472_v47  ;;  %v2608_v24 = vld [vmem:[#allocation5 + $0x660] sm:$0xff] }
 0x3d1   : > { %v9430_v58 = vpop.f32.mrf.mxu0  ;;  %v9432_v31 = vpop.f32.mrf.mxu1  ;;  %v7592_v37 = vcombine.high %v2604_v41, %v2608_v24 }
 0x3d2   : > { %13884 = vst [vmem:[#allocation29_spill] sm:$0xff] %v9430_v58  ;;  %13885 = vst [vmem:[#allocation30_spill] sm:$0xff] %v9432_v31  ;;  %4001 = vmatpush2.bf16.msra.mxu0 %v7471_v11  ;;  %v1864_v8 = vadd.f32 %v1863_v30, %v9418_v40  ;;  %v1823_v16 = vadd.f32 %v1822_v38, %v9430_v58  ;;  %v2468_v11 = vld [vmem:[#allocation5 + $0x200] sm:$0xff] }
 0x3d3   : > { %v9439_v22 = vpop.f32.mrf.mxu0  ;;  %v9441_v34 = vpop.f32.mrf.mxu1  ;;  %4115 = vmatprep.subr.bf16.mxu1 %v7592_v37 }
 0x3d4   : > { %13886 = vst [vmem:[#allocation31_spill] sm:$0xff] %v9441_v34  ;;  %v1803_v17 = vadd.f32 %v1802_v62, %v9439_v22  ;;  %v1845_v54 = vadd.f32 %v1844_v13, %v9441_v34  ;;  %v2476_v62 = vld [vmem:[#allocation5 + $0x240] sm:$0xff]  ;;  %v1865_v30 = vadd.f32 %v1864_v8, %v9432_v31  ;;  %v7456_v34 = vcombine.high %v2468_v11, %v2472_v53 }
 0x3d5   : > { %v9447_v51 = vpop.f32.mrf.mxu0  ;;  %v9449_v59 = vpop.f32.mrf.mxu1  ;;  %v2480_v13 = vld [vmem:[#allocation5 + $0x260] sm:$0xff] }
 0x3d6   : > { %13887 = vst [vmem:[#allocation32_spill] sm:$0xff] %v9449_v59  ;;  %v7464_v47 = vcombine.high %v2476_v62, %v2480_v13  ;;  %v1824_v38 = vadd.f32 %v1823_v16, %v9447_v51 }
 0x3d7   : > { %v9455_v19 = vpop.f32.mrf.mxu0  ;;  %v9457_v20 = vpop.f32.mrf.mxu1 }
 0x3d8   : > { %13888 = vst [vmem:[#allocation33_spill] sm:$0xff] %v9457_v20  ;;  %v1804_v57 = vadd.f32 %v1803_v17, %v9455_v19  ;;  %v1846_v32 = vadd.f32 %v1845_v54, %v9457_v20  ;;  %v7463_v17 = vcombine.low %v2476_v62, %v2480_v13  ;;  %v7591_v54 = vcombine.low %v2604_v41, %v2608_v24  ;;  %v2596_v20 = vld [vmem:[#allocation5 + $0x600] sm:$0xff] }
 0x3d9   : > { %v9463_v2 = vpop.f32.mrf.mxu0  ;;  %v9465_v55 = vpop.f32.mrf.mxu1  ;;  %4002 = vmatprep.subr.bf16.mxu0 %v7464_v47  ;;  %v7455_v62 = vcombine.low %v2468_v11, %v2472_v53 }
 0x3da   : > { %13889 = vst [vmem:[#allocation34_spill] sm:$0xff] %v9465_v55  ;;  %4003 = vmatpush2.bf16.msra.mxu0 %v7463_v17  ;;  %v1825_v8 = vadd.f32 %v1824_v38, %v9463_v2  ;;  %4116 = vmatpush2.bf16.msra.mxu1 %v7591_v54  ;;  %v9527_v38 = vld [vmem:[#allocation5 + $0x1e8] sm:$0xff] }
 0x3db   : > { %v9471_v39 = vpop.f32.mrf.mxu0  ;;  %v9473_v10 = vpop.f32.mrf.mxu1  ;;  %4004 = vmatprep.subr.bf16.mxu0 %v7456_v34  ;;  %v9525_v34 = vld [vmem:[#allocation5 + $0x1c8] sm:$0xff]  ;;  %13895 = vst [vmem:[#allocation40_spill] sm:$0xff] %v9527_v38 }
 0x3dc   : > { %13890 = vst [vmem:[#allocation35_spill] sm:$0xff] %v9473_v10  ;;  %v1805_v29 = vadd.f32 %v1804_v57, %v9471_v39  ;;  %v1847_v25 = vadd.f32 %v1846_v32, %v9473_v10  ;;  %v2600_v57 = vld [vmem:[#allocation5 + $0x620] sm:$0xff]  ;;  %v1866_v10 = vadd.f32 %v1865_v30, %v9449_v59  ;;  %13894 = vst [vmem:[#allocation39_spill] sm:$0xff] %v9525_v34  ;;  %v9529_v54 = vld [vmem:[#allocation5 + $0x5c8] sm:$0xff] }
 0x3dd   : > { %v9479_v50 = vpop.f32.mrf.mxu0  ;;  %v9481_v48 = vpop.f32.mrf.mxu1  ;;  %v7584_v13 = vcombine.high %v2596_v20, %v2600_v57  ;;  %v7583_v47 = vcombine.low %v2596_v20, %v2600_v57  ;;  %13896 = vst [vmem:[#allocation41_spill] sm:$0xff] %v9529_v54  ;;  %v7450_v57 = vcombine.high %v9525_v34, %v9527_v38 }
 0x3de   : > { %13891 = vst [vmem:[#allocation36_spill] sm:$0xff] %v9481_v48  ;;  %v1826_v53 = vadd.f32 %v1825_v8, %v9479_v50  ;;  %4005 = vmatpush2.bf16.msra.mxu0 %v7455_v62 }
 0x3df   : > { %v9487_v33 = vpop.f32.mrf.mxu0  ;;  %v9489_v3 = vpop.f32.mrf.mxu1  ;;  %4117 = vmatprep.subr.bf16.mxu1 %v7584_v13  ;;  %4200 = vmatprep.subr.bf16.mxu0 %v7450_v57 }
 0x3e0   : > { %v1806_v32 = vadd.f32 %v1805_v29, %v9487_v33  ;;  %v1848_v0 = vadd.f32 %v1847_v25, %v9489_v3  ;;  %v1867_v29 = vadd.f32 %v1866_v10, %v9465_v55  ;;  %4118 = vmatpush2.bf16.msra.mxu1 %v7583_v47 }
 0x3e1   : > { %v9495_v60 = vpop.f32.mrf.mxu0  ;;  %v9497_v44 = vpop.f32.mrf.mxu1 }
 0x3e2   : > { %13892 = vst [vmem:[#allocation37_spill] sm:$0xff] %v9497_v44  ;;  %v1868_v20 = vadd.f32 %v1867_v29, %v9481_v48  ;;  %v1827_v10 = vadd.f32 %v1826_v53, %v9495_v60 }
 0x3e3   : > { %v9503_v40 = vpop.f32.mrf.mxu0  ;;  %v9505_v58 = vpop.f32.mrf.mxu1 }
 0x3e4   : > { %v1807_v24 = vadd.f32 %v1806_v32, %v9503_v40  ;;  %v1849_v41 = vadd.f32 %v1848_v0, %v9505_v58  ;;  %v9537_v32 = vld [vmem:[#allocation5 + $0x5e8] sm:$0xff]  ;;  %v1869_v8 = vadd.f32 %v1868_v20, %v9497_v44 }
 0x3e5   : > { %v9511_v16 = vpop.f32.mrf.mxu0  ;;  %v9513_v31 = vpop.f32.mrf.mxu1  ;;  %13897 = vst [vmem:[#allocation42_spill] sm:$0xff] %v9537_v32  ;;  %v7578_v29 = vcombine.high %v9529_v54, %v9537_v32 }
 0x3e6   : > { %13893 = vst [vmem:[#allocation38_spill] sm:$0xff] %v9511_v16  ;;  %v1870_v34 = vadd.f32 %v1869_v8, %v9513_v31 }
 0x3e7   : > { %v9519_v25 = vpop.f32.mrf.mxu0  ;;  %v9521_v17 = vpop.f32.mrf.mxu1  ;;  %4313 = vmatprep.subr.bf16.mxu1 %v7578_v29 }
 0x3e8   : > { %v1808_v11 = vadd.f32 %v1807_v24, %v9519_v25  ;;  %v1850_v30 = vadd.f32 %v1849_v41, %v9521_v17  ;;  %v1828_v24 = vadd.f32 %v1827_v10, %v9511_v16 }
 0x3e9   : > { %v9539_v13 = vpop.f32.mrf.mxu0  ;;  %v9547_v38 = vpop.f32.mrf.mxu1 }
 0x3ea   : > { %v1809_v0 = vrot.slane %v1808_v11, 4  ;;  %v1851_v62 = vrot.slane %v1850_v30, 4  ;;  %v1829_v48 = vadd.f32 %v1828_v24, %v9539_v13  ;;  %v1871_v10 = vadd.f32 %v1870_v34, %v9547_v38 }
 0x3ec   : > { %v1810_v53 = vadd.f32 %v1809_v0, %v1808_v11  ;;  %v1852_v37 = vadd.f32 %v1851_v62, %v1850_v30  ;;  %v1830_v55 = vrot.slane %v1829_v48, 4  ;;  %v1872_v59 = vrot.slane %v1871_v10, 4 }
 0x3ee   : > { %v1811_v47 = vrot.slane %v1810_v53, 2  ;;  %v1853_v20 = vrot.slane %v1852_v37, 2  ;;  %v1831_v11 = vadd.f32 %v1830_v55, %v1829_v48  ;;  %v1873_v0 = vadd.f32 %v1872_v59, %v1871_v10 }
 0x3f0   : > { %v1812_v57 = vadd.f32 %v1811_v47, %v1810_v53  ;;  %v1854_v44 = vadd.f32 %v1853_v20, %v1852_v37  ;;  %v1832_v24 = vrot.slane %v1831_v11, 2  ;;  %v1874_v37 = vrot.slane %v1873_v0, 2 }
 0x3f2   : > { %v1813_v41 = vrot.slane %v1812_v57, 1  ;;  %v1855_v32 = vrot.slane %v1854_v44, 1 }
 0x3f4   : > { %v1814_v16 = vadd.f32 %v1813_v41, %v1812_v57  ;;  %v1856_v34 = vadd.f32 %v1855_v32, %v1854_v44  ;;  %v1875_v44 = vadd.f32 %v1874_v37, %v1873_v0  ;;  %v9585_v41 = vld [vmem:[%s13556_s6 + $0x6] sm:$0xf]  ;;  %v9604_v57 = vld [vmem:[%s13556_s6 + $0xa] sm:$0xf] }
 0x3f6   : > { %v9552_v30 = vmul.f32 0.0078125, %v1814_v16  ;;  %v9570_v48 = vmul.f32 0.0078125, %v1856_v34 }
 0x3f8   : > { %v9556_v62 = vsub.f32 %v9344_v61, %v9552_v30  ;;  %v9560_v8 = vsub.f32 %v9352_v28, %v9552_v30  ;;  %v9564_v29 = vsub.f32 %v9360_v56, %v9552_v30  ;;  %v1833_v61 = vadd.f32 %v1832_v24, %v1831_v11 }
 0x3f9   : > { %v9574_v28 = vsub.f32 %v9368_v45, %v9552_v30  ;;  %v9578_v16 = vsub.f32 %v9376_v5, %v9552_v30  ;;  %v9589_v53 = vsub.f32 %v9346_v26, %v9570_v48  ;;  %v9593_v45 = vsub.f32 %v9354_v35, %v9570_v48 }
 0x3fa   : > { %v1946_v55 = vmul.f32 %v9556_v62, %v9556_v62  ;;  %v1950_v59 = vmul.f32 %v9560_v8, %v9560_v8  ;;  %v1954_v56 = vmul.f32 %v9564_v29, %v9564_v29  ;;  %v1834_v47 = vrot.slane %v1833_v61, 1 }
 0x3fb   : > { %v9597_v5 = vsub.f32 %v9384_v36, %v9552_v30  ;;  %v1958_v20 = vmul.f32 %v9574_v28, %v9574_v28  ;;  %v1876_v26 = vrot.slane %v1875_v44, 1  ;;  %v9608_v11 = vsub.f32 %v9392_v63, %v9552_v30 }
 0x3fc   : > { %v2010_v32 = vadd.f32 %v1950_v59, %v1946_v55  ;;  %v1962_v35 = vmul.f32 %v9578_v16, %v9578_v16  ;;  %v9614_v36 = vrot.slane %v9585_v41, %v9175_v49  ;;  %v9618_v34 = vsub.f32 %v9362_v23, %v9570_v48 }
 0x3fd   : > { %v1948_v24 = vmul.f32 %v9589_v53, %v9589_v53  ;;  %v1952_v37 = vmul.f32 %v9593_v45, %v9593_v45  ;;  %v1835_v63 = vadd.f32 %v1834_v47, %v1833_v61  ;;  %v9626_v55 = vsub.f32 %v9400_v27, %v9552_v30 }
 0x3fe   : > { %v2011_v10 = vadd.f32 %v2010_v32, %v1954_v56  ;;  %v1966_v59 = vmul.f32 %v9597_v5, %v9597_v5  ;;  %v9632_v32 = vrot.slane %v9604_v57, %v9175_v49  ;;  %v9636_v23 = vsub.f32 %v9408_v9, %v9552_v30 }
 0x3ff   : > { %v9643_v61 = vsub.s32 2, %v9172_v14  ;;  %v1877_v27 = vadd.f32 %v1876_v26, %v1875_v44  ;;  %v9647_v47 = vsub.f32 %v9422_v46, %v9552_v30  ;;  %v1970_v9 = vmul.f32 %v9608_v11, %v9608_v11 }
 0x400   : > { %v2012_v0 = vadd.f32 %v2011_v10, %v1958_v20  ;;  %13898 = vst [vmem:[#allocation43_spill] sm:$0xff] %v9636_v23  ;;  %v9640_v20 = vsub.f32 %v9370_v7, %v9570_v48  ;;  %v9651_v10 = vsub.f32 %v9439_v22, %v9552_v30  ;;  %v9657_v7 = vsub.f32 %v9378_v1, %v9570_v48 }
 0x401   : > { %13899 = vst [vmem:[#allocation44_spill] sm:$0xff] %v9643_v61  ;;  %13900 = vst [vmem:[#allocation45_spill] sm:$0xff] %v9647_v47  ;;  %v2052_v44 = vadd.f32 %v1952_v37, %v1948_v24  ;;  %v9661_v26 = vmul.f32 0.0078125, %v1835_v63  ;;  %v9665_v46 = vsub.f32 %v9455_v19, %v9552_v30  ;;  %v9669_v22 = vsub.f32 %v9471_v39, %v9552_v30 }
 0x402   : > { %v2013_v56 = vadd.f32 %v2012_v0, %v1962_v35  ;;  %13901 = vst [vmem:[#allocation46_spill] sm:$0xff] %v9651_v10  ;;  %v1956_v0 = vmul.f32 %v9618_v34, %v9618_v34  ;;  %v9675_v1 = vsub.f32 %v9487_v33, %v9552_v30  ;;  %v9679_v24 = vsub.f32 %v9386_v42, %v9570_v48 }
 0x403   : > { %13902 = vst [vmem:[#allocation47_spill] sm:$0xff] %v9665_v46  ;;  %13903 = vst [vmem:[#allocation48_spill] sm:$0xff] %v9669_v22  ;;  %v1960_v19 = vmul.f32 %v9640_v20, %v9640_v20  ;;  %v9685_v39 = vsub.f32 %v9503_v40, %v9552_v30  ;;  %v1978_v63 = vmul.f32 %v9636_v23, %v9636_v23  ;;  %v13913_v23 = vld [vmem:[#allocation19_spill] sm:$0xff] }
 0x404   : > { %v2014_v35 = vadd.f32 %v2013_v56, %v1966_v59  ;;  %v1974_v59 = vmul.f32 %v9626_v55, %v9626_v55  ;;  %13904 = vst [vmem:[#allocation49_spill] sm:$0xff] %v9675_v1  ;;  %v2053_v37 = vadd.f32 %v2052_v44, %v1956_v0  ;;  %v9691_v33 = vsub.f32 %v9394_v15, %v9570_v48 }
 0x405   : > { %v1964_v42 = vmul.f32 %v9657_v7, %v9657_v7  ;;  %v9697_v49 = vsub.f32 %v9348_v43, %v9661_v26  ;;  %v9701_v40 = vsub.f32 %v9356_v52, %v9661_v26  ;;  %v9705_v0 = vsub.f32 %v9519_v25, %v9552_v30 }
 0x406   : > { %v2015_v56 = vadd.f32 %v2014_v35, %v1970_v9  ;;  %13905 = vst [vmem:[#allocation50_spill] sm:$0xff] %v9691_v33  ;;  %v2054_v35 = vadd.f32 %v2053_v37, %v1960_v19  ;;  %v1982_v15 = vmul.f32 %v9647_v47, %v9647_v47  ;;  %v1986_v44 = vmul.f32 %v9651_v10, %v9651_v10  ;;  %v13909_v10 = vld [vmem:[#allocation31_spill] sm:$0xff] }
 0x407   : > { %v9715_v43 = vsub.f32 %v9402_v12, %v9570_v48  ;;  %v1968_v52 = vmul.f32 %v9679_v24, %v9679_v24  ;;  %v1994_v25 = vmul.f32 %v9669_v22, %v9669_v22  ;;  %v9723_v37 = vsub.f32 %v9410_v21, %v9570_v48 }
 0x408   : > { %v2016_v9 = vadd.f32 %v2015_v56, %v1974_v59  ;;  %v1990_v56 = vmul.f32 %v9665_v46, %v9665_v46  ;;  %v2055_v19 = vadd.f32 %v2054_v35, %v1964_v42  ;;  %v9729_v12 = vsub.f32 %v9364_v6, %v9661_v26 }
 0x409   : > { %13906 = vst [vmem:[#allocation51_spill] sm:$0xff] %v9715_v43  ;;  %13907 = vst [vmem:[#allocation52_spill] sm:$0xff] %v9723_v37  ;;  %v1947_v46 = vmul.f32 %v9697_v49, %v9697_v49  ;;  %v1951_v42 = vmul.f32 %v9701_v40, %v9701_v40  ;;  %v1998_v35 = vmul.f32 %v9675_v1, %v9675_v1 }
 0x40a   : > { %v2017_v59 = vadd.f32 %v2016_v9, %v1978_v63  ;;  %v1972_v63 = vmul.f32 %v9691_v33, %v9691_v33  ;;  %v2056_v9 = vadd.f32 %v2055_v19, %v1968_v52  ;;  %v2002_v21 = vmul.f32 %v9685_v39, %v9685_v39 }
 0x40b   : > { %v2006_v6 = vmul.f32 %v9705_v0, %v9705_v0  ;;  %v1976_v52 = vmul.f32 %v9715_v43, %v9715_v43  ;;  %v9749_v22 = vsub.f32 %v9372_v18, %v9661_v26  ;;  %v9753_v47 = vsub.f32 %v13909_v10, %v9570_v48  ;;  %v13914_v10 = vld [vmem:[#allocation35_spill] sm:$0xff] }
 0x40c   : > { %v2018_v30 = vadd.f32 %v2017_v59, %v1982_v15  ;;  %v9741_v59 = vsub.f32 %v9424_v4, %v9570_v48  ;;  %v2057_v19 = vadd.f32 %v2056_v9, %v1972_v63  ;;  %v9763_v63 = vsub.f32 %v13913_v23, %v9661_v26 }
 0x40d   : > { %13910 = vst [vmem:[#allocation31_spill] sm:$0xff] %v9753_v47  ;;  %v1955_v18 = vmul.f32 %v9729_v12, %v9729_v12  ;;  %v9773_v43 = vmul.f32 0.0078125, %v1877_v27  ;;  %v1959_v23 = vmul.f32 %v9749_v22, %v9749_v22 }
 0x40e   : > { %v2019_v15 = vadd.f32 %v2018_v30, %v1986_v44  ;;  %13908 = vst [vmem:[#allocation53_spill] sm:$0xff] %v9741_v59  ;;  %v13911_v44 = vld [vmem:[#allocation33_spill] sm:$0xff]  ;;  %v1980_v30 = vmul.f32 %v9723_v37, %v9723_v37  ;;  %v2058_v54 = vadd.f32 %v2057_v19, %v1976_v52 }
 0x40f   : > { %v9757_v4 = vsub.f32 %v13911_v44, %v9570_v48  ;;  %v1984_v44 = vmul.f32 %v9741_v59, %v9741_v59  ;;  %v13916_v52 = vld [vmem:[#allocation21_spill] sm:$0xff] }
 0x410   : > { %v2020_v1 = vadd.f32 %v2019_v15, %v1990_v56  ;;  %v2031_v56 = vadd.f32 %v1951_v42, %v1947_v46  ;;  %v9769_v15 = vsub.f32 %v13914_v10, %v9570_v48  ;;  %v2059_v37 = vadd.f32 %v2058_v54, %v1980_v30  ;;  %v13918_v42 = vld [vmem:[#allocation23_spill] sm:$0xff]  ;;  %v13921_v10 = vld [vmem:[#allocation16_spill] sm:$0xff] }
 0x411   : > { %13912 = vst [vmem:[#allocation33_spill] sm:$0xff] %v9757_v4  ;;  %v9777_v19 = vsub.f32 %v13916_v52, %v9661_v26  ;;  %v1988_v54 = vmul.f32 %v9753_v47, %v9753_v47  ;;  %v9793_v30 = vsub.f32 %v13918_v42, %v9661_v26  ;;  %v9805_v52 = vsub.f32 %v13921_v10, %v9773_v43  ;;  %v13931_v47 = vld [vmem:[#allocation18_spill] sm:$0xff] }
 0x412   : > { %v2021_v9 = vadd.f32 %v2020_v1, %v1994_v25  ;;  %13915 = vst [vmem:[#allocation19_spill] sm:$0xff] %v9769_v15  ;;  %v2032_v33 = vadd.f32 %v2031_v56, %v1955_v18  ;;  %v9783_v1 = vsub.f32 %v9489_v3, %v9570_v48  ;;  %v9787_v25 = vsub.f32 %v9505_v58, %v9570_v48 }
 0x413   : > { %v2060_v27 = vadd.f32 %v2059_v37, %v1984_v44  ;;  %v1963_v18 = vmul.f32 %v9763_v63, %v9763_v63  ;;  %v1992_v3 = vmul.f32 %v9757_v4, %v9757_v4  ;;  %13922 = vst [vmem:[#allocation23_spill] sm:$0xff] %v9805_v52  ;;  %v13923_v44 = vld [vmem:[#allocation25_spill] sm:$0xff]  ;;  %v1971_v4 = vmul.f32 %v9793_v30, %v9793_v30 }
 0x414   : > { %v2022_v46 = vadd.f32 %v2021_v9, %v1998_v35  ;;  %13917 = vst [vmem:[#allocation35_spill] sm:$0xff] %v9783_v1  ;;  %v2033_v35 = vadd.f32 %v2032_v33, %v1959_v23  ;;  %v13919_v9 = vld [vmem:[#allocation15_spill] sm:$0xff]  ;;  %v9809_v42 = vsub.f32 %v13923_v44, %v9661_v26  ;;  %v1967_v33 = vmul.f32 %v9777_v19, %v9777_v19 }
 0x415   : > { %v9801_v58 = vsub.f32 %v13919_v9, %v9773_v43  ;;  %v2061_v37 = vadd.f32 %v2060_v27, %v1988_v54  ;;  %v1996_v9 = vmul.f32 %v9769_v15, %v9769_v15  ;;  %v2000_v10 = vmul.f32 %v9783_v1, %v9783_v1  ;;  %v13925_v27 = vld [vmem:[#allocation27_spill] sm:$0xff] }
 0x416   : > { %v2023_v56 = vadd.f32 %v2022_v46, %v2002_v21  ;;  %13924 = vst [vmem:[#allocation15_spill] sm:$0xff] %v9809_v42  ;;  %v2034_v21 = vadd.f32 %v2033_v35, %v1963_v18  ;;  %v9815_v46 = vsub.f32 %v9521_v17, %v9570_v48  ;;  %v9823_v44 = vsub.f32 %v13925_v27, %v9661_v26  ;;  %v13927_v35 = vld [vmem:[#allocation17_spill] sm:$0xff] }
 0x417   : > { %13920 = vst [vmem:[#allocation21_spill] sm:$0xff] %v9801_v58  ;;  %v2062_v54 = vadd.f32 %v2061_v37, %v1992_v3  ;;  %v9829_v17 = vsub.f32 %v13927_v35, %v9773_v43  ;;  %v1949_v48 = vmul.f32 %v9801_v58, %v9801_v58  ;;  %v13929_v37 = vld [vmem:[#allocation29_spill] sm:$0xff]  ;;  %v1975_v1 = vmul.f32 %v9809_v42, %v9809_v42 }
 0x418   : > { %v2024_v23 = vadd.f32 %v2023_v56, %v2006_v6  ;;  %13926 = vst [vmem:[#allocation16_spill] sm:$0xff] %v9823_v44  ;;  %v2035_v18 = vadd.f32 %v2034_v21, %v1967_v33  ;;  %v1953_v56 = vmul.f32 %v9805_v52, %v9805_v52  ;;  %v9837_v27 = vsub.f32 %v13929_v37, %v9661_v26 }
 0x419   : > { %13928 = vst [vmem:[#allocation25_spill] sm:$0xff] %v9829_v17  ;;  %v2063_v3 = vadd.f32 %v2062_v54, %v1996_v9  ;;  %v2004_v35 = vmul.f32 %v9787_v25, %v9787_v25  ;;  %v2008_v15 = vmul.f32 %v9815_v46, %v9815_v46  ;;  %v9847_v59 = vsub.f32 %v13931_v47, %v9773_v43 }
 0x41a   : > { %v2025_v6 = vrot.slane %v2024_v23, 4  ;;  %13930 = vst [vmem:[#allocation27_spill] sm:$0xff] %v9837_v27  ;;  %v2036_v33 = vadd.f32 %v2035_v18, %v1971_v4  ;;  %v9851_v54 = vsub.f32 %v9447_v51, %v9661_v26  ;;  %v1979_v37 = vmul.f32 %v9823_v44, %v9823_v44  ;;  %v13933_v18 = vld [vmem:[#allocation20_spill] sm:$0xff] }
 0x41b   : > { %v2064_v9 = vadd.f32 %v2063_v3, %v2000_v10  ;;  %v1957_v52 = vmul.f32 %v9829_v17, %v9829_v17  ;;  %v2073_v58 = vadd.f32 %v1953_v56, %v1949_v48  ;;  %v9863_v10 = vsub.f32 %v9463_v2, %v9661_v26 }
 0x41c   : > { %v2026_v21 = vadd.f32 %v2025_v6, %v2024_v23  ;;  %13932 = vst [vmem:[#allocation17_spill] sm:$0xff] %v9851_v54  ;;  %v2037_v4 = vadd.f32 %v2036_v33, %v1975_v1  ;;  %v9857_v6 = vsub.f32 %v13933_v18, %v9773_v43  ;;  %v1983_v51 = vmul.f32 %v9837_v27, %v9837_v27  ;;  %v13935_v1 = vld [vmem:[#allocation22_spill] sm:$0xff]  ;;  %v10000_v27 = vld [vmem:[#allocation5 + $0x108] sm:$0xff] }
 0x41d   : > { %v2065_v47 = vadd.f32 %v2064_v9, %v2004_v35  ;;  %13934 = vst [vmem:[#allocation29_spill] sm:$0xff] %v9863_v10  ;;  %v9869_v33 = vsub.f32 %v13935_v1, %v9773_v43  ;;  %v1961_v18 = vmul.f32 %v9847_v59, %v9847_v59  ;;  %v2074_v42 = vadd.f32 %v2073_v58, %v1957_v52 }
 0x41e   : > { %v2027_v23 = vrot.slane %v2026_v21, 2  ;;  %v2038_v3 = vadd.f32 %v2037_v4, %v1979_v37  ;;  %v9875_v48 = vsub.f32 %v9479_v50, %v9661_v26  ;;  %v1987_v2 = vmul.f32 %v9851_v54, %v9851_v54 }
 0x41f   : > { %v2066_v17 = vadd.f32 %v2065_v47, %v2008_v15  ;;  %v1965_v37 = vmul.f32 %v9857_v6, %v9857_v6  ;;  %v2075_v4 = vadd.f32 %v2074_v42, %v1961_v18  ;;  %v9887_v15 = vsub.f32 %v9495_v60, %v9661_v26  ;;  %v13940_v47 = vld [vmem:[#allocation26_spill] sm:$0xff] }
 0x420   : > { %v2028_v44 = vadd.f32 %v2027_v23, %v2026_v21  ;;  %13936 = vst [vmem:[#allocation18_spill] sm:$0xff] %v9875_v48  ;;  %v2039_v56 = vadd.f32 %v2038_v3, %v1983_v51  ;;  %v13937_v21 = vld [vmem:[#allocation24_spill] sm:$0xff]  ;;  %v1991_v50 = vmul.f32 %v9863_v10, %v9863_v10  ;;  %v9893_v51 = vsub.f32 %v13940_v47, %v9773_v43  ;;  %v13942_v42 = vld [vmem:[#allocation38_spill] sm:$0xff] }
 0x421   : > { %v9881_v9 = vsub.f32 %v13937_v21, %v9773_v43  ;;  %v2067_v23 = vrot.slane %v2066_v17, 4  ;;  %13939 = vst [vmem:[#allocation22_spill] sm:$0xff] %v9887_v15  ;;  %v1969_v3 = vmul.f32 %v9869_v33, %v9869_v33  ;;  %v2076_v1 = vadd.f32 %v2075_v4, %v1965_v37 }
 0x422   : > { %v2029_v35 = vrot.slane %v2028_v44, 1  ;;  %v2040_v58 = vadd.f32 %v2039_v56, %v1987_v2  ;;  %13941 = vst [vmem:[#allocation24_spill] sm:$0xff] %v9893_v51  ;;  %v9899_v18 = vsub.f32 %v13942_v42, %v9661_v26  ;;  %v1995_v60 = vmul.f32 %v9875_v48, %v9875_v48 }
 0x423   : > { %13938 = vst [vmem:[#allocation20_spill] sm:$0xff] %v9881_v9  ;;  %v2068_v21 = vadd.f32 %v2067_v23, %v2066_v17  ;;  %v1973_v56 = vmul.f32 %v9881_v9, %v9881_v9  ;;  %v9911_v17 = vsub.f32 %v9539_v13, %v9661_v26  ;;  %v1999_v37 = vmul.f32 %v9887_v15, %v9887_v15  ;;  %v13949_v26 = vld [vmem:[#allocation32_spill] sm:$0xff]  ;;  %v13953_v15 = vld [vmem:[#allocation14_spill] sm:$0xff]  ;;  %v10014_v9 = vld [vmem:[#allocation5 + $0x528] sm:$0xff] }
 0x424   : > { %v2030_v52 = vadd.f32 %v2029_v35, %v2028_v44  ;;  %13943 = vst [vmem:[#allocation26_spill] sm:$0xff] %v9899_v18  ;;  %v2041_v54 = vadd.f32 %v2040_v58, %v1991_v50  ;;  %v13944_v44 = vld [vmem:[#allocation28_spill] sm:$0xff]  ;;  %v2077_v35 = vadd.f32 %v2076_v1, %v1969_v3  ;;  %v13946_v50 = vld [vmem:[#allocation30_spill] sm:$0xff]  ;;  %v2003_v3 = vmul.f32 %v9899_v18, %v9899_v18 }
 0x425   : > { %v9905_v2 = vsub.f32 %v13944_v44, %v9773_v43  ;;  %v2069_v47 = vrot.slane %v2068_v21, 2  ;;  %v9917_v58 = vsub.f32 %v13946_v50, %v9773_v43  ;;  %v9924_v13 = vsub.s32 3, %v9172_v14  ;;  %13966 = vst [vmem:[#allocation62_spill] sm:$0xff] %v10014_v9 }
 0x426   : > { %v2094_v10 = vmul.f32 0.0078125, %v2030_v52  ;;  %v2042_v4 = vadd.f32 %v2041_v54, %v1995_v60  ;;  %v1977_v52 = vmul.f32 %v9893_v51, %v9893_v51  ;;  %v2078_v42 = vadd.f32 %v2077_v35, %v1973_v56 }
 0x427   : > { %13945 = vst [vmem:[#allocation38_spill] sm:$0xff] %v9905_v2  ;;  %13947 = vst [vmem:[#allocation28_spill] sm:$0xff] %v9917_v58  ;;  %v2070_v44 = vadd.f32 %v2069_v47, %v2068_v21  ;;  %v9928_v54 = vsub.f32 %v13949_v26, %v9773_v43  ;;  %v9934_v21 = vrot.slane %v9585_v41, %v9643_v61  ;;  %v9950_v26 = vld [vmem:[#allocation5 + $0x1a8] sm:$0xff] }
 0x428   : > { %v2098_v23 = vadd.f32 1e-05, %v2094_v10  ;;  %v2043_v1 = vadd.f32 %v2042_v4, %v1999_v37  ;;  %13948 = vst [vmem:[#allocation30_spill] sm:$0xff] %v9924_v13  ;;  %v1981_v10 = vmul.f32 %v9905_v2, %v9905_v2  ;;  %v2079_v60 = vadd.f32 %v2078_v42, %v1977_v52  ;;  %v13951_v37 = vld [vmem:[#allocation34_spill] sm:$0xff]  ;;  %v9948_v42 = vld [vmem:[#allocation5 + $0x188] sm:$0xff] }
 0x429   : > { %13950 = vst [vmem:[#allocation32_spill] sm:$0xff] %v9928_v54  ;;  %v2071_v50 = vrot.slane %v2070_v44, 1  ;;  %v2007_v56 = vmul.f32 %v9911_v17, %v9911_v17  ;;  %v9940_v47 = vrot.slane %v9604_v57, %v9643_v61  ;;  %v9944_v4 = vsub.f32 %v13951_v37, %v9773_v43  ;;  %v13954_v37 = vld [vmem:[#allocation36_spill] sm:$0xff] }
 0x42a   : > { %8292 = vrsqrt.f32 %v2098_v23  ;;  %v2044_v35 = vadd.f32 %v2043_v1, %v2003_v3  ;;  %v1985_v23 = vmul.f32 %v9917_v58, %v9917_v58  ;;  %v2080_v52 = vadd.f32 %v2079_v60, %v1981_v10  ;;  %v9980_v58 = vld [vmem:[#allocation5 + $0x148] sm:$0xff] }
 0x42b   : > { %13952 = vst [vmem:[#allocation34_spill] sm:$0xff] %v9944_v4  ;;  %v2072_v14 = vadd.f32 %v2071_v50, %v2070_v44  ;;  %v9954_v3 = vrot.slane %v9585_v41, %v13953_v15  ;;  %v9958_v1 = vrot.slane %v9604_v57, %v13953_v15  ;;  %v9962_v61 = vsub.f32 %v13954_v37, %v9773_v43  ;;  %v9970_v50 = vld [vmem:[#allocation5 + $0x588] sm:$0xff] }
 0x42c   : > { %v2045_v18 = vadd.f32 %v2044_v35, %v2007_v56  ;;  %v1989_v10 = vmul.f32 %v9928_v54, %v9928_v54  ;;  %v2081_v60 = vadd.f32 %v2080_v52, %v1985_v23  ;;  %v9968_v44 = vrot.slane %v9585_v41, %v9924_v13  ;;  %13956 = vst [vmem:[#allocation54_spill] sm:$0xff] %v9970_v50  ;;  %v9972_v56 = vld [vmem:[#allocation5 + $0x5a8] sm:$0xff] }
 0x42d   : > { %13955 = vst [vmem:[#allocation36_spill] sm:$0xff] %v9962_v61  ;;  %13957 = vst [vmem:[#allocation55_spill] sm:$0xff] %v9972_v56  ;;  %v2096_v35 = vmul.f32 0.0078125, %v2072_v14  ;;  %v9976_v15 = vrot.slane %v9604_v57, %v9924_v13  ;;  %v9982_v23 = vld [vmem:[#allocation5 + $0x168] sm:$0xff]  ;;  %v1993_v54 = vmul.f32 %v9944_v4, %v9944_v4 }
 0x42e   : > { %v2046_v48 = vrot.slane %v2045_v18, 4  ;;  %13958 = vst [vmem:[#allocation56_spill] sm:$0xff] %v9980_v58  ;;  %13959 = vst [vmem:[#allocation57_spill] sm:$0xff] %v9982_v23  ;;  %v13960_v41 = vld [vmem:[#allocation37_spill] sm:$0xff]  ;;  %v2082_v14 = vadd.f32 %v2081_v60, %v1989_v10  ;;  %v10004_v10 = vsub.f32 %v9513_v31, %v9773_v43  ;;  %v1997_v60 = vmul.f32 %v9962_v61, %v9962_v61 }
 0x42f   : > { %v9986_v52 = vsub.f32 %v13960_v41, %v9773_v43  ;;  %v9992_v57 = vld [vmem:[#allocation5 + $0x548] sm:$0xff]  ;;  %v2100_v37 = vadd.f32 1e-05, %v2096_v35 }
 0x430   : > { %13962 = vst [vmem:[#allocation58_spill] sm:$0xff] %v9992_v57  ;;  %v9994_v13 = vld [vmem:[#allocation5 + $0x568] sm:$0xff]  ;;  %v2047_v51 = vadd.f32 %v2046_v48, %v2045_v18  ;;  %13964 = vst [vmem:[#allocation60_spill] sm:$0xff] %v10004_v10  ;;  %v2083_v2 = vadd.f32 %v2082_v14, %v1993_v54  ;;  %v10026_v14 = vsub.f32 %v9547_v38, %v9773_v43 }
 0x431   : > { %13961 = vst [vmem:[#allocation37_spill] sm:$0xff] %v9986_v52  ;;  %13963 = vst [vmem:[#allocation59_spill] sm:$0xff] %v9994_v13  ;;  %v10010_v48 = vld [vmem:[#allocation5 + $0x128] sm:$0xff]  ;;  %8294 = vrsqrt.f32 %v2100_v37  ;;  %v2001_v35 = vmul.f32 %v9986_v52, %v9986_v52 }
 0x432   : > { %v10012_v18 = vld [vmem:[#allocation5 + $0x508] sm:$0xff]  ;;  %v2048_v41 = vrot.slane %v2047_v51, 2  ;;  %13967 = vst [vmem:[#allocation63_spill] sm:$0xff] %v10026_v14  ;;  %v2084_v61 = vadd.f32 %v2083_v2, %v1997_v60  ;;  %v2005_v2 = vmul.f32 %v10004_v10, %v10004_v10  ;;  %v2009_v13 = vmul.f32 %v10026_v14, %v10026_v14 }
 0x433   : > { %13965 = vst [vmem:[#allocation61_spill] sm:$0xff] %v10012_v18  ;;  %v10020_v56 = vld [vmem:[#allocation5 + $0xc8] sm:$0xff] }
 0x434   : > { %v10022_v54 = vld [vmem:[#allocation5 + $0xe8] sm:$0xff]  ;;  %v2049_v31 = vadd.f32 %v2048_v41, %v2047_v51  ;;  %v2085_v60 = vadd.f32 %v2084_v61, %v2001_v35 }
 0x435   : > { %v10032_v50 = vld [vmem:[#allocation5 + $0x4c8] sm:$0xff] }
 0x436   : > { %13968 = vst [vmem:[#allocation64_spill] sm:$0xff] %v10032_v50  ;;  %v10034_v4 = vld [vmem:[#allocation5 + $0x4e8] sm:$0xff]  ;;  %v2050_v38 = vrot.slane %v2049_v31, 1  ;;  %v2086_v18 = vadd.f32 %v2085_v60, %v2005_v2 }
 0x437   : > { %13969 = vst [vmem:[#allocation65_spill] sm:$0xff] %v10034_v4  ;;  %v10042_v43 = vld [vmem:[#allocation5 + $0x88] sm:$0xff]  ;;  %v10056_v52 = vpop.eup %8292 }
 0x438   : > { %13970 = vst [vmem:[#allocation66_spill] sm:$0xff] %v10042_v43  ;;  %v10050_v41 = vld [vmem:[#allocation5 + $0xa8] sm:$0xff]  ;;  %v10070_v10 = vmul.f32 %v10056_v52, %v9685_v39  ;;  %v10074_v9 = vmul.f32 %v10056_v52, %v9705_v0  ;;  %v2051_v35 = vadd.f32 %v2050_v38, %v2049_v31  ;;  %v2087_v2 = vadd.f32 %v2086_v18, %v2009_v13 }
 0x439   : > { %13971 = vst [vmem:[#allocation67_spill] sm:$0xff] %v10050_v41  ;;  %v10052_v23 = vld [vmem:[#allocation5 + $0x488] sm:$0xff]  ;;  %v2106_v43 = vmul.f32 %v10056_v52, %v9556_v62  ;;  %v2110_v13 = vmul.f32 %v10056_v52, %v9560_v8  ;;  %v2114_v38 = vmul.f32 %v10056_v52, %v9564_v29  ;;  %v2126_v62 = vmul.f32 %v10056_v52, %v9597_v5 }
 0x43a   : > { %13972 = vst [vmem:[#allocation68_spill] sm:$0xff] %v10052_v23  ;;  %v10054_v58 = vld [vmem:[#allocation5 + $0x4a8] sm:$0xff]  ;;  %13975 = vst [vmem:[#allocation71_spill] sm:$0xff] %v10070_v10  ;;  %v2095_v41 = vmul.f32 0.0078125, %v2051_v35  ;;  %v2088_v60 = vrot.slane %v2087_v2, 4 }
 0x43b   : > { %13973 = vst [vmem:[#allocation69_spill] sm:$0xff] %v10054_v58  ;;  %v10064_v37 = vld [vmem:[#allocation5 + $0x48] sm:$0xff]  ;;  %v2191_v18 = vmul.f32 %v9614_v36, %v2106_v43  ;;  %v2211_v43 = vmul.f32 %v9614_v36, %v2126_v62 }
 0x43c   : > { %v10066_v51 = vld [vmem:[#allocation5 + $0x68] sm:$0xff]  ;;  %v2099_v35 = vadd.f32 1e-05, %v2095_v41  ;;  %v2089_v31 = vadd.f32 %v2088_v60, %v2087_v2  ;;  %v2118_v41 = vmul.f32 %v10056_v52, %v9574_v28  ;;  %v2122_v2 = vmul.f32 %v10056_v52, %v9578_v16 }
 0x43d   : > { %13974 = vst [vmem:[#allocation70_spill] sm:$0xff] %v10066_v51  ;;  %v10078_v61 = vld [vmem:[#allocation5 + $0x448] sm:$0xff] }
 0x43e   : > { %13976 = vst [vmem:[#allocation72_spill] sm:$0xff] %v10078_v61  ;;  %v10080_v57 = vld [vmem:[#allocation5 + $0x468] sm:$0xff]  ;;  %8296 = vrsqrt.f32 %v2099_v35  ;;  %v10146_v28 = vpop.eup %8294  ;;  %v2203_v35 = vmul.f32 %v9614_v36, %v2118_v41 }
 0x43f   : > { %13977 = vst [vmem:[#allocation73_spill] sm:$0xff] %v10080_v57  ;;  %v10088_v0 = vld [vmem:[#allocation5 + $0x8] sm:$0xff]  ;;  %v2168_v16 = vmul.f32 %v10146_v28, %v9815_v46  ;;  %v2276_v46 = vadd.f32 %v9632_v32, %v2191_v18  ;;  %v2207_v57 = vmul.f32 %v9614_v36, %v2122_v2  ;;  %v2112_v41 = vmul.f32 %v10146_v28, %v9593_v45 }
 0x440   : > { %v10090_v50 = vld [vmem:[#allocation5 + $0x28] sm:$0xff]  ;;  %v2116_v18 = vmul.f32 %v10146_v28, %v9618_v34  ;;  %v10198_v62 = vadd.f32 %v9632_v32, %v2203_v35 }
 0x441   : > { %v10092_v14 = vld [vmem:[#allocation5 + $0x408] sm:$0xff]  ;;  %v2340_v34 = vmax.f32 %v2276_v46, 0.0  ;;  %v2292_v2 = vadd.f32 %v9632_v32, %v2207_v57  ;;  %v2197_v35 = vmul.f32 %v9934_v21, %v2112_v41 }
 0x442   : > { %13978 = vst [vmem:[#allocation74_spill] sm:$0xff] %v10092_v14  ;;  %v10100_v4 = vld [vmem:[#allocation5 + $0x428] sm:$0xff]  ;;  %v2090_v14 = vrot.slane %v2089_v31, 2 }
 0x443   : > { %13979 = vst [vmem:[#allocation75_spill] sm:$0xff] %v10100_v4  ;;  %v10102_v39 = vld [vmem:[#allocation5 + $0x3c8] sm:$0xff]  ;;  %v2195_v4 = vmul.f32 %v9614_v36, %v2110_v13  ;;  %v10156_v13 = vmul.f32 %v10146_v28, %v9787_v25 }
 0x444   : > { %v10104_v10 = vld [vmem:[#allocation5 + $0x3e8] sm:$0xff]  ;;  %v2091_v5 = vadd.f32 %v2090_v14, %v2089_v31 }
 0x445   : > { %13980 = vst [vmem:[#allocation76_spill] sm:$0xff] %v10104_v10  ;;  %v10124_v23 = vld [vmem:[#allocation5 + $0x7c8] sm:$0xff]  ;;  %13986 = vst [vmem:[#allocation82_spill] sm:$0xff] %v10156_v13  ;;  %v2199_v10 = vmul.f32 %v9614_v36, %v2114_v38  ;;  %v2108_v38 = vmul.f32 %v10146_v28, %v9589_v53  ;;  %v2296_v53 = vadd.f32 %v9632_v32, %v2211_v43 }
 0x446   : > { %13981 = vst [vmem:[#allocation77_spill] sm:$0xff] %v10124_v23  ;;  %v10126_v51 = vld [vmem:[#allocation5 + $0x7e8] sm:$0xff]  ;;  %v2280_v23 = vadd.f32 %v9632_v32, %v2195_v4  ;;  %v2092_v31 = vrot.slane %v2091_v5, 1  ;;  %v2251_v4 = vmul.f32 %v9614_v36, %v10074_v9  ;;  %v2253_v43 = vmul.f32 %v9934_v21, %v2168_v16 }
 0x447   : > { %13982 = vst [vmem:[#allocation78_spill] sm:$0xff] %v10126_v51  ;;  %v10134_v58 = vld [vmem:[#allocation5 + $0x388] sm:$0xff]  ;;  %v10195_v45 = vadd.f32 %v9632_v32, %v2199_v10  ;;  %v2193_v10 = vmul.f32 %v9934_v21, %v2108_v38  ;;  %v2352_v38 = vmax.f32 %v10198_v62, 0.0 }
 0x448   : > { %v10136_v8 = vld [vmem:[#allocation5 + $0x3a8] sm:$0xff]  ;;  %v2093_v14 = vadd.f32 %v2092_v31, %v2091_v5 }
 0x449   : > { %13983 = vst [vmem:[#allocation79_spill] sm:$0xff] %v10136_v8  ;;  %v10142_v60 = vld [vmem:[#allocation5 + $0x788] sm:$0xff]  ;;  %v2344_v8 = vmax.f32 %v2280_v23, 0.0  ;;  %v2278_v57 = vadd.f32 %v9940_v47, %v2193_v10 }
 0x44a   : > { %13984 = vst [vmem:[#allocation80_spill] sm:$0xff] %v10142_v60  ;;  %v10144_v29 = vld [vmem:[#allocation5 + $0x7a8] sm:$0xff]  ;;  %v2097_v31 = vmul.f32 0.0078125, %v2093_v14  ;;  %v2348_v14 = vmax.f32 %v10195_v45, 0.0  ;;  %v2360_v45 = vmax.f32 %v2296_v53, 0.0 }
 0x44b   : > { %13985 = vst [vmem:[#allocation81_spill] sm:$0xff] %v10144_v29  ;;  %v10168_v51 = vld [vmem:[#allocation5 + $0x348] sm:$0xff]  ;;  %v2120_v29 = vmul.f32 %v10146_v28, %v9640_v20  ;;  %v10213_v20 = vadd.f32 %v9632_v32, %v2251_v4  ;;  %v10224_v5 = vpack.c.bf16 %v2344_v8, %v2340_v34  ;;  %v2356_v4 = vmax.f32 %v2292_v2, 0.0 }
 0x44c   : > { %13987 = vst [vmem:[#allocation83_spill] sm:$0xff] %v10168_v51  ;;  %v10170_v25 = vld [vmem:[#allocation5 + $0x368] sm:$0xff]  ;;  %v2101_v46 = vadd.f32 1e-05, %v2097_v31  ;;  %v10228_v51 = vpop.eup %8296  ;;  %v2282_v31 = vadd.f32 %v9940_v47, %v2197_v35 }
 0x44d   : > { %13988 = vst [vmem:[#allocation84_spill] sm:$0xff] %v10170_v25  ;;  %v10182_v61 = vld [vmem:[#allocation5 + $0x308] sm:$0xff]  ;;  %v2201_v25 = vmul.f32 %v9934_v21, %v2116_v18  ;;  %v2205_v41 = vmul.f32 %v9934_v21, %v2120_v29  ;;  %v2130_v18 = vmul.f32 %v10056_v52, %v9608_v11  ;;  %v2107_v62 = vmul.f32 %v10228_v51, %v9697_v49 }
 0x44e   : > { %v10184_v13 = vld [vmem:[#allocation5 + $0x328] sm:$0xff]  ;;  %8298 = vrsqrt.f32 %v2101_v46  ;;  %v2111_v29 = vmul.f32 %v10228_v51, %v9701_v40  ;;  %v2115_v8 = vmul.f32 %v10228_v51, %v9729_v12  ;;  %v2119_v11 = vmul.f32 %v10228_v51, %v9749_v22 }
 0x44f   : > { %v10202_v9 = vld [vmem:[#allocation5 + $0x2c8] sm:$0xff]  ;;  %v2286_v16 = vadd.f32 %v9940_v47, %v2201_v25  ;;  %v2290_v2 = vadd.f32 %v9940_v47, %v2205_v41  ;;  %v2123_v34 = vmul.f32 %v10228_v51, %v9763_v63  ;;  %v2127_v53 = vmul.f32 %v10228_v51, %v9777_v19 }
 0x450   : > { %13989 = vst [vmem:[#allocation85_spill] sm:$0xff] %v10202_v9  ;;  %v10204_v60 = vld [vmem:[#allocation5 + $0x2e8] sm:$0xff]  ;;  %v2192_v49 = vmul.f32 %v9954_v3, %v2107_v62  ;;  %v2196_v40 = vmul.f32 %v9954_v3, %v2111_v29  ;;  %v2200_v10 = vmul.f32 %v9954_v3, %v2115_v8  ;;  %v2124_v12 = vmul.f32 %v10146_v28, %v9657_v7 }
 0x451   : > { %13990 = vst [vmem:[#allocation86_spill] sm:$0xff] %v10204_v60  ;;  %v2342_v25 = vmax.f32 %v2278_v57, 0.0  ;;  %v2204_v22 = vmul.f32 %v9954_v3, %v2119_v11  ;;  %v2208_v35 = vmul.f32 %v9954_v3, %v2123_v34  ;;  %v2128_v63 = vmul.f32 %v10146_v28, %v9679_v24 }
 0x452   : > { %v2277_v46 = vadd.f32 %v9958_v1, %v2192_v49  ;;  %v2281_v19 = vadd.f32 %v9958_v1, %v2196_v40  ;;  %v2285_v41 = vadd.f32 %v9958_v1, %v2200_v10  ;;  %v2212_v62 = vmul.f32 %v9954_v3, %v2127_v53 }
 0x453   : > { %v2346_v29 = vmax.f32 %v2282_v31, 0.0  ;;  %v2289_v8 = vadd.f32 %v9958_v1, %v2204_v22  ;;  %v2350_v7 = vmax.f32 %v2286_v16, 0.0  ;;  %v2354_v57 = vmax.f32 %v2290_v2, 0.0 }
 0x454   : > { %v2341_v23 = vmax.f32 %v2277_v46, 0.0  ;;  %v2345_v11 = vmax.f32 %v2281_v19, 0.0  ;;  %v2349_v9 = vmax.f32 %v2285_v41, 0.0  ;;  %v2209_v34 = vmul.f32 %v9934_v21, %v2124_v12  ;;  %v13994_v46 = vld [vmem:[#allocation40_spill] sm:$0xff] }
 0x455   : > { %v2353_v60 = vmax.f32 %v2289_v8, 0.0  ;;  %v2213_v24 = vmul.f32 %v9934_v21, %v2128_v63  ;;  %v2134_v49 = vmul.f32 %v10056_v52, %v9626_v55  ;;  %v2215_v40 = vmul.f32 %v9614_v36, %v2130_v18  ;;  %v13991_v63 = vld [vmem:[#allocation50_spill] sm:$0xff]  ;;  %v13992_v18 = vld [vmem:[#allocation15_spill] sm:$0xff] }
 0x456   : > { %v10265_v10 = vpack.c.bf16 %v2345_v11, %v2341_v23  ;;  %v10267_v31 = vpack.c.bf16 %v2352_v38, %v2348_v14  ;;  %v2293_v16 = vadd.f32 %v9958_v1, %v2208_v35  ;;  %v2297_v2 = vadd.f32 %v9958_v1, %v2212_v62  ;;  %v13993_v35 = vld [vmem:[#allocation39_spill] sm:$0xff] }
 0x457   : > { %v10272_v53 = vadd.f32 %v9940_v47, %v2253_v43  ;;  %v10274_v12 = vpack.c.bf16 %v2346_v29, %v2342_v25  ;;  %v10276_v22 = vpack.c.bf16 %v2360_v45, %v2356_v4  ;;  %v2132_v55 = vmul.f32 %v10146_v28, %v13991_v63  ;;  %v13996_v29 = vld [vmem:[#allocation51_spill] sm:$0xff] }
 0x458   : > { %4006 = vmatprep.mubr.bf16.mxu0 %v10265_v10  ;;  %v10281_v23 = vpack.c.bf16 %v2353_v60, %v2349_v9  ;;  %v10283_v14 = vpack.c.bf16 %v2354_v57, %v2350_v7  ;;  %v2131_v38 = vmul.f32 %v10228_v51, %v9793_v30  ;;  %v2135_v43 = vmul.f32 %v10228_v51, %v13992_v18  ;;  %v13997_v7 = vld [vmem:[#allocation21_spill] sm:$0xff]  ;;  %v13998_v11 = vld [vmem:[#allocation23_spill] sm:$0xff] }
 0x459   : > { %4007 = vmatmul.mubr.bf16.vlgmr.msra.gmra.mxu0 %v10224_v5  ;;  %v10291_v4 = vadd.f32 %v9940_v47, %v2209_v34  ;;  %v10294_v45 = vadd.f32 %v9940_v47, %v2213_v24  ;;  %v2219_v25 = vmul.f32 %v9614_v36, %v2134_v49  ;;  %v10298_v60 = vadd.f32 %v9632_v32, %v2215_v40  ;;  %v13999_v24 = vld [vmem:[#allocation25_spill] sm:$0xff] }
 0x45a   : > { %v2167_v30 = vmul.f32 %v10228_v51, %v9911_v17  ;;  %v13995_v19 = vcombine.low %v13993_v35, %v13994_v46  ;;  %4016 = vmatprep.mubr.bf16.mxu0 %v10281_v23  ;;  %v2357_v41 = vmax.f32 %v2293_v16, 0.0  ;;  %v2361_v62 = vmax.f32 %v2297_v2, 0.0 }
 0x45b   : > { %v10300_v9 = vpop.eup %8298  ;;  %v2136_v8 = vmul.f32 %v10146_v28, %v13996_v29  ;;  %v14000_v49 = vcombine.high %v9948_v42, %v9950_v26  ;;  %v10320_v40 = vmul.f32 %v9934_v21, %v2132_v55  ;;  %v2216_v63 = vmul.f32 %v9954_v3, %v2131_v38 }
 0x45c   : > { %4201 = vmatpush1.bf16.msra.mxu0 %v13995_v19  ;;  %v2109_v57 = vmul.f32 %v10300_v9, %v13997_v7  ;;  %v2113_v34 = vmul.f32 %v10300_v9, %v13998_v11  ;;  %v2117_v17 = vmul.f32 %v10300_v9, %v13999_v24  ;;  %v2121_v16 = vmul.f32 %v10300_v9, %v9847_v59  ;;  %v14004_v24 = vld [vmem:[#allocation57_spill] sm:$0xff] }
 0x45d   : > { %4202 = vmatprep.subr.bf16.mxu0 %v14000_v49  ;;  %v2125_v2 = vmul.f32 %v10300_v9, %v9857_v6  ;;  %v2220_v18 = vmul.f32 %v9954_v3, %v2135_v43  ;;  %v2129_v55 = vmul.f32 %v10300_v9, %v9869_v33  ;;  %v2252_v29 = vmul.f32 %v9954_v3, %v2167_v30  ;;  %v14002_v43 = vld [vmem:[#allocation16_spill] sm:$0xff] }
 0x45e   : > { %v2194_v35 = vmul.f32 %v9968_v44, %v2109_v57  ;;  %v2198_v46 = vmul.f32 %v9968_v44, %v2113_v34  ;;  %v2202_v19 = vmul.f32 %v9968_v44, %v2117_v17  ;;  %v2206_v59 = vmul.f32 %v9968_v44, %v2121_v16  ;;  %v14003_v33 = vld [vmem:[#allocation56_spill] sm:$0xff]  ;;  %v14006_v17 = vld [vmem:[#allocation27_spill] sm:$0xff] }
 0x45f   : > { %v14001_v6 = vcombine.low %v9948_v42, %v9950_v26  ;;  %v10338_v38 = vpack.c.bf16 %v2361_v62, %v2357_v41  ;;  %v2139_v7 = vmul.f32 %v10228_v51, %v14002_v43  ;;  %v14005_v30 = vcombine.high %v14003_v33, %v14004_v24 }
 0x460   : > { %v2279_v57 = vadd.f32 %v9976_v15, %v2194_v35  ;;  %v2283_v11 = vadd.f32 %v9976_v15, %v2198_v46  ;;  %v2287_v34 = vadd.f32 %v9976_v15, %v2202_v19  ;;  %v2143_v49 = vmul.f32 %v10228_v51, %v14006_v17 }
 0x461   : > { %4203 = vmatpush1.bf16.msra.mxu0 %v14001_v6  ;;  %v2291_v42 = vadd.f32 %v9976_v15, %v2206_v59  ;;  %v2210_v26 = vmul.f32 %v9968_v44, %v2125_v2  ;;  %v2301_v41 = vadd.f32 %v9958_v1, %v2216_v63  ;;  %v2305_v62 = vadd.f32 %v9958_v1, %v2220_v18 }
 0x462   : > { %4204 = vmatprep.subr.bf16.mxu0 %v14005_v30  ;;  %v2343_v16 = vmax.f32 %v2279_v57, 0.0  ;;  %v2347_v35 = vmax.f32 %v2283_v11, 0.0  ;;  %v2351_v46 = vmax.f32 %v2287_v34, 0.0  ;;  %4017 = vmatmul.mubr.bf16.gmra.mxu0 %v10267_v31  ;;  %v2214_v19 = vmul.f32 %v9968_v44, %v2129_v55  ;;  %v14009_v11 = vld [vmem:[#allocation20_spill] sm:$0xff] }
 0x463   : > { %v2355_v6 = vmax.f32 %v2291_v42, 0.0  ;;  %v14007_v43 = vcombine.low %v14003_v33, %v14004_v24  ;;  %4026 = vmatprep.mubr.bf16.mxu0 %v10338_v38  ;;  %v2358_v2 = vmax.f32 %v10291_v4, 0.0  ;;  %v2362_v63 = vmax.f32 %v10294_v45, 0.0  ;;  %v14010_v30 = vld [vmem:[#allocation24_spill] sm:$0xff] }
 0x464   : > { %v2224_v18 = vmul.f32 %v9954_v3, %v2139_v7  ;;  %v10364_v59 = vadd.f32 %v9958_v1, %v2252_v29  ;;  %v10366_v57 = vpack.c.bf16 %v2347_v35, %v2343_v16  ;;  %v14008_v55 = vcombine.high %v10000_v27, %v10010_v48 }
 0x465   : > { %4205 = vmatpush1.bf16.msra.mxu0 %v14007_v43  ;;  %v2133_v34 = vmul.f32 %v10300_v9, %v14009_v11  ;;  %v2228_v33 = vmul.f32 %v9954_v3, %v2143_v49  ;;  %v2365_v24 = vmax.f32 %v2301_v41, 0.0  ;;  %v2369_v4 = vmax.f32 %v2305_v62, 0.0  ;;  %v14012_v62 = vld [vmem:[#allocation43_spill] sm:$0xff] }
 0x466   : > { %4206 = vmatprep.subr.bf16.mxu0 %v14008_v55  ;;  %v2137_v45 = vmul.f32 %v10300_v9, %v14010_v30  ;;  %v2304_v7 = vadd.f32 %v9632_v32, %v2219_v25  ;;  %4119 = vmatprep.mubr.bf16.mxu1 %v10366_v57  ;;  %v10378_v29 = vpack.c.bf16 %v2355_v6, %v2351_v46  ;;  %v14013_v46 = vld [vmem:[#allocation41_spill] sm:$0xff]  ;;  %v14014_v6 = vld [vmem:[#allocation42_spill] sm:$0xff]  ;;  %v14018_v55 = vld [vmem:[#allocation55_spill] sm:$0xff] }
 0x467   : > { %v2295_v17 = vadd.f32 %v9976_v15, %v2210_v26  ;;  %v2299_v42 = vadd.f32 %v9976_v15, %v2214_v19  ;;  %v2221_v16 = vmul.f32 %v9934_v21, %v2136_v8  ;;  %4120 = vmatmul.mubr.bf16.vlgmr.msra.gmra.mxu1 %v10274_v12  ;;  %v14011_v49 = vcombine.low %v10000_v27, %v10010_v48  ;;  %v14016_v48 = vld [vmem:[#allocation45_spill] sm:$0xff] }
 0x468   : > { %v2309_v41 = vadd.f32 %v9958_v1, %v2224_v18  ;;  %v2313_v25 = vadd.f32 %v9958_v1, %v2228_v33  ;;  %v2138_v35 = vmul.f32 %v10056_v52, %v14012_v62  ;;  %v14015_v26 = vcombine.low %v14013_v46, %v14014_v6  ;;  %4129 = vmatprep.mubr.bf16.mxu1 %v10378_v29  ;;  %v14017_v18 = vld [vmem:[#allocation54_spill] sm:$0xff] }
 0x469   : > { %4207 = vmatpush1.bf16.msra.mxu0 %v14011_v49  ;;  %v10395_v8 = vpack.c.bf16 %v2362_v63, %v2358_v2  ;;  %v2218_v19 = vmul.f32 %v9968_v44, %v2133_v34  ;;  %v2364_v27 = vmax.f32 %v10298_v60, 0.0  ;;  %v2142_v43 = vmul.f32 %v10056_v52, %v14016_v48  ;;  %v14021_v46 = vld [vmem:[#allocation38_spill] sm:$0xff]  ;;  %v14026_v48 = vld [vmem:[#allocation67_spill] sm:$0xff] }
 0x46a   : > { %4314 = vmatpush1.bf16.msra.mxu1 %v14015_v26  ;;  %v14019_v11 = vcombine.high %v14017_v18, %v14018_v55  ;;  %v14020_v33 = vcombine.high %v10020_v56, %v10022_v54  ;;  %v10407_v30 = vpack.c.bf16 %v2369_v4, %v2365_v24  ;;  %v2222_v2 = vmul.f32 %v9968_v44, %v2137_v45  ;;  %v14025_v26 = vld [vmem:[#allocation66_spill] sm:$0xff] }
 0x46b   : > { %v2368_v63 = vmax.f32 %v2304_v7, 0.0  ;;  %v10412_v34 = vadd.f32 %v9940_v47, %v10320_v40  ;;  %v2359_v60 = vmax.f32 %v2295_v17, 0.0  ;;  %v2363_v49 = vmax.f32 %v2299_v42, 0.0  ;;  %4027 = vmatmul.mubr.bf16.gmra.mxu0 %v10276_v22  ;;  %v14023_v40 = vld [vmem:[#allocation28_spill] sm:$0xff] }
 0x46c   : > { %4315 = vmatprep.subr.bf16.mxu1 %v14019_v11  ;;  %4208 = vmatprep.subr.bf16.mxu0 %v14020_v33  ;;  %v10416_v62 = vadd.f32 %v9940_v47, %v2221_v16  ;;  %v2141_v6 = vmul.f32 %v10300_v9, %v14021_v46  ;;  %v14022_v24 = vcombine.low %v10020_v56, %v10022_v54  ;;  %v2373_v4 = vmax.f32 %v2309_v41, 0.0  ;;  %v14028_v54 = vld [vmem:[#allocation17_spill] sm:$0xff]  ;;  %v14031_v46 = vld [vmem:[#allocation59_spill] sm:$0xff] }
 0x46d   : > { %4036 = vmatprep.mubr.bf16.mxu0 %v10407_v30  ;;  %v2377_v45 = vmax.f32 %v2313_v25, 0.0  ;;  %v2145_v7 = vmul.f32 %v10300_v9, %v14023_v40  ;;  %v2223_v17 = vmul.f32 %v9614_v36, %v2138_v35  ;;  %v14024_v42 = vcombine.low %v14017_v18, %v14018_v55  ;;  %v14029_v25 = vld [vmem:[#allocation63_spill] sm:$0xff]  ;;  %v14030_v35 = vld [vmem:[#allocation58_spill] sm:$0xff]  ;;  %v14034_v55 = vld [vmem:[#allocation29_spill] sm:$0xff] }
 0x46e   : > { %4209 = vmatpush1.bf16.msra.mxu0 %v14022_v24  ;;  %v2303_v16 = vadd.f32 %v9976_v15, %v2218_v19  ;;  %v14027_v11 = vcombine.high %v14025_v26, %v14026_v48  ;;  %v2227_v56 = vmul.f32 %v9614_v36, %v2142_v43  ;;  %v2147_v41 = vmul.f32 %v10228_v51, %v14028_v54 }
 0x46f   : > { %4316 = vmatpush1.bf16.msra.mxu1 %v14024_v42  ;;  %v10439_v33 = vmul.f32 %v10300_v9, %v14029_v25  ;;  %v14032_v24 = vcombine.high %v14030_v35, %v14031_v46  ;;  %v2307_v18 = vadd.f32 %v9976_v15, %v2222_v2  ;;  %v10445_v19 = vpack.c.bf16 %v2368_v63, %v2364_v27  ;;  %v14049_v27 = vld [vmem:[#allocation34_spill] sm:$0xff] }
 0x470   : > { %4210 = vmatprep.subr.bf16.mxu0 %v14027_v11  ;;  %v2151_v40 = vmul.f32 %v10228_v51, %v14034_v55  ;;  %v10449_v42 = vpack.c.bf16 %v2363_v49, %v2359_v60  ;;  %v2226_v43 = vmul.f32 %v9968_v44, %v2141_v6  ;;  %v14036_v11 = vld [vmem:[#allocation52_spill] sm:$0xff]  ;;  %v2232_v25 = vmul.f32 %v9954_v3, %v2147_v41  ;;  %v14040_v55 = vld [vmem:[#allocation53_spill] sm:$0xff] }
 0x471   : > { %4317 = vmatprep.subr.bf16.mxu1 %v14032_v24  ;;  %14033 = vst [vmem:[#allocation50_spill] sm:$0xff] %v10445_v19  ;;  %v2140_v54 = vmul.f32 %v10146_v28, %v14036_v11  ;;  %4130 = vmatmul.mubr.bf16.gmra.mxu1 %v10283_v14  ;;  %v14037_v24 = vcombine.low %v14025_v26, %v14026_v48  ;;  %v2367_v6 = vmax.f32 %v2303_v16, 0.0 }
 0x472   : > { %14035 = vst [vmem:[#allocation15_spill] sm:$0xff] %v10449_v42  ;;  %v10460_v2 = vpack.c.bf16 %v2377_v45, %v2373_v4  ;;  %v2230_v63 = vmul.f32 %v9968_v44, %v2145_v7  ;;  %v2308_v60 = vadd.f32 %v9632_v32, %v2223_v17  ;;  %v14039_v49 = vcombine.low %v14030_v35, %v14031_v46  ;;  %v14041_v4 = vld [vmem:[#allocation61_spill] sm:$0xff]  ;;  %v14042_v45 = vld [vmem:[#allocation62_spill] sm:$0xff] }
 0x473   : > { %4211 = vmatpush1.bf16.msra.mxu0 %v14037_v24  ;;  %4139 = vmatprep.mubr.bf16.mxu1 %v10449_v42  ;;  %v2312_v41 = vadd.f32 %v9632_v32, %v2227_v56  ;;  %v2144_v26 = vmul.f32 %v10146_v28, %v14040_v55  ;;  %v2236_v48 = vmul.f32 %v9954_v3, %v2151_v40  ;;  %v2371_v7 = vmax.f32 %v2307_v18, 0.0  ;;  %v14044_v17 = vld [vmem:[#allocation70_spill] sm:$0xff]  ;;  %v14047_v56 = vld [vmem:[#allocation47_spill] sm:$0xff] }
 0x474   : > { %14038 = vst [vmem:[#allocation39_spill] sm:$0xff] %v10460_v2  ;;  %4318 = vmatpush1.bf16.msra.mxu1 %v14039_v49  ;;  %v14043_v11 = vcombine.high %v14041_v4, %v14042_v45  ;;  %v14045_v24 = vcombine.high %v10064_v37, %v14044_v17  ;;  %v2317_v35 = vadd.f32 %v9958_v1, %v2232_v25  ;;  %v14046_v46 = vld [vmem:[#allocation46_spill] sm:$0xff]  ;;  %v2370_v25 = vmax.f32 %v10416_v62, 0.0 }
 0x475   : > { %v2146_v16 = vmul.f32 %v10056_v52, %v14046_v46  ;;  %v2150_v49 = vmul.f32 %v10056_v52, %v14047_v56  ;;  %4037 = vmatmul.mubr.bf16.gmra.mxu0 %v10445_v19  ;;  %v2225_v40 = vmul.f32 %v9934_v21, %v2140_v54  ;;  %v2321_v55 = vadd.f32 %v9958_v1, %v2236_v48 }
 0x476   : > { %4319 = vmatprep.subr.bf16.mxu1 %v14043_v11  ;;  %4212 = vmatprep.subr.bf16.mxu0 %v14045_v24  ;;  %v14048_v11 = vld [vmem:[#allocation32_spill] sm:$0xff]  ;;  %v2153_v24 = vmul.f32 %v10300_v9, %v14049_v27  ;;  %v14050_v46 = vcombine.low %v10064_v37, %v14044_v17  ;;  %v2311_v56 = vadd.f32 %v9976_v15, %v2226_v43  ;;  %v2372_v62 = vmax.f32 %v2308_v60, 0.0  ;;  %v14054_v43 = vld [vmem:[#allocation65_spill] sm:$0xff] }
 0x477   : > { %v2149_v18 = vmul.f32 %v10300_v9, %v14048_v11  ;;  %4046 = vmatprep.mubr.bf16.mxu0 %v10460_v2  ;;  %v2315_v54 = vadd.f32 %v9976_v15, %v2230_v63  ;;  %v2231_v48 = vmul.f32 %v9614_v36, %v2146_v16  ;;  %v14051_v11 = vcombine.low %v14041_v4, %v14042_v45  ;;  %v14056_v4 = vld [vmem:[#allocation18_spill] sm:$0xff] }
 0x478   : > { %4213 = vmatpush1.bf16.msra.mxu0 %v14050_v46  ;;  %v14052_v27 = vcombine.high %v10088_v0, %v10090_v50  ;;  %v2376_v19 = vmax.f32 %v2312_v41, 0.0  ;;  %v2229_v37 = vmul.f32 %v9934_v21, %v2144_v26  ;;  %v2235_v17 = vmul.f32 %v9614_v36, %v2150_v49  ;;  %v14053_v46 = vld [vmem:[#allocation64_spill] sm:$0xff]  ;;  %v14057_v26 = vld [vmem:[#allocation22_spill] sm:$0xff] }
 0x479   : > { %4320 = vmatpush1.bf16.msra.mxu1 %v14051_v11  ;;  %v14055_v2 = vcombine.high %v14053_v46, %v14054_v43  ;;  %v10509_v63 = vpack.c.bf16 %v2371_v7, %v2367_v6  ;;  %v2381_v16 = vmax.f32 %v2317_v35, 0.0  ;;  %v2385_v42 = vmax.f32 %v2321_v55, 0.0 }
 0x47a   : > { %4214 = vmatprep.subr.bf16.mxu0 %v14052_v27  ;;  %v2155_v45 = vmul.f32 %v10228_v51, %v14056_v4  ;;  %v2310_v11 = vadd.f32 %v9940_v47, %v2225_v40  ;;  %v2234_v60 = vmul.f32 %v9968_v44, %v2149_v18  ;;  %v2238_v41 = vmul.f32 %v9968_v44, %v2153_v24 }
 0x47b   : > { %4321 = vmatprep.subr.bf16.mxu1 %v14055_v2  ;;  %v2159_v49 = vmul.f32 %v10228_v51, %v14057_v26  ;;  %4140 = vmatmul.mubr.bf16.gmra.mxu1 %v10395_v8  ;;  %v2375_v27 = vmax.f32 %v2311_v56, 0.0  ;;  %v14058_v2 = vcombine.low %v10088_v0, %v10090_v50  ;;  %v2316_v6 = vadd.f32 %v9632_v32, %v2231_v48  ;;  %v14060_v0 = vld [vmem:[#allocation68_spill] sm:$0xff]  ;;  %v14061_v56 = vld [vmem:[#allocation69_spill] sm:$0xff] }
 0x47c   : > { %v2320_v7 = vadd.f32 %v9632_v32, %v2235_v17  ;;  %v2240_v35 = vmul.f32 %v9954_v3, %v2155_v45  ;;  %v14059_v40 = vcombine.low %v14053_v46, %v14054_v43  ;;  %4149 = vmatprep.mubr.bf16.mxu1 %v10509_v63  ;;  %v2379_v55 = vmax.f32 %v2315_v54, 0.0  ;;  %v14063_v17 = vld [vmem:[#allocation76_spill] sm:$0xff] }
 0x47d   : > { %4215 = vmatpush1.bf16.msra.mxu0 %v14058_v2  ;;  %v10529_v18 = vpack.c.bf16 %v2376_v19, %v2372_v62  ;;  %v2314_v24 = vadd.f32 %v9940_v47, %v2229_v37  ;;  %v2244_v50 = vmul.f32 %v9954_v3, %v2159_v49  ;;  %v14062_v48 = vcombine.high %v14060_v0, %v14061_v56  ;;  %v14065_v43 = vld [vmem:[#allocation48_spill] sm:$0xff]  ;;  %v14066_v37 = vld [vmem:[#allocation31_spill] sm:$0xff] }
 0x47e   : > { %4322 = vmatpush1.bf16.msra.mxu1 %v14059_v40  ;;  %v14064_v4 = vcombine.high %v10102_v39, %v14063_v17  ;;  %v10539_v45 = vpack.c.bf16 %v2385_v42, %v2381_v16  ;;  %v2325_v46 = vadd.f32 %v9958_v1, %v2240_v35  ;;  %v2154_v19 = vmul.f32 %v10056_v52, %v14065_v43  ;;  %v14068_v35 = vld [vmem:[#allocation33_spill] sm:$0xff] }
 0x47f   : > { %4323 = vmatprep.subr.bf16.mxu1 %v14062_v48  ;;  %4047 = vmatmul.mubr.bf16.gmra.mxu0 %v10529_v18  ;;  %v2319_v54 = vadd.f32 %v9976_v15, %v2234_v60  ;;  %v2323_v62 = vadd.f32 %v9976_v15, %v2238_v41  ;;  %v2148_v26 = vmul.f32 %v10146_v28, %v14066_v37  ;;  %v2380_v16 = vmax.f32 %v2316_v6, 0.0  ;;  %v14069_v48 = vld [vmem:[#allocation49_spill] sm:$0xff]  ;;  %v14072_v6 = vld [vmem:[#allocation79_spill] sm:$0xff]  ;;  %v14074_v37 = vld [vmem:[#allocation72_spill] sm:$0xff] }
 0x480   : > { %4216 = vmatprep.subr.bf16.mxu0 %v14064_v4  ;;  %v2329_v49 = vadd.f32 %v9958_v1, %v2244_v50  ;;  %v14067_v42 = vcombine.low %v10102_v39, %v14063_v17  ;;  %4056 = vmatprep.mubr.bf16.mxu0 %v10539_v45  ;;  %v2384_v2 = vmax.f32 %v2320_v7, 0.0  ;;  %v2152_v40 = vmul.f32 %v10146_v28, %v14068_v35 }
 0x481   : > { %v2158_v60 = vmul.f32 %v10056_v52, %v14069_v48  ;;  %v14070_v41 = vcombine.low %v14060_v0, %v14061_v56  ;;  %v14071_v50 = vmax.f32 %v10412_v34, 0.0  ;;  %v10565_v39 = vpack.c.bf16 %v2379_v55, %v2375_v27  ;;  %v14077_v48 = vld [vmem:[#allocation36_spill] sm:$0xff] }
 0x482   : > { %4217 = vmatpush2.bf16.msra.mxu0 %v14067_v42  ;;  %v2374_v17 = vmax.f32 %v2310_v11, 0.0  ;;  %v14073_v7 = vcombine.high %v10134_v58, %v14072_v6  ;;  %v2239_v43 = vmul.f32 %v9614_v36, %v2154_v19  ;;  %v14075_v42 = vld [vmem:[#allocation73_spill] sm:$0xff]  ;;  %v2378_v35 = vmax.f32 %v2314_v24, 0.0 }
 0x483   : > { %4324 = vmatpush1.bf16.msra.mxu1 %v14070_v41  ;;  %v10563_v4 = vpack.c.bf16 %v2370_v25, %v14071_v50  ;;  %v14076_v52 = vcombine.high %v14074_v37, %v14075_v42  ;;  %v2389_v0 = vmax.f32 %v2325_v46, 0.0  ;;  %v2393_v56 = vmax.f32 %v2329_v49, 0.0  ;;  %v14078_v11 = vld [vmem:[#allocation37_spill] sm:$0xff]  ;;  %v14079_v41 = vld [vmem:[#allocation26_spill] sm:$0xff] }
 0x484   : > { %4218 = vmatprep.subr.bf16.mxu0 %v14073_v7  ;;  %v2243_v34 = vmul.f32 %v9614_v36, %v2158_v60  ;;  %v2383_v25 = vmax.f32 %v2319_v54, 0.0  ;;  %v2157_v27 = vmul.f32 %v10300_v9, %v14077_v48  ;;  %v2161_v55 = vmul.f32 %v10300_v9, %v14078_v11  ;;  %v14088_v48 = vld [vmem:[#allocation71_spill] sm:$0xff]  ;;  %v14089_v11 = vld [vmem:[#allocation82_spill] sm:$0xff] }
 0x485   : > { %4325 = vmatprep.subr.bf16.mxu1 %v14076_v52  ;;  %v2163_v50 = vmul.f32 %v10228_v51, %v14079_v41  ;;  %4150 = vmatmul.mubr.bf16.gmra.mxu1 %v10563_v4  ;;  %v2387_v19 = vmax.f32 %v2323_v62, 0.0  ;;  %v14080_v24 = vcombine.low %v10134_v58, %v14072_v6  ;;  %v10585_v46 = vpack.c.bf16 %v2384_v2, %v2380_v16  ;;  %v14082_v2 = vld [vmem:[#allocation74_spill] sm:$0xff]  ;;  %v14086_v52 = vld [vmem:[#allocation84_spill] sm:$0xff] }
 0x486   : > { %v2233_v54 = vmul.f32 %v9934_v21, %v2148_v26  ;;  %v2237_v49 = vmul.f32 %v9934_v21, %v2152_v40  ;;  %v2400_v60 = vmax.f32 %v10213_v20, 0.0  ;;  %v14081_v7 = vcombine.low %v14074_v37, %v14075_v42  ;;  %4159 = vmatprep.mubr.bf16.mxu1 %v10565_v39  ;;  %v14083_v26 = vld [vmem:[#allocation75_spill] sm:$0xff] }
 0x487   : > { %4219 = vmatpush2.bf16.msra.mxu0 %v14080_v24  ;;  %v2324_v51 = vadd.f32 %v9632_v32, %v2239_v43  ;;  %v2328_v62 = vadd.f32 %v9632_v32, %v2243_v34  ;;  %v2248_v58 = vmul.f32 %v9954_v3, %v2163_v50  ;;  %v2402_v16 = vmax.f32 %v10272_v53, 0.0  ;;  %v14085_v20 = vld [vmem:[#allocation83_spill] sm:$0xff] }
 0x488   : > { %4326 = vmatpush1.bf16.msra.mxu1 %v14081_v7  ;;  %v14084_v6 = vcombine.high %v14082_v2, %v14083_v26  ;;  %v10601_v40 = vpack.c.bf16 %v2378_v35, %v2374_v17  ;;  %v14087_v37 = vcombine.high %v14085_v20, %v14086_v52  ;;  %v10606_v42 = vpack.c.bf16 %v2393_v56, %v2389_v0 }
 0x489   : > { %v2247_v43 = vmul.f32 %v9614_v36, %v14088_v48  ;;  %4057 = vmatmul.mubr.bf16.gmra.mxu0 %v10585_v46  ;;  %v2242_v3 = vmul.f32 %v9968_v44, %v2157_v27  ;;  %v2246_v53 = vmul.f32 %v9968_v44, %v2161_v55  ;;  %v2333_v34 = vadd.f32 %v9958_v1, %v2248_v58  ;;  %v10628_v27 = vld [vmem:[#allocation5 + $0x748] sm:$0xff]  ;;  %v14096_v58 = vld [vmem:[#allocation19_spill] sm:$0xff] }
 0x48a   : > { %4327 = vmatprep.subr.bf16.mxu1 %v14084_v6  ;;  %4220 = vmatprep.subr.bf16.mxu0 %v14087_v37  ;;  %v2249_v17 = vmul.f32 %v9934_v21, %v14089_v11  ;;  %v10616_v35 = vpack.c.bf16 %v2387_v19, %v2383_v25  ;;  %v2318_v41 = vadd.f32 %v9940_v47, %v2233_v54  ;;  %v2401_v36 = vmax.f32 %v10364_v59, 0.0  ;;  %v10630_v25 = vld [vmem:[#allocation5 + $0x768] sm:$0xff] }
 0x48b   : > { %v14090_v0 = vcombine.low %v14085_v20, %v14086_v52  ;;  %4066 = vmatprep.mubr.bf16.mxu0 %v10606_v42  ;;  %v2332_v56 = vadd.f32 %v9632_v32, %v2247_v43  ;;  %v14091_v1 = vcombine.low %v14082_v2, %v14083_v26  ;;  %v2322_v55 = vadd.f32 %v9940_v47, %v2237_v49  ;;  %v14093_v54 = vld [vmem:[#allocation77_spill] sm:$0xff]  ;;  %v14094_v32 = vld [vmem:[#allocation78_spill] sm:$0xff]  ;;  %v14097_v26 = vld [vmem:[#allocation35_spill] sm:$0xff] }
 0x48c   : > { %v14092_v50 = vcombine.high %v10182_v61, %v10184_v13  ;;  %v2388_v19 = vmax.f32 %v2324_v51, 0.0  ;;  %v2392_v24 = vmax.f32 %v2328_v62, 0.0  ;;  %v2334_v59 = vadd.f32 %v9940_v47, %v2249_v17  ;;  %v2485_v49 = vld [vmem:[#allocation5 + $0x288] sm:$0xff]  ;;  %v14098_v62 = vld [vmem:[#allocation60_spill] sm:$0xff] }
 0x48d   : > { %4221 = vmatpush2.bf16.msra.mxu0 %v14090_v0  ;;  %4328 = vmatpush1.bf16.msra.mxu1 %v14091_v1  ;;  %v14095_v7 = vcombine.high %v14093_v54, %v14094_v32  ;;  %v2156_v2 = vmul.f32 %v10146_v28, %v14096_v58  ;;  %v2160_v6 = vmul.f32 %v10146_v28, %v14097_v26  ;;  %v2397_v20 = vmax.f32 %v2333_v34, 0.0  ;;  %v2489_v52 = vld [vmem:[#allocation5 + $0x2a8] sm:$0xff]  ;;  %v14100_v34 = vld [vmem:[#allocation86_spill] sm:$0xff] }
 0x48e   : > { %4222 = vmatprep.subr.bf16.mxu0 %v14092_v50  ;;  %v2396_v37 = vmax.f32 %v2332_v56, 0.0  ;;  %v2327_v48 = vadd.f32 %v9976_v15, %v2242_v3  ;;  %v2331_v51 = vadd.f32 %v9976_v15, %v2246_v53  ;;  %v2165_v43 = vmul.f32 %v10300_v9, %v14098_v62  ;;  %4160 = vmatmul.mubr.bf16.gmra.mxu1 %v10601_v40  ;;  %v14101_v0 = vld [vmem:[#allocation85_spill] sm:$0xff] }
 0x48f   : > { %4329 = vmatprep.subr.bf16.mxu1 %v14095_v7  ;;  %v2398_v11 = vmax.f32 %v2334_v59, 0.0  ;;  %v7626_v17 = vcombine.high %v10628_v27, %v10630_v25  ;;  %v14099_v28 = vcombine.low %v10182_v61, %v10184_v13  ;;  %v7481_v56 = vcombine.low %v14101_v0, %v14100_v34  ;;  %4169 = vmatprep.mubr.bf16.mxu1 %v10616_v35  ;;  %v14103_v7 = vld [vmem:[#allocation80_spill] sm:$0xff]  ;;  %v14104_v61 = vld [vmem:[#allocation81_spill] sm:$0xff] }
 0x490   : > { %v10656_v1 = vpack.c.bf16 %v2400_v60, %v2396_v37  ;;  %v14102_v3 = vcombine.low %v14093_v54, %v14094_v32  ;;  %v2382_v9 = vmax.f32 %v2318_v41, 0.0  ;;  %v10662_v53 = vpack.c.bf16 %v2392_v24, %v2388_v19  ;;  %v2629_v26 = vld [vmem:[#allocation5 + $0x708] sm:$0xff] }
 0x491   : > { %4223 = vmatpush2.bf16.msra.mxu0 %v14099_v28  ;;  %v7474_v50 = vcombine.high %v2485_v49, %v2489_v52  ;;  %v10664_v59 = vpack.c.bf16 %v2402_v16, %v2398_v11  ;;  %v14105_v13 = vcombine.high %v14103_v7, %v14104_v61  ;;  %v2386_v58 = vmax.f32 %v2322_v55, 0.0  ;;  %v2633_v60 = vld [vmem:[#allocation5 + $0x728] sm:$0xff] }
 0x492   : > { %4330 = vmatpush2.bf16.msra.mxu1 %v14102_v3  ;;  %v14106_v37 = vcombine.high %v14101_v0, %v14100_v34  ;;  %v2241_v54 = vmul.f32 %v9934_v21, %v2156_v2  ;;  %v2245_v41 = vmul.f32 %v9934_v21, %v2160_v6  ;;  %v10674_v19 = vpack.c.bf16 %v2401_v36, %v2397_v20  ;;  %v2477_v62 = vld [vmem:[#allocation5 + $0x248] sm:$0xff] }
 0x493   : > { %4331 = vmatprep.subr.bf16.mxu1 %v14105_v13  ;;  %v2254_v16 = vmul.f32 %v9968_v44, %v10439_v33  ;;  %v2391_v24 = vmax.f32 %v2327_v48, 0.0  ;;  %v2395_v32 = vmax.f32 %v2331_v51, 0.0  ;;  %4067 = vmatmul.mubr.bf16.gmra.mxu0 %v10662_v53  ;;  %v2250_v55 = vmul.f32 %v9968_v44, %v2165_v43  ;;  %v2481_v11 = vld [vmem:[#allocation5 + $0x268] sm:$0xff]  ;;  %v2466_v13 = vld [vmem:[#allocation5 + $0x1f0] sm:$0xff] }
 0x494   : > { %4224 = vmatprep.subr.bf16.mxu0 %v14106_v37  ;;  %4076 = vmatprep.mubr.bf16.mxu0 %v10674_v19  ;;  %v7473_v28 = vcombine.low %v2485_v49, %v2489_v52  ;;  %v14107_v21 = vcombine.low %v14103_v7, %v14104_v61  ;;  %v7625_v36 = vcombine.low %v10628_v27, %v10630_v25  ;;  %v2469_v48 = vld [vmem:[#allocation5 + $0x208] sm:$0xff] }
 0x495   : > { %4225 = vmatpush2.bf16.msra.mxu0 %v7481_v56  ;;  %v7618_v33 = vcombine.high %v2629_v26, %v2633_v60  ;;  %v10686_v2 = vpack.c.bf16 %v2386_v58, %v2382_v9  ;;  %v2326_v44 = vadd.f32 %v9940_v47, %v2241_v54  ;;  %v2330_v6 = vadd.f32 %v9940_v47, %v2245_v41  ;;  %v2473_v51 = vld [vmem:[#allocation5 + $0x228] sm:$0xff]  ;;  %v2454_v41 = vld [vmem:[#allocation5 + $0x190] sm:$0xff] }
 0x496   : > { %4332 = vmatpush2.bf16.msra.mxu1 %v14107_v21  ;;  %4226 = vmatprep.subr.bf16.mxu0 %v7474_v50  ;;  %v7466_v20 = vcombine.high %v2477_v62, %v2481_v11  ;;  %v2339_v49 = vadd.f32 %v9976_v15, %v2254_v16  ;;  %v10691_v52 = vpack.c.bf16 %v2395_v32, %v2391_v24  ;;  %v2621_v43 = vld [vmem:[#allocation5 + $0x6c8] sm:$0xff]  ;;  %v2458_v16 = vld [vmem:[#allocation5 + $0x1b0] sm:$0xff] }
 0x497   : > { %4333 = vmatprep.subr.bf16.mxu1 %v7626_v17  ;;  %v2625_v34 = vld [vmem:[#allocation5 + $0x6e8] sm:$0xff]  ;;  %v2335_v27 = vadd.f32 %v9976_v15, %v2250_v55  ;;  %4170 = vmatmul.mubr.bf16.gmra.mxu1 %v10686_v2  ;;  %v7465_v25 = vcombine.low %v2477_v62, %v2481_v11  ;;  %v7617_v17 = vcombine.low %v2629_v26, %v2633_v60  ;;  %v2390_v56 = vmax.f32 %v2326_v44, 0.0  ;;  %v2462_v15 = vld [vmem:[#allocation5 + $0x1d0] sm:$0xff] }
 0x498   : > { %4179 = vmatprep.mubr.bf16.mxu1 %v10691_v52  ;;  %v7458_v47 = vcombine.high %v2469_v48, %v2473_v51  ;;  %v7610_v0 = vcombine.high %v2621_v43, %v2625_v34  ;;  %v2394_v3 = vmax.f32 %v2330_v6, 0.0  ;;  %v2613_v9 = vld [vmem:[#allocation5 + $0x688] sm:$0xff]  ;;  %v2403_v7 = vmax.f32 %v2339_v49, 0.0  ;;  %v2446_v44 = vld [vmem:[#allocation5 + $0x150] sm:$0xff] }
 0x499   : > { %4227 = vmatpush2.bf16.msra.mxu0 %v7473_v28  ;;  %v2399_v50 = vmax.f32 %v2335_v27, 0.0  ;;  %v2617_v61 = vld [vmem:[#allocation5 + $0x6a8] sm:$0xff]  ;;  %v7457_v58 = vcombine.low %v2469_v48, %v2473_v51  ;;  %v7609_v26 = vcombine.low %v2621_v43, %v2625_v34  ;;  %v7452_v54 = vcombine.high %v2462_v15, %v2466_v13  ;;  %v2450_v6 = vld [vmem:[#allocation5 + $0x170] sm:$0xff] }
 0x49a   : > { %4334 = vmatpush2.bf16.msra.mxu1 %v7625_v36  ;;  %4228 = vmatprep.subr.bf16.mxu0 %v7466_v20  ;;  %v10698_v60 = vpack.c.bf16 %v2394_v3, %v2390_v56  ;;  %v7602_v37 = vcombine.high %v2613_v9, %v2617_v61  ;;  %v2605_v32 = vld [vmem:[#allocation5 + $0x648] sm:$0xff]  ;;  %v7451_v62 = vcombine.low %v2462_v15, %v2466_v13  ;;  %v2438_v43 = vld [vmem:[#allocation5 + $0x110] sm:$0xff] }
 0x49b   : > { %4335 = vmatprep.subr.bf16.mxu1 %v7618_v33  ;;  %4077 = vmatmul.mubr.bf16.gmra.mxu0 %v10656_v1  ;;  %v10700_v24 = vpack.c.bf16 %v2403_v7, %v2399_v50  ;;  %v2609_v55 = vld [vmem:[#allocation5 + $0x668] sm:$0xff]  ;;  %v7601_v11 = vcombine.low %v2613_v9, %v2617_v61  ;;  %v7444_v28 = vcombine.high %v2454_v41, %v2458_v16  ;;  %v2442_v34 = vld [vmem:[#allocation5 + $0x130] sm:$0xff] }
 0x49c   : > { %4232 = vmatprep.mubr.bf16.mxu0 %v10265_v10  ;;  %v7594_v21 = vcombine.high %v2605_v32, %v2609_v55  ;;  %v2597_v36 = vld [vmem:[#allocation5 + $0x608] sm:$0xff]  ;;  %v7443_v20 = vcombine.low %v2454_v41, %v2458_v16  ;;  %v7593_v48 = vcombine.low %v2605_v32, %v2609_v55  ;;  %v7436_v49 = vcombine.high %v2446_v44, %v2450_v6  ;;  %v2590_v27 = vld [vmem:[#allocation5 + $0x5d0] sm:$0xff] }
 0x49d   : > { %4229 = vmatpush2.bf16.msra.mxu0 %v7465_v25  ;;  %v2601_v33 = vld [vmem:[#allocation5 + $0x628] sm:$0xff]  ;;  %v2594_v25 = vld [vmem:[#allocation5 + $0x5f0] sm:$0xff]  ;;  %v7427_v61 = vcombine.low %v2438_v43, %v2442_v34 }
 0x49e   : > { %4336 = vmatpush2.bf16.msra.mxu1 %v7617_v17  ;;  %4230 = vmatprep.subr.bf16.mxu0 %v7458_v47  ;;  %v7586_v51 = vcombine.high %v2597_v36, %v2601_v33  ;;  %v7435_v17 = vcombine.low %v2446_v44, %v2450_v6  ;;  %v7585_v47 = vcombine.low %v2597_v36, %v2601_v33  ;;  %v2582_v3 = vld [vmem:[#allocation5 + $0x590] sm:$0xff] }
 0x49f   : > { %4337 = vmatprep.subr.bf16.mxu1 %v7610_v0  ;;  %4180 = vmatmul.mubr.bf16.gmra.mxu1 %v10698_v60  ;;  %v7428_v0 = vcombine.high %v2438_v43, %v2442_v34  ;;  %v7580_v56 = vcombine.high %v2590_v27, %v2594_v25  ;;  %v2586_v9 = vld [vmem:[#allocation5 + $0x5b0] sm:$0xff]  ;;  %v7579_v15 = vcombine.low %v2590_v27, %v2594_v25  ;;  %v14108_v27 = vld [vmem:[#allocation15_spill] sm:$0xff] }
 0x4a0   : > { %4189 = vmatprep.mubr.bf16.mxu1 %v10700_v24  ;;  %v2430_v50 = vld [vmem:[#allocation5 + $0xd0] sm:$0xff]  ;;  %v7572_v13 = vcombine.high %v2582_v3, %v2586_v9  ;;  %v7571_v32 = vcombine.low %v2582_v3, %v2586_v9 }
 0x4a1   : > { %4231 = vmatpush2.bf16.msra.mxu0 %v7457_v58  ;;  %v2434_v7 = vld [vmem:[#allocation5 + $0xf0] sm:$0xff] }
 0x4a2   : > { %4338 = vmatpush2.bf16.msra.mxu1 %v7609_v26  ;;  %4426 = vmatprep.subr.bf16.mxu0 %v7452_v54  ;;  %v7420_v58 = vcombine.high %v2430_v50, %v2434_v7  ;;  %v2422_v26 = vld [vmem:[#allocation5 + $0x90] sm:$0xff]  ;;  %v7419_v16 = vcombine.low %v2430_v50, %v2434_v7  ;;  %v14110_v7 = vld [vmem:[#allocation39_spill] sm:$0xff] }
 0x4a3   : > { %4339 = vmatprep.subr.bf16.mxu1 %v7602_v37  ;;  %v2426_v37 = vld [vmem:[#allocation5 + $0xb0] sm:$0xff] }
 0x4a4   : > { %4233 = vmatmul.mubr.bf16.vlgmr.msra.gmra.mxu0 %v10224_v5  ;;  %v2574_v54 = vld [vmem:[#allocation5 + $0x550] sm:$0xff]  ;;  %v7412_v55 = vcombine.high %v2422_v26, %v2426_v37  ;;  %v7411_v33 = vcombine.low %v2422_v26, %v2426_v37 }
 0x4a5   : > { %4427 = vmatpush1.bf16.msra.mxu0 %v7451_v62  ;;  %4242 = vmatprep.mubr.bf16.mxu0 %v10281_v23  ;;  %v2578_v41 = vld [vmem:[#allocation5 + $0x570] sm:$0xff] }
 0x4a6   : > { %4340 = vmatpush2.bf16.msra.mxu1 %v7601_v11  ;;  %4428 = vmatprep.subr.bf16.mxu0 %v7444_v28  ;;  %v7564_v62 = vcombine.high %v2574_v54, %v2578_v41  ;;  %v2566_v11 = vld [vmem:[#allocation5 + $0x510] sm:$0xff]  ;;  %v7563_v44 = vcombine.low %v2574_v54, %v2578_v41 }
 0x4a7   : > { %4341 = vmatprep.subr.bf16.mxu1 %v7594_v21  ;;  %4190 = vmatmul.mubr.bf16.gmra.mxu1 %v10664_v59  ;;  %v2570_v28 = vld [vmem:[#allocation5 + $0x530] sm:$0xff] }
 0x4a8   : > { %4345 = vmatprep.mubr.bf16.mxu1 %v10366_v57  ;;  %v2414_v21 = vld [vmem:[#allocation5 + $0x50] sm:$0xff]  ;;  %v7556_v6 = vcombine.high %v2566_v11, %v2570_v28  ;;  %v7555_v25 = vcombine.low %v2566_v11, %v2570_v28 }
 0x4a9   : > { %4429 = vmatpush1.bf16.msra.mxu0 %v7443_v20  ;;  %v2418_v36 = vld [vmem:[#allocation5 + $0x70] sm:$0xff] }
 0x4aa   : > { %4342 = vmatpush2.bf16.msra.mxu1 %v7593_v48  ;;  %4430 = vmatprep.subr.bf16.mxu0 %v7436_v49  ;;  %v7404_v20 = vcombine.high %v2414_v21, %v2418_v36  ;;  %v2406_v48 = vld [vmem:[#allocation5 + $0x10] sm:$0xff]  ;;  %v7403_v34 = vcombine.low %v2414_v21, %v2418_v36 }
 0x4ab   : > { %4343 = vmatprep.subr.bf16.mxu1 %v7586_v51  ;;  %v2410_v51 = vld [vmem:[#allocation5 + $0x30] sm:$0xff] }
 0x4ac   : > { %4243 = vmatmul.mubr.bf16.gmra.mxu0 %v10267_v31  ;;  %v2558_v49 = vld [vmem:[#allocation5 + $0x4d0] sm:$0xff] }
 0x4ad   : > { %4431 = vmatpush1.bf16.msra.mxu0 %v7435_v17  ;;  %4252 = vmatprep.mubr.bf16.mxu0 %v10338_v38  ;;  %v2562_v43 = vld [vmem:[#allocation5 + $0x4f0] sm:$0xff]  ;;  %v7396_v17 = vcombine.high %v2406_v48, %v2410_v51 }
 0x4ae   : > { %4344 = vmatpush2.bf16.msra.mxu1 %v7585_v47  ;;  %4432 = vmatprep.subr.bf16.mxu0 %v7428_v0  ;;  %v7548_v47 = vcombine.high %v2558_v49, %v2562_v43  ;;  %v2550_v0 = vld [vmem:[#allocation5 + $0x490] sm:$0xff] }
 0x4af   : > { %4539 = vmatprep.subr.bf16.mxu1 %v7580_v56  ;;  %v2554_v56 = vld [vmem:[#allocation5 + $0x4b0] sm:$0xff] }
 0x4b0   : > { %v14109_v3 = vld [vmem:[#allocation50_spill] sm:$0xff] }
 0x4b1   : > { %4346 = vmatmul.mubr.bf16.vlgmr.msra.gmra.mxu1 %v10274_v12  ;;  %4433 = vmatpush1.bf16.msra.mxu0 %v7427_v61  ;;  %v2526_v9 = vld [vmem:[#allocation5 + $0x3d0] sm:$0xff]  ;;  %v7395_v61 = vcombine.low %v2406_v48, %v2410_v51 }
 0x4b2   : > { %4540 = vmatpush1.bf16.msra.mxu1 %v7579_v15  ;;  %4355 = vmatprep.mubr.bf16.mxu1 %v10378_v29  ;;  %v2530_v50 = vld [vmem:[#allocation5 + $0x3f0] sm:$0xff]  ;;  %v7547_v15 = vcombine.low %v2558_v49, %v2562_v43 }
 0x4b3   : > { %4541 = vmatprep.subr.bf16.mxu1 %v7572_v13  ;;  %4434 = vmatprep.subr.bf16.mxu0 %v7420_v58  ;;  %v7540_v13 = vcombine.high %v2550_v0, %v2554_v56  ;;  %v7516_v58 = vcombine.high %v2526_v9, %v2530_v50  ;;  %v2518_v26 = vld [vmem:[#allocation5 + $0x390] sm:$0xff] }
 0x4b4   : > { %4253 = vmatmul.mubr.bf16.gmra.mxu0 %v10276_v22  ;;  %v2522_v37 = vld [vmem:[#allocation5 + $0x3b0] sm:$0xff] }
 0x4b5   : > { %4435 = vmatpush1.bf16.msra.mxu0 %v7419_v16  ;;  %4262 = vmatprep.mubr.bf16.mxu0 %v10407_v30  ;;  %v2542_v54 = vld [vmem:[#allocation5 + $0x450] sm:$0xff]  ;;  %v7515_v16 = vcombine.low %v2526_v9, %v2530_v50 }
 0x4b6   : > { %4542 = vmatpush1.bf16.msra.mxu1 %v7571_v32  ;;  %4436 = vmatprep.subr.bf16.mxu0 %v7412_v55  ;;  %v2546_v41 = vld [vmem:[#allocation5 + $0x470] sm:$0xff]  ;;  %v7539_v32 = vcombine.low %v2550_v0, %v2554_v56  ;;  %v7508_v55 = vcombine.high %v2518_v26, %v2522_v37 }
 0x4b7   : > { %4543 = vmatprep.subr.bf16.mxu1 %v7564_v62  ;;  %v7532_v62 = vcombine.high %v2542_v54, %v2546_v41  ;;  %v2534_v11 = vld [vmem:[#allocation5 + $0x410] sm:$0xff] }
 0x4b8   : > { %v2538_v28 = vld [vmem:[#allocation5 + $0x430] sm:$0xff] }
 0x4b9   : > { %4356 = vmatmul.mubr.bf16.gmra.mxu1 %v10283_v14  ;;  %4437 = vmatpush1.bf16.msra.mxu0 %v7411_v33  ;;  %v2510_v21 = vld [vmem:[#allocation5 + $0x350] sm:$0xff]  ;;  %v7507_v33 = vcombine.low %v2518_v26, %v2522_v37 }
 0x4ba   : > { %4544 = vmatpush1.bf16.msra.mxu1 %v7563_v44  ;;  %4365 = vmatprep.mubr.bf16.mxu1 %v14108_v27  ;;  %v2514_v36 = vld [vmem:[#allocation5 + $0x370] sm:$0xff]  ;;  %v7531_v44 = vcombine.low %v2542_v54, %v2546_v41 }
 0x4bb   : > { %4545 = vmatprep.subr.bf16.mxu1 %v7556_v6  ;;  %4438 = vmatprep.subr.bf16.mxu0 %v7404_v20  ;;  %v7524_v6 = vcombine.high %v2534_v11, %v2538_v28  ;;  %v7500_v20 = vcombine.high %v2510_v21, %v2514_v36  ;;  %v2502_v48 = vld [vmem:[#allocation5 + $0x310] sm:$0xff] }
 0x4bc   : > { %4263 = vmatmul.mubr.bf16.gmra.mxu0 %v14109_v3  ;;  %v2506_v51 = vld [vmem:[#allocation5 + $0x330] sm:$0xff] }
 0x4bd   : > { %4439 = vmatpush1.bf16.msra.mxu0 %v7403_v34  ;;  %4272 = vmatprep.mubr.bf16.mxu0 %v14110_v7  ;;  %v2654_v49 = vld [vmem:[#allocation5 + $0x7d0] sm:$0xff]  ;;  %v7499_v34 = vcombine.low %v2510_v21, %v2514_v36 }
 0x4be   : > { %4546 = vmatpush1.bf16.msra.mxu1 %v7555_v25  ;;  %4440 = vmatprep.subr.bf16.mxu0 %v7396_v17  ;;  %v2658_v43 = vld [vmem:[#allocation5 + $0x7f0] sm:$0xff]  ;;  %v7523_v25 = vcombine.low %v2534_v11, %v2538_v28  ;;  %v7492_v17 = vcombine.high %v2502_v48, %v2506_v51 }
 0x4bf   : > { %4547 = vmatprep.subr.bf16.mxu1 %v7548_v47  ;;  %v7644_v47 = vcombine.high %v2654_v49, %v2658_v43  ;;  %v2646_v0 = vld [vmem:[#allocation5 + $0x790] sm:$0xff] }
 0x4c0   : > { %v2650_v56 = vld [vmem:[#allocation5 + $0x7b0] sm:$0xff] }
 0x4c1   : > { %4366 = vmatmul.mubr.bf16.gmra.mxu1 %v10395_v8  ;;  %4441 = vmatpush1.bf16.msra.mxu0 %v7395_v61  ;;  %v2494_v9 = vld [vmem:[#allocation5 + $0x2d0] sm:$0xff]  ;;  %v7491_v61 = vcombine.low %v2502_v48, %v2506_v51 }
 0x4c2   : > { %4548 = vmatpush1.bf16.msra.mxu1 %v7547_v15  ;;  %4375 = vmatprep.mubr.bf16.mxu1 %v10509_v63  ;;  %v2498_v50 = vld [vmem:[#allocation5 + $0x2f0] sm:$0xff]  ;;  %v7643_v15 = vcombine.low %v2654_v49, %v2658_v43 }
 0x4c3   : > { %4549 = vmatprep.subr.bf16.mxu1 %v7540_v13  ;;  %4442 = vmatprep.subr.bf16.mxu0 %v7516_v58  ;;  %v7636_v13 = vcombine.high %v2646_v0, %v2650_v56  ;;  %v7484_v58 = vcombine.high %v2494_v9, %v2498_v50  ;;  %v2486_v26 = vld [vmem:[#allocation5 + $0x290] sm:$0xff] }
 0x4c4   : > { %4273 = vmatmul.mubr.bf16.gmra.mxu0 %v10529_v18  ;;  %v2490_v37 = vld [vmem:[#allocation5 + $0x2b0] sm:$0xff] }
 0x4c5   : > { %4443 = vmatpush2.bf16.msra.mxu0 %v7515_v16  ;;  %4282 = vmatprep.mubr.bf16.mxu0 %v10539_v45  ;;  %v2638_v54 = vld [vmem:[#allocation5 + $0x750] sm:$0xff]  ;;  %v7483_v16 = vcombine.low %v2494_v9, %v2498_v50  ;;  %v2463_v9 = vld [vmem:[#allocation5 + $0x1d8] sm:$0xff] }
 0x4c6   : > { %4550 = vmatpush1.bf16.msra.mxu1 %v7539_v32  ;;  %4444 = vmatprep.subr.bf16.mxu0 %v7508_v55  ;;  %v2642_v41 = vld [vmem:[#allocation5 + $0x770] sm:$0xff]  ;;  %v7635_v32 = vcombine.low %v2646_v0, %v2650_v56  ;;  %v7476_v55 = vcombine.high %v2486_v26, %v2490_v37  ;;  %v2467_v50 = vld [vmem:[#allocation5 + $0x1f8] sm:$0xff] }
 0x4c7   : > { %4551 = vmatprep.subr.bf16.mxu1 %v7532_v62  ;;  %v7628_v62 = vcombine.high %v2638_v54, %v2642_v41  ;;  %v2630_v11 = vld [vmem:[#allocation5 + $0x710] sm:$0xff] }
 0x4c8   : > { %v2634_v28 = vld [vmem:[#allocation5 + $0x730] sm:$0xff] }
 0x4c9   : > { %4376 = vmatmul.mubr.bf16.gmra.mxu1 %v10563_v4  ;;  %4445 = vmatpush2.bf16.msra.mxu0 %v7507_v33  ;;  %v2478_v21 = vld [vmem:[#allocation5 + $0x250] sm:$0xff]  ;;  %v7475_v33 = vcombine.low %v2486_v26, %v2490_v37  ;;  %v2455_v26 = vld [vmem:[#allocation5 + $0x198] sm:$0xff] }
 0x4ca   : > { %4552 = vmatpush1.bf16.msra.mxu1 %v7531_v44  ;;  %4385 = vmatprep.mubr.bf16.mxu1 %v10565_v39  ;;  %v2482_v36 = vld [vmem:[#allocation5 + $0x270] sm:$0xff]  ;;  %v7627_v44 = vcombine.low %v2638_v54, %v2642_v41  ;;  %v2459_v37 = vld [vmem:[#allocation5 + $0x1b8] sm:$0xff] }
 0x4cb   : > { %4553 = vmatprep.subr.bf16.mxu1 %v7524_v6  ;;  %4446 = vmatprep.subr.bf16.mxu0 %v7500_v20  ;;  %v7620_v6 = vcombine.high %v2630_v11, %v2634_v28  ;;  %v7468_v20 = vcombine.high %v2478_v21, %v2482_v36  ;;  %v2470_v48 = vld [vmem:[#allocation5 + $0x210] sm:$0xff] }
 0x4cc   : > { %4283 = vmatmul.mubr.bf16.gmra.mxu0 %v10585_v46  ;;  %v2474_v51 = vld [vmem:[#allocation5 + $0x230] sm:$0xff] }
 0x4cd   : > { %4447 = vmatpush2.bf16.msra.mxu0 %v7499_v34  ;;  %4292 = vmatprep.mubr.bf16.mxu0 %v10606_v42  ;;  %v2622_v49 = vld [vmem:[#allocation5 + $0x6d0] sm:$0xff]  ;;  %v7467_v34 = vcombine.low %v2478_v21, %v2482_v36  ;;  %v2447_v21 = vld [vmem:[#allocation5 + $0x158] sm:$0xff] }
 0x4ce   : > { %4554 = vmatpush1.bf16.msra.mxu1 %v7523_v25  ;;  %4448 = vmatprep.subr.bf16.mxu0 %v7492_v17  ;;  %v2626_v43 = vld [vmem:[#allocation5 + $0x6f0] sm:$0xff]  ;;  %v7619_v25 = vcombine.low %v2630_v11, %v2634_v28  ;;  %v7460_v17 = vcombine.high %v2470_v48, %v2474_v51  ;;  %v2451_v36 = vld [vmem:[#allocation5 + $0x178] sm:$0xff] }
 0x4cf   : > { %4555 = vmatprep.subr.bf16.mxu1 %v7644_v47  ;;  %v7612_v47 = vcombine.high %v2622_v49, %v2626_v43  ;;  %v2614_v0 = vld [vmem:[#allocation5 + $0x690] sm:$0xff] }
 0x4d0   : > { %v2618_v56 = vld [vmem:[#allocation5 + $0x6b0] sm:$0xff] }
 0x4d1   : > { %4386 = vmatmul.mubr.bf16.gmra.mxu1 %v10601_v40  ;;  %4449 = vmatpush2.bf16.msra.mxu0 %v7491_v61  ;;  %v7459_v61 = vcombine.low %v2470_v48, %v2474_v51  ;;  %v2606_v54 = vld [vmem:[#allocation5 + $0x650] sm:$0xff]  ;;  %v2439_v48 = vld [vmem:[#allocation5 + $0x118] sm:$0xff] }
 0x4d2   : > { %4556 = vmatpush2.bf16.msra.mxu1 %v7643_v15  ;;  %4395 = vmatprep.mubr.bf16.mxu1 %v10616_v35  ;;  %v7611_v15 = vcombine.low %v2622_v49, %v2626_v43  ;;  %v2610_v41 = vld [vmem:[#allocation5 + $0x670] sm:$0xff]  ;;  %v2443_v51 = vld [vmem:[#allocation5 + $0x138] sm:$0xff] }
 0x4d3   : > { %4557 = vmatprep.subr.bf16.mxu1 %v7636_v13  ;;  %4450 = vmatprep.subr.bf16.mxu0 %v7484_v58  ;;  %v7604_v13 = vcombine.high %v2614_v0, %v2618_v56  ;;  %v7454_v58 = vcombine.high %v2463_v9, %v2467_v50  ;;  %v2598_v11 = vld [vmem:[#allocation5 + $0x610] sm:$0xff]  ;;  %v2591_v49 = vld [vmem:[#allocation5 + $0x5d8] sm:$0xff] }
 0x4d4   : > { %4293 = vmatmul.mubr.bf16.gmra.mxu0 %v10662_v53  ;;  %v2602_v28 = vld [vmem:[#allocation5 + $0x630] sm:$0xff]  ;;  %v2595_v43 = vld [vmem:[#allocation5 + $0x5f8] sm:$0xff] }
 0x4d5   : > { %4451 = vmatpush2.bf16.msra.mxu0 %v7483_v16  ;;  %4302 = vmatprep.mubr.bf16.mxu0 %v10674_v19  ;;  %v7453_v16 = vcombine.low %v2463_v9, %v2467_v50  ;;  %v2431_v9 = vld [vmem:[#allocation5 + $0xd8] sm:$0xff] }
 0x4d6   : > { %4558 = vmatpush2.bf16.msra.mxu1 %v7635_v32  ;;  %4452 = vmatprep.subr.bf16.mxu0 %v7476_v55  ;;  %v7603_v32 = vcombine.low %v2614_v0, %v2618_v56  ;;  %v7446_v55 = vcombine.high %v2455_v26, %v2459_v37  ;;  %v2583_v0 = vld [vmem:[#allocation5 + $0x598] sm:$0xff] }
 0x4d7   : > { %4559 = vmatprep.subr.bf16.mxu1 %v7628_v62  ;;  %v7596_v62 = vcombine.high %v2606_v54, %v2610_v41  ;;  %v2587_v56 = vld [vmem:[#allocation5 + $0x5b8] sm:$0xff] }
 0x4d8   : > { %v2435_v50 = vld [vmem:[#allocation5 + $0xf8] sm:$0xff] }
 0x4d9   : > { %4396 = vmatmul.mubr.bf16.gmra.mxu1 %v10686_v2  ;;  %4453 = vmatpush2.bf16.msra.mxu0 %v7475_v33  ;;  %v7445_v33 = vcombine.low %v2455_v26, %v2459_v37  ;;  %v2423_v26 = vld [vmem:[#allocation5 + $0x98] sm:$0xff] }
 0x4da   : > { %4560 = vmatpush2.bf16.msra.mxu1 %v7627_v44  ;;  %4405 = vmatprep.mubr.bf16.mxu1 %v10691_v52  ;;  %v7595_v44 = vcombine.low %v2606_v54, %v2610_v41  ;;  %v2427_v37 = vld [vmem:[#allocation5 + $0xb8] sm:$0xff] }
 0x4db   : > { %4561 = vmatprep.subr.bf16.mxu1 %v7620_v6  ;;  %4454 = vmatprep.subr.bf16.mxu0 %v7468_v20  ;;  %v7588_v6 = vcombine.high %v2598_v11, %v2602_v28  ;;  %v7438_v20 = vcombine.high %v2447_v21, %v2451_v36  ;;  %v2575_v54 = vld [vmem:[#allocation5 + $0x558] sm:$0xff] }
 0x4dc   : > { %4303 = vmatmul.mubr.bf16.gmra.mxu0 %v10656_v1  ;;  %v2579_v41 = vld [vmem:[#allocation5 + $0x578] sm:$0xff] }
 0x4dd   : > { %4455 = vmatpush2.bf16.msra.mxu0 %v7467_v34  ;;  %4458 = vmatprep.mubr.bf16.mxu0 %v10265_v10  ;;  %v7437_v34 = vcombine.low %v2447_v21, %v2451_v36  ;;  %v2415_v21 = vld [vmem:[#allocation5 + $0x58] sm:$0xff] }
 0x4de   : > { %4562 = vmatpush2.bf16.msra.mxu1 %v7619_v25  ;;  %4456 = vmatprep.subr.bf16.mxu0 %v7460_v17  ;;  %v7587_v25 = vcombine.low %v2598_v11, %v2602_v28  ;;  %v7430_v17 = vcombine.high %v2439_v48, %v2443_v51  ;;  %v2567_v11 = vld [vmem:[#allocation5 + $0x518] sm:$0xff] }
 0x4df   : > { %4563 = vmatprep.subr.bf16.mxu1 %v7612_v47  ;;  %v7582_v47 = vcombine.high %v2591_v49, %v2595_v43  ;;  %v2571_v28 = vld [vmem:[#allocation5 + $0x538] sm:$0xff] }
 0x4e0   : > { %v2419_v36 = vld [vmem:[#allocation5 + $0x78] sm:$0xff] }
 0x4e1   : > { %4406 = vmatmul.mubr.bf16.gmra.mxu1 %v10698_v60  ;;  %4457 = vmatpush2.bf16.msra.mxu0 %v7459_v61  ;;  %v7429_v61 = vcombine.low %v2439_v48, %v2443_v51  ;;  %v2407_v48 = vld [vmem:[#allocation5 + $0x18] sm:$0xff] }
 0x4e2   : > { %4564 = vmatpush2.bf16.msra.mxu1 %v7611_v15  ;;  %4415 = vmatprep.mubr.bf16.mxu1 %v10700_v24  ;;  %v7581_v15 = vcombine.low %v2591_v49, %v2595_v43  ;;  %v2411_v51 = vld [vmem:[#allocation5 + $0x38] sm:$0xff] }
 0x4e3   : > { %4565 = vmatprep.subr.bf16.mxu1 %v7604_v13  ;;  %4652 = vmatprep.subr.bf16.mxu0 %v7454_v58  ;;  %v7574_v13 = vcombine.high %v2583_v0, %v2587_v56  ;;  %v7422_v58 = vcombine.high %v2431_v9, %v2435_v50  ;;  %v2559_v49 = vld [vmem:[#allocation5 + $0x4d8] sm:$0xff] }
 0x4e4   : > { %4459 = vmatmul.mubr.bf16.vlgmr.msra.gmra.mxu0 %v10224_v5  ;;  %v2563_v43 = vld [vmem:[#allocation5 + $0x4f8] sm:$0xff] }
 0x4e5   : > { %4653 = vmatpush1.bf16.msra.mxu0 %v7453_v16  ;;  %4468 = vmatprep.mubr.bf16.mxu0 %v10281_v23  ;;  %v7421_v16 = vcombine.low %v2431_v9, %v2435_v50  ;;  %v2527_v9 = vld [vmem:[#allocation5 + $0x3d8] sm:$0xff] }
 0x4e6   : > { %4566 = vmatpush2.bf16.msra.mxu1 %v7603_v32  ;;  %4654 = vmatprep.subr.bf16.mxu0 %v7446_v55  ;;  %v7573_v32 = vcombine.low %v2583_v0, %v2587_v56  ;;  %v7414_v55 = vcombine.high %v2423_v26, %v2427_v37  ;;  %v2551_v0 = vld [vmem:[#allocation5 + $0x498] sm:$0xff] }
 0x4e7   : > { %4567 = vmatprep.subr.bf16.mxu1 %v7596_v62  ;;  %v7566_v62 = vcombine.high %v2575_v54, %v2579_v41  ;;  %v2555_v56 = vld [vmem:[#allocation5 + $0x4b8] sm:$0xff] }
 0x4e8   : > { %v2531_v50 = vld [vmem:[#allocation5 + $0x3f8] sm:$0xff] }
 0x4e9   : > { %4416 = vmatmul.mubr.bf16.gmra.mxu1 %v10664_v59  ;;  %4655 = vmatpush1.bf16.msra.mxu0 %v7445_v33  ;;  %v7413_v33 = vcombine.low %v2423_v26, %v2427_v37  ;;  %v2519_v26 = vld [vmem:[#allocation5 + $0x398] sm:$0xff] }
 0x4ea   : > { %4568 = vmatpush2.bf16.msra.mxu1 %v7595_v44  ;;  %4571 = vmatprep.mubr.bf16.mxu1 %v10366_v57  ;;  %v7565_v44 = vcombine.low %v2575_v54, %v2579_v41  ;;  %v2523_v37 = vld [vmem:[#allocation5 + $0x3b8] sm:$0xff] }
 0x4eb   : > { %4569 = vmatprep.subr.bf16.mxu1 %v7588_v6  ;;  %4656 = vmatprep.subr.bf16.mxu0 %v7438_v20  ;;  %v7558_v6 = vcombine.high %v2567_v11, %v2571_v28  ;;  %v7406_v20 = vcombine.high %v2415_v21, %v2419_v36  ;;  %v2543_v54 = vld [vmem:[#allocation5 + $0x458] sm:$0xff] }
 0x4ec   : > { %4469 = vmatmul.mubr.bf16.gmra.mxu0 %v10267_v31  ;;  %v2547_v41 = vld [vmem:[#allocation5 + $0x478] sm:$0xff] }
 0x4ed   : > { %4657 = vmatpush1.bf16.msra.mxu0 %v7437_v34  ;;  %4478 = vmatprep.mubr.bf16.mxu0 %v10338_v38  ;;  %v7405_v34 = vcombine.low %v2415_v21, %v2419_v36  ;;  %v2511_v21 = vld [vmem:[#allocation5 + $0x358] sm:$0xff] }
 0x4ee   : > { %4570 = vmatpush2.bf16.msra.mxu1 %v7587_v25  ;;  %4658 = vmatprep.subr.bf16.mxu0 %v7430_v17  ;;  %v7557_v25 = vcombine.low %v2567_v11, %v2571_v28  ;;  %v7398_v17 = vcombine.high %v2407_v48, %v2411_v51  ;;  %v2535_v11 = vld [vmem:[#allocation5 + $0x418] sm:$0xff] }
 0x4ef   : > { %4765 = vmatprep.subr.bf16.mxu1 %v7582_v47  ;;  %v7550_v47 = vcombine.high %v2559_v49, %v2563_v43  ;;  %v2539_v28 = vld [vmem:[#allocation5 + $0x438] sm:$0xff] }
 0x4f0   : > { %v2515_v36 = vld [vmem:[#allocation5 + $0x378] sm:$0xff] }
 0x4f1   : > { %4572 = vmatmul.mubr.bf16.vlgmr.msra.gmra.mxu1 %v10274_v12  ;;  %4659 = vmatpush1.bf16.msra.mxu0 %v7429_v61  ;;  %v7397_v61 = vcombine.low %v2407_v48, %v2411_v51  ;;  %v2503_v48 = vld [vmem:[#allocation5 + $0x318] sm:$0xff] }
 0x4f2   : > { %4766 = vmatpush1.bf16.msra.mxu1 %v7581_v15  ;;  %4581 = vmatprep.mubr.bf16.mxu1 %v10378_v29  ;;  %v7549_v15 = vcombine.low %v2559_v49, %v2563_v43  ;;  %v2507_v51 = vld [vmem:[#allocation5 + $0x338] sm:$0xff] }
 0x4f3   : > { %4767 = vmatprep.subr.bf16.mxu1 %v7574_v13  ;;  %4660 = vmatprep.subr.bf16.mxu0 %v7422_v58  ;;  %v7542_v13 = vcombine.high %v2551_v0, %v2555_v56  ;;  %v7518_v58 = vcombine.high %v2527_v9, %v2531_v50  ;;  %v2655_v49 = vld [vmem:[#allocation5 + $0x7d8] sm:$0xff] }
 0x4f4   : > { %4479 = vmatmul.mubr.bf16.gmra.mxu0 %v10276_v22  ;;  %v2659_v43 = vld [vmem:[#allocation5 + $0x7f8] sm:$0xff] }
 0x4f5   : > { %4661 = vmatpush1.bf16.msra.mxu0 %v7421_v16  ;;  %4488 = vmatprep.mubr.bf16.mxu0 %v10407_v30  ;;  %v7517_v16 = vcombine.low %v2527_v9, %v2531_v50  ;;  %v2495_v9 = vld [vmem:[#allocation5 + $0x2d8] sm:$0xff] }
 0x4f6   : > { %4768 = vmatpush1.bf16.msra.mxu1 %v7573_v32  ;;  %4662 = vmatprep.subr.bf16.mxu0 %v7414_v55  ;;  %v7541_v32 = vcombine.low %v2551_v0, %v2555_v56  ;;  %v7510_v55 = vcombine.high %v2519_v26, %v2523_v37  ;;  %v2647_v0 = vld [vmem:[#allocation5 + $0x798] sm:$0xff] }
 0x4f7   : > { %4769 = vmatprep.subr.bf16.mxu1 %v7566_v62  ;;  %v7534_v62 = vcombine.high %v2543_v54, %v2547_v41  ;;  %v2651_v56 = vld [vmem:[#allocation5 + $0x7b8] sm:$0xff] }
 0x4f8   : > { %v2499_v50 = vld [vmem:[#allocation5 + $0x2f8] sm:$0xff] }
 0x4f9   : > { %4582 = vmatmul.mubr.bf16.gmra.mxu1 %v10283_v14  ;;  %4663 = vmatpush1.bf16.msra.mxu0 %v7413_v33  ;;  %v7509_v33 = vcombine.low %v2519_v26, %v2523_v37  ;;  %v2487_v26 = vld [vmem:[#allocation5 + $0x298] sm:$0xff] }
 0x4fa   : > { %4770 = vmatpush1.bf16.msra.mxu1 %v7565_v44  ;;  %4591 = vmatprep.mubr.bf16.mxu1 %v14108_v27  ;;  %v7533_v44 = vcombine.low %v2543_v54, %v2547_v41  ;;  %v2491_v37 = vld [vmem:[#allocation5 + $0x2b8] sm:$0xff] }
 0x4fb   : > { %4771 = vmatprep.subr.bf16.mxu1 %v7558_v6  ;;  %4664 = vmatprep.subr.bf16.mxu0 %v7406_v20  ;;  %v7526_v6 = vcombine.high %v2535_v11, %v2539_v28  ;;  %v7502_v20 = vcombine.high %v2511_v21, %v2515_v36  ;;  %v2639_v54 = vld [vmem:[#allocation5 + $0x758] sm:$0xff] }
 0x4fc   : > { %4489 = vmatmul.mubr.bf16.gmra.mxu0 %v14109_v3  ;;  %v2643_v41 = vld [vmem:[#allocation5 + $0x778] sm:$0xff] }
 0x4fd   : > { %4665 = vmatpush1.bf16.msra.mxu0 %v7405_v34  ;;  %4498 = vmatprep.mubr.bf16.mxu0 %v14110_v7  ;;  %v7501_v34 = vcombine.low %v2511_v21, %v2515_v36  ;;  %v2479_v21 = vld [vmem:[#allocation5 + $0x258] sm:$0xff] }
 0x4fe   : > { %4772 = vmatpush1.bf16.msra.mxu1 %v7557_v25  ;;  %4666 = vmatprep.subr.bf16.mxu0 %v7398_v17  ;;  %v7525_v25 = vcombine.low %v2535_v11, %v2539_v28  ;;  %v7494_v17 = vcombine.high %v2503_v48, %v2507_v51  ;;  %v2631_v11 = vld [vmem:[#allocation5 + $0x718] sm:$0xff] }
 0x4ff   : > { %4773 = vmatprep.subr.bf16.mxu1 %v7550_v47  ;;  %v7646_v47 = vcombine.high %v2655_v49, %v2659_v43  ;;  %v2635_v28 = vld [vmem:[#allocation5 + $0x738] sm:$0xff] }
 0x500   : > { %v2483_v36 = vld [vmem:[#allocation5 + $0x278] sm:$0xff] }
 0x501   : > { %4592 = vmatmul.mubr.bf16.gmra.mxu1 %v10395_v8  ;;  %4667 = vmatpush1.bf16.msra.mxu0 %v7397_v61  ;;  %v7493_v61 = vcombine.low %v2503_v48, %v2507_v51  ;;  %v2471_v48 = vld [vmem:[#allocation5 + $0x218] sm:$0xff] }
 0x502   : > { %4774 = vmatpush1.bf16.msra.mxu1 %v7549_v15  ;;  %4601 = vmatprep.mubr.bf16.mxu1 %v10509_v63  ;;  %v7645_v15 = vcombine.low %v2655_v49, %v2659_v43  ;;  %v2475_v51 = vld [vmem:[#allocation5 + $0x238] sm:$0xff] }
 0x503   : > { %4775 = vmatprep.subr.bf16.mxu1 %v7542_v13  ;;  %4668 = vmatprep.subr.bf16.mxu0 %v7518_v58  ;;  %v7638_v13 = vcombine.high %v2647_v0, %v2651_v56  ;;  %v7486_v58 = vcombine.high %v2495_v9, %v2499_v50  ;;  %v2623_v49 = vld [vmem:[#allocation5 + $0x6d8] sm:$0xff] }
 0x504   : > { %4499 = vmatmul.mubr.bf16.gmra.mxu0 %v10529_v18  ;;  %v2627_v43 = vld [vmem:[#allocation5 + $0x6f8] sm:$0xff] }
 0x505   : > { %4669 = vmatpush2.bf16.msra.mxu0 %v7517_v16  ;;  %4508 = vmatprep.mubr.bf16.mxu0 %v10539_v45  ;;  %v7485_v16 = vcombine.low %v2495_v9, %v2499_v50  ;;  %v7461_v9 = vcombine.low %v2471_v48, %v2475_v51  ;;  %v7613_v50 = vcombine.low %v2623_v49, %v2627_v43 }
 0x506   : > { %4776 = vmatpush1.bf16.msra.mxu1 %v7541_v32  ;;  %4670 = vmatprep.subr.bf16.mxu0 %v7510_v55  ;;  %v7637_v32 = vcombine.low %v2647_v0, %v2651_v56  ;;  %v7478_v55 = vcombine.high %v2487_v26, %v2491_v37  ;;  %v2615_v0 = vld [vmem:[#allocation5 + $0x698] sm:$0xff] }
 0x507   : > { %4777 = vmatprep.subr.bf16.mxu1 %v7534_v62  ;;  %v7630_v62 = vcombine.high %v2639_v54, %v2643_v41  ;;  %v2619_v56 = vld [vmem:[#allocation5 + $0x6b8] sm:$0xff] }
 0x509   : > { %4602 = vmatmul.mubr.bf16.gmra.mxu1 %v10563_v4  ;;  %4671 = vmatpush2.bf16.msra.mxu0 %v7509_v33  ;;  %v7477_v33 = vcombine.low %v2487_v26, %v2491_v37  ;;  %v2599_v37 = vld [vmem:[#allocation5 + $0x618] sm:$0xff] }
 0x50a   : > { %4778 = vmatpush1.bf16.msra.mxu1 %v7533_v44  ;;  %4611 = vmatprep.mubr.bf16.mxu1 %v10565_v39  ;;  %v7629_v44 = vcombine.low %v2639_v54, %v2643_v41  ;;  %v2603_v54 = vld [vmem:[#allocation5 + $0x638] sm:$0xff] }
 0x50b   : > { %4779 = vmatprep.subr.bf16.mxu1 %v7526_v6  ;;  %4672 = vmatprep.subr.bf16.mxu0 %v7502_v20  ;;  %v7622_v6 = vcombine.high %v2631_v11, %v2635_v28  ;;  %v7470_v20 = vcombine.high %v2479_v21, %v2483_v36 }
 0x50c   : > { %4509 = vmatmul.mubr.bf16.gmra.mxu0 %v10585_v46 }
 0x50d   : > { %4673 = vmatpush2.bf16.msra.mxu0 %v7501_v34  ;;  %4518 = vmatprep.mubr.bf16.mxu0 %v10606_v42  ;;  %v7469_v34 = vcombine.low %v2479_v21, %v2483_v36 }
 0x50e   : > { %4780 = vmatpush1.bf16.msra.mxu1 %v7525_v25  ;;  %4674 = vmatprep.subr.bf16.mxu0 %v7494_v17  ;;  %v7621_v25 = vcombine.low %v2631_v11, %v2635_v28  ;;  %v7462_v17 = vcombine.high %v2471_v48, %v2475_v51 }
 0x50f   : > { %4781 = vmatprep.subr.bf16.mxu1 %v7646_v47  ;;  %v7614_v47 = vcombine.high %v2623_v49, %v2627_v43 }
 0x511   : > { %4612 = vmatmul.mubr.bf16.gmra.mxu1 %v10601_v40  ;;  %4675 = vmatpush2.bf16.msra.mxu0 %v7493_v61  ;;  %v7606_v61 = vcombine.high %v2615_v0, %v2619_v56 }
 0x512   : > { %4782 = vmatpush2.bf16.msra.mxu1 %v7645_v15  ;;  %4621 = vmatprep.mubr.bf16.mxu1 %v10616_v35  ;;  %v2607_v15 = vld [vmem:[#allocation5 + $0x658] sm:$0xff] }
 0x513   : > { %4783 = vmatprep.subr.bf16.mxu1 %v7638_v13  ;;  %4676 = vmatprep.subr.bf16.mxu0 %v7486_v58  ;;  %v2611_v13 = vld [vmem:[#allocation5 + $0x678] sm:$0xff]  ;;  %v7605_v58 = vcombine.low %v2615_v0, %v2619_v56 }
 0x514   : > { %4519 = vmatmul.mubr.bf16.gmra.mxu0 %v10662_v53  ;;  %v7598_v26 = vcombine.high %v2607_v15, %v2611_v13  ;;  %v7597_v41 = vcombine.low %v2607_v15, %v2611_v13  ;;  %v8223_v13 = vld [vmem:[#allocation7 + $0x38] sm:$0xff]  }
 0x515   : > { %4677 = vmatpush2.bf16.msra.mxu0 %v7485_v16  ;;  %4528 = vmatprep.mubr.bf16.mxu0 %v10674_v19 }
 0x516   : > { %4784 = vmatpush2.bf16.msra.mxu1 %v7637_v32  ;;  %4678 = vmatprep.subr.bf16.mxu0 %v7478_v55  ;;  %v7590_v32 = vcombine.high %v2599_v37, %v2603_v54 }
 0x517   : > { %4785 = vmatprep.subr.bf16.mxu1 %v7630_v62  ;;  %v7589_v62 = vcombine.low %v2599_v37, %v2603_v54 }
 0x519   : > { %4622 = vmatmul.mubr.bf16.gmra.mxu1 %v10686_v2  ;;  %4679 = vmatpush2.bf16.msra.mxu0 %v7477_v33 }
 0x51a   : > { %4786 = vmatpush2.bf16.msra.mxu1 %v7629_v44  ;;  %4631 = vmatprep.mubr.bf16.mxu1 %v10691_v52 }
 0x51b   : > { %4787 = vmatprep.subr.bf16.mxu1 %v7622_v6  ;;  %4680 = vmatprep.subr.bf16.mxu0 %v7470_v20 }
 0x51c   : > { %4529 = vmatmul.mubr.bf16.gmra.mxu0 %v10656_v1 }
 0x51d   : > { %4681 = vmatpush2.bf16.msra.mxu0 %v7469_v34  ;;  %4684 = vmatprep.mubr.bf16.mxu0 %v10265_v10  ;;  %v10768_v10 = vpop.f32.mrf.mxu0 }
 0x51e   : > { %4788 = vmatpush2.bf16.msra.mxu1 %v7621_v25  ;;  %4682 = vmatprep.subr.bf16.mxu0 %v7462_v17 }
 0x51f   : > { %4789 = vmatprep.subr.bf16.mxu1 %v7614_v47  ;;  %v10772_v16 = vpop.f32.mrf.mxu0 }
 0x521   : > { %4632 = vmatmul.mubr.bf16.gmra.mxu1 %v10698_v60  ;;  %4683 = vmatpush2.bf16.msra.mxu0 %v7461_v9  ;;  %v4012_v55 = vpop.f32.mrf.mxu0 }
 0x522   : > { %4790 = vmatpush2.bf16.msra.mxu1 %v7613_v50  ;;  %4641 = vmatprep.mubr.bf16.mxu1 %v10700_v24 }
 0x523   : > { %4791 = vmatprep.subr.bf16.mxu1 %v7606_v61  ;;  %v4014_v11 = vpop.f32.mrf.mxu0 }
 0x524   : > { %4685 = vmatmul.mubr.bf16.vlgmr.msra.gmra.mxu0 %v10224_v5 }
 0x525   : > { %4694 = vmatprep.mubr.bf16.mxu0 %v10281_v23  ;;  %v4018_v28 = vpop.f32.mrf.mxu0 }
 0x526   : > { %4792 = vmatpush2.bf16.msra.mxu1 %v7605_v58 }
 0x527   : > { %4793 = vmatprep.subr.bf16.mxu1 %v7598_v26  ;;  %v10778_v5 = vpop.f32.mrf.mxu0  ;;  %v4121_v21 = vpop.f32.mrf.mxu1 }
 0x528   : > { %v10834_v61 = vadd.f32 %v4121_v21, %v10768_v10 }
 0x529   : > { %4642 = vmatmul.mubr.bf16.gmra.mxu1 %v10664_v59  ;;  %v10780_v23 = vpop.f32.mrf.mxu0 }
 0x52a   : > { %4794 = vmatpush2.bf16.msra.mxu1 %v7597_v41  ;;  %4797 = vmatprep.mubr.bf16.mxu1 %v10366_v57  ;;  %v4123_v57 = vpop.f32.mrf.mxu1  ;;  %v8224_v41 = vld [vmem:[#allocation7 + $0x70] sm:$0xff]  }
 0x52b   : > { %4795 = vmatprep.subr.bf16.mxu1 %v7590_v32  ;;  %v10784_v36 = vpop.f32.mrf.mxu0  ;;  %v10844_v26 = vadd.f32 %v4123_v57, %v10772_v16 }
 0x52c   : > { %4695 = vmatmul.mubr.bf16.gmra.mxu0 %v10267_v31  ;;  %v4125_v31 = vpop.f32.mrf.mxu1 }
 0x52d   : > { %4704 = vmatprep.mubr.bf16.mxu0 %v10338_v38  ;;  %v10786_v33 = vpop.f32.mrf.mxu0  ;;  %v10828_v9 = vadd.f32 %v4125_v31, %v4012_v55 }
 0x52e   : > { %4796 = vmatpush2.bf16.msra.mxu1 %v7589_v62  ;;  %v4127_v44 = vpop.f32.mrf.mxu1 }
 0x52f   : > { %v10790_v38 = vpop.f32.mrf.mxu0  ;;  %v10836_v15 = vadd.f32 %v4127_v44, %v4014_v11 }
 0x531   : > { %4798 = vmatmul.mubr.bf16.vlgmr.msra.gmra.mxu1 %v10274_v12  ;;  %v10792_v6 = vpop.f32.mrf.mxu0  ;;  %v4131_v20 = vpop.f32.mrf.mxu1  ;;  %v4899_v16 = vadd.f32 %v10836_v15, %v10844_v26 }
 0x532   : > { %4807 = vmatprep.mubr.bf16.mxu1 %v10378_v29 }
 0x533   : > { %v10796_v12 = vpop.f32.mrf.mxu0  ;;  %v4133_v29 = vpop.f32.mrf.mxu1 }
 0x534   : > { %4705 = vmatmul.mubr.bf16.gmra.mxu0 %v10276_v22  ;;  %v10849_v37 = vadd.f32 %v4133_v29, %v10778_v5  ;;  %v8227_v29 = vld [vmem:[#allocation7 + $0x28] sm:$0xff]  }
 0x535   : > { %4714 = vmatprep.mubr.bf16.mxu0 %v10407_v30  ;;  %v10798_v48 = vpop.f32.mrf.mxu0  ;;  %v4135_v22 = vpop.f32.mrf.mxu1 }
 0x536   : > { %v10852_v54 = vadd.f32 %v4135_v22, %v10780_v23 }
 0x537   : > { %v10802_v30 = vpop.f32.mrf.mxu0  ;;  %v4137_v51 = vpop.f32.mrf.mxu1 }
 0x538   : > { %v10862_v55 = vadd.f32 %v4137_v51, %v10784_v36 }
 0x539   : > { %4808 = vmatmul.mubr.bf16.gmra.mxu1 %v10283_v14  ;;  %v10804_v49 = vpop.f32.mrf.mxu0 }
 0x53a   : > { %4817 = vmatprep.mubr.bf16.mxu1 %v14108_v27 }
 0x53b   : > { %v4141_v43 = vpop.f32.mrf.mxu1  ;;  %v10808_v14 = vpop.f32.mrf.mxu0 }
 0x53c   : > { %4715 = vmatmul.mubr.bf16.gmra.mxu0 %v14109_v3  ;;  %v10865_v62 = vadd.f32 %v4141_v43, %v10786_v33  ;;  %v8226_v33 = vld [vmem:[#allocation7 + $0x68] sm:$0xff]  }
 0x53d   : > { %4724 = vmatprep.mubr.bf16.mxu0 %v14110_v7  ;;  %v4143_v27 = vpop.f32.mrf.mxu1 }
 0x53e   : > { %v10872_v23 = vadd.f32 %v4143_v27, %v10790_v38 }
 0x53f   : > { %v10810_v34 = vpop.f32.mrf.mxu0  ;;  %v4145_v3 = vpop.f32.mrf.mxu1 }
 0x540   : > { %v10875_v21 = vadd.f32 %v4145_v3, %v10792_v6 }
 0x541   : > { %4818 = vmatmul.mubr.bf16.gmra.mxu1 %v10395_v8  ;;  %v10814_v7 = vpop.f32.mrf.mxu0  ;;  %v4147_v25 = vpop.f32.mrf.mxu1 }
 0x542   : > { %4827 = vmatprep.mubr.bf16.mxu1 %v10509_v63 }
 0x543   : > { %v10816_v17 = vpop.f32.mrf.mxu0 }
 0x544   : > { %4725 = vmatmul.mubr.bf16.gmra.mxu0 %v10529_v18 }
 0x545   : > { %4734 = vmatprep.mubr.bf16.mxu0 %v10539_v45  ;;  %v4151_v47 = vpop.f32.mrf.mxu1  ;;  %v10820_v8 = vpop.f32.mrf.mxu0 }
 0x546   : > { %v10886_v38 = vadd.f32 %v4151_v47, %v10798_v48 }
 0x547   : > { %v4153_v63 = vpop.f32.mrf.mxu1 }
 0x548   : > { %v10894_v43 = vadd.f32 %v4153_v63, %v10802_v30  ;;  %v8229_v63 = vld [vmem:[#allocation7 + $0x20] sm:$0xff]  }
 0x549   : > { %4828 = vmatmul.mubr.bf16.gmra.mxu1 %v10563_v4  ;;  %v10822_v0 = vpop.f32.mrf.mxu0  ;;  %v4155_v18 = vpop.f32.mrf.mxu1 }
 0x54a   : > { %4837 = vmatprep.mubr.bf16.mxu1 %v10565_v39  ;;  %v8222_v39 = vld [vmem:[#allocation7 + $0x78] sm:$0xff]  }
 0x54b   : > { %v10826_v45 = vpop.f32.mrf.mxu0  ;;  %v4157_v56 = vpop.f32.mrf.mxu1  ;;  %7729 = vmatprep.subr.bf16.mxu0 %v8222_v39 }
 0x54c   : > { %4735 = vmatmul.mubr.bf16.gmra.mxu0 %v10585_v46  ;;  %v10838_v46 = vadd.f32 %v4131_v20, %v4018_v28  ;;  %v8225_v28 = vld [vmem:[#allocation7 + $0x30] sm:$0xff]   ;;  %v10883_v20 = vadd.f32 %v4147_v25, %v10796_v12  ;;  %v10897_v12 = vadd.f32 %v4155_v18, %v10804_v49  ;;  %v10903_v47 = vadd.f32 %v4157_v56, %v10808_v14 }
 0x54d   : > { %4744 = vmatprep.mubr.bf16.mxu0 %v10606_v42  ;;  %v10830_v50 = vpop.f32.mrf.mxu0  ;;  %7730 = vmatpush3.bf16.msra.mxu0 %v8223_v13 }
 0x54e   : > { %v4161_v4 = vpop.f32.mrf.mxu1  ;;  %7731 = vmatprep.subr.bf16.mxu0 %v8224_v41 }
 0x54f   : > { %v10841_v42 = vpop.f32.mrf.mxu0  ;;  %v10906_v39 = vadd.f32 %v4161_v4, %v10810_v34  ;;  %v8230_v34 = vld [vmem:[#allocation7 + $0x58] sm:$0xff]  }
 0x550   : > { %v4163_v58 = vpop.f32.mrf.mxu1 }
 0x551   : > { %4838 = vmatmul.mubr.bf16.gmra.mxu1 %v10601_v40  ;;  %v4878_v40 = vadd.f32 %v10828_v9, %v10834_v61  ;;  %7732 = vmatpush3.bf16.msra.mxu0 %v8225_v28  ;;  %v10911_v13 = vadd.f32 %v4163_v58, %v10814_v7 }
 0x552   : > { %4847 = vmatprep.mubr.bf16.mxu1 %v10616_v35  ;;  %v4165_v35 = vpop.f32.mrf.mxu1  ;;  %7733 = vmatprep.subr.bf16.mxu0 %v8226_v33 }
 0x553   : > { %v10854_v10 = vpop.f32.mrf.mxu0  ;;  %v4879_v32 = vadd.f32 %v4878_v40, %v10838_v46  ;;  %v10914_v40 = vadd.f32 %v4165_v35, %v10816_v17  ;;  %v8231_v17 = vld [vmem:[#allocation7 + $0x18] sm:$0xff]  }
 0x554   : > { %4745 = vmatmul.mubr.bf16.gmra.mxu0 %v10662_v53  ;;  %v4167_v53 = vpop.f32.mrf.mxu1 }
 0x555   : > { %4754 = vmatprep.mubr.bf16.mxu0 %v10674_v19  ;;  %v10867_v11 = vpop.f32.mrf.mxu0  ;;  %v4900_v19 = vadd.f32 %v4899_v16, %v10849_v37  ;;  %v4880_v5 = vadd.f32 %v4879_v32, %v10852_v54  ;;  %7734 = vmatpush3.bf16.msra.mxu0 %v8227_v29  ;;  %v10920_v16 = vadd.f32 %v4167_v53, %v10820_v8  ;;  %v8232_v53 = vld [vmem:[#allocation7 + $0x50] sm:$0xff]  }
 0x557   : > { %v10877_v36 = vpop.f32.mrf.mxu0  ;;  %v4171_v57 = vpop.f32.mrf.mxu1  ;;  %v4901_v31 = vadd.f32 %v4900_v19, %v10862_v55  ;;  %v4881_v44 = vadd.f32 %v4880_v5, %v10865_v62 }
 0x558   : > { %v10923_v32 = vadd.f32 %v4171_v57, %v10822_v0 }
 0x559   : > { %4848 = vmatmul.mubr.bf16.gmra.mxu1 %v10686_v2  ;;  %v10889_v6 = vpop.f32.mrf.mxu0  ;;  %v4173_v22 = vpop.f32.mrf.mxu1  ;;  %v4902_v2 = vadd.f32 %v4901_v31, %v10872_v23  ;;  %v4882_v51 = vadd.f32 %v4881_v44, %v10875_v21  ;;  %v8233_v31 = vld [vmem:[#allocation7 + $0x10] sm:$0xff]  }
 0x55a   : > { %4857 = vmatprep.mubr.bf16.mxu1 %v10691_v52  ;;  %v8228_v52 = vld [vmem:[#allocation7 + $0x60] sm:$0xff]   ;;  %v10929_v28 = vadd.f32 %v4173_v22, %v10826_v45 }
 0x55b   : > { %v4078_v27 = vpop.f32.mrf.mxu0  ;;  %v4175_v48 = vpop.f32.mrf.mxu1  ;;  %v4903_v3 = vadd.f32 %v4902_v2, %v10883_v20  ;;  %v4883_v25 = vadd.f32 %v4882_v51, %v10886_v38  ;;  %7735 = vmatprep.subr.bf16.mxu0 %v8228_v52 }
 0x55c   : > { %4755 = vmatmul.mubr.bf16.gmra.mxu0 %v10656_v1  ;;  %14111 = vst [vmem:[#allocation40_spill] sm:$0xff] %v10929_v28  ;;  %v10932_v19 = vadd.f32 %v4175_v48, %v10830_v50 }
 0x55d   : > { %v4080_v30 = vpop.f32.mrf.mxu0  ;;  %v4177_v49 = vpop.f32.mrf.mxu1  ;;  %v4904_v18 = vadd.f32 %v4903_v3, %v10894_v43  ;;  %v4884_v1 = vadd.f32 %v4883_v25, %v10897_v12  ;;  %7736 = vmatpush3.bf16.msra.mxu0 %v8229_v63 }
 0x55e   : > { %7737 = vmatprep.subr.bf16.mxu0 %v8230_v34  ;;  %v10939_v57 = vadd.f32 %v4177_v49, %v10841_v42  ;;  %v8236_v34 = vld [vmem:[#allocation7 + $0x40] sm:$0xff]  }
 0x55f   : > { %v4082_v41 = vpop.f32.mrf.mxu0  ;;  %v4181_v14 = vpop.f32.mrf.mxu1  ;;  %v4905_v56 = vadd.f32 %v4904_v18, %v10903_v47  ;;  %v4885_v4 = vadd.f32 %v4884_v1, %v10906_v39 }
 0x560   : > { %14112 = vst [vmem:[#allocation51_spill] sm:$0xff] %v10939_v57  ;;  %v10942_v33 = vadd.f32 %v4181_v14, %v10854_v10  ;;  %v8234_v10 = vld [vmem:[#allocation7 + $0x48] sm:$0xff]  }
 0x561   : > { %4858 = vmatmul.mubr.bf16.gmra.mxu1 %v10698_v60  ;;  %v4084_v7 = vpop.f32.mrf.mxu0  ;;  %v4183_v58 = vpop.f32.mrf.mxu1  ;;  %v4906_v60 = vadd.f32 %v4905_v56, %v10911_v13  ;;  %v4886_v35 = vadd.f32 %v4885_v4, %v10914_v40  ;;  %7738 = vmatpush3.bf16.msra.mxu0 %v8231_v17  ;;  %v8237_v17 = vld [vmem:[#allocation7] sm:$0xff]  }
 0x562   : > { %4867 = vmatprep.mubr.bf16.mxu1 %v10700_v24  ;;  %7739 = vmatprep.subr.bf16.mxu0 %v8232_v53  ;;  %v10949_v22 = vadd.f32 %v4183_v58, %v10867_v11 }
 0x563   : > { %v4185_v0 = vpop.f32.mrf.mxu1  ;;  %v4907_v24 = vadd.f32 %v4906_v60, %v10920_v16  ;;  %v4887_v5 = vadd.f32 %v4886_v35, %v10923_v32 }
 0x564   : > { %v10934_v8 = vpop.f32.mrf.mxu0  ;;  %14113 = vst [vmem:[#allocation21_spill] sm:$0xff] %v10949_v22  ;;  %v10952_v2 = vadd.f32 %v4185_v0, %v10877_v36  ;;  %v8235_v36 = vld [vmem:[#allocation7 + $0x8] sm:$0xff]  }
 0x565   : > { %v4187_v50 = vpop.f32.mrf.mxu1  ;;  %v4908_v44 = vadd.f32 %v4907_v24, %v10929_v28  ;;  %v4888_v29 = vadd.f32 %v4887_v5, %v10932_v19  ;;  %7740 = vmatpush3.bf16.msra.mxu0 %v8233_v31 }
 0x566   : > { %v10944_v45 = vpop.f32.mrf.mxu0  ;;  %v10960_v3 = vadd.f32 %v4187_v50, %v10889_v6  ;;  %7741 = vmatprep.subr.bf16.mxu0 %v8234_v10 }
 0x567   : > { %v4191_v51 = vpop.f32.mrf.mxu1  ;;  %v4909_v48 = vadd.f32 %v4908_v44, %v10939_v57  ;;  %v4889_v52 = vadd.f32 %v4888_v29, %v10942_v33 }
 0x568   : > { %v10954_v42 = vpop.f32.mrf.mxu0  ;;  %14114 = vst [vmem:[#allocation23_spill] sm:$0xff] %v10960_v3  ;;  %v10962_v25 = vadd.f32 %v4191_v51, %v4078_v27 }
 0x569   : > { %4868 = vmatmul.mubr.bf16.gmra.mxu1 %v10664_v59  ;;  %v4193_v63 = vpop.f32.mrf.mxu1  ;;  %v4910_v49 = vadd.f32 %v4909_v48, %v10949_v22  ;;  %v4890_v59 = vadd.f32 %v4889_v52, %v10952_v2  ;;  %7742 = vmatpush3.bf16.msra.mxu0 %v8235_v36 }
 0x56a   : > { %v10964_v11 = vpop.f32.mrf.mxu0  ;;  %v10968_v18 = vadd.f32 %v4193_v63, %v4080_v30  ;;  %7743 = vmatprep.subr.bf16.mxu0 %v8236_v34 }
 0x56b   : > { %v4195_v14 = vpop.f32.mrf.mxu1  ;;  %v4911_v6 = vadd.f32 %v4910_v49, %v10960_v3  ;;  %v4891_v27 = vadd.f32 %v4890_v59, %v10962_v25 }
 0x56c   : > { %14115 = vst [vmem:[#allocation25_spill] sm:$0xff] %v10968_v18  ;;  %v10970_v1 = vpop.f32.mrf.mxu0  ;;  %v10974_v56 = vadd.f32 %v4195_v14, %v4082_v41 }
 0x56d   : > { %v4197_v58 = vpop.f32.mrf.mxu1  ;;  %v4912_v60 = vadd.f32 %v4911_v6, %v10968_v18  ;;  %7744 = vmatpush3.bf16.msra.mxu0 %v8237_v17 }
 0x56e   : > { %v4246_v4 = vpop.f32.mrf.mxu0  ;;  %v4892_v30 = vadd.f32 %v4891_v27, %v10974_v56  ;;  %v10978_v35 = vadd.f32 %v4197_v58, %v4084_v7 }
 0x570   : > { %14116 = vst [vmem:[#allocation16_spill] sm:$0xff] %v10978_v35  ;;  %v10980_v0 = vpop.f32.mrf.mxu0  ;;  %v4893_v24 = vrot.slane %v4892_v30, 4  ;;  %v4913_v5 = vadd.f32 %v4912_v60, %v10978_v35 }
 0x571   : > { %v4347_v53 = vpop.f32.mrf.mxu1 }
 0x572   : > { %v10983_v31 = vpop.f32.mrf.mxu0  ;;  %v4894_v50 = vadd.f32 %v4893_v24, %v4892_v30  ;;  %v4914_v44 = vrot.slane %v4913_v5, 4 }
 0x573   : > { %v4349_v41 = vpop.f32.mrf.mxu1 }
 0x574   : > { %v10985_v29 = vpop.f32.mrf.mxu0  ;;  %v4895_v10 = vrot.slane %v4894_v50, 2  ;;  %v4915_v48 = vadd.f32 %v4914_v44, %v4913_v5 }
 0x575   : > { %v4351_v51 = vpop.f32.mrf.mxu1 }
 0x576   : > { %v10987_v52 = vpop.f32.mrf.mxu0  ;;  %v4896_v36 = vadd.f32 %v4895_v10, %v4894_v50  ;;  %v4916_v63 = vrot.slane %v4915_v48, 2 }
 0x577   : > { %v4353_v7 = vpop.f32.mrf.mxu1 }
 0x578   : > { %v10989_v49 = vpop.f32.mrf.mxu0  ;;  %v4897_v14 = vrot.slane %v4896_v36, 1  ;;  %v4917_v17 = vadd.f32 %v4916_v63, %v4915_v48  ;;  %v11041_v28 = vadd.f32 %v4353_v7, %v10964_v11  ;;  %v11059_v11 = vadd.f32 %v4349_v41, %v10944_v45 }
 0x579   : > { %v4357_v59 = vpop.f32.mrf.mxu1 }
 0x57a   : > { %v10991_v34 = vpop.f32.mrf.mxu0  ;;  %v4898_v27 = vadd.f32 %v4897_v14, %v4896_v36  ;;  %v4918_v10 = vrot.slane %v4917_v17, 1 }
 0x57b   : > { %v4359_v6 = vpop.f32.mrf.mxu1 }
 0x57c   : > { %v10993_v58 = vpop.f32.mrf.mxu0  ;;  %v10997_v30 = vmul.f32 0.0078125, %v4898_v27  ;;  %v4919_v35 = vadd.f32 %v4918_v10, %v4917_v17  ;;  %v11064_v7 = vadd.f32 %v4359_v6, %v4246_v4 }
 0x57d   : > { %v10995_v60 = vpop.f32.mrf.mxu1 }
 0x57e   : > { %v10999_v24 = vpop.f32.mrf.mxu0  ;;  %v11005_v50 = vsub.f32 %v10834_v61, %v10997_v30  ;;  %v11009_v44 = vsub.f32 %v10828_v9, %v10997_v30  ;;  %v11021_v27 = vsub.f32 %v10838_v46, %v10997_v30  ;;  %v11033_v22 = vsub.f32 %v10852_v54, %v10997_v30  ;;  %14123 = vst [vmem:[#allocation41_spill] sm:$0xff] %v11064_v7 }
 0x57f   : > { %v11001_v5 = vpop.f32.mrf.mxu1  ;;  %v11038_v46 = vadd.f32 %v4351_v51, %v10954_v42  ;;  %v11047_v17 = vsub.f32 %v10865_v62, %v10997_v30  ;;  %v11051_v54 = vmul.f32 0.0078125, %v4919_v35  ;;  %v11056_v42 = vadd.f32 %v4347_v53, %v10934_v8 }
 0x580   : > { %14117 = vst [vmem:[#allocation56_spill] sm:$0xff] %v11005_v50  ;;  %14118 = vst [vmem:[#allocation57_spill] sm:$0xff] %v11009_v44  ;;  %v11011_v48 = vpop.f32.mrf.mxu0  ;;  %v5182_v61 = vmul.f32 %v11005_v50, %v11005_v50  ;;  %v5190_v9 = vmul.f32 %v11009_v44, %v11009_v44  ;;  %v5198_v10 = vmul.f32 %v11021_v27, %v11021_v27 }
 0x581   : > { %v11013_v36 = vpop.f32.mrf.mxu1  ;;  %14119 = vst [vmem:[#allocation27_spill] sm:$0xff] %v11021_v27  ;;  %14121 = vst [vmem:[#allocation24_spill] sm:$0xff] %v11033_v22  ;;  %v11062_v51 = vadd.f32 %v4357_v59, %v10970_v1  ;;  %v5206_v35 = vmul.f32 %v11033_v22, %v11033_v22  ;;  %v11078_v45 = vsub.f32 %v10844_v26, %v11051_v54 }
 0x582   : > { %v11015_v63 = vpop.f32.mrf.mxu0  ;;  %14122 = vst [vmem:[#allocation43_spill] sm:$0xff] %v11047_v17  ;;  %v5310_v44 = vadd.f32 %v5190_v9, %v5182_v61  ;;  %v11070_v61 = vsub.f32 %v10875_v21, %v10997_v30  ;;  %v11082_v1 = vsub.f32 %v10836_v15, %v11051_v54  ;;  %v4920_v4 = vadd.f32 %v11038_v46, %v11056_v42 }
 0x583   : > { %v11017_v14 = vpop.f32.mrf.mxu1  ;;  %14125 = vst [vmem:[#allocation45_spill] sm:$0xff] %v11078_v45  ;;  %v4941_v21 = vadd.f32 %v11041_v28, %v11059_v11  ;;  %v11092_v41 = vsub.f32 %v10886_v38, %v10997_v30  ;;  %v5214_v26 = vmul.f32 %v11047_v17, %v11047_v17  ;;  %v11100_v15 = vsub.f32 %v10897_v12, %v10997_v30 }
 0x584   : > { %v11027_v18 = vpop.f32.mrf.mxu0  ;;  %14124 = vst [vmem:[#allocation42_spill] sm:$0xff] %v11070_v61  ;;  %v5311_v9 = vadd.f32 %v5310_v44, %v5198_v10  ;;  %14126 = vst [vmem:[#allocation54_spill] sm:$0xff] %v11082_v1  ;;  %v11104_v44 = vsub.f32 %v10906_v39, %v10997_v30  ;;  %v4921_v10 = vadd.f32 %v4920_v4, %v11062_v51 }
 0x585   : > { %14120 = vst [vmem:[#allocation20_spill] sm:$0xff] %v11027_v18  ;;  %v11029_v3 = vpop.f32.mrf.mxu1  ;;  %14127 = vst [vmem:[#allocation55_spill] sm:$0xff] %v11092_v41  ;;  %v4942_v22 = vadd.f32 %v4941_v21, %v11064_v7  ;;  %v11112_v17 = vsub.f32 %v10914_v40, %v10997_v30  ;;  %v5222_v12 = vmul.f32 %v11070_v61, %v11070_v61 }
 0x586   : > { %v11035_v57 = vpop.f32.mrf.mxu0  ;;  %v5312_v59 = vadd.f32 %v5311_v9, %v5206_v35  ;;  %14128 = vst [vmem:[#allocation38_spill] sm:$0xff] %v11100_v15  ;;  %14129 = vst [vmem:[#allocation28_spill] sm:$0xff] %v11104_v44  ;;  %v11116_v35 = vsub.f32 %v10923_v32, %v10997_v30  ;;  %v11124_v4 = vsub.f32 %v10932_v19, %v10997_v30 }
 0x587   : > { %v11043_v50 = vpop.f32.mrf.mxu1  ;;  %14130 = vst [vmem:[#allocation66_spill] sm:$0xff] %v11112_v17  ;;  %v11128_v21 = vsub.f32 %v10849_v37, %v11051_v54  ;;  %v5183_v40 = vmul.f32 %v11078_v45, %v11078_v45  ;;  %v5191_v32 = vmul.f32 %v11082_v1, %v11082_v1  ;;  %v11142_v19 = vsub.f32 %v10952_v2, %v10997_v30 }
 0x588   : > { %v11053_v18 = vpop.f32.mrf.mxu0  ;;  %14131 = vst [vmem:[#allocation67_spill] sm:$0xff] %v11116_v35  ;;  %v5313_v9 = vadd.f32 %v5312_v59, %v5214_v26  ;;  %14132 = vst [vmem:[#allocation17_spill] sm:$0xff] %v11124_v4  ;;  %v11138_v26 = vsub.f32 %v10942_v33, %v10997_v30  ;;  %v5230_v37 = vmul.f32 %v11092_v41, %v11092_v41 }
 0x589   : > { %v11066_v62 = vpop.f32.mrf.mxu1  ;;  %14133 = vst [vmem:[#allocation63_spill] sm:$0xff] %v11128_v21  ;;  %14135 = vst [vmem:[#allocation59_spill] sm:$0xff] %v11142_v19  ;;  %v11150_v45 = vsub.f32 %v10962_v25, %v10997_v30  ;;  %v11154_v1 = vsub.f32 %v10974_v56, %v10997_v30  ;;  %v11158_v33 = vsub.f32 %v10862_v55, %v11051_v54 }
 0x58a   : > { %v11074_v8 = vpop.f32.mrf.mxu0  ;;  %14134 = vst [vmem:[#allocation58_spill] sm:$0xff] %v11138_v26  ;;  %v5314_v59 = vadd.f32 %v5313_v9, %v5222_v12  ;;  %v11162_v2 = vadd.f32 %v10995_v60, %v10980_v0  ;;  %v5238_v12 = vmul.f32 %v11100_v15, %v11100_v15  ;;  %v5246_v25 = vmul.f32 %v11104_v44, %v11104_v44 }
 0x58b   : > { %v11088_v53 = vpop.f32.mrf.mxu1  ;;  %14136 = vst [vmem:[#allocation29_spill] sm:$0xff] %v11150_v45  ;;  %14137 = vst [vmem:[#allocation52_spill] sm:$0xff] %v11158_v33  ;;  %v5254_v56 = vmul.f32 %v11112_v17, %v11112_v17  ;;  %v5262_v55 = vmul.f32 %v11116_v35, %v11116_v35  ;;  %v11178_v0 = vsub.f32 %v10872_v23, %v11051_v54 }
 0x58c   : > { %v11096_v6 = vpop.f32.mrf.mxu0  ;;  %v5315_v30 = vadd.f32 %v5314_v59, %v5230_v37  ;;  %v5199_v60 = vmul.f32 %v11128_v21, %v11128_v21  ;;  %v5331_v15 = vadd.f32 %v5191_v32, %v5183_v40  ;;  %v5270_v44 = vmul.f32 %v11124_v4, %v11124_v4 }
 0x58d   : > { %v11108_v38 = vpop.f32.mrf.mxu1  ;;  %14138 = vst [vmem:[#allocation53_spill] sm:$0xff] %v11178_v0  ;;  %v5278_v37 = vmul.f32 %v11138_v26, %v11138_v26  ;;  %v5286_v59 = vmul.f32 %v11142_v19, %v11142_v19  ;;  %v11192_v23 = vsub.f32 %v10883_v20, %v11051_v54  ;;  %v5207_v40 = vmul.f32 %v11158_v33, %v11158_v33 }
 0x58e   : > { %v11120_v39 = vpop.f32.mrf.mxu0  ;;  %v5316_v17 = vadd.f32 %v5315_v30, %v5238_v12  ;;  %v5332_v32 = vadd.f32 %v5331_v15, %v5199_v60  ;;  %v11198_v4 = vadd.f32 %v11001_v5, %v10983_v31  ;;  %v5294_v26 = vmul.f32 %v11150_v45, %v11150_v45 }
 0x58f   : > { %v11134_v27 = vpop.f32.mrf.mxu1  ;;  %14139 = vst [vmem:[#allocation61_spill] sm:$0xff] %v11192_v23  ;;  %v11204_v12 = vmul.f32 %v11154_v1, %v11154_v1  ;;  %v11208_v20 = vadd.f32 %v11013_v36, %v10985_v29  ;;  %v11214_v15 = vsub.f32 %v10894_v43, %v11051_v54  ;;  %v5215_v31 = vmul.f32 %v11178_v0, %v11178_v0 }
 0x590   : > { %v11146_v61 = vpop.f32.mrf.mxu0  ;;  %v5317_v30 = vadd.f32 %v5316_v17, %v5246_v25  ;;  %v5333_v5 = vadd.f32 %v5332_v32, %v5207_v40  ;;  %v11220_v60 = vadd.f32 %v11017_v14, %v10987_v52  ;;  %v4922_v25 = vadd.f32 %v4921_v10, %v11162_v2 }
 0x591   : > { %v11164_v41 = vpop.f32.mrf.mxu1  ;;  %14140 = vst [vmem:[#allocation62_spill] sm:$0xff] %v11214_v15  ;;  %v11225_v29 = vadd.f32 %v11029_v3, %v10989_v49  ;;  %v11229_v43 = vadd.f32 %v11043_v50, %v10991_v34  ;;  %v11235_v40 = vsub.f32 %v10903_v47, %v11051_v54  ;;  %v5223_v52 = vmul.f32 %v11192_v23, %v11192_v23 }
 0x592   : > { %v11172_v9 = vpop.f32.mrf.mxu0  ;;  %v5318_v17 = vadd.f32 %v5317_v30, %v5254_v56  ;;  %v5334_v14 = vadd.f32 %v5333_v5, %v5215_v31  ;;  %v4943_v10 = vadd.f32 %v4942_v22, %v11198_v4  ;;  %v11242_v3 = vsub.f32 %v10911_v13, %v11051_v54 }
 0x593   : > { %v4389_v7 = vpop.f32.mrf.mxu1  ;;  %14141 = vst [vmem:[#allocation70_spill] sm:$0xff] %v11235_v40  ;;  %v4923_v49 = vadd.f32 %v4922_v25, %v11208_v20  ;;  %v11247_v34 = vadd.f32 %v11066_v62, %v10993_v58  ;;  %v5231_v50 = vmul.f32 %v11214_v15, %v11214_v15  ;;  %v11260_v5 = vsub.f32 %v10920_v16, %v11051_v54 }
 0x594   : > { %v11188_v35 = vpop.f32.mrf.mxu0  ;;  %v5319_v32 = vadd.f32 %v5318_v17, %v5262_v55  ;;  %14142 = vst [vmem:[#allocation46_spill] sm:$0xff] %v11242_v3  ;;  %v5335_v30 = vadd.f32 %v5334_v14, %v5223_v52  ;;  %v4944_v22 = vadd.f32 %v4943_v10, %v11220_v60  ;;  %v11256_v55 = vadd.f32 %v11088_v53, %v10999_v24  ;;  %v14144_v14 = vld [vmem:[#allocation40_spill] sm:$0xff] }
 0x595   : > { %v4391_v21 = vpop.f32.mrf.mxu1  ;;  %14143 = vst [vmem:[#allocation47_spill] sm:$0xff] %v11260_v5  ;;  %v4924_v58 = vadd.f32 %v4923_v49, %v11225_v29  ;;  %v11265_v62 = vadd.f32 %v11108_v38, %v11011_v48  ;;  %v5239_v25 = vmul.f32 %v11235_v40, %v11235_v40  ;;  %v11274_v53 = vadd.f32 %v11134_v27, %v11015_v63  ;;  %v14146_v38 = vld [vmem:[#allocation20_spill] sm:$0xff] }
 0x596   : > { %v11210_v19 = vpop.f32.mrf.mxu0  ;;  %v5320_v31 = vadd.f32 %v5319_v32, %v5270_v44  ;;  %v5336_v52 = vadd.f32 %v5335_v30, %v5231_v50  ;;  %v4945_v24 = vadd.f32 %v4944_v22, %v11229_v43  ;;  %v11278_v10 = vsub.f32 %v14144_v14, %v11051_v54 }
 0x597   : > { %v4393_v45 = vpop.f32.mrf.mxu1  ;;  %v4925_v48 = vadd.f32 %v4924_v58, %v11247_v34  ;;  %v11283_v32 = vadd.f32 %v11164_v41, %v14146_v38  ;;  %v5247_v50 = vmul.f32 %v11242_v3, %v11242_v3  ;;  %v11291_v27 = vadd.f32 %v4389_v7, %v11035_v57 }
 0x598   : > { %v11231_v36 = vpop.f32.mrf.mxu0  ;;  %v5321_v44 = vadd.f32 %v5320_v31, %v5278_v37  ;;  %14145 = vst [vmem:[#allocation32_spill] sm:$0xff] %v11278_v10  ;;  %v5337_v30 = vadd.f32 %v5336_v52, %v5239_v25  ;;  %v4946_v63 = vadd.f32 %v4945_v24, %v11256_v55  ;;  %v14147_v31 = vld [vmem:[#allocation51_spill] sm:$0xff]  ;;  %v11299_v14 = vadd.f32 %v4391_v21, %v11053_v18 }
 0x599   : > { %v4397_v56 = vpop.f32.mrf.mxu1  ;;  %v11295_v58 = vsub.f32 %v14147_v31, %v11051_v54  ;;  %v4926_v41 = vadd.f32 %v4925_v48, %v11265_v62  ;;  %v5255_v25 = vmul.f32 %v11260_v5, %v11260_v5  ;;  %v11307_v7 = vadd.f32 %v4393_v45, %v11074_v8 }
 0x59a   : > { %v11249_v47 = vpop.f32.mrf.mxu0  ;;  %v5322_v22 = vadd.f32 %v5321_v44, %v5286_v59  ;;  %v5338_v52 = vadd.f32 %v5337_v30, %v5247_v50  ;;  %v4947_v57 = vadd.f32 %v4946_v63, %v11274_v53  ;;  %v14149_v44 = vld [vmem:[#allocation21_spill] sm:$0xff]  ;;  %v11315_v21 = vadd.f32 %v4397_v56, %v11096_v6 }
 0x59b   : > { %v4399_v13 = vpop.f32.mrf.mxu1  ;;  %14148 = vst [vmem:[#allocation34_spill] sm:$0xff] %v11295_v58  ;;  %v11311_v31 = vsub.f32 %v14149_v44, %v11051_v54  ;;  %v4927_v18 = vadd.f32 %v4926_v41, %v11283_v32  ;;  %v5263_v50 = vmul.f32 %v11278_v10, %v11278_v10  ;;  %v14155_v10 = vld [vmem:[#allocation16_spill] sm:$0xff] }
 0x59c   : > { %v11267_v17 = vpop.f32.mrf.mxu0  ;;  %v5323_v24 = vadd.f32 %v5322_v22, %v5294_v26  ;;  %v5339_v30 = vadd.f32 %v5338_v52, %v5255_v25  ;;  %v4948_v8 = vadd.f32 %v4947_v57, %v11291_v27  ;;  %v11323_v45 = vadd.f32 %v4399_v13, %v11120_v39  ;;  %v14151_v22 = vld [vmem:[#allocation23_spill] sm:$0xff] }
 0x59d   : > { %v4401_v16 = vpop.f32.mrf.mxu1  ;;  %14150 = vst [vmem:[#allocation64_spill] sm:$0xff] %v11311_v31  ;;  %v11328_v41 = vsub.f32 %v14151_v22, %v11051_v54  ;;  %v4928_v6 = vadd.f32 %v4927_v18, %v11299_v14  ;;  %v5271_v25 = vmul.f32 %v11295_v58, %v11295_v58  ;;  %v11366_v5 = vsub.f32 %v14155_v10, %v11051_v54 }
 0x59e   : > { %v11285_v49 = vpop.f32.mrf.mxu0  ;;  %v5324_v63 = vadd.f32 %v5323_v24, %v11204_v12  ;;  %v11332_v56 = vadd.f32 %v4401_v16, %v11146_v61  ;;  %v5340_v52 = vadd.f32 %v5339_v30, %v5263_v50  ;;  %v4949_v39 = vadd.f32 %v4948_v8, %v11307_v7  ;;  %v14153_v16 = vld [vmem:[#allocation25_spill] sm:$0xff] }
 0x59f   : > { %v4403_v37 = vpop.f32.mrf.mxu1  ;;  %14152 = vst [vmem:[#allocation65_spill] sm:$0xff] %v11328_v41  ;;  %v4929_v24 = vadd.f32 %v4928_v6, %v11315_v21  ;;  %v11350_v22 = vsub.f32 %v14153_v16, %v11051_v54  ;;  %v5279_v50 = vmul.f32 %v11311_v31, %v11311_v31  ;;  %v8238_v16 = vld [vmem:[#allocation7 + $0xf8] sm:$0xff]   ;;  %14156 = vst [vmem:[#allocation22_spill] sm:$0xff] %v11366_v5 }
 0x5a0   : > { %v11301_v38 = vpop.f32.mrf.mxu0  ;;  %v11340_v13 = vadd.f32 %v4403_v37, %v11172_v9  ;;  %v5325_v57 = vrot.slane %v5324_v63, 4  ;;  %v5341_v30 = vadd.f32 %v5340_v52, %v5271_v25  ;;  %v4950_v9 = vadd.f32 %v4949_v39, %v11323_v45  ;;  %7793 = vmatprep.subr.bf16.mxu1 %v8238_v16  ;;  %v8239_v54 = vld [vmem:[#allocation7 + $0xb8] sm:$0xff]  }
 0x5a1   : > { %v4407_v59 = vpop.f32.mrf.mxu1  ;;  %14154 = vst [vmem:[#allocation18_spill] sm:$0xff] %v11350_v22  ;;  %v4930_v58 = vadd.f32 %v4929_v24, %v11332_v56  ;;  %v5287_v25 = vmul.f32 %v11328_v41, %v11328_v41  ;;  %v5295_v10 = vmul.f32 %v11350_v22, %v11350_v22  ;;  %7794 = vmatpush3.bf16.msra.mxu1 %v8239_v54  ;;  %v8240_v41 = vld [vmem:[#allocation7 + $0xf0] sm:$0xff]  }
 0x5a2   : > { %v11317_v48 = vpop.f32.mrf.mxu0  ;;  %v11344_v18 = vadd.f32 %v4407_v59, %v11188_v35  ;;  %v5326_v8 = vadd.f32 %v5325_v57, %v5324_v63  ;;  %v5342_v52 = vadd.f32 %v5341_v30, %v5279_v50  ;;  %v4951_v63 = vadd.f32 %v4950_v9, %v11340_v13  ;;  %7795 = vmatprep.subr.bf16.mxu1 %v8240_v41 }
 0x5a3   : > { %v4409_v26 = vpop.f32.mrf.mxu1 }
 0x5a4   : > { %v11334_v44 = vpop.f32.mrf.mxu0  ;;  %v11357_v6 = vadd.f32 %v4409_v26, %v11210_v19  ;;  %v5327_v57 = vrot.slane %v5326_v8, 2  ;;  %v4931_v19 = vadd.f32 %v4930_v58, %v11344_v18  ;;  %v5343_v24 = vadd.f32 %v5342_v52, %v5287_v25 }
 0x5a5   : > { %v4411_v12 = vpop.f32.mrf.mxu1 }
 0x5a6   : > { %v11346_v61 = vpop.f32.mrf.mxu0  ;;  %v11360_v35 = vadd.f32 %v4411_v12, %v11231_v36  ;;  %v5328_v30 = vadd.f32 %v5327_v57, %v5326_v8  ;;  %v4952_v9 = vadd.f32 %v4951_v63, %v11357_v6  ;;  %v5344_v16 = vadd.f32 %v5343_v24, %v5295_v10  ;;  %v8241_v57 = vld [vmem:[#allocation7 + $0xb0] sm:$0xff]  }
 0x5a7   : > { %v4413_v37 = vpop.f32.mrf.mxu1  ;;  %7796 = vmatpush3.bf16.msra.mxu1 %v8241_v57 }
 0x5a8   : > { %v11362_v59 = vpop.f32.mrf.mxu0  ;;  %v11373_v36 = vadd.f32 %v4413_v37, %v11249_v47  ;;  %v4932_v58 = vadd.f32 %v4931_v19, %v11360_v35  ;;  %v5329_v31 = vrot.slane %v5328_v30, 1 }
 0x5a9   : > { %v4417_v39 = vpop.f32.mrf.mxu1 }
 0x5aa   : > { %v11376_v26 = vadd.f32 %v4417_v39, %v11267_v17  ;;  %v11378_v12 = vpop.f32.mrf.mxu0  ;;  %v5303_v17 = vmul.f32 %v11366_v5, %v11366_v5  ;;  %v4953_v25 = vadd.f32 %v4952_v9, %v11373_v36  ;;  %v5330_v54 = vadd.f32 %v5329_v31, %v5328_v30 }
 0x5ab   : > { %v4419_v50 = vpop.f32.mrf.mxu1 }
 0x5ac   : > { %v11385_v47 = vadd.f32 %v4419_v50, %v11285_v49  ;;  %v4470_v37 = vpop.f32.mrf.mxu0  ;;  %v4933_v8 = vadd.f32 %v4932_v58, %v11376_v26  ;;  %v5345_v49 = vadd.f32 %v5344_v16, %v5303_v17 }
 0x5ad   : > { %v4421_v39 = vpop.f32.mrf.mxu1 }
 0x5ae   : > { %v11392_v52 = vadd.f32 %v4421_v39, %v11301_v38  ;;  %v4472_v63 = vpop.f32.mrf.mxu0  ;;  %v4954_v50 = vadd.f32 %v4953_v25, %v11385_v47  ;;  %v5346_v9 = vrot.slane %v5345_v49, 4  ;;  %v5478_v38 = vmul.f32 0.0078125, %v5330_v54 }
 0x5af   : > { %v4423_v19 = vpop.f32.mrf.mxu1 }
 0x5b0   : > { %v4934_v10 = vadd.f32 %v4933_v8, %v11392_v52  ;;  %v11397_v24 = vadd.f32 %v4423_v19, %v11317_v48  ;;  %v11399_v22 = vpop.f32.mrf.mxu0  ;;  %v5347_v41 = vadd.f32 %v5346_v9, %v5345_v49  ;;  %v5486_v30 = vadd.f32 1e-05, %v5478_v38 }
 0x5b1   : > { %v4573_v58 = vpop.f32.mrf.mxu1 }
 0x5b2   : > { %14157 = vst [vmem:[#allocation68_spill] sm:$0xff] %v11397_v24  ;;  %v4935_v39 = vrot.slane %v4934_v10, 4  ;;  %v4955_v5 = vadd.f32 %v4954_v50, %v11397_v24  ;;  %v11402_v17 = vpop.f32.mrf.mxu0  ;;  %v5348_v48 = vrot.slane %v5347_v41, 2  ;;  %8300 = vrsqrt.f32 %v5486_v30 }
 0x5b3   : > { %v4575_v31 = vpop.f32.mrf.mxu1 }
 0x5b4   : > { %v4936_v16 = vadd.f32 %v4935_v39, %v4934_v10  ;;  %v4956_v25 = vrot.slane %v4955_v5, 4  ;;  %v11404_v8 = vpop.f32.mrf.mxu0  ;;  %v5349_v54 = vadd.f32 %v5348_v48, %v5347_v41 }
 0x5b5   : > { %v4577_v19 = vpop.f32.mrf.mxu1 }
 0x5b6   : > { %v4937_v3 = vrot.slane %v4936_v16, 2  ;;  %v4957_v57 = vadd.f32 %v4956_v25, %v4955_v5  ;;  %v11406_v40 = vpop.f32.mrf.mxu0  ;;  %v5350_v49 = vrot.slane %v5349_v54, 1  ;;  %v11413_v24 = vadd.f32 %v4577_v19, %v11362_v59  ;;  %v11418_v5 = vld [vmem:[%s13556_s6 + $0xe] sm:$0xff]  ;;  %v11428_v25 = vld [vmem:[%s13556_s6 + $0x16] sm:$0xff] }
 0x5b7   : > { %v4579_v15 = vpop.f32.mrf.mxu1  ;;  %14159 = vst [vmem:[#allocation76_spill] sm:$0xff] %v11418_v5  ;;  %14161 = vst [vmem:[#allocation31_spill] sm:$0xff] %v11428_v25  ;;  %v11431_v19 = vadd.f32 %v4573_v58, %v11334_v44 }
 0x5b8   : > { %v4938_v23 = vadd.f32 %v4937_v3, %v4936_v16  ;;  %v4958_v50 = vrot.slane %v4957_v57, 2  ;;  %v11408_v0 = vpop.f32.mrf.mxu0  ;;  %v5351_v33 = vadd.f32 %v5350_v49, %v5349_v54  ;;  %14158 = vst [vmem:[#allocation69_spill] sm:$0xff] %v11413_v24  ;;  %v11421_v41 = vadd.f32 %v4579_v15, %v11378_v12  ;;  %v14166_v49 = vld [vmem:[#allocation13_spill] sm:$0xff] }
 0x5b9   : > { %v4583_v9 = vpop.f32.mrf.mxu1  ;;  %14162 = vst [vmem:[#allocation33_spill] sm:$0xff] %v11431_v19  ;;  %v4962_v44 = vadd.f32 %v11413_v24, %v11431_v19 }
 0x5ba   : > { %v4939_v38 = vrot.slane %v4938_v23, 1  ;;  %v4959_v10 = vadd.f32 %v4958_v50, %v4957_v57  ;;  %v11410_v39 = vpop.f32.mrf.mxu0  ;;  %14160 = vst [vmem:[#allocation48_spill] sm:$0xff] %v11421_v41  ;;  %v5479_v48 = vmul.f32 0.0078125, %v5351_v33  ;;  %v11433_v57 = vadd.f32 %v4583_v9, %v4470_v37  ;;  %v14167_v9 = vld [vmem:[#allocation14_spill] sm:$0xff] }
 0x5bb   : > { %v4585_v30 = vpop.f32.mrf.mxu1  ;;  %v11450_v37 = vrot.slane %v11428_v25, %v14166_v49 }
 0x5bc   : > { %v4940_v3 = vadd.f32 %v4939_v38, %v4938_v23  ;;  %v11423_v16 = vpop.f32.mrf.mxu0  ;;  %v4960_v59 = vrot.slane %v4959_v10, 1  ;;  %14163 = vst [vmem:[#allocation49_spill] sm:$0xff] %v11433_v57  ;;  %v11436_v23 = vadd.f32 %v4575_v31, %v11346_v61  ;;  %v11438_v15 = vadd.f32 %v4585_v30, %v4472_v63 }
 0x5bd   : > { %v4587_v54 = vpop.f32.mrf.mxu1  ;;  %v11444_v38 = vrot.slane %v11418_v5, %v14166_v49  ;;  %v5487_v33 = vadd.f32 1e-05, %v5479_v48  ;;  %v11454_v61 = vrot.slane %v11418_v5, %v14167_v9  ;;  %v11460_v31 = vrot.slane %v11428_v25, %v14167_v9 }
 0x5be   : > { %v5048_v50 = vmul.f32 0.0078125, %v4940_v3  ;;  %14164 = vst [vmem:[#allocation79_spill] sm:$0xff] %v11436_v23  ;;  %14165 = vst [vmem:[#allocation72_spill] sm:$0xff] %v11438_v15  ;;  %v11440_v12 = vpop.f32.mrf.mxu0  ;;  %v4983_v63 = vadd.f32 %v11421_v41, %v11436_v23  ;;  %v4961_v49 = vadd.f32 %v4960_v59, %v4959_v10  ;;  %v4963_v24 = vadd.f32 %v4962_v44, %v11433_v57  ;;  %v8242_v44 = vld [vmem:[#allocation7 + $0xe8] sm:$0xff]  }
 0x5bf   : > { %v4589_v58 = vpop.f32.mrf.mxu1  ;;  %v11481_v23 = vadd.f32 %v4587_v54, %v11399_v22  ;;  %8302 = vrsqrt.f32 %v5487_v33  ;;  %7797 = vmatprep.subr.bf16.mxu1 %v8242_v44 }
 0x5c0   : > { %v11462_v30 = vpop.f32.mrf.mxu0  ;;  %v11465_v3 = vsub.f32 %v11056_v42, %v5048_v50  ;;  %v11468_v48 = vsub.f32 %v11038_v46, %v5048_v50  ;;  %v11472_v5 = vsub.f32 %v11062_v51, %v5048_v50  ;;  %v11475_v41 = vsub.f32 %v11162_v2, %v5048_v50  ;;  %v11485_v46 = vpop.eup %8300 }
 0x5c1   : > { %v4593_v19 = vpop.f32.mrf.mxu1  ;;  %v11478_v9 = vadd.f32 %v4983_v63, %v11438_v15  ;;  %14172 = vst [vmem:[#allocation74_spill] sm:$0xff] %v11481_v23  ;;  %v11488_v10 = vsub.f32 %v11208_v20, %v5048_v50  ;;  %v11491_v51 = vsub.f32 %v11225_v29, %v5048_v50  ;;  %v11494_v2 = vsub.f32 %v11247_v34, %v5048_v50 }
 0x5c2   : > { %14168 = vst [vmem:[#allocation73_spill] sm:$0xff] %v11465_v3  ;;  %14169 = vst [vmem:[#allocation36_spill] sm:$0xff] %v11468_v48  ;;  %v11483_v42 = vpop.f32.mrf.mxu0  ;;  %v5622_v22 = vmul.f32 %v11485_v46, %v11154_v1  ;;  %v11499_v54 = vsub.f32 %v11265_v62, %v5048_v50  ;;  %v11502_v63 = vsub.f32 %v11283_v32, %v5048_v50 }
 0x5c3   : > { %14170 = vst [vmem:[#allocation37_spill] sm:$0xff] %v11472_v5  ;;  %14171 = vst [vmem:[#allocation26_spill] sm:$0xff] %v11475_v41  ;;  %v4595_v59 = vpop.f32.mrf.mxu1  ;;  %v11505_v20 = vsub.f32 %v11299_v14, %v5048_v50  ;;  %v11510_v29 = vsub.f32 %v11315_v21, %v5048_v50  ;;  %v11513_v34 = vsub.f32 %v11332_v56, %v5048_v50 }
 0x5c4   : > { %14173 = vst [vmem:[#allocation75_spill] sm:$0xff] %v11488_v10  ;;  %14174 = vst [vmem:[#allocation83_spill] sm:$0xff] %v11491_v51  ;;  %v11507_v33 = vpop.f32.mrf.mxu0  ;;  %v5184_v1 = vmul.f32 %v11465_v3, %v11465_v3  ;;  %v5192_v62 = vmul.f32 %v11468_v48, %v11468_v48  ;;  %v11520_v32 = vsub.f32 %v11344_v18, %v5048_v50 }
 0x5c5   : > { %14175 = vst [vmem:[#allocation84_spill] sm:$0xff] %v11494_v2  ;;  %14176 = vst [vmem:[#allocation71_spill] sm:$0xff] %v11499_v54  ;;  %v4597_v15 = vpop.f32.mrf.mxu1  ;;  %v11523_v14 = vsub.f32 %v11360_v35, %v5048_v50  ;;  %v11526_v21 = vsub.f32 %v11376_v26, %v5048_v50  ;;  %v11529_v56 = vsub.f32 %v11392_v52, %v5048_v50 }
 0x5c6   : > { %14177 = vst [vmem:[#allocation82_spill] sm:$0xff] %v11502_v63  ;;  %14178 = vst [vmem:[#allocation77_spill] sm:$0xff] %v11505_v20  ;;  %v11531_v57 = vpop.f32.mrf.mxu0  ;;  %v5200_v3 = vmul.f32 %v11472_v5, %v11472_v5  ;;  %v5208_v44 = vmul.f32 %v11475_v41, %v11475_v41  ;;  %v5216_v18 = vmul.f32 %v11488_v10, %v11488_v10 }
 0x5c7   : > { %14179 = vst [vmem:[#allocation78_spill] sm:$0xff] %v11510_v29  ;;  %14180 = vst [vmem:[#allocation19_spill] sm:$0xff] %v11513_v34  ;;  %v5224_v35 = vmul.f32 %v11491_v51, %v11491_v51  ;;  %v11541_v48 = vpop.f32.mrf.mxu1  ;;  %v11544_v26 = vmul.f32 %v11444_v38, %v5622_v22  ;;  %v5232_v52 = vmul.f32 %v11494_v2, %v11494_v2  ;;  %v5049_v2 = vmul.f32 0.0078125, %v4961_v49 }
 0x5c8   : > { %14181 = vst [vmem:[#allocation35_spill] sm:$0xff] %v11520_v32  ;;  %14182 = vst [vmem:[#allocation60_spill] sm:$0xff] %v11523_v14  ;;  %v11550_v50 = vmul.f32 %v11499_v54, %v11499_v54  ;;  %v11554_v41 = vmul.f32 %v11502_v63, %v11502_v63  ;;  %v11556_v10 = vpop.f32.mrf.mxu0  ;;  %v11560_v51 = vmul.f32 %v11505_v20, %v11505_v20 }
 0x5c9   : > { %14183 = vst [vmem:[#allocation86_spill] sm:$0xff] %v11526_v21  ;;  %14184 = vst [vmem:[#allocation85_spill] sm:$0xff] %v11529_v56  ;;  %v11564_v22 = vmul.f32 %v11510_v29, %v11510_v29  ;;  %v5352_v5 = vadd.f32 %v5192_v62, %v5184_v1  ;;  %v11566_v25 = vpop.f32.mrf.mxu1  ;;  %v11570_v54 = vmul.f32 %v11513_v34, %v11513_v34 }
 0x5ca   : > { %14185 = vst [vmem:[#allocation80_spill] sm:$0xff] %v11544_v26  ;;  %v11574_v63 = vmul.f32 %v11520_v32, %v11520_v32  ;;  %v11578_v20 = vmul.f32 %v11523_v14, %v11523_v14  ;;  %v11582_v29 = vmul.f32 %v11526_v21, %v11526_v21  ;;  %v11584_v1 = vpop.f32.mrf.mxu0  ;;  %v11588_v49 = vmul.f32 %v11529_v56, %v11529_v56 }
 0x5cb   : > { %14186 = vst [vmem:[#allocation81_spill] sm:$0xff] %v11584_v1  ;;  %v5353_v62 = vadd.f32 %v5352_v5, %v5200_v3  ;;  %v4964_v34 = vadd.f32 %v4963_v24, %v11481_v23  ;;  %v11592_v32 = vadd.f32 %v4589_v58, %v11402_v17  ;;  %v11594_v26 = vpop.f32.mrf.mxu1  ;;  %v11597_v14 = vsub.f32 %v11059_v11, %v5049_v2  ;;  %v8243_v24 = vld [vmem:[#allocation7 + $0xa8] sm:$0xff]  }
 0x5cc   : > { %v11600_v21 = vsub.f32 %v11041_v28, %v5049_v2  ;;  %v11603_v1 = vadd.f32 %v4593_v19, %v11404_v8  ;;  %v11606_v56 = vadd.f32 %v4595_v59, %v11406_v40  ;;  %v11608_v5 = vpop.f32.mrf.mxu0  ;;  %v14193_v17 = vld [vmem:[#allocation41_spill] sm:$0xff]  ;;  %v11614_v23 = vsub.f32 %v11198_v4, %v5049_v2  ;;  %7798 = vmatpush3.bf16.msra.mxu1 %v8243_v24 }
 0x5cd   : > { %14187 = vst [vmem:[#allocation15_spill] sm:$0xff] %v11592_v32  ;;  %14188 = vst [vmem:[#allocation50_spill] sm:$0xff] %v11597_v14  ;;  %v5354_v3 = vadd.f32 %v5353_v62, %v5208_v44  ;;  %v11611_v58 = vsub.f32 %v14193_v17, %v5049_v2  ;;  %v11617_v11 = vadd.f32 %v4597_v15, %v11408_v0  ;;  %v11619_v28 = vpop.f32.mrf.mxu1  ;;  %v11646_v62 = vpop.eup %8302 }
 0x5ce   : > { %14189 = vst [vmem:[#allocation39_spill] sm:$0xff] %v11600_v21  ;;  %14190 = vst [vmem:[#allocation40_spill] sm:$0xff] %v11603_v1  ;;  %v11622_v8 = vsub.f32 %v11220_v60, %v5049_v2  ;;  %v11625_v40 = vsub.f32 %v11229_v43, %v5049_v2  ;;  %v11628_v19 = vsub.f32 %v11256_v55, %v5049_v2  ;;  %v11633_v44 = vpop.f32.mrf.mxu0  ;;  %v8244_v55 = vld [vmem:[#allocation7 + $0xe0] sm:$0xff]  }
 0x5cf   : > { %14191 = vst [vmem:[#allocation20_spill] sm:$0xff] %v11606_v56  ;;  %14192 = vst [vmem:[#allocation51_spill] sm:$0xff] %v11608_v5  ;;  %v11631_v59 = vsub.f32 %v11274_v53, %v5049_v2  ;;  %v5355_v4 = vadd.f32 %v5354_v3, %v5216_v18  ;;  %v11636_v0 = vsub.f32 %v11291_v27, %v5049_v2  ;;  %v11644_v43 = vpop.f32.mrf.mxu1  ;;  %7799 = vmatprep.subr.bf16.mxu1 %v8244_v55 }
 0x5d0   : > { %14194 = vst [vmem:[#allocation21_spill] sm:$0xff] %v11611_v58  ;;  %14195 = vst [vmem:[#allocation23_spill] sm:$0xff] %v11614_v23  ;;  %v11639_v15 = vsub.f32 %v11307_v7, %v5049_v2  ;;  %v11642_v60 = vsub.f32 %v11323_v45, %v5049_v2  ;;  %v11649_v53 = vsub.f32 %v11340_v13, %v5049_v2  ;;  %v11658_v18 = vpop.f32.mrf.mxu0  ;;  %v8245_v45 = vld [vmem:[#allocation7 + $0xa0] sm:$0xff]  }
 0x5d1   : > { %14196 = vst [vmem:[#allocation25_spill] sm:$0xff] %v11617_v11  ;;  %14197 = vst [vmem:[#allocation16_spill] sm:$0xff] %v11622_v8  ;;  %v11652_v24 = vsub.f32 %v11357_v6, %v5049_v2  ;;  %v5185_v27 = vmul.f32 %v11597_v14, %v11597_v14  ;;  %v5193_v7 = vmul.f32 %v11600_v21, %v11600_v21  ;;  %v14209_v13 = vld [vmem:[#allocation68_spill] sm:$0xff]  ;;  %v11669_v6 = vpop.f32.mrf.mxu1  ;;  %7800 = vmatpush3.bf16.msra.mxu1 %v8245_v45 }
 0x5d2   : > { %14198 = vst [vmem:[#allocation13_spill] sm:$0xff] %v11625_v40  ;;  %14199 = vst [vmem:[#allocation14_spill] sm:$0xff] %v11628_v19  ;;  %v5356_v3 = vadd.f32 %v5355_v4, %v5224_v35  ;;  %v11661_v17 = vsub.f32 %v11373_v36, %v5049_v2  ;;  %v11667_v5 = vsub.f32 %v14209_v13, %v5049_v2 }
 0x5d3   : > { %14200 = vst [vmem:[#allocation41_spill] sm:$0xff] %v11631_v59  ;;  %14201 = vst [vmem:[#allocation87_spill] sm:$0xff] %v11633_v44  ;;  %v11664_v44 = vsub.f32 %v11385_v47, %v5049_v2  ;;  %v5201_v14 = vmul.f32 %v11611_v58, %v11611_v58  ;;  %v5209_v21 = vmul.f32 %v11614_v23, %v11614_v23  ;;  %v11679_v47 = vpop.f32.mrf.mxu0  ;;  %v11691_v23 = vpop.f32.mrf.mxu1 }
 0x5d4   : > { %14202 = vst [vmem:[#allocation88_spill] sm:$0xff] %v11636_v0  ;;  %14203 = vst [vmem:[#allocation89_spill] sm:$0xff] %v11639_v15  ;;  %v5217_v35 = vmul.f32 %v11622_v8, %v11622_v8  ;;  %v5225_v36 = vmul.f32 %v11625_v40, %v11625_v40  ;;  %v5357_v2 = vadd.f32 %v5356_v3, %v5232_v52 }
 0x5d5   : > { %14204 = vst [vmem:[#allocation90_spill] sm:$0xff] %v11642_v60  ;;  %14205 = vst [vmem:[#allocation91_spill] sm:$0xff] %v11649_v53  ;;  %v5233_v4 = vmul.f32 %v11628_v19, %v11628_v19  ;;  %v11685_v55 = vmul.f32 %v11631_v59, %v11631_v59  ;;  %v11689_v13 = vmul.f32 %v11636_v0, %v11636_v0  ;;  %v11705_v59 = vpop.f32.mrf.mxu0  ;;  %v11720_v8 = vpop.f32.mrf.mxu1 }
 0x5d6   : > { %14206 = vst [vmem:[#allocation92_spill] sm:$0xff] %v11652_v24  ;;  %14207 = vst [vmem:[#allocation93_spill] sm:$0xff] %v11661_v17  ;;  %v11695_v40 = vmul.f32 %v11639_v15, %v11639_v15  ;;  %v11699_v52 = vmul.f32 %v11642_v60, %v11642_v60  ;;  %v11703_v45 = vmul.f32 %v11649_v53, %v11649_v53 }
 0x5d7   : > { %14208 = vst [vmem:[#allocation94_spill] sm:$0xff] %v11664_v44  ;;  %14210 = vst [vmem:[#allocation68_spill] sm:$0xff] %v11667_v5  ;;  %v5373_v3 = vadd.f32 %v5193_v7, %v5185_v27  ;;  %v5358_v0 = vadd.f32 %v5357_v2, %v11550_v50  ;;  %v11710_v19 = vmul.f32 %v11652_v24, %v11652_v24  ;;  %v14211_v7 = vld [vmem:[#allocation45_spill] sm:$0xff]  ;;  %v11727_v24 = vpop.f32.mrf.mxu0 }
 0x5d8   : > { %v11714_v15 = vmul.f32 %v11661_v17, %v11661_v17  ;;  %v11718_v60 = vmul.f32 %v11664_v44, %v11664_v44  ;;  %v4985_v27 = vadd.f32 %v11478_v9, %v11592_v32  ;;  %v4965_v50 = vadd.f32 %v4964_v34, %v11603_v1 }
 0x5d9   : > { %v5374_v53 = vadd.f32 %v5373_v3, %v5201_v14  ;;  %v5503_v2 = vmul.f32 %v11646_v62, %v14211_v7  ;;  %v5359_v17 = vadd.f32 %v5358_v0, %v11554_v41  ;;  %v11732_v58 = vadd.f32 %v11541_v48, %v11410_v39  ;;  %v14213_v14 = vld [vmem:[#allocation54_spill] sm:$0xff]  ;;  %v11740_v3 = vpop.f32.mrf.mxu1  ;;  %v14214_v0 = vld [vmem:[#allocation56_spill] sm:$0xff]  ;;  %v11749_v48 = vpop.f32.mrf.mxu0 }
 0x5da   : > { %v11736_v44 = vadd.f32 %v11566_v25, %v11423_v16  ;;  %v5511_v9 = vmul.f32 %v11646_v62, %v14213_v14  ;;  %v11744_v7 = vadd.f32 %v11594_v26, %v11440_v12  ;;  %v5502_v39 = vmul.f32 %v11485_v46, %v14214_v0  ;;  %v14215_v26 = vld [vmem:[#allocation57_spill] sm:$0xff] }
 0x5db   : > { %14212 = vst [vmem:[#allocation45_spill] sm:$0xff] %v11732_v58  ;;  %v5375_v34 = vadd.f32 %v5374_v53, %v5209_v21  ;;  %v5672_v41 = vmul.f32 %v11454_v61, %v5503_v2  ;;  %v5360_v16 = vadd.f32 %v5359_v17, %v11560_v51  ;;  %v4986_v25 = vadd.f32 %v4985_v27, %v11606_v56  ;;  %v11755_v21 = vpop.f32.mrf.mxu1  ;;  %v11761_v1 = vpop.f32.mrf.mxu0 }
 0x5dc   : > { %v4966_v14 = vadd.f32 %v4965_v50, %v11617_v11  ;;  %v5680_v32 = vmul.f32 %v11454_v61, %v5511_v9  ;;  %v5510_v2 = vmul.f32 %v11485_v46, %v14215_v26  ;;  %v5671_v0 = vmul.f32 %v11444_v38, %v5502_v39  ;;  %v8248_v11 = vld [vmem:[#allocation7 + $0xd0] sm:$0xff]  }
 0x5dd   : > { %v5376_v53 = vadd.f32 %v5375_v34, %v5217_v35  ;;  %v5841_v12 = vadd.f32 %v11460_v31, %v5672_v41  ;;  %v5361_v51 = vadd.f32 %v5360_v16, %v11564_v22  ;;  %v4987_v17 = vadd.f32 %v4986_v25, %v11732_v58  ;;  %v11770_v35 = vpop.f32.mrf.mxu1  ;;  %v11774_v26 = vpop.f32.mrf.mxu0  ;;  %v14216_v25 = vld [vmem:[#allocation63_spill] sm:$0xff]  ;;  %v14217_v58 = vld [vmem:[#allocation52_spill] sm:$0xff] }
 0x5de   : > { %v5849_v27 = vadd.f32 %v11460_v31, %v5680_v32  ;;  %v11768_v50 = vadd.f32 %v11619_v28, %v11462_v30  ;;  %v5679_v41 = vmul.f32 %v11444_v38, %v5510_v2  ;;  %v5840_v39 = vadd.f32 %v11450_v37, %v5671_v0 }
 0x5df   : > { %v5377_v9 = vadd.f32 %v5376_v53, %v5225_v36  ;;  %v5969_v34 = vmax.f32 %v5841_v12, 0.0  ;;  %v5362_v22 = vadd.f32 %v5361_v51, %v11570_v54  ;;  %v5519_v32 = vmul.f32 %v11646_v62, %v14216_v25  ;;  %v11781_v28 = vpop.f32.mrf.mxu1  ;;  %v11788_v2 = vpop.f32.mrf.mxu0  ;;  %v8246_v54 = vld [vmem:[#allocation7 + $0xd8] sm:$0xff]  }
 0x5e0   : > { %v5977_v16 = vmax.f32 %v5849_v27, 0.0  ;;  %v5527_v30 = vmul.f32 %v11646_v62, %v14217_v58  ;;  %v5848_v36 = vadd.f32 %v11450_v37, %v5679_v41  ;;  %v5968_v53 = vmax.f32 %v5840_v39, 0.0  ;;  %7801 = vmatprep.subr.bf16.mxu1 %v8246_v54 }
 0x5e1   : > { %v5378_v56 = vadd.f32 %v5377_v9, %v5233_v4  ;;  %v11786_v12 = vadd.f32 %v11644_v43, %v11483_v42  ;;  %v5363_v0 = vadd.f32 %v5362_v22, %v11574_v63  ;;  %v5688_v27 = vmul.f32 %v11454_v61, %v5519_v32  ;;  %v11793_v25 = vpop.f32.mrf.mxu1  ;;  %v8247_v4 = vld [vmem:[#allocation7 + $0x98] sm:$0xff]   ;;  %v11798_v39 = vpop.f32.mrf.mxu0 }
 0x5e2   : > { %v6097_v51 = vpack.c.bf16 %v5977_v16, %v5969_v34  ;;  %v5696_v58 = vmul.f32 %v11454_v61, %v5527_v30  ;;  %v4967_v41 = vadd.f32 %v4966_v14, %v11736_v44  ;;  %v4988_v42 = vadd.f32 %v4987_v17, %v11744_v7  ;;  %7802 = vmatpush3.bf16.msra.mxu1 %v8247_v4  ;;  %v14218_v4 = vld [vmem:[#allocation27_spill] sm:$0xff] }
 0x5e3   : > { %v5379_v9 = vadd.f32 %v5378_v56, %v11685_v55  ;;  %v5976_v43 = vmax.f32 %v5848_v36, 0.0  ;;  %v5364_v63 = vadd.f32 %v5363_v0, %v11578_v20  ;;  %v11803_v34 = vmul.f32 %v11667_v5, %v11667_v5  ;;  %v11807_v55 = vpop.f32.mrf.mxu1  ;;  %v11812_v30 = vpop.f32.mrf.mxu0  ;;  %v8249_v20 = vld [vmem:[#allocation7 + $0x90] sm:$0xff]   ;;  %7803 = vmatprep.subr.bf16.mxu1 %v8248_v11  ;;  %v14220_v11 = vld [vmem:[#allocation53_spill] sm:$0xff] }
 0x5e4   : > { %6711 = vmatprep.mubr.bf16.mxu0 %v6097_v51  ;;  %v5857_v22 = vadd.f32 %v11460_v31, %v5688_v27  ;;  %v5865_v56 = vadd.f32 %v11460_v31, %v5696_v58  ;;  %v4968_v17 = vadd.f32 %v4967_v41, %v11768_v50  ;;  %v4989_v32 = vadd.f32 %v4988_v42, %v11786_v12 }
 0x5e5   : > { %v5380_v14 = vadd.f32 %v5379_v9, %v11689_v13  ;;  %v6096_v16 = vpack.c.bf16 %v5976_v43, %v5968_v53  ;;  %v5365_v36 = vadd.f32 %v5364_v63, %v11582_v29  ;;  %v11817_v51 = vadd.f32 %v11669_v6, %v11507_v33  ;;  %v11819_v27 = vpop.f32.mrf.mxu1  ;;  %v8250_v13 = vld [vmem:[#allocation7 + $0xc8] sm:$0xff]   ;;  %v14219_v9 = vld [vmem:[#allocation24_spill] sm:$0xff]  ;;  %v11830_v42 = vpop.f32.mrf.mxu0 }
 0x5e6   : > { %v5985_v54 = vmax.f32 %v5857_v22, 0.0  ;;  %v5993_v0 = vmax.f32 %v5865_v56, 0.0  ;;  %v11824_v58 = vadd.f32 %v11691_v23, %v11531_v57  ;;  %v5518_v29 = vmul.f32 %v11485_v46, %v14218_v4  ;;  %7804 = vmatpush3.bf16.msra.mxu1 %v8249_v20  ;;  %v14222_v20 = vld [vmem:[#allocation81_spill] sm:$0xff] }
 0x5e7   : > { %v5381_v53 = vadd.f32 %v5380_v14, %v11695_v40  ;;  %6712 = vmatmul.mubr.bf16.vlgmr.msra.gmra.mxu0 %v6096_v16  ;;  %v5526_v41 = vmul.f32 %v11485_v46, %v14219_v9  ;;  %v5366_v33 = vadd.f32 %v5365_v36, %v11588_v49  ;;  %v5535_v43 = vmul.f32 %v11646_v62, %v14220_v11  ;;  %v14221_v40 = vld [vmem:[#allocation61_spill] sm:$0xff]  ;;  %v11837_v22 = vpop.f32.mrf.mxu1  ;;  %v11846_v49 = vpop.f32.mrf.mxu0 }
 0x5e8   : > { %v6105_v6 = vpack.c.bf16 %v5993_v0, %v5985_v54  ;;  %v5543_v63 = vmul.f32 %v11646_v62, %v14221_v40  ;;  %v11842_v23 = vadd.f32 %v11720_v8, %v11556_v10  ;;  %v5687_v56 = vmul.f32 %v11444_v38, %v5518_v29  ;;  %v8251_v16 = vld [vmem:[#allocation7 + $0x88] sm:$0xff]   ;;  %7805 = vmatprep.subr.bf16.mxu1 %v8250_v13  ;;  %v8252_v10 = vld [vmem:[#allocation7 + $0xc0] sm:$0xff]  }
 0x5e9   : > { %v5382_v57 = vadd.f32 %v5381_v53, %v11699_v52  ;;  %v5695_v14 = vmul.f32 %v11444_v38, %v5526_v41  ;;  %v5367_v36 = vrot.slane %v5366_v33, 4  ;;  %v4969_v54 = vadd.f32 %v4968_v17, %v11817_v51  ;;  %v11851_v53 = vpop.f32.mrf.mxu1  ;;  %v11860_v41 = vpop.f32.mrf.mxu0 }
 0x5ea   : > { %6719 = vmatprep.mubr.bf16.mxu0 %v6105_v6  ;;  %v5704_v0 = vmul.f32 %v11454_v61, %v5535_v43  ;;  %v5712_v52 = vmul.f32 %v11454_v61, %v5543_v63  ;;  %v5856_v4 = vadd.f32 %v11450_v37, %v5687_v56  ;;  %v11858_v9 = vadd.f32 %v11740_v3, %v14222_v20 }
 0x5eb   : > { %v5383_v8 = vadd.f32 %v5382_v57, %v11703_v45  ;;  %v5864_v29 = vadd.f32 %v11450_v37, %v5695_v14  ;;  %v5368_v17 = vadd.f32 %v5367_v36, %v5366_v33  ;;  %v4990_v6 = vadd.f32 %v4989_v32, %v11824_v58  ;;  %v11865_v43 = vpop.f32.mrf.mxu1  ;;  %v11869_v56 = vpop.f32.mrf.mxu0  ;;  %7806 = vmatpush3.bf16.msra.mxu1 %v8251_v16  ;;  %v14223_v36 = vld [vmem:[#allocation51_spill] sm:$0xff] }
 0x5ec   : > { %v5873_v11 = vadd.f32 %v11460_v31, %v5704_v0  ;;  %v5881_v13 = vadd.f32 %v11460_v31, %v5712_v52  ;;  %v4970_v40 = vadd.f32 %v4969_v54, %v11842_v23  ;;  %v5984_v63 = vmax.f32 %v5856_v4, 0.0  ;;  %7807 = vmatprep.subr.bf16.mxu1 %v8252_v10  ;;  %v8253_v52 = vld [vmem:[#allocation7 + $0x80] sm:$0xff]   ;;  %v14224_v4 = vld [vmem:[#allocation43_spill] sm:$0xff] }
 0x5ed   : > { %v5384_v45 = vadd.f32 %v5383_v8, %v11710_v19  ;;  %v5992_v57 = vmax.f32 %v5864_v29, 0.0  ;;  %v5369_v3 = vrot.slane %v5368_v17, 2  ;;  %v11873_v32 = vadd.f32 %v11755_v21, %v14223_v36  ;;  %v11875_v0 = vpop.f32.mrf.mxu1  ;;  %v11881_v16 = vpop.f32.mrf.mxu0  ;;  %v14226_v36 = vld [vmem:[#allocation42_spill] sm:$0xff] }
 0x5ee   : > { %v6001_v14 = vmax.f32 %v5873_v11, 0.0  ;;  %v6009_v33 = vmax.f32 %v5881_v13, 0.0  ;;  %v4991_v54 = vadd.f32 %v4990_v6, %v11858_v9  ;;  %v5534_v29 = vmul.f32 %v11485_v46, %v14224_v4  ;;  %v14225_v13 = vld [vmem:[#allocation87_spill] sm:$0xff] }
 0x5ef   : > { %v5385_v19 = vadd.f32 %v5384_v45, %v11714_v15  ;;  %v6104_v8 = vpack.c.bf16 %v5992_v57, %v5984_v63  ;;  %v5370_v20 = vadd.f32 %v5369_v3, %v5368_v17  ;;  %v11885_v21 = vadd.f32 %v11770_v35, %v14225_v13  ;;  %v11889_v5 = vpop.f32.mrf.mxu1  ;;  %v14227_v45 = vld [vmem:[#allocation62_spill] sm:$0xff]  ;;  %v11897_v3 = vpop.f32.mrf.mxu0  ;;  %7808 = vmatpush3.bf16.msra.mxu1 %v8253_v52 }
 0x5f0   : > { %v6113_v11 = vpack.c.bf16 %v6009_v33, %v6001_v14  ;;  %v5542_v10 = vmul.f32 %v11485_v46, %v14226_v36  ;;  %v5703_v6 = vmul.f32 %v11444_v38, %v5534_v29  ;;  %v5551_v63 = vmul.f32 %v11646_v62, %v14227_v45  ;;  %v14228_v57 = vld [vmem:[#allocation70_spill] sm:$0xff] }
 0x5f1   : > { %v5386_v15 = vadd.f32 %v5385_v19, %v11718_v60  ;;  %6720 = vmatmul.mubr.bf16.gmra.mxu0 %v6104_v8  ;;  %v5559_v17 = vmul.f32 %v11646_v62, %v14228_v57  ;;  %v5371_v35 = vrot.slane %v5370_v20, 1  ;;  %v4971_v14 = vadd.f32 %v4970_v40, %v11873_v32  ;;  %v11905_v19 = vpop.f32.mrf.mxu1 }
 0x5f2   : > { %6727 = vmatprep.mubr.bf16.mxu0 %v6113_v11  ;;  %v11902_v33 = vadd.f32 %v11781_v28, %v11658_v18  ;;  %v5711_v60 = vmul.f32 %v11444_v38, %v5542_v10  ;;  %v5872_v4 = vadd.f32 %v11450_v37, %v5703_v6  ;;  %v5720_v29 = vmul.f32 %v11454_v61, %v5551_v63  ;;  %v11911_v11 = vpop.f32.mrf.mxu0 }
 0x5f3   : > { %v5387_v8 = vadd.f32 %v5386_v15, %v11803_v34  ;;  %v5728_v13 = vmul.f32 %v11454_v61, %v5559_v17  ;;  %v5372_v40 = vadd.f32 %v5371_v35, %v5370_v20  ;;  %v4992_v36 = vadd.f32 %v4991_v54, %v11885_v21  ;;  %v11919_v52 = vpop.f32.mrf.mxu1 }
 0x5f4   : > { %v5880_v18 = vadd.f32 %v11450_v37, %v5711_v60  ;;  %v11917_v28 = vadd.f32 %v11793_v25, %v11679_v47  ;;  %v6000_v10 = vmax.f32 %v5872_v4, 0.0  ;;  %v5889_v15 = vadd.f32 %v11460_v31, %v5720_v29  ;;  %v11923_v45 = vpop.f32.mrf.mxu0  ;;  %v14230_v60 = vld [vmem:[#allocation55_spill] sm:$0xff] }
 0x5f5   : > { %v5388_v34 = vrot.slane %v5387_v8, 4  ;;  %v5897_v6 = vadd.f32 %v11460_v31, %v5728_v13  ;;  %14229 = vst [vmem:[#allocation54_spill] sm:$0xff] %v11923_v45  ;;  %v5480_v63 = vmul.f32 0.0078125, %v5372_v40  ;;  %v4972_v20 = vadd.f32 %v4971_v14, %v11902_v33  ;;  %v11930_v47 = vpop.f32.mrf.mxu1 }
 0x5f6   : > { %v6008_v54 = vmax.f32 %v5880_v18, 0.0  ;;  %v11928_v57 = vadd.f32 %v11807_v55, %v11705_v59  ;;  %v6017_v17 = vmax.f32 %v5889_v15, 0.0  ;;  %v5550_v4 = vmul.f32 %v11485_v46, %v14230_v60  ;;  %v14231_v18 = vld [vmem:[#allocation38_spill] sm:$0xff] }
 0x5f7   : > { %v5389_v25 = vadd.f32 %v5388_v34, %v5387_v8  ;;  %v6025_v35 = vmax.f32 %v5897_v6, 0.0  ;;  %v4993_v13 = vadd.f32 %v4992_v36, %v11917_v28  ;;  %v11937_v40 = vadd.f32 %v11819_v27, %v11727_v24  ;;  %v11943_v59 = vpop.f32.mrf.mxu1  ;;  %v14233_v27 = vld [vmem:[#allocation46_spill] sm:$0xff] }
 0x5f8   : > { %v6112_v29 = vpack.c.bf16 %v6008_v54, %v6000_v10  ;;  %v11941_v14 = vadd.f32 %v11837_v22, %v11749_v48  ;;  %v5558_v34 = vmul.f32 %v11485_v46, %v14231_v18  ;;  %v5719_v15 = vmul.f32 %v11444_v38, %v5550_v4  ;;  %v11948_v10 = vpop.f32.mrf.mxu0  ;;  %v14234_v48 = vld [vmem:[#allocation47_spill] sm:$0xff] }
 0x5f9   : > { %v5390_v55 = vrot.slane %v5389_v25, 2  ;;  %v6121_v8 = vpack.c.bf16 %v6025_v35, %v6017_v17  ;;  %14232 = vst [vmem:[#allocation56_spill] sm:$0xff] %v11948_v10  ;;  %v5488_v36 = vadd.f32 1e-05, %v5480_v63  ;;  %v4973_v24 = vadd.f32 %v4972_v20, %v11928_v57  ;;  %v11955_v54 = vpop.f32.mrf.mxu1 }
 0x5fa   : > { %6728 = vmatmul.mubr.bf16.gmra.mxu0 %v6112_v29  ;;  %v5567_v6 = vmul.f32 %v11646_v62, %v14233_v27  ;;  %v5575_v22 = vmul.f32 %v11646_v62, %v14234_v48  ;;  %v5727_v35 = vmul.f32 %v11444_v38, %v5558_v34  ;;  %v5888_v60 = vadd.f32 %v11450_v37, %v5719_v15 }
 0x5fb   : > { %v5391_v17 = vadd.f32 %v5390_v55, %v5389_v25  ;;  %6735 = vmatprep.mubr.bf16.mxu0 %v6121_v8  ;;  %v11961_v63 = vadd.f32 %v11865_v43, %v11774_v26  ;;  %v4994_v20 = vadd.f32 %v4993_v13, %v11937_v40  ;;  %v4974_v4 = vadd.f32 %v4973_v24, %v11941_v14  ;;  %v11967_v27 = vpop.f32.mrf.mxu1  ;;  %v11974_v26 = vpop.f32.mrf.mxu0 }
 0x5fc   : > { %v5736_v29 = vmul.f32 %v11454_v61, %v5567_v6  ;;  %v5744_v18 = vmul.f32 %v11454_v61, %v5575_v22  ;;  %v5896_v55 = vadd.f32 %v11450_v37, %v5727_v35  ;;  %v6016_v8 = vmax.f32 %v5888_v60, 0.0  ;;  %14236 = vst [vmem:[#allocation63_spill] sm:$0xff] %v11974_v26 }
 0x5fd   : > { %v5392_v25 = vrot.slane %v5391_v17, 1  ;;  %v11972_v34 = vadd.f32 %v11851_v53, %v11761_v1  ;;  %v4975_v15 = vadd.f32 %v4974_v4, %v11961_v63  ;;  %v11981_v24 = vadd.f32 %v11889_v5, %v11798_v39  ;;  %v11983_v6 = vpop.f32.mrf.mxu1  ;;  %v14238_v53 = vld [vmem:[#allocation28_spill] sm:$0xff]  ;;  %v14239_v4 = vld [vmem:[#allocation66_spill] sm:$0xff] }
 0x5fe   : > { %v5905_v43 = vadd.f32 %v11460_v31, %v5736_v29  ;;  %v5913_v13 = vadd.f32 %v11460_v31, %v5744_v18  ;;  %8304 = vrsqrt.f32 %v5488_v36  ;;  %v6024_v48 = vmax.f32 %v5896_v55, 0.0  ;;  %v11997_v55 = vpop.f32.mrf.mxu0 }
 0x5ff   : > { %14235 = vst [vmem:[#allocation57_spill] sm:$0xff] %v11972_v34  ;;  %v11987_v1 = vadd.f32 %v11875_v0, %v11788_v2  ;;  %v5566_v22 = vmul.f32 %v11485_v46, %v14238_v53  ;;  %v4976_v29 = vadd.f32 %v4975_v15, %v11981_v24  ;;  %v5574_v18 = vmul.f32 %v11485_v46, %v14239_v4  ;;  %v11994_v5 = vpop.f32.mrf.mxu1  ;;  %v14242_v53 = vld [vmem:[#allocation32_spill] sm:$0xff] }
 0x600   : > { %v6033_v35 = vmax.f32 %v5905_v43, 0.0  ;;  %v6041_v60 = vmax.f32 %v5913_v13, 0.0  ;;  %v5393_v39 = vadd.f32 %v5392_v25, %v5391_v17  ;;  %v6120_v26 = vpack.c.bf16 %v6024_v48, %v6016_v8  ;;  %14240 = vst [vmem:[#allocation27_spill] sm:$0xff] %v11997_v55  ;;  %v14243_v17 = vld [vmem:[#allocation34_spill] sm:$0xff]  ;;  %v14245_v8 = vld [vmem:[#allocation80_spill] sm:$0xff] }
 0x601   : > { %14237 = vst [vmem:[#allocation52_spill] sm:$0xff] %v11987_v1  ;;  %v4995_v36 = vadd.f32 %v4994_v20, %v11972_v34  ;;  %v4977_v0 = vrot.slane %v4976_v29, 4  ;;  %v5735_v10 = vmul.f32 %v11444_v38, %v5566_v22  ;;  %v5743_v43 = vmul.f32 %v11444_v38, %v5574_v18  ;;  %v12001_v13 = vpop.f32.mrf.mxu1  ;;  %v14248_v18 = vld [vmem:[#allocation44_spill] sm:$0xff] }
 0x602   : > { %v6129_v2 = vpack.c.bf16 %v6041_v60, %v6033_v35  ;;  %14241 = vst [vmem:[#allocation24_spill] sm:$0xff] %v12001_v13  ;;  %6736 = vmatmul.mubr.bf16.gmra.mxu0 %v6120_v26  ;;  %v5583_v4 = vmul.f32 %v11646_v62, %v14242_v53  ;;  %v5591_v25 = vmul.f32 %v11646_v62, %v14243_v17 }
 0x603   : > { %v4996_v15 = vadd.f32 %v4995_v36, %v11987_v1  ;;  %v12010_v20 = vadd.f32 %v11905_v19, %v11812_v30  ;;  %v12014_v48 = vadd.f32 %v11450_v37, %v14245_v8  ;;  %v4978_v22 = vadd.f32 %v4977_v0, %v4976_v29  ;;  %v12018_v60 = vpop.f32.mrf.mxu1  ;;  %v14249_v36 = vld [vmem:[#allocation76_spill] sm:$0xff]  ;;  %v12027_v8 = vpop.f32.mrf.mxu0  ;;  %v14257_v1 = vld [vmem:[#allocation67_spill] sm:$0xff] }
 0x604   : > { %6743 = vmatprep.mubr.bf16.mxu0 %v6129_v2  ;;  %v5904_v26 = vadd.f32 %v11450_v37, %v5735_v10  ;;  %v5912_v35 = vadd.f32 %v11450_v37, %v5743_v43  ;;  %14247 = vst [vmem:[#allocation81_spill] sm:$0xff] %v12018_v60  ;;  %v12022_v53 = vrot.slane %v14249_v36, %v14248_v18  ;;  %14251 = vst [vmem:[#allocation43_spill] sm:$0xff] %v12027_v8  ;;  %v14253_v43 = vld [vmem:[#allocation31_spill] sm:$0xff] }
 0x605   : > { %14244 = vst [vmem:[#allocation53_spill] sm:$0xff] %v12010_v20  ;;  %14246 = vst [vmem:[#allocation61_spill] sm:$0xff] %v12014_v48  ;;  %v5752_v17 = vmul.f32 %v11454_v61, %v5583_v4  ;;  %v5760_v30 = vmul.f32 %v11454_v61, %v5591_v25  ;;  %v4997_v19 = vadd.f32 %v4996_v15, %v12010_v20  ;;  %v5481_v2 = vmul.f32 0.0078125, %v5393_v39  ;;  %v12029_v55 = vpop.f32.mrf.mxu1  ;;  %v14255_v15 = vld [vmem:[#allocation22_spill] sm:$0xff]  ;;  %v14258_v48 = vld [vmem:[#allocation17_spill] sm:$0xff] }
 0x606   : > { %14250 = vst [vmem:[#allocation51_spill] sm:$0xff] %v12022_v53  ;;  %v4979_v29 = vrot.slane %v4978_v22, 2  ;;  %v6032_v0 = vmax.f32 %v5904_v26, 0.0  ;;  %v6040_v10 = vmax.f32 %v5912_v35, 0.0  ;;  %14252 = vst [vmem:[#allocation87_spill] sm:$0xff] %v12029_v55  ;;  %v12033_v60 = vrot.slane %v14253_v43, %v14248_v18  ;;  %v14256_v39 = vld [vmem:[#allocation30_spill] sm:$0xff] }
 0x607   : > { %v5921_v53 = vadd.f32 %v11460_v31, %v5752_v17  ;;  %v5929_v4 = vadd.f32 %v11460_v31, %v5760_v30  ;;  %v4998_v13 = vrot.slane %v4997_v19, 4  ;;  %v5623_v8 = vmul.f32 %v11646_v62, %v14255_v15  ;;  %v12044_v55 = vpop.f32.mrf.mxu1  ;;  %v12046_v17 = vpop.f32.mrf.mxu0 }
 0x608   : > { %14254 = vst [vmem:[#allocation42_spill] sm:$0xff] %v12033_v60  ;;  %v12042_v26 = vrot.slane %v14249_v36, %v14256_v39  ;;  %v4980_v35 = vadd.f32 %v4979_v29, %v4978_v22  ;;  %v6128_v45 = vpack.c.bf16 %v6040_v10, %v6032_v0  ;;  %v5489_v30 = vadd.f32 1e-05, %v5481_v2 }
 0x609   : > { %v6049_v18 = vmax.f32 %v5921_v53, 0.0  ;;  %v6057_v43 = vmax.f32 %v5929_v4, 0.0  ;;  %v4999_v60 = vadd.f32 %v4998_v13, %v4997_v19  ;;  %v5582_v25 = vmul.f32 %v11485_v46, %v14257_v1  ;;  %v12052_v34 = vpop.f32.mrf.mxu1  ;;  %v14260_v13 = vld [vmem:[#allocation64_spill] sm:$0xff] }
 0x60a   : > { %v4981_v20 = vrot.slane %v4980_v35, 1  ;;  %v5590_v15 = vmul.f32 %v11485_v46, %v14258_v48  ;;  %6744 = vmatmul.mubr.bf16.gmra.mxu0 %v6128_v45  ;;  %v12056_v53 = vadd.f32 %v11943_v59, %v11860_v41  ;;  %v5599_v19 = vmul.f32 %v11646_v62, %v14260_v13  ;;  %v14262_v41 = vld [vmem:[#allocation65_spill] sm:$0xff] }
 0x60b   : > { %v6137_v22 = vpack.c.bf16 %v6057_v43, %v6049_v18  ;;  %v5000_v36 = vrot.slane %v4999_v60, 2  ;;  %v12060_v2 = vpop.eup %8304  ;;  %v12064_v1 = vadd.f32 %v11919_v52, %v11830_v42  ;;  %v5751_v48 = vmul.f32 %v11444_v38, %v5582_v25  ;;  %v12068_v0 = vpop.f32.mrf.mxu1 }
 0x60c   : > { %14259 = vst [vmem:[#allocation62_spill] sm:$0xff] %v12056_v53  ;;  %v4982_v29 = vadd.f32 %v4981_v20, %v4980_v35  ;;  %v5759_v45 = vmul.f32 %v11444_v38, %v5590_v15  ;;  %v5607_v59 = vmul.f32 %v11646_v62, %v14262_v41  ;;  %v5768_v4 = vmul.f32 %v11454_v61, %v5599_v19  ;;  %v12077_v35 = vpop.f32.mrf.mxu0  ;;  %v14272_v41 = vld [vmem:[#allocation49_spill] sm:$0xff] }
 0x60d   : > { %14261 = vst [vmem:[#allocation70_spill] sm:$0xff] %v12064_v1  ;;  %6751 = vmatprep.mubr.bf16.mxu0 %v6137_v22  ;;  %v5001_v10 = vadd.f32 %v5000_v36, %v4999_v60  ;;  %v12075_v20 = vadd.f32 %v11955_v54, %v11869_v56  ;;  %v12080_v42 = vmul.f32 %v11454_v61, %v5623_v8  ;;  %8306 = vrsqrt.f32 %v5489_v30  ;;  %v12083_v43 = vpop.f32.mrf.mxu1  ;;  %v14265_v60 = vld [vmem:[#allocation85_spill] sm:$0xff] }
 0x60e   : > { %v5050_v52 = vmul.f32 0.0078125, %v4982_v29  ;;  %v12087_v15 = vmul.f32 %v12060_v2, %v14265_v60  ;;  %v12091_v22 = vadd.f32 %v11930_v47, %v11846_v49  ;;  %v12095_v56 = vadd.f32 %v12056_v53, %v12064_v1  ;;  %v14268_v8 = vld [vmem:[#allocation33_spill] sm:$0xff] }
 0x60f   : > { %14263 = vst [vmem:[#allocation55_spill] sm:$0xff] %v12075_v20  ;;  %v5920_v54 = vadd.f32 %v11450_v37, %v5751_v48  ;;  %v14270_v36 = vld [vmem:[#allocation69_spill] sm:$0xff]  ;;  %v5002_v19 = vrot.slane %v5001_v10, 1  ;;  %v5928_v29 = vadd.f32 %v11450_v37, %v5759_v45  ;;  %v5776_v49 = vmul.f32 %v11454_v61, %v5607_v59  ;;  %v12118_v18 = vpop.f32.mrf.mxu1  ;;  %v14278_v45 = vld [vmem:[#allocation40_spill] sm:$0xff] }
 0x610   : > { %14266 = vst [vmem:[#allocation38_spill] sm:$0xff] %v12087_v15  ;;  %14267 = vst [vmem:[#allocation46_spill] sm:$0xff] %v12091_v22  ;;  %v12099_v30 = vsub.f32 %v14268_v8, %v5050_v52  ;;  %v12102_v13 = vsub.f32 %v14270_v36, %v5050_v52  ;;  %v12106_v60 = vsub.f32 %v14272_v41, %v5050_v52  ;;  %v12116_v8 = vpop.f32.mrf.mxu0  ;;  %v14276_v36 = vld [vmem:[#allocation74_spill] sm:$0xff]  ;;  %v14280_v41 = vld [vmem:[#allocation25_spill] sm:$0xff] }
 0x611   : > { %v12110_v47 = vadd.f32 %v11460_v31, %v5768_v4  ;;  %v12114_v48 = vadd.f32 %v12075_v20, %v12091_v22  ;;  %14274 = vst [vmem:[#allocation32_spill] sm:$0xff] %v12116_v8  ;;  %14275 = vst [vmem:[#allocation34_spill] sm:$0xff] %v12118_v18  ;;  %v12121_v53 = vsub.f32 %v14276_v36, %v5050_v52  ;;  %v12167_v15 = vpop.f32.mrf.mxu1  ;;  %v6056_v18 = vmax.f32 %v5928_v29, 0.0 }
 0x612   : > { %14269 = vst [vmem:[#allocation47_spill] sm:$0xff] %v12099_v30  ;;  %14271 = vst [vmem:[#allocation28_spill] sm:$0xff] %v12102_v13  ;;  %v12124_v1 = vsub.f32 %v14278_v45, %v5050_v52  ;;  %v12127_v25 = vsub.f32 %v14280_v41, %v5050_v52  ;;  %v12130_v59 = vsub.f32 %v11736_v44, %v5050_v52 }
 0x613   : > { %14273 = vst [vmem:[#allocation66_spill] sm:$0xff] %v12106_v60  ;;  %14277 = vst [vmem:[#allocation80_spill] sm:$0xff] %v12121_v53  ;;  %v12133_v4 = vsub.f32 %v11768_v50, %v5050_v52  ;;  %v12136_v20 = vsub.f32 %v11817_v51, %v5050_v52  ;;  %v12139_v22 = vsub.f32 %v11842_v23, %v5050_v52 }
 0x614   : > { %14279 = vst [vmem:[#allocation44_spill] sm:$0xff] %v12124_v1  ;;  %14281 = vst [vmem:[#allocation76_spill] sm:$0xff] %v12127_v25  ;;  %v12142_v36 = vsub.f32 %v11873_v32, %v5050_v52  ;;  %v12145_v45 = vsub.f32 %v11902_v33, %v5050_v52  ;;  %v12148_v41 = vsub.f32 %v11928_v57, %v5050_v52  ;;  %v12165_v57 = vpop.f32.mrf.mxu0 }
 0x615   : > { %14282 = vst [vmem:[#allocation31_spill] sm:$0xff] %v12130_v59  ;;  %14283 = vst [vmem:[#allocation22_spill] sm:$0xff] %v12133_v4  ;;  %v5186_v44 = vmul.f32 %v12099_v30, %v12099_v30  ;;  %v5194_v50 = vmul.f32 %v12102_v13, %v12102_v13  ;;  %v12155_v51 = vsub.f32 %v11941_v14, %v5050_v52 }
 0x616   : > { %14284 = vst [vmem:[#allocation30_spill] sm:$0xff] %v12136_v20  ;;  %14285 = vst [vmem:[#allocation67_spill] sm:$0xff] %v12139_v22  ;;  %v12158_v23 = vsub.f32 %v11961_v63, %v5050_v52  ;;  %v12161_v32 = vsub.f32 %v11981_v24, %v5050_v52  ;;  %v5202_v33 = vmul.f32 %v12106_v60, %v12106_v60  ;;  %v12210_v8 = vpop.f32.mrf.mxu0 }
 0x617   : > { %14286 = vst [vmem:[#allocation17_spill] sm:$0xff] %v12142_v36  ;;  %14287 = vst [vmem:[#allocation64_spill] sm:$0xff] %v12145_v45  ;;  %v5210_v30 = vmul.f32 %v12121_v53, %v12121_v53  ;;  %v5218_v14 = vmul.f32 %v12124_v1, %v12124_v1  ;;  %v5226_v63 = vmul.f32 %v12127_v25, %v12127_v25  ;;  %v8254_v25 = vld [vmem:[#allocation7 + $0x178] sm:$0xff]  }
 0x618   : > { %14288 = vst [vmem:[#allocation65_spill] sm:$0xff] %v12148_v41  ;;  %14289 = vst [vmem:[#allocation85_spill] sm:$0xff] %v12155_v51  ;;  %v12177_v24 = vmul.f32 %v12130_v59, %v12130_v59  ;;  %v12181_v52 = vmul.f32 %v12133_v4, %v12133_v4  ;;  %v12185_v60 = vmul.f32 %v12136_v20, %v12136_v20  ;;  %7857 = vmatprep.subr.bf16.mxu0 %v8254_v25 }
 0x619   : > { %14290 = vst [vmem:[#allocation33_spill] sm:$0xff] %v12158_v23  ;;  %14291 = vst [vmem:[#allocation69_spill] sm:$0xff] %v12161_v32  ;;  %v12189_v53 = vmul.f32 %v12139_v22, %v12139_v22  ;;  %v12193_v1 = vmul.f32 %v12142_v36, %v12142_v36  ;;  %v12197_v59 = vmul.f32 %v12145_v45, %v12145_v45  ;;  %v12212_v45 = vpop.f32.mrf.mxu1 }
 0x61a   : > { %14292 = vst [vmem:[#allocation49_spill] sm:$0xff] %v12165_v57  ;;  %14293 = vst [vmem:[#allocation74_spill] sm:$0xff] %v12167_v15  ;;  %v12201_v4 = vmul.f32 %v12148_v41, %v12148_v41  ;;  %v5394_v13 = vadd.f32 %v5194_v50, %v5186_v44  ;;  %v5003_v20 = vadd.f32 %v5002_v19, %v5001_v10  ;;  %v8255_v15 = vld [vmem:[#allocation7 + $0x138] sm:$0xff]   ;;  %v6048_v57 = vmax.f32 %v5920_v54, 0.0  ;;  %v12222_v54 = vpop.eup %8306 }
 0x61b   : > { %v12205_v22 = vmul.f32 %v12155_v51, %v12155_v51  ;;  %v12208_v36 = vadd.f32 %v11460_v31, %v5776_v49  ;;  %14294 = vst [vmem:[#allocation40_spill] sm:$0xff] %v12210_v8  ;;  %14295 = vst [vmem:[#allocation25_spill] sm:$0xff] %v12212_v45  ;;  %v12216_v41 = vmul.f32 %v12158_v23, %v12158_v23  ;;  %7858 = vmatpush3.bf16.msra.mxu0 %v8255_v15  ;;  %v8256_v23 = vld [vmem:[#allocation7 + $0x170] sm:$0xff]  }
 0x61c   : > { %v12220_v10 = vmul.f32 %v12161_v32, %v12161_v32  ;;  %v5395_v19 = vadd.f32 %v5394_v13, %v5202_v33  ;;  %v5051_v44 = vmul.f32 0.0078125, %v5003_v20  ;;  %v6136_v29 = vpack.c.bf16 %v6056_v18, %v6048_v57  ;;  %v14297_v15 = vld [vmem:[#allocation58_spill] sm:$0xff]  ;;  %7859 = vmatprep.subr.bf16.mxu0 %v8256_v23 }
 0x61d   : > { %v6065_v49 = vmax.f32 %v12110_v47, 0.0  ;;  %v12227_v50 = vadd.f32 %v11967_v27, %v11881_v16  ;;  %v12231_v25 = vadd.f32 %v11983_v6, %v11897_v3  ;;  %v6073_v32 = vmax.f32 %v12208_v36, 0.0  ;;  %v8257_v13 = vld [vmem:[#allocation7 + $0x130] sm:$0xff]   ;;  %v14298_v47 = vld [vmem:[#allocation79_spill] sm:$0xff]  ;;  %v14300_v16 = vld [vmem:[#allocation48_spill] sm:$0xff]  ;;  %v12252_v36 = vpop.f32.mrf.mxu0 }
 0x61e   : > { %v5396_v51 = vadd.f32 %v5395_v19, %v5210_v30  ;;  %v12236_v20 = vadd.f32 %v11994_v5, %v11911_v11  ;;  %v5598_v18 = vmul.f32 %v11485_v46, %v14297_v15  ;;  %v12241_v33 = vsub.f32 %v14298_v47, %v5051_v44  ;;  %v14302_v3 = vld [vmem:[#allocation72_spill] sm:$0xff]  ;;  %v14304_v30 = vld [vmem:[#allocation15_spill] sm:$0xff]  ;;  %6752 = vmatmul.mubr.bf16.gmra.mxu0 %v6136_v29  ;;  %v12254_v11 = vpop.f32.mrf.mxu1  ;;  %v14310_v47 = vld [vmem:[#allocation45_spill] sm:$0xff] }
 0x61f   : > { %14296 = vst [vmem:[#allocation95_spill] sm:$0xff] %v12231_v25  ;;  %v12244_v27 = vsub.f32 %v14300_v16, %v5051_v44  ;;  %v12247_v6 = vsub.f32 %v14302_v3, %v5051_v44  ;;  %v12250_v57 = vsub.f32 %v14304_v30, %v5051_v44  ;;  %14306 = vst [vmem:[#allocation15_spill] sm:$0xff] %v12252_v36  ;;  %v14308_v19 = vld [vmem:[#allocation20_spill] sm:$0xff]  ;;  %7860 = vmatpush3.bf16.msra.mxu0 %v8257_v13 }
 0x620   : > { %14299 = vst [vmem:[#allocation58_spill] sm:$0xff] %v12241_v33  ;;  %14307 = vst [vmem:[#allocation96_spill] sm:$0xff] %v12254_v11  ;;  %v5397_v5 = vadd.f32 %v5396_v51, %v5218_v14  ;;  %v12257_v15 = vsub.f32 %v14308_v19, %v5051_v44  ;;  %v12260_v45 = vsub.f32 %v14310_v47, %v5051_v44  ;;  %v8258_v14 = vld [vmem:[#allocation7 + $0x168] sm:$0xff]   ;;  %v14321_v11 = vld [vmem:[#allocation52_spill] sm:$0xff] }
 0x621   : > { %14301 = vst [vmem:[#allocation79_spill] sm:$0xff] %v12244_v27  ;;  %14303 = vst [vmem:[#allocation48_spill] sm:$0xff] %v12247_v6  ;;  %v12263_v16 = vsub.f32 %v11744_v7, %v5051_v44  ;;  %v12266_v3 = vsub.f32 %v11786_v12, %v5051_v44  ;;  %v12269_v29 = vsub.f32 %v11824_v58, %v5051_v44  ;;  %v14319_v12 = vld [vmem:[#allocation57_spill] sm:$0xff]  ;;  %7861 = vmatprep.subr.bf16.mxu0 %v8258_v14 }
 0x622   : > { %14305 = vst [vmem:[#allocation72_spill] sm:$0xff] %v12250_v57  ;;  %14309 = vst [vmem:[#allocation20_spill] sm:$0xff] %v12257_v15  ;;  %v12272_v30 = vsub.f32 %v11858_v9, %v5051_v44  ;;  %v12275_v51 = vsub.f32 %v11885_v21, %v5051_v44  ;;  %v5398_v19 = vadd.f32 %v5397_v5, %v5226_v63  ;;  %v8259_v58 = vld [vmem:[#allocation7 + $0x128] sm:$0xff]   ;;  %v12296_v63 = vpop.f32.mrf.mxu0 }
 0x623   : > { %14311 = vst [vmem:[#allocation45_spill] sm:$0xff] %v12260_v45  ;;  %14312 = vst [vmem:[#allocation97_spill] sm:$0xff] %v12263_v16  ;;  %v12278_v47 = vsub.f32 %v11917_v28, %v5051_v44  ;;  %v12281_v7 = vsub.f32 %v11937_v40, %v5051_v44  ;;  %v12284_v23 = vsub.f32 %v14319_v12, %v5051_v44  ;;  %v14323_v9 = vld [vmem:[#allocation53_spill] sm:$0xff]  ;;  %v12298_v40 = vpop.f32.mrf.mxu1  ;;  %7862 = vmatpush3.bf16.msra.mxu0 %v8259_v58 }
 0x624   : > { %14313 = vst [vmem:[#allocation98_spill] sm:$0xff] %v12266_v3  ;;  %14314 = vst [vmem:[#allocation99_spill] sm:$0xff] %v12269_v29  ;;  %v12287_v36 = vsub.f32 %v14321_v11, %v5051_v44  ;;  %v12290_v8 = vsub.f32 %v14323_v9, %v5051_v44  ;;  %v5187_v21 = vmul.f32 %v12241_v33, %v12241_v33 }
 0x625   : > { %14315 = vst [vmem:[#allocation100_spill] sm:$0xff] %v12272_v30  ;;  %14316 = vst [vmem:[#allocation101_spill] sm:$0xff] %v12275_v51  ;;  %v5195_v28 = vmul.f32 %v12244_v27, %v12244_v27  ;;  %v5399_v13 = vadd.f32 %v5398_v19, %v12177_v24  ;;  %v5203_v11 = vmul.f32 %v12247_v6, %v12247_v6  ;;  %v8260_v19 = vld [vmem:[#allocation7 + $0x160] sm:$0xff]   ;;  %v12342_v6 = vpop.f32.mrf.mxu1  ;;  %v14324_v27 = vld [vmem:[#allocation59_spill] sm:$0xff] }
 0x626   : > { %14317 = vst [vmem:[#allocation102_spill] sm:$0xff] %v12278_v47  ;;  %14318 = vst [vmem:[#allocation103_spill] sm:$0xff] %v12281_v7  ;;  %v5211_v44 = vmul.f32 %v12250_v57, %v12250_v57  ;;  %v5219_v5 = vmul.f32 %v12257_v15, %v12257_v15  ;;  %v5227_v12 = vmul.f32 %v12260_v45, %v12260_v45  ;;  %7863 = vmatprep.subr.bf16.mxu0 %v8260_v19 }
 0x627   : > { %14320 = vst [vmem:[#allocation57_spill] sm:$0xff] %v12284_v23  ;;  %14322 = vst [vmem:[#allocation52_spill] sm:$0xff] %v12287_v36  ;;  %v5235_v9 = vmul.f32 %v12263_v16, %v12263_v16  ;;  %v12313_v14 = vmul.f32 %v12266_v3, %v12266_v3  ;;  %v12317_v24 = vmul.f32 %v12269_v29, %v12269_v29  ;;  %v8261_v16 = vld [vmem:[#allocation7 + $0x120] sm:$0xff]  }
 0x628   : > { %v5400_v57 = vadd.f32 %v5399_v13, %v12181_v52  ;;  %v12322_v15 = vmul.f32 %v12272_v30, %v12272_v30  ;;  %v12326_v45 = vmul.f32 %v12275_v51, %v12275_v51  ;;  %v12330_v3 = vmul.f32 %v12278_v47, %v12278_v47  ;;  %v12340_v30 = vpop.f32.mrf.mxu0  ;;  %7864 = vmatpush3.bf16.msra.mxu0 %v8261_v16  ;;  %v14329_v16 = vld [vmem:[#allocation81_spill] sm:$0xff] }
 0x629   : > { %v12334_v29 = vmul.f32 %v12281_v7, %v12281_v7  ;;  %v12338_v52 = vmul.f32 %v12284_v23, %v12284_v23  ;;  %v5415_v58 = vadd.f32 %v5195_v28, %v5187_v21  ;;  %v6145_v13 = vpack.c.bf16 %v6073_v32, %v6065_v49  ;;  %v14325_v49 = vld [vmem:[#allocation18_spill] sm:$0xff] }
 0x62a   : > { %v5401_v51 = vadd.f32 %v5400_v57, %v12185_v60  ;;  %v12347_v47 = vmul.f32 %v12287_v36, %v12287_v36  ;;  %v5606_v7 = vmul.f32 %v11485_v46, %v14324_v27  ;;  %v5767_v33 = vmul.f32 %v11444_v38, %v5598_v18 }
 0x62b   : > { %v5416_v23 = vadd.f32 %v5415_v58, %v5203_v11  ;;  %6759 = vmatprep.mubr.bf16.mxu0 %v6145_v13  ;;  %v5005_v32 = vadd.f32 %v12095_v56, %v12227_v50  ;;  %v5615_v21 = vmul.f32 %v11646_v62, %v14325_v49  ;;  %v5961_v60 = vadd.f32 %v11460_v31, %v12080_v42  ;;  %v14326_v58 = vld [vmem:[#allocation54_spill] sm:$0xff]  ;;  %v14327_v62 = vld [vmem:[#allocation24_spill] sm:$0xff]  ;;  %v12369_v42 = vpop.f32.mrf.mxu0  ;;  %v14330_v49 = vld [vmem:[#allocation63_spill] sm:$0xff] }
 0x62c   : > { %v5402_v57 = vadd.f32 %v5401_v51, %v12189_v53  ;;  %v5026_v28 = vadd.f32 %v12114_v48, %v12231_v25  ;;  %v5775_v27 = vmul.f32 %v11444_v38, %v5606_v7  ;;  %v5936_v18 = vadd.f32 %v11450_v37, %v5767_v33  ;;  %v12371_v53 = vpop.f32.mrf.mxu1  ;;  %v14328_v33 = vld [vmem:[#allocation56_spill] sm:$0xff]  ;;  %v14332_v25 = vld [vmem:[#allocation27_spill] sm:$0xff] }
 0x62d   : > { %v5417_v11 = vadd.f32 %v5416_v23, %v5211_v44  ;;  %v5006_v19 = vadd.f32 %v5005_v32, %v12236_v20  ;;  %v5784_v56 = vmul.f32 %v11454_v61, %v5615_v21  ;;  %v12367_v13 = vadd.f32 %v14327_v62, %v14326_v58  ;;  %v14331_v21 = vld [vmem:[#allocation87_spill] sm:$0xff] }
 0x62e   : > { %v5403_v48 = vadd.f32 %v5402_v57, %v12193_v1  ;;  %v5944_v51 = vadd.f32 %v11450_v37, %v5775_v27  ;;  %v6064_v7 = vmax.f32 %v5936_v18, 0.0  ;;  %v12377_v23 = vadd.f32 %v14329_v16, %v14328_v33  ;;  %v14333_v57 = vld [vmem:[#allocation29_spill] sm:$0xff]  ;;  %v8263_v16 = vld [vmem:[#allocation7 + $0x118] sm:$0xff]  }
 0x62f   : > { %v5418_v44 = vadd.f32 %v5417_v11, %v5219_v5  ;;  %v5953_v61 = vadd.f32 %v11460_v31, %v5784_v56  ;;  %v6089_v32 = vmax.f32 %v5961_v60, 0.0  ;;  %v12382_v58 = vadd.f32 %v14331_v21, %v14330_v49  ;;  %v14334_v31 = vld [vmem:[#allocation43_spill] sm:$0xff]  ;;  %v12396_v11 = vpop.f32.mrf.mxu0  ;;  %v12398_v56 = vpop.f32.mrf.mxu1 }
 0x630   : > { %v5404_v62 = vadd.f32 %v5403_v48, %v12197_v59  ;;  %v6072_v36 = vmax.f32 %v5944_v51, 0.0  ;;  %v12387_v1 = vadd.f32 %v12044_v55, %v14332_v25  ;;  %v5614_v27 = vmul.f32 %v11485_v46, %v14333_v57  ;;  %v8262_v46 = vld [vmem:[#allocation7 + $0x158] sm:$0xff]   ;;  %v8264_v57 = vld [vmem:[#allocation7 + $0x150] sm:$0xff]  }
 0x631   : > { %v5419_v18 = vadd.f32 %v5418_v44, %v5227_v12  ;;  %v6081_v33 = vmax.f32 %v5953_v61, 0.0  ;;  %v5027_v5 = vadd.f32 %v5026_v28, %v12367_v13  ;;  %v12394_v60 = vadd.f32 %v12052_v34, %v14334_v31  ;;  %v14336_v61 = vld [vmem:[#allocation39_spill] sm:$0xff]  ;;  %7865 = vmatprep.subr.bf16.mxu0 %v8262_v46  ;;  %v14341_v46 = vld [vmem:[#allocation61_spill] sm:$0xff] }
 0x632   : > { %v5405_v59 = vadd.f32 %v5404_v62, %v12201_v4  ;;  %v6144_v48 = vpack.c.bf16 %v6072_v36, %v6064_v7  ;;  %v5007_v55 = vadd.f32 %v5006_v19, %v12377_v23  ;;  %v5783_v25 = vmul.f32 %v11444_v38, %v5614_v27  ;;  %v14335_v19 = vld [vmem:[#allocation50_spill] sm:$0xff]  ;;  %7866 = vmatpush3.bf16.msra.mxu0 %v8263_v16  ;;  %v14343_v16 = vld [vmem:[#allocation51_spill] sm:$0xff] }
 0x633   : > { %v5420_v12 = vadd.f32 %v5419_v18, %v5235_v9  ;;  %v6153_v51 = vpack.c.bf16 %v6089_v32, %v6081_v33  ;;  %v5028_v28 = vadd.f32 %v5027_v5, %v12382_v58  ;;  %v12406_v34 = vadd.f32 %v12068_v0, %v12046_v17  ;;  %v12420_v0 = vld [vmem:[%s13556_s6 + $0x16] sm:$0xff]  ;;  %v12428_v32 = vpop.f32.mrf.mxu1  ;;  %v14337_v33 = vld [vmem:[#allocation73_spill] sm:$0xff]  ;;  %7867 = vmatprep.subr.bf16.mxu0 %v8264_v57 }
 0x634   : > { %v5406_v44 = vadd.f32 %v5405_v59, %v12205_v22  ;;  %6760 = vmatmul.mubr.bf16.gmra.mxu0 %v6144_v48  ;;  %v5008_v4 = vadd.f32 %v5007_v55, %v12387_v1  ;;  %v5952_v36 = vadd.f32 %v11450_v37, %v5783_v25  ;;  %v5505_v38 = vmul.f32 %v12222_v54, %v14335_v19  ;;  %v12426_v37 = vpop.f32.mrf.mxu0  ;;  %v14339_v59 = vld [vmem:[#allocation34_spill] sm:$0xff]  ;;  %v14340_v55 = vld [vmem:[#allocation36_spill] sm:$0xff] }
 0x635   : > { %v5421_v9 = vadd.f32 %v5420_v12, %v12313_v14  ;;  %6767 = vmatprep.mubr.bf16.mxu0 %v6153_v51  ;;  %v5029_v7 = vadd.f32 %v5028_v28, %v12394_v60  ;;  %v5513_v17 = vmul.f32 %v12222_v54, %v14336_v61  ;;  %v12424_v22 = vrot.slane %v12420_v0, %v14256_v39 }
 0x636   : > { %v5407_v14 = vadd.f32 %v5406_v44, %v12216_v41  ;;  %v6080_v49 = vmax.f32 %v5952_v36, 0.0  ;;  %v12433_v21 = vadd.f32 %v12083_v43, %v12077_v35  ;;  %v5674_v62 = vmul.f32 %v12042_v26, %v5505_v38  ;;  %v8265_v41 = vld [vmem:[#allocation7 + $0x110] sm:$0xff]   ;;  %v14338_v43 = vld [vmem:[#allocation32_spill] sm:$0xff] }
 0x637   : > { %v5422_v27 = vadd.f32 %v5421_v9, %v12317_v24  ;;  %v5009_v39 = vadd.f32 %v5008_v4, %v12406_v34  ;;  %v5682_v18 = vmul.f32 %v12042_v26, %v5513_v17  ;;  %v5504_v5 = vmul.f32 %v12060_v2, %v14337_v33  ;;  %v12456_v4 = vpop.f32.mrf.mxu1  ;;  %v14344_v9 = vld [vmem:[#allocation21_spill] sm:$0xff]  ;;  %7868 = vmatpush3.bf16.msra.mxu0 %v8265_v41 }
 0x638   : > { %v5408_v31 = vadd.f32 %v5407_v14, %v12220_v10  ;;  %v5843_v35 = vadd.f32 %v12424_v22, %v5674_v62  ;;  %v12445_v48 = vadd.f32 %v14339_v59, %v14338_v43  ;;  %v5512_v24 = vmul.f32 %v12060_v2, %v14340_v55  ;;  %v12454_v10 = vpop.f32.mrf.mxu0  ;;  %v14345_v14 = vld [vmem:[#allocation42_spill] sm:$0xff]  ;;  %v14346_v62 = vld [vmem:[#allocation23_spill] sm:$0xff]  ;;  %v8266_v41 = vld [vmem:[#allocation7 + $0x148] sm:$0xff]  }
 0x639   : > { %v5423_v25 = vadd.f32 %v5422_v27, %v12322_v15  ;;  %v14342_v12 = vmax.f32 %v14341_v46, 0.0  ;;  %v5851_v28 = vadd.f32 %v12424_v22, %v5682_v18  ;;  %v5673_v44 = vmul.f32 %v14343_v16, %v5504_v5  ;;  %v14347_v5 = vld [vmem:[#allocation49_spill] sm:$0xff]  ;;  %v12475_v46 = vpop.f32.mrf.mxu1  ;;  %7869 = vmatprep.subr.bf16.mxu0 %v8266_v41 }
 0x63a   : > { %v5409_v36 = vrot.slane %v5408_v31, 4  ;;  %v5971_v19 = vmax.f32 %v5843_v35, 0.0  ;;  %v5681_v38 = vmul.f32 %v14343_v16, %v5512_v24  ;;  %v5521_v61 = vmul.f32 %v12222_v54, %v14344_v9  ;;  %v14348_v35 = vld [vmem:[#allocation74_spill] sm:$0xff]  ;;  %v14355_v41 = vld [vmem:[#allocation37_spill] sm:$0xff] }
 0x63b   : > { %v6152_v51 = vpack.c.bf16 %v14342_v12, %v6080_v49  ;;  %v5424_v15 = vadd.f32 %v5423_v25, %v12326_v45  ;;  %v5979_v17 = vmax.f32 %v5851_v28, 0.0  ;;  %v5842_v49 = vadd.f32 %v14345_v14, %v5673_v44  ;;  %v12473_v25 = vpop.f32.mrf.mxu0 }
 0x63c   : > { %v5529_v57 = vmul.f32 %v12222_v54, %v14346_v62  ;;  %v5410_v27 = vadd.f32 %v5409_v36, %v5408_v31  ;;  %v5850_v18 = vadd.f32 %v14345_v14, %v5681_v38  ;;  %v5690_v33 = vmul.f32 %v12042_v26, %v5521_v61  ;;  %v8267_v31 = vld [vmem:[#allocation7 + $0x108] sm:$0xff]   ;;  %v8268_v36 = vld [vmem:[#allocation7 + $0x140] sm:$0xff]   ;;  %v8270_v38 = vld [vmem:[#allocation7 + $0x1f8] sm:$0xff]  }
 0x63d   : > { %6768 = vmatmul.mubr.bf16.gmra.mxu0 %v6152_v51  ;;  %v12469_v43 = vadd.f32 %v14348_v35, %v14347_v5  ;;  %v5425_v59 = vadd.f32 %v5424_v15, %v12330_v3  ;;  %v6099_v45 = vpack.c.bf16 %v5979_v17, %v5971_v19  ;;  %v5970_v55 = vmax.f32 %v5842_v49, 0.0  ;;  %v12484_v15 = vld [vmem:[#allocation7 + $0x1b8] sm:$0xff]   ;;  %8005 = vmatprep.subr.bf16.mxu1 %v8270_v38  ;;  %v14352_v5 = vld [vmem:[#allocation25_spill] sm:$0xff] }
 0x63e   : > { %v5698_v24 = vmul.f32 %v12042_v26, %v5529_v57  ;;  %v5411_v12 = vrot.slane %v5410_v27, 2  ;;  %v5030_v51 = vadd.f32 %v5029_v7, %v12433_v21  ;;  %v5978_v28 = vmax.f32 %v5850_v18, 0.0  ;;  %14349 = vst [vmem:[#allocation53_spill] sm:$0xff] %v12484_v15  ;;  %v12487_v57 = vld [vmem:[#allocation7 + $0x1f0] sm:$0xff]   ;;  %7870 = vmatpush3.bf16.msra.mxu0 %v8267_v31  ;;  %v14358_v31 = vld [vmem:[#allocation13_spill] sm:$0xff] }
 0x63f   : > { %v5859_v44 = vadd.f32 %v12424_v22, %v5690_v33  ;;  %v5307_v3 = vmul.f32 %v12290_v8, %v12290_v8  ;;  %v5426_v19 = vadd.f32 %v5425_v59, %v12334_v29  ;;  %6808 = vmatprep.mubr.bf16.mxu1 %v6099_v45  ;;  %v5010_v9 = vadd.f32 %v5009_v39, %v12445_v48  ;;  %v14351_v29 = vld [vmem:[#allocation40_spill] sm:$0xff]  ;;  %v14353_v39 = vld [vmem:[#allocation15_spill] sm:$0xff] }
 0x640   : > { %v5867_v61 = vadd.f32 %v12424_v22, %v5698_v24  ;;  %v5412_v17 = vadd.f32 %v5411_v12, %v5410_v27  ;;  %v6098_v49 = vpack.c.bf16 %v5978_v28, %v5970_v55  ;;  %v5031_v62 = vadd.f32 %v5030_v51, %v12469_v43  ;;  %14350 = vst [vmem:[#allocation59_spill] sm:$0xff] %v12487_v57  ;;  %v14354_v59 = vld [vmem:[#allocation96_spill] sm:$0xff]  ;;  %v12498_v27 = vpop.f32.mrf.mxu0  ;;  %v12500_v55 = vpop.f32.mrf.mxu1 }
 0x641   : > { %v5987_v7 = vmax.f32 %v5859_v44, 0.0  ;;  %v5427_v18 = vadd.f32 %v5426_v19, %v12338_v52  ;;  %v12492_v35 = vadd.f32 %v14352_v5, %v14351_v29  ;;  %v12496_v45 = vadd.f32 %v14354_v59, %v14353_v39  ;;  %v14356_v52 = vld [vmem:[#allocation26_spill] sm:$0xff]  ;;  %v14357_v28 = vld [vmem:[#allocation16_spill] sm:$0xff]  ;;  %7871 = vmatprep.subr.bf16.mxu0 %v8268_v36 }
 0x642   : > { %v5995_v33 = vmax.f32 %v5867_v61, 0.0  ;;  %v5413_v24 = vrot.slane %v5412_v17, 1  ;;  %6809 = vmatmul.mubr.bf16.vlgmr.msra.gmra.mxu1 %v6098_v49  ;;  %v5520_v12 = vmul.f32 %v12060_v2, %v14355_v41  ;;  %v5528_v51 = vmul.f32 %v12060_v2, %v14356_v52  ;;  %v8269_v19 = vld [vmem:[#allocation7 + $0x100] sm:$0xff]   ;;  %v12516_v39 = vld [vmem:[#allocation7 + $0x1b0] sm:$0xff]  }
 0x643   : > { %v5537_v44 = vmul.f32 %v12222_v54, %v14357_v28  ;;  %v5428_v61 = vadd.f32 %v5427_v18, %v12347_v47  ;;  %v12511_v5 = vadd.f32 %v12298_v40, %v12296_v63  ;;  %v5545_v49 = vmul.f32 %v12222_v54, %v14358_v31  ;;  %8013 = vmatpush3.bf16.msra.mxu1 %v12484_v15  ;;  %v12522_v47 = vld [vmem:[#allocation7 + $0x1e8] sm:$0xff]  }
 0x644   : > { %v6107_v29 = vpack.c.bf16 %v5995_v33, %v5987_v7  ;;  %14359 = vst [vmem:[#allocation18_spill] sm:$0xff] %v12516_v39  ;;  %v5414_v59 = vadd.f32 %v5413_v24, %v5412_v17  ;;  %v5689_v41 = vmul.f32 %v14343_v16, %v5520_v12  ;;  %v5697_v36 = vmul.f32 %v14343_v16, %v5528_v51  ;;  %v12527_v33 = vpop.f32.mrf.mxu0  ;;  %v12529_v17 = vpop.f32.mrf.mxu1  ;;  %v14394_v15 = vld [vmem:[#allocation93_spill] sm:$0xff] }
 0x645   : > { %v5706_v52 = vmul.f32 %v12042_v26, %v5537_v44  ;;  %8006 = vmatprep.subr.bf16.mxu1 %v12487_v57  ;;  %14360 = vst [vmem:[#allocation54_spill] sm:$0xff] %v12522_v47  ;;  %v5429_v63 = vadd.f32 %v5428_v61, %v5307_v3  ;;  %v5011_v40 = vadd.f32 %v5010_v9, %v12492_v35  ;;  %v12541_v61 = vld [vmem:[#allocation7 + $0x1a8] sm:$0xff]  }
 0x646   : > { %6816 = vmatprep.mubr.bf16.mxu1 %v6107_v29  ;;  %v5032_v7 = vadd.f32 %v5031_v62, %v12496_v45  ;;  %v5714_v18 = vmul.f32 %v12042_v26, %v5545_v49  ;;  %v5482_v24 = vmul.f32 0.0078125, %v5414_v59  ;;  %v5858_v12 = vadd.f32 %v14345_v14, %v5689_v41  ;;  %7872 = vmatpush3.bf16.msra.mxu0 %v8269_v19 }
 0x647   : > { %v5866_v51 = vadd.f32 %v14345_v14, %v5697_v36  ;;  %v5875_v28 = vadd.f32 %v12424_v22, %v5706_v52  ;;  %v5430_v3 = vrot.slane %v5429_v63, 4  ;;  %v5012_v44 = vadd.f32 %v5011_v40, %v12511_v5  ;;  %8014 = vmatpush3.bf16.msra.mxu1 %v12516_v39  ;;  %14361 = vst [vmem:[#allocation24_spill] sm:$0xff] %v12541_v61  ;;  %v12554_v52 = vpop.f32.mrf.mxu1  ;;  %v14362_v40 = vld [vmem:[#allocation75_spill] sm:$0xff] }
 0x648   : > { %v5883_v9 = vadd.f32 %v12424_v22, %v5714_v18  ;;  %v12538_v62 = vadd.f32 %v12342_v6, %v12340_v30  ;;  %7921 = vmatprep.subr.bf16.mxu0 %v8270_v38  ;;  %v5490_v29 = vadd.f32 1e-05, %v5482_v24  ;;  %v5986_v31 = vmax.f32 %v5858_v12, 0.0  ;;  %8007 = vmatprep.subr.bf16.mxu1 %v12522_v47  ;;  %v12552_v30 = vpop.f32.mrf.mxu0  ;;  %v14363_v24 = vld [vmem:[#allocation83_spill] sm:$0xff]  ;;  %v12560_v12 = vld [vmem:[#allocation7 + $0x1e0] sm:$0xff]  }
 0x649   : > { %v5994_v49 = vmax.f32 %v5866_v51, 0.0  ;;  %v6003_v59 = vmax.f32 %v5875_v28, 0.0  ;;  %v5431_v19 = vadd.f32 %v5430_v3, %v5429_v63  ;;  %v12546_v36 = vadd.f32 %v12371_v53, %v12369_v42  ;;  %14364 = vst [vmem:[#allocation56_spill] sm:$0xff] %v12560_v12 }
 0x64a   : > { %v6011_v41 = vmax.f32 %v5883_v9, 0.0  ;;  %v12550_v6 = vadd.f32 %v12398_v56, %v12396_v11  ;;  %8308 = vrsqrt.f32 %v5490_v29  ;;  %v5536_v18 = vmul.f32 %v12060_v2, %v14362_v40  ;;  %v12568_v56 = vld [vmem:[#allocation7 + $0x1a0] sm:$0xff]   ;;  %v14366_v9 = vld [vmem:[#allocation14_spill] sm:$0xff]  ;;  %v4869_v40 = vpop.f32.mrf.mxu1 }
 0x64b   : > { %v6106_v38 = vpack.c.bf16 %v5994_v49, %v5986_v31  ;;  %v5544_v63 = vmul.f32 %v12060_v2, %v14363_v24  ;;  %v5432_v42 = vrot.slane %v5431_v19, 2  ;;  %v5033_v51 = vadd.f32 %v5032_v7, %v12538_v62  ;;  %8015 = vmatpush3.bf16.msra.mxu1 %v12541_v61  ;;  %14365 = vst [vmem:[#allocation81_spill] sm:$0xff] %v12568_v56  ;;  %v14367_v31 = vld [vmem:[#allocation41_spill] sm:$0xff]  ;;  %v12576_v7 = vld [vmem:[#allocation7 + $0x1d8] sm:$0xff]  }
 0x64c   : > { %v6115_v53 = vpack.c.bf16 %v6011_v41, %v6003_v59  ;;  %v12565_v11 = vadd.f32 %v12428_v32, %v12426_v37  ;;  %v5705_v28 = vmul.f32 %v14343_v16, %v5536_v18  ;;  %v5553_v29 = vmul.f32 %v12222_v54, %v14366_v9  ;;  %14368 = vst [vmem:[#allocation63_spill] sm:$0xff] %v12576_v7 }
 0x64d   : > { %6817 = vmatmul.mubr.bf16.gmra.mxu1 %v6106_v38  ;;  %v5713_v3 = vmul.f32 %v14343_v16, %v5544_v63  ;;  %v5561_v49 = vmul.f32 %v12222_v54, %v14367_v31  ;;  %v5433_v59 = vadd.f32 %v5432_v42, %v5431_v19  ;;  %v5013_v37 = vadd.f32 %v5012_v44, %v12546_v36  ;;  %v4756_v38 = vpop.f32.mrf.mxu0 }
 0x64e   : > { %6824 = vmatprep.mubr.bf16.mxu1 %v6115_v53  ;;  %v5034_v32 = vadd.f32 %v5033_v51, %v12550_v6  ;;  %v12582_v41 = vadd.f32 %v12456_v4, %v12454_v10  ;;  %v5874_v18 = vadd.f32 %v14345_v14, %v5705_v28  ;;  %v5722_v63 = vmul.f32 %v12042_v26, %v5553_v29  ;;  %v12599_v4 = vld [vmem:[#allocation7 + $0x198] sm:$0xff]  }
 0x64f   : > { %v5882_v24 = vadd.f32 %v14345_v14, %v5713_v3  ;;  %v5730_v9 = vmul.f32 %v12042_v26, %v5561_v49  ;;  %8008 = vmatprep.subr.bf16.mxu1 %v12560_v12  ;;  %v5434_v19 = vrot.slane %v5433_v59, 1  ;;  %v5014_v44 = vadd.f32 %v5013_v37, %v12565_v11  ;;  %14369 = vst [vmem:[#allocation87_spill] sm:$0xff] %v12599_v4  ;;  %v4758_v31 = vpop.f32.mrf.mxu0  ;;  %v4871_v49 = vpop.f32.mrf.mxu1  ;;  %v12611_v37 = vld [vmem:[#allocation7 + $0x1d0] sm:$0xff]  }
 0x650   : > { %v12592_v42 = vadd.f32 %v12475_v46, %v12473_v25  ;;  %v12596_v10 = vadd.f32 %v12500_v55, %v12498_v27  ;;  %8016 = vmatpush3.bf16.msra.mxu1 %v12568_v56  ;;  %v6002_v53 = vmax.f32 %v5874_v18, 0.0  ;;  %v5891_v28 = vadd.f32 %v12424_v22, %v5722_v63  ;;  %v14370_v27 = vld [vmem:[#allocation84_spill] sm:$0xff]  ;;  %14371 = vst [vmem:[#allocation27_spill] sm:$0xff] %v12611_v37 }
 0x651   : > { %v6010_v51 = vmax.f32 %v5882_v24, 0.0  ;;  %v5899_v3 = vadd.f32 %v12424_v22, %v5730_v9  ;;  %8009 = vmatprep.subr.bf16.mxu1 %v12576_v7  ;;  %v5435_v29 = vadd.f32 %v5434_v19, %v5433_v59  ;;  %v5035_v25 = vadd.f32 %v5034_v32, %v12582_v41  ;;  %v14372_v9 = vld [vmem:[#allocation71_spill] sm:$0xff]  ;;  %v14373_v19 = vld [vmem:[#allocation88_spill] sm:$0xff]  ;;  %v4873_v12 = vpop.f32.mrf.mxu1 }
 0x652   : > { %v12607_v46 = vadd.f32 %v12529_v17, %v12527_v33  ;;  %v5552_v55 = vmul.f32 %v12060_v2, %v14370_v27  ;;  %v6019_v24 = vmax.f32 %v5891_v28, 0.0  ;;  %v5560_v7 = vmul.f32 %v12060_v2, %v14372_v9  ;;  %v14374_v17 = vld [vmem:[#allocation89_spill] sm:$0xff]  ;;  %v12621_v27 = vld [vmem:[#allocation7 + $0x190] sm:$0xff]  }
 0x653   : > { %v6114_v18 = vpack.c.bf16 %v6010_v51, %v6002_v53  ;;  %v6027_v63 = vmax.f32 %v5899_v3, 0.0  ;;  %v5483_v59 = vmul.f32 0.0078125, %v5435_v29  ;;  %v5569_v33 = vmul.f32 %v12222_v54, %v14373_v19  ;;  %14375 = vst [vmem:[#allocation29_spill] sm:$0xff] %v12621_v27  ;;  %v12627_v29 = vld [vmem:[#allocation7 + $0x1c8] sm:$0xff]  }
 0x654   : > { %v5721_v32 = vmul.f32 %v14343_v16, %v5552_v55  ;;  %v5577_v56 = vmul.f32 %v12222_v54, %v14374_v17  ;;  %8017 = vmatpush3.bf16.msra.mxu1 %v12599_v4  ;;  %v5015_v51 = vadd.f32 %v5014_v44, %v12592_v42  ;;  %v5729_v28 = vmul.f32 %v14343_v16, %v5560_v7  ;;  %v4760_v4 = vpop.f32.mrf.mxu0 }
 0x655   : > { %6825 = vmatmul.mubr.bf16.gmra.mxu1 %v6114_v18  ;;  %v6123_v53 = vpack.c.bf16 %v6027_v63, %v6019_v24  ;;  %v12625_v3 = vadd.f32 %v4869_v40, %v4756_v38  ;;  %14376 = vst [vmem:[#allocation43_spill] sm:$0xff] %v12627_v29  ;;  %v5491_v55 = vadd.f32 1e-05, %v5483_v59  ;;  %v5738_v19 = vmul.f32 %v12042_v26, %v5569_v33  ;;  %v12645_v59 = vld [vmem:[#allocation7 + $0x188] sm:$0xff]  }
 0x656   : > { %v5890_v9 = vadd.f32 %v14345_v14, %v5721_v32  ;;  %v5746_v17 = vmul.f32 %v12042_v26, %v5577_v56  ;;  %8010 = vmatprep.subr.bf16.mxu1 %v12611_v37  ;;  %v5036_v44 = vadd.f32 %v5035_v25, %v12596_v10  ;;  %v5016_v7 = vadd.f32 %v5015_v51, %v12607_v46  ;;  %v14378_v25 = vld [vmem:[#allocation69_spill] sm:$0xff]  ;;  %v14388_v37 = vld [vmem:[#allocation90_spill] sm:$0xff] }
 0x657   : > { %6832 = vmatprep.mubr.bf16.mxu1 %v6123_v53  ;;  %v5898_v38 = vadd.f32 %v14345_v14, %v5729_v28  ;;  %v12638_v40 = vadd.f32 %v12554_v52, %v12552_v30  ;;  %v12640_v18 = vpop.eup %8308  ;;  %8310 = vrsqrt.f32 %v5491_v55  ;;  %v5907_v56 = vadd.f32 %v12424_v22, %v5738_v19  ;;  %14377 = vst [vmem:[#allocation50_spill] sm:$0xff] %v12645_v59  ;;  %v12655_v53 = vld [vmem:[#allocation7 + $0x1c0] sm:$0xff]  }
 0x658   : > { %v6018_v24 = vmax.f32 %v5890_v9, 0.0  ;;  %v5915_v63 = vadd.f32 %v12424_v22, %v5746_v17  ;;  %8018 = vmatpush3.bf16.msra.mxu1 %v12621_v27  ;;  %v12649_v32 = vmul.f32 %v12640_v18, %v14378_v25  ;;  %v5017_v30 = vadd.f32 %v5016_v7, %v12625_v3  ;;  %14380 = vst [vmem:[#allocation73_spill] sm:$0xff] %v12655_v53  ;;  %v14381_v9 = vld [vmem:[#allocation82_spill] sm:$0xff]  ;;  %v14383_v7 = vld [vmem:[#allocation77_spill] sm:$0xff] }
 0x659   : > { %v6026_v33 = vmax.f32 %v5898_v38, 0.0  ;;  %v12652_v52 = vadd.f32 %v4873_v12, %v4760_v4  ;;  %8011 = vmatprep.subr.bf16.mxu1 %v12627_v29  ;;  %v6035_v51 = vmax.f32 %v5907_v56, 0.0  ;;  %v12657_v55 = vadd.f32 %v4871_v49, %v4758_v31  ;;  %v14382_v17 = vld [vmem:[#allocation38_spill] sm:$0xff]  ;;  %v4762_v4 = vpop.f32.mrf.mxu0  ;;  %v4875_v29 = vpop.f32.mrf.mxu1  ;;  %v14384_v31 = vld [vmem:[#allocation12_spill] sm:$0xff] }
 0x65a   : > { %14379 = vst [vmem:[#allocation39_spill] sm:$0xff] %v12649_v32  ;;  %v6043_v28 = vmax.f32 %v5915_v63, 0.0  ;;  %v5568_v19 = vmul.f32 %v12060_v2, %v14381_v9  ;;  %v5793_v25 = vmul.f32 %v14343_v16, %v14382_v17  ;;  %v5576_v12 = vmul.f32 %v12060_v2, %v14383_v7  ;;  %v12669_v56 = vld [vmem:[%s13556_s6 + $0xe] sm:$0xff] }
 0x65b   : > { %v6122_v27 = vpack.c.bf16 %v6026_v33, %v6018_v24  ;;  %v5018_v38 = vadd.f32 %v5017_v30, %v12652_v52  ;;  %v14385_v49 = vsub.s32 4, %v14384_v31  ;;  %v5037_v24 = vadd.f32 %v5036_v44, %v12638_v40  ;;  %v12679_v30 = vld [vmem:[#allocation7 + $0x180] sm:$0xff]  }
 0x65c   : > { %v6131_v9 = vpack.c.bf16 %v6043_v28, %v6035_v51  ;;  %v5737_v33 = vmul.f32 %v14343_v16, %v5568_v19  ;;  %8019 = vmatpush3.bf16.msra.mxu1 %v12645_v59  ;;  %14387 = vst [vmem:[#allocation34_spill] sm:$0xff] %v12679_v30  ;;  %v5745_v32 = vmul.f32 %v14343_v16, %v5576_v12  ;;  %v14389_v28 = vld [vmem:[#allocation91_spill] sm:$0xff]  ;;  %v14390_v59 = vld [vmem:[#allocation68_spill] sm:$0xff] }
 0x65d   : > { %v12674_v63 = vrot.slane %v12669_v56, %v14385_v49  ;;  %6833 = vmatmul.mubr.bf16.gmra.mxu1 %v6122_v27  ;;  %v5019_v7 = vrot.slane %v5018_v38, 4  ;;  %v5585_v61 = vmul.f32 %v12222_v54, %v14388_v37  ;;  %8012 = vmatprep.subr.bf16.mxu1 %v12655_v53  ;;  %v5038_v44 = vadd.f32 %v5037_v24, %v12657_v55 }
 0x65e   : > { %6840 = vmatprep.mubr.bf16.mxu1 %v6131_v9  ;;  %v5906_v51 = vadd.f32 %v14345_v14, %v5737_v33  ;;  %v5593_v19 = vmul.f32 %v12222_v54, %v14389_v28  ;;  %v12690_v49 = vadd.f32 %v4875_v29, %v4762_v4  ;;  %v12693_v27 = vadd.f32 %v14345_v14, %v5793_v25  ;;  %v14391_v28 = vld [vmem:[#allocation78_spill] sm:$0xff] }
 0x65f   : > { %14386 = vst [vmem:[#allocation32_spill] sm:$0xff] %v12674_v63  ;;  %v5020_v17 = vadd.f32 %v5019_v7, %v5018_v38  ;;  %v5914_v12 = vadd.f32 %v14345_v14, %v5745_v32  ;;  %v5754_v37 = vmul.f32 %v12042_v26, %v5585_v61  ;;  %v5625_v9 = vmul.f32 %v12222_v54, %v14390_v59  ;;  %v14392_v7 = vld [vmem:[#allocation19_spill] sm:$0xff] }
 0x660   : > { %v6034_v53 = vmax.f32 %v5906_v51, 0.0  ;;  %v5762_v24 = vmul.f32 %v12042_v26, %v5593_v19  ;;  %v5039_v33 = vadd.f32 %v5038_v44, %v12690_v49  ;;  %8020 = vmatpush3.bf16.msra.mxu1 %v12679_v30  ;;  %v5584_v38 = vmul.f32 %v12060_v2, %v14391_v28  ;;  %v14393_v51 = vld [vmem:[#allocation92_spill] sm:$0xff] }
 0x661   : > { %v5021_v29 = vrot.slane %v5020_v17, 2  ;;  %v6042_v4 = vmax.f32 %v5914_v12, 0.0  ;;  %v5923_v25 = vadd.f32 %v12424_v22, %v5754_v37  ;;  %v5592_v59 = vmul.f32 %v12060_v2, %v14392_v7 }
 0x662   : > { %v5931_v32 = vadd.f32 %v12424_v22, %v5762_v24  ;;  %v5040_v61 = vrot.slane %v5039_v33, 4  ;;  %v5601_v19 = vmul.f32 %v12222_v54, %v14393_v51  ;;  %v5753_v30 = vmul.f32 %v14343_v16, %v5584_v38 }
 0x663   : > { %v5022_v47 = vadd.f32 %v5021_v29, %v5020_v17  ;;  %v6130_v44 = vpack.c.bf16 %v6042_v4, %v6034_v53  ;;  %v6051_v39 = vmax.f32 %v5923_v25, 0.0  ;;  %v5761_v37 = vmul.f32 %v14343_v16, %v5592_v59  ;;  %v14395_v17 = vld [vmem:[#allocation35_spill] sm:$0xff] }
 0x664   : > { %v6059_v12 = vmax.f32 %v5931_v32, 0.0  ;;  %v5041_v57 = vadd.f32 %v5040_v61, %v5039_v33  ;;  %v5609_v28 = vmul.f32 %v12222_v54, %v14394_v15  ;;  %v12714_v24 = vpop.eup %8310  ;;  %v5922_v7 = vadd.f32 %v14345_v14, %v5753_v30 }
 0x665   : > { %v5023_v63 = vrot.slane %v5022_v47, 1  ;;  %6841 = vmatmul.mubr.bf16.gmra.mxu1 %v6130_v44  ;;  %v5770_v51 = vmul.f32 %v12042_v26, %v5601_v19  ;;  %v5600_v53 = vmul.f32 %v12060_v2, %v14395_v17  ;;  %v12722_v29 = vmul.f32 %v12714_v24, %v12290_v8  ;;  %v14397_v8 = vld [vmem:[#allocation60_spill] sm:$0xff] }
 0x666   : > { %v6139_v33 = vpack.c.bf16 %v6059_v12, %v6051_v39  ;;  %v5042_v4 = vrot.slane %v5041_v57, 2  ;;  %v5930_v25 = vadd.f32 %v14345_v14, %v5761_v37  ;;  %v6050_v38 = vmax.f32 %v5922_v7, 0.0 }
 0x667   : > { %v5024_v15 = vadd.f32 %v5023_v63, %v5022_v47  ;;  %v5778_v32 = vmul.f32 %v12042_v26, %v5609_v28  ;;  %v5939_v61 = vadd.f32 %v12424_v22, %v5770_v51  ;;  %v14396_v30 = vsub.s32 4, %v14384_v31 }
 0x668   : > { %6848 = vmatprep.mubr.bf16.mxu1 %v6139_v33  ;;  %v5043_v19 = vadd.f32 %v5042_v4, %v5041_v57  ;;  %v6058_v44 = vmax.f32 %v5930_v25, 0.0  ;;  %v5608_v39 = vmul.f32 %v12060_v2, %v14397_v8  ;;  %v5794_v47 = vmul.f32 %v12042_v26, %v5625_v9  ;;  %v14399_v33 = vld [vmem:[#allocation70_spill] sm:$0xff] }
 0x669   : > { %v12730_v59 = vrot.slane %v12420_v0, %v14396_v30  ;;  %v14398_v63 = vsub.s32 5, %v14384_v31  ;;  %v5052_v28 = vmul.f32 0.0078125, %v5024_v15  ;;  %v5947_v51 = vadd.f32 %v12424_v22, %v5778_v32  ;;  %v14400_v25 = vld [vmem:[#allocation62_spill] sm:$0xff] }
 0x66a   : > { %v5044_v7 = vrot.slane %v5043_v19, 1  ;;  %v6067_v17 = vmax.f32 %v5939_v61, 0.0  ;;  %v5769_v57 = vmul.f32 %v14343_v16, %v5600_v53  ;;  %v6138_v8 = vpack.c.bf16 %v6058_v44, %v6050_v38  ;;  %v14405_v61 = vld [vmem:[#allocation94_spill] sm:$0xff] }
 0x66b   : > { %v12739_v37 = vrot.slane %v12669_v56, %v14398_v63  ;;  %v12744_v4 = vsub.f32 %v14399_v33, %v5052_v28  ;;  %v12747_v30 = vsub.f32 %v14400_v25, %v5052_v28  ;;  %v5777_v9 = vmul.f32 %v14343_v16, %v5608_v39 }
 0x66c   : > { %v12751_v12 = vsub.f32 %v12227_v50, %v5052_v28  ;;  %v12754_v15 = vsub.f32 %v12236_v20, %v5052_v28  ;;  %v12757_v32 = vsub.f32 %v12377_v23, %v5052_v28  ;;  %v5617_v53 = vmul.f32 %v12222_v54, %v14405_v61 }
 0x66d   : > { %14401 = vst [vmem:[#allocation36_spill] sm:$0xff] %v12747_v30  ;;  %v12762_v63 = vsub.f32 %v12387_v1, %v5052_v28  ;;  %v12765_v33 = vsub.f32 %v12406_v34, %v5052_v28  ;;  %v12768_v38 = vsub.f32 %v12445_v48, %v5052_v28  ;;  %v12771_v50 = vsub.f32 %v12492_v35, %v5052_v28 }
 0x66e   : > { %14402 = vst [vmem:[#allocation61_spill] sm:$0xff] %v12751_v12  ;;  %14403 = vst [vmem:[#allocation51_spill] sm:$0xff] %v12754_v15  ;;  %6849 = vmatmul.mubr.bf16.gmra.mxu1 %v6138_v8  ;;  %v12774_v20 = vsub.f32 %v12511_v5, %v5052_v28  ;;  %v12777_v23 = vsub.f32 %v12546_v36, %v5052_v28  ;;  %v12780_v54 = vsub.f32 %v12565_v11, %v5052_v28 }
 0x66f   : > { %14404 = vst [vmem:[#allocation21_spill] sm:$0xff] %v12757_v32  ;;  %14406 = vst [vmem:[#allocation42_spill] sm:$0xff] %v12762_v63  ;;  %v12783_v1 = vsub.f32 %v12592_v42, %v5052_v28  ;;  %v12786_v34 = vsub.f32 %v12607_v46, %v5052_v28  ;;  %v12789_v48 = vsub.f32 %v12625_v3, %v5052_v28 }
 0x670   : > { %14407 = vst [vmem:[#allocation23_spill] sm:$0xff] %v12765_v33  ;;  %14408 = vst [vmem:[#allocation49_spill] sm:$0xff] %v12768_v38  ;;  %v5188_v35 = vmul.f32 %v12744_v4, %v12744_v4  ;;  %v5196_v5 = vmul.f32 %v12747_v30, %v12747_v30  ;;  %v12796_v36 = vsub.f32 %v12652_v52, %v5052_v28 }
 0x671   : > { %14409 = vst [vmem:[#allocation74_spill] sm:$0xff] %v12771_v50  ;;  %14410 = vst [vmem:[#allocation40_spill] sm:$0xff] %v12774_v20  ;;  %v5204_v11 = vmul.f32 %v12751_v12, %v12751_v12  ;;  %v5212_v42 = vmul.f32 %v12754_v15, %v12754_v15  ;;  %v5220_v46 = vmul.f32 %v12757_v32, %v12757_v32  ;;  %v14417_v15 = vld [vmem:[#allocation86_spill] sm:$0xff] }
 0x672   : > { %14411 = vst [vmem:[#allocation25_spill] sm:$0xff] %v12777_v23  ;;  %14412 = vst [vmem:[#allocation15_spill] sm:$0xff] %v12780_v54  ;;  %v5228_v3 = vmul.f32 %v12762_v63, %v12762_v63  ;;  %v5236_v44 = vmul.f32 %v12765_v33, %v12765_v33  ;;  %v5244_v39 = vmul.f32 %v12768_v38, %v12768_v38  ;;  %v6075_v63 = vmax.f32 %v5947_v51, 0.0 }
 0x673   : > { %14413 = vst [vmem:[#allocation96_spill] sm:$0xff] %v12783_v1  ;;  %14414 = vst [vmem:[#allocation37_spill] sm:$0xff] %v12786_v34  ;;  %v5252_v52 = vmul.f32 %v12771_v50, %v12771_v50  ;;  %v12814_v28 = vmul.f32 %v12774_v20, %v12774_v20  ;;  %v12818_v25 = vmul.f32 %v12777_v23, %v12777_v23 }
 0x674   : > { %14415 = vst [vmem:[#allocation26_spill] sm:$0xff] %v12789_v48  ;;  %14416 = vst [vmem:[#allocation16_spill] sm:$0xff] %v12796_v36  ;;  %v12822_v8 = vmul.f32 %v12780_v54, %v12780_v54  ;;  %v12826_v61 = vmul.f32 %v12783_v1, %v12783_v1  ;;  %v5436_v38 = vadd.f32 %v5196_v5, %v5188_v35 }
 0x675   : > { %v5045_v33 = vadd.f32 %v5044_v7, %v5043_v19  ;;  %v5938_v50 = vadd.f32 %v14345_v14, %v5769_v57  ;;  %v5946_v20 = vadd.f32 %v14345_v14, %v5777_v9  ;;  %v5786_v32 = vmul.f32 %v12042_v26, %v5617_v53 }
 0x676   : > { %v5963_v23 = vadd.f32 %v12424_v22, %v5794_v47  ;;  %v5616_v12 = vmul.f32 %v12060_v2, %v14417_v15  ;;  %v12836_v54 = vmul.f32 %v12786_v34, %v12786_v34  ;;  %v5437_v1 = vadd.f32 %v5436_v38, %v5204_v11  ;;  %v14418_v15 = vld [vmem:[#allocation46_spill] sm:$0xff] }
 0x677   : > { %v5053_v30 = vmul.f32 0.0078125, %v5045_v33  ;;  %v6147_v35 = vpack.c.bf16 %v6075_v63, %v6067_v17  ;;  %v12840_v19 = vmul.f32 %v12789_v48, %v12789_v48  ;;  %v12844_v7 = vmul.f32 %v12796_v36, %v12796_v36  ;;  %v14419_v17 = vld [vmem:[#allocation55_spill] sm:$0xff] }
 0x678   : > { %v6066_v26 = vmax.f32 %v5938_v50, 0.0  ;;  %v6074_v47 = vmax.f32 %v5946_v20, 0.0  ;;  %v5438_v51 = vadd.f32 %v5437_v1, %v5212_v42  ;;  %v5955_v2 = vadd.f32 %v12424_v22, %v5786_v32  ;;  %v14420_v33 = vld [vmem:[#allocation95_spill] sm:$0xff] }
 0x679   : > { %6856 = vmatprep.mubr.bf16.mxu1 %v6147_v35  ;;  %v6091_v57 = vmax.f32 %v5963_v23, 0.0  ;;  %v5785_v9 = vmul.f32 %v14343_v16, %v5616_v12  ;;  %v12849_v53 = vsub.f32 %v14418_v15, %v5053_v30  ;;  %v12852_v63 = vsub.f32 %v14419_v17, %v5053_v30  ;;  %v14425_v48 = vld [vmem:[#allocation79_spill] sm:$0xff] }
 0x67a   : > { %v12855_v38 = vsub.f32 %v14420_v33, %v5053_v30  ;;  %v12858_v5 = vsub.f32 %v12367_v13, %v5053_v30  ;;  %v5439_v50 = vadd.f32 %v5438_v51, %v5220_v46  ;;  %v12861_v20 = vsub.f32 %v12382_v58, %v5053_v30 }
 0x67b   : > { %v12864_v22 = vsub.f32 %v12394_v60, %v5053_v30  ;;  %v12867_v16 = vsub.f32 %v12433_v21, %v5053_v30  ;;  %v12870_v12 = vsub.f32 %v12469_v43, %v5053_v30  ;;  %v12873_v32 = vsub.f32 %v12496_v45, %v5053_v30 }
 0x67c   : > { %v12876_v23 = vsub.f32 %v12538_v62, %v5053_v30  ;;  %v12879_v13 = vsub.f32 %v12550_v6, %v5053_v30  ;;  %v5440_v58 = vadd.f32 %v5439_v50, %v5228_v3  ;;  %v12882_v1 = vsub.f32 %v12582_v41, %v5053_v30 }
 0x67d   : > { %v12885_v60 = vsub.f32 %v12596_v10, %v5053_v30  ;;  %v12888_v21 = vsub.f32 %v12638_v40, %v5053_v30  ;;  %v12891_v43 = vsub.f32 %v12657_v55, %v5053_v30  ;;  %v12894_v45 = vsub.f32 %v12690_v49, %v5053_v30 }
 0x67e   : > { %14421 = vst [vmem:[#allocation13_spill] sm:$0xff] %v12879_v13  ;;  %14422 = vst [vmem:[#allocation75_spill] sm:$0xff] %v12882_v1  ;;  %v5189_v62 = vmul.f32 %v12849_v53, %v12849_v53  ;;  %v5197_v6 = vmul.f32 %v12852_v63, %v12852_v63  ;;  %v5441_v41 = vadd.f32 %v5440_v58, %v5236_v44  ;;  %v6083_v33 = vmax.f32 %v5955_v2, 0.0  ;;  %v14424_v58 = vld [vmem:[#allocation58_spill] sm:$0xff] }
 0x67f   : > { %14423 = vst [vmem:[#allocation83_spill] sm:$0xff] %v12885_v60  ;;  %v5205_v10 = vmul.f32 %v12855_v38, %v12855_v38  ;;  %v5213_v40 = vmul.f32 %v12858_v5, %v12858_v5  ;;  %v5221_v55 = vmul.f32 %v12861_v20, %v12861_v20  ;;  %v5229_v49 = vmul.f32 %v12864_v22, %v12864_v22 }
 0x680   : > { %v5237_v30 = vmul.f32 %v12867_v16, %v12867_v16  ;;  %v5245_v11 = vmul.f32 %v12870_v12, %v12870_v12  ;;  %v12914_v42 = vmul.f32 %v12873_v32, %v12873_v32  ;;  %v5442_v46 = vadd.f32 %v5441_v41, %v5244_v39 }
 0x681   : > { %v12918_v3 = vmul.f32 %v12876_v23, %v12876_v23  ;;  %v12922_v44 = vmul.f32 %v12879_v13, %v12879_v13  ;;  %v12926_v35 = vmul.f32 %v12882_v1, %v12882_v1  ;;  %v12930_v51 = vmul.f32 %v12885_v60, %v12885_v60 }
 0x682   : > { %v5457_v15 = vadd.f32 %v5197_v6, %v5189_v62  ;;  %v6146_v17 = vpack.c.bf16 %v6074_v47, %v6066_v26  ;;  %v5443_v39 = vadd.f32 %v5442_v46, %v5252_v52  ;;  %v5954_v50 = vadd.f32 %v14345_v14, %v5785_v9  ;;  %v14427_v62 = vld [vmem:[#allocation47_spill] sm:$0xff]  ;;  %v14429_v6 = vld [vmem:[#allocation32_spill] sm:$0xff] }
 0x683   : > { %v5507_v41 = vmul.f32 %v12714_v24, %v14424_v58  ;;  %v5515_v36 = vmul.f32 %v12714_v24, %v14425_v48  ;;  %v6155_v1 = vpack.c.bf16 %v6091_v57, %v6083_v33  ;;  %v14426_v13 = vsub.s32 5, %v14384_v31  ;;  %v14428_v48 = vld [vmem:[#allocation28_spill] sm:$0xff] }
 0x684   : > { %v5458_v34 = vadd.f32 %v5457_v15, %v5205_v10  ;;  %6857 = vmatmul.mubr.bf16.gmra.mxu1 %v6146_v17  ;;  %v5506_v26 = vmul.f32 %v12640_v18, %v14427_v62  ;;  %v5444_v52 = vadd.f32 %v5443_v39, %v12814_v28  ;;  %v6082_v14 = vmax.f32 %v5954_v50, 0.0  ;;  %v14430_v46 = vld [vmem:[#allocation48_spill] sm:$0xff] }
 0x685   : > { %v12940_v60 = vrot.slane %v12420_v0, %v14426_v13  ;;  %v5676_v47 = vmul.f32 %v12739_v37, %v5507_v41  ;;  %v5684_v2 = vmul.f32 %v12739_v37, %v5515_v36  ;;  %6864 = vmatprep.mubr.bf16.mxu1 %v6155_v1  ;;  %v5514_v57 = vmul.f32 %v12640_v18, %v14428_v48 }
 0x686   : > { %v5459_v9 = vadd.f32 %v5458_v34, %v5213_v40  ;;  %v5675_v10 = vmul.f32 %v14429_v6, %v5506_v26  ;;  %v5523_v0 = vmul.f32 %v12714_v24, %v14430_v46  ;;  %v5445_v13 = vadd.f32 %v5444_v52, %v12818_v25  ;;  %v14432_v40 = vld [vmem:[#allocation72_spill] sm:$0xff] }
 0x687   : > { %v14431_v15 = vmax.f32 %v12693_v27, 0.0  ;;  %v5845_v17 = vadd.f32 %v12940_v60, %v5676_v47  ;;  %v5853_v33 = vadd.f32 %v12940_v60, %v5684_v2  ;;  %v5683_v34 = vmul.f32 %v14429_v6, %v5514_v57  ;;  %v14433_v2 = vld [vmem:[#allocation66_spill] sm:$0xff] }
 0x688   : > { %v5460_v36 = vadd.f32 %v5459_v9, %v5221_v55  ;;  %v5844_v1 = vadd.f32 %v12730_v59, %v5675_v10  ;;  %v5531_v39 = vmul.f32 %v12714_v24, %v14432_v40  ;;  %v5446_v50 = vadd.f32 %v5445_v13, %v12822_v8  ;;  %v14434_v10 = vld [vmem:[#allocation80_spill] sm:$0xff] }
 0x689   : > { %v6154_v28 = vpack.c.bf16 %v14431_v15, %v6082_v14  ;;  %v5973_v58 = vmax.f32 %v5845_v17, 0.0  ;;  %v5981_v41 = vmax.f32 %v5853_v33, 0.0  ;;  %v5692_v25 = vmul.f32 %v12739_v37, %v5523_v0  ;;  %v14435_v13 = vld [vmem:[#allocation20_spill] sm:$0xff] }
 0x68a   : > { %v5461_v27 = vadd.f32 %v5460_v36, %v5229_v49  ;;  %v5852_v62 = vadd.f32 %v12730_v59, %v5683_v34  ;;  %v5972_v26 = vmax.f32 %v5844_v1, 0.0  ;;  %v5700_v52 = vmul.f32 %v12739_v37, %v5531_v39  ;;  %v14436_v1 = vld [vmem:[#allocation45_spill] sm:$0xff] }
 0x68b   : > { %v5447_v55 = vadd.f32 %v5446_v50, %v12826_v61  ;;  %v6101_v14 = vpack.c.bf16 %v5981_v41, %v5973_v58  ;;  %v5861_v47 = vadd.f32 %v12940_v60, %v5692_v25  ;;  %v5522_v9 = vmul.f32 %v12640_v18, %v14433_v2  ;;  %v14440_v2 = vld [vmem:[#allocation59_spill] sm:$0xff] }
 0x68c   : > { %v5462_v48 = vadd.f32 %v5461_v27, %v5237_v30  ;;  %6865 = vmatmul.mubr.bf16.gmra.mxu1 %v6154_v28  ;;  %v5980_v8 = vmax.f32 %v5852_v62, 0.0  ;;  %v5869_v57 = vadd.f32 %v12940_v60, %v5700_v52  ;;  %v5530_v49 = vmul.f32 %v12640_v18, %v14434_v10 }
 0x68d   : > { %v5448_v46 = vadd.f32 %v5447_v55, %v12836_v54  ;;  %6905 = vmatprep.mubr.bf16.mxu0 %v6101_v14  ;;  %v5989_v0 = vmax.f32 %v5861_v47, 0.0  ;;  %v5691_v61 = vmul.f32 %v14429_v6, %v5522_v9  ;;  %v5539_v15 = vmul.f32 %v12714_v24, %v14435_v13  ;;  %v14439_v55 = vld [vmem:[#allocation76_spill] sm:$0xff]  ;;  %v14442_v13 = vld [vmem:[#allocation98_spill] sm:$0xff] }
 0x68e   : > { %v5463_v17 = vadd.f32 %v5462_v48, %v5245_v11  ;;  %v6100_v33 = vpack.c.bf16 %v5980_v8, %v5972_v26  ;;  %v5997_v36 = vmax.f32 %v5869_v57, 0.0  ;;  %v5699_v30 = vmul.f32 %v14429_v6, %v5530_v49  ;;  %v14437_v11 = vld [vmem:[#allocation44_spill] sm:$0xff]  ;;  %v14438_v26 = vld [vmem:[#allocation53_spill] sm:$0xff] }
 0x68f   : > { %v5449_v28 = vadd.f32 %v5448_v46, %v12840_v19  ;;  %v5860_v34 = vadd.f32 %v12730_v59, %v5691_v61  ;;  %v5547_v40 = vmul.f32 %v12714_v24, %v14436_v1  ;;  %v5708_v54 = vmul.f32 %v12739_v37, %v5539_v15  ;;  %v14441_v8 = vld [vmem:[#allocation97_spill] sm:$0xff]  ;;  %v14445_v1 = vld [vmem:[#allocation54_spill] sm:$0xff] }
 0x690   : > { %v5464_v39 = vadd.f32 %v5463_v17, %v12914_v42  ;;  %6906 = vmatmul.mubr.bf16.vlgmr.msra.gmra.mxu0 %v6100_v33  ;;  %v6109_v50 = vpack.c.bf16 %v5997_v36, %v5989_v0  ;;  %v5868_v58 = vadd.f32 %v12730_v59, %v5699_v30  ;;  %v5538_v41 = vmul.f32 %v12640_v18, %v14437_v11  ;;  %v14443_v33 = vld [vmem:[#allocation18_spill] sm:$0xff] }
 0x691   : > { %v5450_v25 = vadd.f32 %v5449_v28, %v12844_v7  ;;  %v5988_v27 = vmax.f32 %v5860_v34, 0.0  ;;  %v5716_v19 = vmul.f32 %v12739_v37, %v5547_v40  ;;  %v5877_v62 = vadd.f32 %v12940_v60, %v5708_v54  ;;  %7922 = vmatpush3.bf16.msra.mxu0 %v14438_v26  ;;  %v14444_v34 = vld [vmem:[#allocation31_spill] sm:$0xff] }
 0x692   : > { %v5465_v52 = vadd.f32 %v5464_v39, %v12918_v3  ;;  %6913 = vmatprep.mubr.bf16.mxu0 %v6109_v50  ;;  %v5996_v42 = vmax.f32 %v5868_v58, 0.0  ;;  %v5546_v14 = vmul.f32 %v12640_v18, %v14439_v55  ;;  %v5707_v47 = vmul.f32 %v14429_v6, %v5538_v41  ;;  %7923 = vmatprep.subr.bf16.mxu0 %v14440_v2  ;;  %v14446_v41 = vld [vmem:[#allocation22_spill] sm:$0xff]  ;;  %v14447_v26 = vld [vmem:[#allocation99_spill] sm:$0xff]  ;;  %v14449_v2 = vld [vmem:[#allocation56_spill] sm:$0xff] }
 0x693   : > { %v5451_v9 = vrot.slane %v5450_v25, 4  ;;  %v5885_v7 = vadd.f32 %v12940_v60, %v5716_v19  ;;  %v6005_v48 = vmax.f32 %v5877_v62, 0.0  ;;  %v5555_v57 = vmul.f32 %v12714_v24, %v14441_v8 }
 0x694   : > { %v5293_v10 = vmul.f32 %v12888_v21, %v12888_v21  ;;  %v5466_v3 = vadd.f32 %v5465_v52, %v12922_v44  ;;  %v5715_v49 = vmul.f32 %v14429_v6, %v5546_v14  ;;  %v5876_v46 = vadd.f32 %v12730_v59, %v5707_v47 }
 0x695   : > { %v5452_v0 = vadd.f32 %v5451_v9, %v5450_v25  ;;  %v6013_v61 = vmax.f32 %v5885_v7, 0.0  ;;  %v5563_v15 = vmul.f32 %v12714_v24, %v14442_v13  ;;  %v5724_v17 = vmul.f32 %v12739_v37, %v5555_v57  ;;  %7924 = vmatpush3.bf16.msra.mxu0 %v14443_v33  ;;  %v14451_v13 = vld [vmem:[#allocation30_spill] sm:$0xff] }
 0x696   : > { %v5467_v36 = vadd.f32 %v5466_v3, %v12926_v35  ;;  %v6108_v30 = vpack.c.bf16 %v5996_v42, %v5988_v27  ;;  %v5884_v28 = vadd.f32 %v12730_v59, %v5715_v49  ;;  %v5554_v44 = vmul.f32 %v12640_v18, %v14444_v34  ;;  %7925 = vmatprep.subr.bf16.mxu0 %v14445_v1  ;;  %v14448_v42 = vld [vmem:[#allocation24_spill] sm:$0xff] }
 0x697   : > { %v5453_v40 = vrot.slane %v5452_v0, 2  ;;  %v6117_v54 = vpack.c.bf16 %v6013_v61, %v6005_v48  ;;  %v5732_v39 = vmul.f32 %v12739_v37, %v5563_v15  ;;  %v5893_v50 = vadd.f32 %v12940_v60, %v5724_v17  ;;  %v14450_v48 = vld [vmem:[#allocation100_spill] sm:$0xff]  ;;  %v14452_v17 = vld [vmem:[#allocation81_spill] sm:$0xff] }
 0x698   : > { %v5468_v58 = vadd.f32 %v5467_v36, %v12930_v51  ;;  %6914 = vmatmul.mubr.bf16.gmra.mxu0 %v6108_v30  ;;  %v6004_v11 = vmax.f32 %v5876_v46, 0.0  ;;  %v5562_v35 = vmul.f32 %v12640_v18, %v14446_v41  ;;  %v5723_v25 = vmul.f32 %v14429_v6, %v5554_v44  ;;  %v14454_v44 = vld [vmem:[#allocation63_spill] sm:$0xff] }
 0x699   : > { %v5454_v27 = vadd.f32 %v5453_v40, %v5452_v0  ;;  %6921 = vmatprep.mubr.bf16.mxu0 %v6117_v54  ;;  %v6012_v19 = vmax.f32 %v5884_v28, 0.0  ;;  %v5901_v62 = vadd.f32 %v12940_v60, %v5732_v39  ;;  %v5571_v52 = vmul.f32 %v12714_v24, %v14447_v26  ;;  %7926 = vmatpush3.bf16.msra.mxu0 %v14448_v42  ;;  %v14453_v28 = vld [vmem:[#allocation67_spill] sm:$0xff]  ;;  %v14455_v39 = vld [vmem:[#allocation101_spill] sm:$0xff] }
 0x69a   : > { %v5301_v51 = vmul.f32 %v12891_v43, %v12891_v43  ;;  %v5469_v55 = vadd.f32 %v5468_v58, %v5293_v10  ;;  %v6021_v14 = vmax.f32 %v5893_v50, 0.0  ;;  %v5731_v47 = vmul.f32 %v14429_v6, %v5562_v35  ;;  %7927 = vmatprep.subr.bf16.mxu0 %v14449_v2  ;;  %v14459_v2 = vld [vmem:[#allocation17_spill] sm:$0xff] }
 0x69b   : > { %v5455_v9 = vrot.slane %v5454_v27, 1  ;;  %v6029_v7 = vmax.f32 %v5901_v62, 0.0  ;;  %v5579_v8 = vmul.f32 %v12714_v24, %v14450_v48  ;;  %v5740_v57 = vmul.f32 %v12739_v37, %v5571_v52  ;;  %v14457_v62 = vld [vmem:[#allocation87_spill] sm:$0xff] }
 0x69c   : > { %v5309_v3 = vmul.f32 %v12894_v45, %v12894_v45  ;;  %v5470_v49 = vadd.f32 %v5469_v55, %v5301_v51  ;;  %v5892_v46 = vadd.f32 %v12730_v59, %v5723_v25  ;;  %v6116_v10 = vpack.c.bf16 %v6012_v19, %v6004_v11  ;;  %v14458_v55 = vld [vmem:[#allocation27_spill] sm:$0xff] }
 0x69d   : > { %v5456_v0 = vadd.f32 %v5455_v9, %v5454_v27  ;;  %v5748_v61 = vmul.f32 %v12739_v37, %v5579_v8  ;;  %v5570_v15 = vmul.f32 %v12640_v18, %v14451_v13  ;;  %7928 = vmatpush3.bf16.msra.mxu0 %v14452_v17  ;;  %v5900_v36 = vadd.f32 %v12730_v59, %v5731_v47  ;;  %v14456_v27 = vld [vmem:[#allocation102_spill] sm:$0xff]  ;;  %v14460_v8 = vld [vmem:[#allocation64_spill] sm:$0xff]  ;;  %v14463_v13 = vld [vmem:[#allocation29_spill] sm:$0xff] }
 0x69e   : > { %v5471_v33 = vadd.f32 %v5470_v49, %v5309_v3  ;;  %v5909_v30 = vadd.f32 %v12940_v60, %v5740_v57  ;;  %v5578_v34 = vmul.f32 %v12640_v18, %v14453_v28  ;;  %7929 = vmatprep.subr.bf16.mxu0 %v14454_v44  ;;  %v6125_v40 = vpack.c.bf16 %v6029_v7, %v6021_v14  ;;  %v14461_v3 = vld [vmem:[#allocation39_spill] sm:$0xff] }
 0x69f   : > { %v5484_v1 = vmul.f32 0.0078125, %v5456_v0  ;;  %v5917_v54 = vadd.f32 %v12940_v60, %v5748_v61  ;;  %v5587_v50 = vmul.f32 %v12714_v24, %v14455_v39  ;;  %v6020_v11 = vmax.f32 %v5892_v46, 0.0  ;;  %v14465_v28 = vld [vmem:[#allocation43_spill] sm:$0xff] }
 0x6a0   : > { %v5472_v58 = vrot.slane %v5471_v33, 4  ;;  %6922 = vmatmul.mubr.bf16.gmra.mxu0 %v6116_v10  ;;  %v5739_v35 = vmul.f32 %v14429_v6, %v5570_v15  ;;  %v5747_v25 = vmul.f32 %v14429_v6, %v5578_v34  ;;  %v5595_v19 = vmul.f32 %v12714_v24, %v14456_v27  ;;  %v14462_v10 = vld [vmem:[#allocation103_spill] sm:$0xff] }
 0x6a1   : > { %v5492_v41 = vadd.f32 1e-05, %v5484_v1  ;;  %6929 = vmatprep.mubr.bf16.mxu0 %v6125_v40  ;;  %7930 = vmatpush3.bf16.msra.mxu0 %v14457_v62  ;;  %v6028_v52 = vmax.f32 %v5900_v36, 0.0  ;;  %v6037_v42 = vmax.f32 %v5909_v30, 0.0  ;;  %v5756_v51 = vmul.f32 %v12739_v37, %v5587_v50  ;;  %v14464_v36 = vld [vmem:[#allocation57_spill] sm:$0xff]  ;;  %v13078_v39 = vld [vmem:[%s13556_s6 + $0x16] sm:$0xff] }
 0x6a2   : > { %v5473_v26 = vadd.f32 %v5472_v58, %v5471_v33  ;;  %7931 = vmatprep.subr.bf16.mxu0 %v14458_v55  ;;  %v6045_v14 = vmax.f32 %v5917_v54, 0.0  ;;  %v5764_v47 = vmul.f32 %v12739_v37, %v5595_v19  ;;  %v5586_v9 = vmul.f32 %v12640_v18, %v14459_v2 }
 0x6a3   : > { %8312 = vrsqrt.f32 %v5492_v41  ;;  %v5657_v7 = vsub.s32 6, %v14384_v31  ;;  %v5594_v57 = vmul.f32 %v12640_v18, %v14460_v8  ;;  %v5795_v49 = vmul.f32 %v14429_v6, %v14461_v3  ;;  %v14470_v8 = vld [vmem:[#allocation85_spill] sm:$0xff] }
 0x6a4   : > { %v5474_v48 = vrot.slane %v5473_v26, 2  ;;  %v5908_v46 = vadd.f32 %v12730_v59, %v5739_v35  ;;  %v5916_v0 = vadd.f32 %v12730_v59, %v5747_v25  ;;  %v5603_v61 = vmul.f32 %v12714_v24, %v14462_v10 }
 0x6a5   : > { %7932 = vmatpush3.bf16.msra.mxu0 %v14463_v13  ;;  %v6124_v17 = vpack.c.bf16 %v6028_v52, %v6020_v11  ;;  %v5925_v33 = vadd.f32 %v12940_v60, %v5756_v51  ;;  %v5611_v30 = vmul.f32 %v12714_v24, %v14464_v36  ;;  %v5796_v34 = vmul.f32 %v12739_v37, %v12722_v29 }
 0x6a6   : > { %v5475_v15 = vadd.f32 %v5474_v48, %v5473_v26  ;;  %7933 = vmatprep.subr.bf16.mxu0 %v14465_v28  ;;  %v6133_v44 = vpack.c.bf16 %v6045_v14, %v6037_v42  ;;  %v5933_v1 = vadd.f32 %v12940_v60, %v5764_v47  ;;  %v5755_v40 = vmul.f32 %v14429_v6, %v5586_v9  ;;  %v14466_v26 = vld [vmem:[#allocation52_spill] sm:$0xff]  ;;  %v14467_v42 = vld [vmem:[#allocation50_spill] sm:$0xff]  ;;  %v14468_v14 = vld [vmem:[#allocation65_spill] sm:$0xff] }
 0x6a7   : > { %v13073_v54 = vrot.slane %v12669_v56, %v5657_v7  ;;  %v13081_v50 = vrot.slane %v13078_v39, %v5657_v7  ;;  %v5763_v29 = vmul.f32 %v14429_v6, %v5594_v57  ;;  %v5964_v11 = vadd.f32 %v12730_v59, %v5795_v49  ;;  %v14469_v9 = vld [vmem:[#allocation73_spill] sm:$0xff]  ;;  %v7745_v36 = vpop.f32.mrf.mxu0 }
 0x6a8   : > { %v5476_v58 = vrot.slane %v5475_v15, 1  ;;  %6930 = vmatmul.mubr.bf16.gmra.mxu0 %v6124_v17  ;;  %v6036_v41 = vmax.f32 %v5908_v46, 0.0  ;;  %v6044_v35 = vmax.f32 %v5916_v0, 0.0  ;;  %v5772_v25 = vmul.f32 %v12739_v37, %v5603_v61  ;;  %v14471_v0 = vld [vmem:[#allocation33_spill] sm:$0xff] }
 0x6a9   : > { %6937 = vmatprep.mubr.bf16.mxu0 %v6133_v44  ;;  %v6053_v19 = vmax.f32 %v5925_v33, 0.0  ;;  %v5780_v62 = vmul.f32 %v12739_v37, %v5611_v30  ;;  %v5619_v52 = vmul.f32 %v12714_v24, %v14466_v26  ;;  %7934 = vmatpush3.bf16.msra.mxu0 %v14467_v42  ;;  %v6061_v51 = vmax.f32 %v5933_v1, 0.0  ;;  %v14472_v33 = vld [vmem:[#allocation34_spill] sm:$0xff] }
 0x6aa   : > { %v5477_v27 = vadd.f32 %v5476_v58, %v5475_v15  ;;  %v5924_v55 = vadd.f32 %v12730_v59, %v5755_v40  ;;  %v5602_v47 = vmul.f32 %v12640_v18, %v14468_v14  ;;  %v5965_v2 = vadd.f32 %v12940_v60, %v5796_v34  ;;  %7935 = vmatprep.subr.bf16.mxu0 %v14469_v9  ;;  %v7746_v58 = vpop.f32.mrf.mxu0 }
 0x6ab   : > { %v5932_v48 = vadd.f32 %v12730_v59, %v5763_v29  ;;  %v5610_v57 = vmul.f32 %v12640_v18, %v14470_v8  ;;  %v5788_v24 = vmul.f32 %v12739_v37, %v5619_v52  ;;  %v6092_v3 = vmax.f32 %v5964_v11, 0.0 }
 0x6ac   : > { %v5485_v7 = vmul.f32 0.0078125, %v5477_v27  ;;  %v6132_v49 = vpack.c.bf16 %v6044_v35, %v6036_v41  ;;  %v5941_v46 = vadd.f32 %v12940_v60, %v5772_v25  ;;  %v5618_v10 = vmul.f32 %v12640_v18, %v14471_v0  ;;  %v14473_v41 = vld [vmem:[#allocation36_spill] sm:$0xff] }
 0x6ad   : > { %v5949_v13 = vadd.f32 %v12940_v60, %v5780_v62  ;;  %v5957_v15 = vadd.f32 %v12940_v60, %v5788_v24  ;;  %v6093_v17 = vmax.f32 %v5965_v2, 0.0  ;;  %7936 = vmatpush3.bf16.msra.mxu0 %v14472_v33  ;;  %v6141_v30 = vpack.c.bf16 %v6061_v51, %v6053_v19  ;;  %v14474_v19 = vld [vmem:[#allocation61_spill] sm:$0xff] }
 0x6ae   : > { %v5493_v61 = vadd.f32 1e-05, %v5485_v7  ;;  %v6052_v28 = vmax.f32 %v5924_v55, 0.0  ;;  %v5771_v37 = vmul.f32 %v14429_v6, %v5602_v47  ;;  %v5787_v34 = vmul.f32 %v14429_v6, %v5618_v10  ;;  %v14475_v55 = vld [vmem:[#allocation51_spill] sm:$0xff] }
 0x6af   : > { %v6060_v18 = vmax.f32 %v5932_v48, 0.0  ;;  %v5779_v1 = vmul.f32 %v14429_v6, %v5610_v57  ;;  %v6085_v40 = vmax.f32 %v5957_v15, 0.0  ;;  %v6069_v60 = vmax.f32 %v5941_v46, 0.0  ;;  %v7748_v6 = vpop.f32.mrf.mxu0 }
 0x6b0   : > { %v13107_v44 = vpop.eup %8312  ;;  %8314 = vrsqrt.f32 %v5493_v61  ;;  %6938 = vmatmul.mubr.bf16.gmra.mxu0 %v6132_v49  ;;  %v5956_v29 = vadd.f32 %v12730_v59, %v5787_v34  ;;  %v6077_v25 = vmax.f32 %v5949_v13, 0.0  ;;  %v13117_v26 = vadd.f32 %v7746_v58, %v7745_v36 }
 0x6b1   : > { %6945 = vmatprep.mubr.bf16.mxu0 %v6141_v30  ;;  %v5508_v11 = vmul.f32 %v13107_v44, %v12744_v4  ;;  %v5516_v35 = vmul.f32 %v13107_v44, %v14473_v41  ;;  %v6157_v27 = vpack.c.bf16 %v6093_v17, %v6085_v40  ;;  %v5524_v62 = vmul.f32 %v13107_v44, %v14474_v19  ;;  %v7749_v47 = vpop.f32.mrf.mxu0  ;;  %v14476_v17 = vld [vmem:[#allocation21_spill] sm:$0xff] }
 0x6b2   : > { %v6084_v52 = vmax.f32 %v5956_v29, 0.0  ;;  %v5532_v14 = vmul.f32 %v13107_v44, %v14475_v55  ;;  %v5940_v4 = vadd.f32 %v12730_v59, %v5771_v37  ;;  %v5948_v2 = vadd.f32 %v12730_v59, %v5779_v1 }
 0x6b3   : > { %v5677_v42 = vmul.f32 %v13073_v54, %v5508_v11  ;;  %v5685_v51 = vmul.f32 %v13073_v54, %v5516_v35  ;;  %v6140_v8 = vpack.c.bf16 %v6060_v18, %v6052_v28  ;;  %v5693_v57 = vmul.f32 %v13073_v54, %v5524_v62  ;;  %v7751_v59 = vpop.f32.mrf.mxu0 }
 0x6b4   : > { %v13125_v9 = vpack.c.bf16 %v6092_v3, %v6084_v52  ;;  %v13130_v24 = vadd.f32 %v7749_v47, %v7748_v6  ;;  %v6149_v49 = vpack.c.bf16 %v6077_v25, %v6069_v60  ;;  %v5701_v10 = vmul.f32 %v13073_v54, %v5532_v14 }
 0x6b5   : > { %v5846_v7 = vadd.f32 %v13081_v50, %v5677_v42  ;;  %v5854_v48 = vadd.f32 %v13081_v50, %v5685_v51  ;;  %v5661_v61 = vsub.s32 7, %v14384_v31  ;;  %v6068_v3 = vmax.f32 %v5940_v4, 0.0  ;;  %v7752_v30 = vpop.f32.mrf.mxu0  ;;  %v14477_v31 = vld [vmem:[#allocation42_spill] sm:$0xff] }
 0x6b6   : > { %v6076_v13 = vmax.f32 %v5948_v2, 0.0  ;;  %v5540_v33 = vmul.f32 %v13107_v44, %v14476_v17  ;;  %v5862_v36 = vadd.f32 %v13081_v50, %v5693_v57  ;;  %v5870_v28 = vadd.f32 %v13081_v50, %v5701_v10  ;;  %v14478_v17 = vld [vmem:[#allocation23_spill] sm:$0xff] }
 0x6b7   : > { %v5974_v46 = vmax.f32 %v5846_v7, 0.0  ;;  %v5982_v0 = vmax.f32 %v5854_v48, 0.0  ;;  %v13140_v37 = vadd.f32 %v7752_v30, %v7751_v59  ;;  %v13143_v34 = vrot.slane %v12669_v56, %v5661_v61  ;;  %v7754_v1 = vpop.f32.mrf.mxu0 }
 0x6b8   : > { %6946 = vmatmul.mubr.bf16.gmra.mxu0 %v6140_v8  ;;  %v5548_v18 = vmul.f32 %v13107_v44, %v14477_v31  ;;  %v6148_v58 = vpack.c.bf16 %v6076_v13, %v6068_v3  ;;  %v13150_v60 = vrot.slane %v13078_v39, %v5661_v61  ;;  %v5709_v29 = vmul.f32 %v13073_v54, %v5540_v33  ;;  %v14479_v31 = vld [vmem:[#allocation49_spill] sm:$0xff] }
 0x6b9   : > { %6953 = vmatprep.mubr.bf16.mxu0 %v6149_v49  ;;  %v13134_v15 = vpack.c.bf16 %v5982_v0, %v5974_v46  ;;  %v5990_v35 = vmax.f32 %v5862_v36, 0.0  ;;  %v7755_v25 = vpop.f32.mrf.mxu0  ;;  %v5998_v62 = vmax.f32 %v5870_v28, 0.0  ;;  %v5556_v33 = vmul.f32 %v13107_v44, %v14478_v17 }
 0x6ba   : > { %v13185_v13 = vadd.f32 %v7755_v25, %v7754_v1 }
 0x6bb   : > { %v6110_v30 = vpack.c.bf16 %v5998_v62, %v5990_v35 }
 0x6bd   : > { %v13147_v40 = vpop.eup %8314 }
 0x6be   : > { %v5509_v11 = vmul.f32 %v13147_v40, %v12849_v53  ;;  %v5517_v41 = vmul.f32 %v13147_v40, %v12852_v63  ;;  %v5525_v56 = vmul.f32 %v13147_v40, %v12855_v38  ;;  %v5533_v19 = vmul.f32 %v13147_v40, %v12858_v5 }
 0x6bf   : > { %v5541_v39 = vmul.f32 %v13147_v40, %v12861_v20  ;;  %v5549_v6 = vmul.f32 %v13147_v40, %v12864_v22  ;;  %v5717_v38 = vmul.f32 %v13073_v54, %v5548_v18  ;;  %v5557_v20 = vmul.f32 %v13147_v40, %v12867_v16  ;;  %v7757_v22 = vpop.f32.mrf.mxu0 }
 0x6c0   : > { %6954 = vmatmul.mubr.bf16.gmra.mxu0 %v6148_v58  ;;  %v5678_v53 = vmul.f32 %v13143_v34, %v5509_v11  ;;  %v5686_v63 = vmul.f32 %v13143_v34, %v5517_v41  ;;  %v5694_v52 = vmul.f32 %v13143_v34, %v5525_v56  ;;  %v5702_v42 = vmul.f32 %v13143_v34, %v5533_v19 }
 0x6c1   : > { %6961 = vmatprep.mubr.bf16.mxu0 %v6157_v27  ;;  %v5710_v5 = vmul.f32 %v13143_v34, %v5541_v39  ;;  %v5718_v51 = vmul.f32 %v13143_v34, %v5549_v6  ;;  %v5565_v47 = vmul.f32 %v13147_v40, %v12870_v12  ;;  %v5726_v48 = vmul.f32 %v13143_v34, %v5557_v20  ;;  %v7758_v8 = vpop.f32.mrf.mxu0  ;;  %v14480_v20 = vld [vmem:[#allocation74_spill] sm:$0xff] }
 0x6c2   : > { %v5847_v55 = vadd.f32 %v13150_v60, %v5678_v53  ;;  %v5855_v14 = vadd.f32 %v13150_v60, %v5686_v63  ;;  %v5863_v4 = vadd.f32 %v13150_v60, %v5694_v52  ;;  %v5871_v27 = vadd.f32 %v13150_v60, %v5702_v42 }
 0x6c3   : > { %v5879_v2 = vadd.f32 %v13150_v60, %v5710_v5  ;;  %v5887_v7 = vadd.f32 %v13150_v60, %v5718_v51  ;;  %v5734_v46 = vmul.f32 %v13143_v34, %v5565_v47  ;;  %v7760_v59 = vpop.f32.mrf.mxu0  ;;  %v5878_v12 = vadd.f32 %v13081_v50, %v5709_v29 }
 0x6c4   : > { %v5975_v16 = vmax.f32 %v5847_v55, 0.0  ;;  %v5983_v57 = vmax.f32 %v5855_v14, 0.0  ;;  %v5991_v49 = vmax.f32 %v5863_v4, 0.0  ;;  %v5999_v0 = vmax.f32 %v5871_v27, 0.0  ;;  %v14481_v55 = vld [vmem:[#allocation40_spill] sm:$0xff] }
 0x6c5   : > { %v6007_v10 = vmax.f32 %v5879_v2, 0.0  ;;  %v6015_v61 = vmax.f32 %v5887_v7, 0.0  ;;  %v5886_v28 = vadd.f32 %v13081_v50, %v5717_v38  ;;  %v5564_v18 = vmul.f32 %v13107_v44, %v14479_v31  ;;  %v7761_v58 = vpop.f32.mrf.mxu0  ;;  %v14482_v2 = vld [vmem:[#allocation13_spill] sm:$0xff] }
 0x6c6   : > { %v6103_v3 = vpack.c.bf16 %v5983_v57, %v5975_v16  ;;  %v6111_v36 = vpack.c.bf16 %v5999_v0, %v5991_v49  ;;  %v5895_v11 = vadd.f32 %v13150_v60, %v5726_v48  ;;  %v5903_v41 = vadd.f32 %v13150_v60, %v5734_v46  ;;  %v14483_v16 = vld [vmem:[#allocation75_spill] sm:$0xff] }
 0x6c7   : > { %v5573_v1 = vmul.f32 %v13147_v40, %v12873_v32  ;;  %v5581_v29 = vmul.f32 %v13147_v40, %v12876_v23  ;;  %v6119_v56 = vpack.c.bf16 %v6015_v61, %v6007_v10  ;;  %v13199_v35 = vadd.f32 %v7758_v8, %v7757_v22  ;;  %v7763_v19 = vpop.f32.mrf.mxu0 }
 0x6c8   : > { %6962 = vmatmul.mubr.bf16.gmra.mxu0 %v13125_v9  ;;  %7010 = vmatprep.mubr.bf16.mxu1 %v6111_v36  ;;  %v13201_v25 = vadd.f32 %v7761_v58, %v7760_v59  ;;  %v5725_v9 = vmul.f32 %v13073_v54, %v5556_v33  ;;  %v5733_v62 = vmul.f32 %v13073_v54, %v5564_v18  ;;  %v6006_v39 = vmax.f32 %v5878_v12, 0.0  ;;  %v14484_v18 = vld [vmem:[#allocation25_spill] sm:$0xff] }
 0x6c9   : > { %7002 = vmatprep.mubr.bf16.mxu0 %v6103_v3  ;;  %7011 = vmatmul.mubr.bf16.vlgmr.msra.gmra.mxu1 %v6110_v30  ;;  %v6014_v6 = vmax.f32 %v5886_v28, 0.0  ;;  %v5742_v32 = vmul.f32 %v13143_v34, %v5573_v1  ;;  %v5750_v23 = vmul.f32 %v13143_v34, %v5581_v29  ;;  %v7764_v53 = vpop.f32.mrf.mxu0  ;;  %v6023_v63 = vmax.f32 %v5895_v11, 0.0  ;;  %v14485_v29 = vld [vmem:[#allocation15_spill] sm:$0xff] }
 0x6ca   : > { %7018 = vmatprep.mubr.bf16.mxu1 %v6119_v56  ;;  %v6031_v52 = vmax.f32 %v5903_v41, 0.0  ;;  %v13207_v38 = vadd.f32 %v7764_v53, %v7763_v19  ;;  %v5894_v5 = vadd.f32 %v13081_v50, %v5725_v9  ;;  %v5902_v51 = vadd.f32 %v13081_v50, %v5733_v62  ;;  %v14486_v62 = vld [vmem:[#allocation83_spill] sm:$0xff] }
 0x6cb   : > { %v7766_v42 = vpop.f32.mrf.mxu0  ;;  %v5572_v22 = vmul.f32 %v13107_v44, %v14480_v20  ;;  %v5580_v14 = vmul.f32 %v13107_v44, %v14481_v55  ;;  %v6118_v4 = vpack.c.bf16 %v6014_v6, %v6006_v39  ;;  %v5911_v47 = vadd.f32 %v13150_v60, %v5742_v32 }
 0x6cc   : > { %v5919_v27 = vadd.f32 %v13150_v60, %v5750_v23  ;;  %v5589_v7 = vmul.f32 %v13147_v40, %v14482_v2  ;;  %v6127_v8 = vpack.c.bf16 %v6031_v52, %v6023_v63  ;;  %v5597_v57 = vmul.f32 %v13147_v40, %v14483_v16 }
 0x6cd   : > { %v7767_v48 = vpop.f32.mrf.mxu0  ;;  %v6022_v0 = vmax.f32 %v5894_v5, 0.0  ;;  %v5749_v10 = vmul.f32 %v13073_v54, %v5580_v14  ;;  %v6030_v61 = vmax.f32 %v5902_v51, 0.0  ;;  %v6039_v59 = vmax.f32 %v5911_v47, 0.0 }
 0x6ce   : > { %v13222_v49 = vadd.f32 %v7767_v48, %v7766_v42  ;;  %v6047_v3 = vmax.f32 %v5919_v27, 0.0  ;;  %v5758_v12 = vmul.f32 %v13143_v34, %v5589_v7  ;;  %v5766_v33 = vmul.f32 %v13143_v34, %v5597_v57  ;;  %v14488_v27 = vld [vmem:[#allocation37_spill] sm:$0xff] }
 0x6cf   : > { %v7769_v46 = vpop.f32.mrf.mxu0  ;;  %v5918_v31 = vadd.f32 %v13081_v50, %v5749_v10  ;;  %v5588_v58 = vmul.f32 %v13107_v44, %v14484_v18  ;;  %v6126_v11 = vpack.c.bf16 %v6030_v61, %v6022_v0  ;;  %v5596_v56 = vmul.f32 %v13107_v44, %v14485_v29  ;;  %v14490_v18 = vld [vmem:[#allocation26_spill] sm:$0xff] }
 0x6d0   : > { %7003 = vmatmul.mubr.bf16.vlgmr.msra.gmra.mxu0 %v13134_v15  ;;  %v5741_v15 = vmul.f32 %v13073_v54, %v5572_v22  ;;  %v6135_v41 = vpack.c.bf16 %v6047_v3, %v6039_v59  ;;  %v5927_v1 = vadd.f32 %v13150_v60, %v5758_v12  ;;  %v5935_v9 = vadd.f32 %v13150_v60, %v5766_v33 }
 0x6d1   : > { %7019 = vmatmul.mubr.bf16.gmra.mxu1 %v6118_v4  ;;  %v7770_v17 = vpop.f32.mrf.mxu0  ;;  %v5605_v39 = vmul.f32 %v13147_v40, %v14486_v62  ;;  %v5613_v6 = vmul.f32 %v13147_v40, %v12888_v21  ;;  %v6046_v53 = vmax.f32 %v5918_v31, 0.0  ;;  %v5757_v63 = vmul.f32 %v13073_v54, %v5588_v58  ;;  %v14487_v4 = vld [vmem:[#allocation96_spill] sm:$0xff] }
 0x6d2   : > { %7026 = vmatprep.mubr.bf16.mxu1 %v6127_v8  ;;  %v13228_v36 = vadd.f32 %v7770_v17, %v7769_v46  ;;  %v5910_v28 = vadd.f32 %v13081_v50, %v5741_v15  ;;  %v5765_v52 = vmul.f32 %v13073_v54, %v5596_v56  ;;  %v6055_v42 = vmax.f32 %v5927_v1, 0.0  ;;  %v14489_v17 = vld [vmem:[#allocation16_spill] sm:$0xff] }
 0x6d3   : > { %v7772_v30 = vpop.f32.mrf.mxu0  ;;  %v6063_v5 = vmax.f32 %v5935_v9, 0.0  ;;  %v5774_v51 = vmul.f32 %v13143_v34, %v5605_v39  ;;  %v5782_v20 = vmul.f32 %v13143_v34, %v5613_v6  ;;  %v5629_v22 = vmul.f32 %v13147_v40, %v12894_v45 }
 0x6d4   : > { %v6038_v23 = vmax.f32 %v5910_v28, 0.0  ;;  %v5926_v55 = vadd.f32 %v13081_v50, %v5757_v63  ;;  %v5934_v14 = vadd.f32 %v13081_v50, %v5765_v52  ;;  %v5604_v47 = vmul.f32 %v13107_v44, %v14487_v4 }
 0x6d5   : > { %v7773_v19 = vpop.f32.mrf.mxu0  ;;  %v5612_v2 = vmul.f32 %v13107_v44, %v14488_v27  ;;  %v6143_v7 = vpack.c.bf16 %v6063_v5, %v6055_v42  ;;  %v5943_v48 = vadd.f32 %v13150_v60, %v5774_v51  ;;  %v5951_v8 = vadd.f32 %v13150_v60, %v5782_v20 }
 0x6d6   : > { %v13242_v32 = vadd.f32 %v7773_v19, %v7772_v30  ;;  %v6134_v21 = vpack.c.bf16 %v6046_v53, %v6038_v23  ;;  %v5621_v16 = vmul.f32 %v13147_v40, %v12891_v43  ;;  %v6054_v45 = vmax.f32 %v5926_v55, 0.0 }
 0x6d7   : > { %v6062_v57 = vmax.f32 %v5934_v14, 0.0  ;;  %v5773_v0 = vmul.f32 %v13073_v54, %v5604_v47  ;;  %v5781_v15 = vmul.f32 %v13073_v54, %v5612_v2  ;;  %v5798_v10 = vmul.f32 %v13143_v34, %v5629_v22 }
 0x6d8   : > { %v6071_v61 = vmax.f32 %v5943_v48, 0.0  ;;  %v6079_v59 = vmax.f32 %v5951_v8, 0.0  ;;  %v5790_v3 = vmul.f32 %v13143_v34, %v5621_v16  ;;  %v5628_v33 = vmul.f32 %v13107_v44, %v14489_v17 }
 0x6d9   : > { %7027 = vmatmul.mubr.bf16.gmra.mxu1 %v6126_v11  ;;  %v6142_v40 = vpack.c.bf16 %v6062_v57, %v6054_v45  ;;  %v5942_v30 = vadd.f32 %v13081_v50, %v5773_v0  ;;  %v5950_v28 = vadd.f32 %v13081_v50, %v5781_v15  ;;  %v5620_v58 = vmul.f32 %v13107_v44, %v14490_v18 }
 0x6da   : > { %7034 = vmatprep.mubr.bf16.mxu1 %v6135_v41  ;;  %v6151_v11 = vpack.c.bf16 %v6079_v59, %v6071_v61  ;;  %v5959_v41 = vadd.f32 %v13150_v60, %v5790_v3  ;;  %v5967_v34 = vadd.f32 %v13150_v60, %v5798_v10  ;;  %v5797_v56 = vmul.f32 %v13073_v54, %v5628_v33 }
 0x6db   : > { %v6070_v19 = vmax.f32 %v5942_v30, 0.0  ;;  %v6078_v9 = vmax.f32 %v5950_v28, 0.0  ;;  %v5789_v62 = vmul.f32 %v13073_v54, %v5620_v58 }
 0x6dc   : > { %v6087_v39 = vmax.f32 %v5959_v41, 0.0  ;;  %v6095_v6 = vmax.f32 %v5967_v34, 0.0  ;;  %v5966_v44 = vadd.f32 %v13081_v50, %v5797_v56 }
 0x6dd   : > { %v6150_v23 = vpack.c.bf16 %v6078_v9, %v6070_v19  ;;  %v5958_v53 = vadd.f32 %v13081_v50, %v5789_v62  ;;  %v13289_v50 = vld [vmem:[%s13556_s6 + $0x1e] ss:$0 sm:$0xff] }
 0x6de   : > { %v7775_v46 = vpop.f32.mrf.mxu0  ;;  %v6159_v63 = vpack.c.bf16 %v6095_v6, %v6087_v39  ;;  %v6094_v60 = vmax.f32 %v5966_v44, 0.0  ;;  %v6714_v2 = vadd.f32 %v13117_v26, %v13289_v50  ;;  %v6717_v45 = vadd.f32 %v13130_v24, %v13289_v50 }
 0x6df   : > { %v6086_v52 = vmax.f32 %v5958_v53, 0.0 }
 0x6e0   : > { %v7776_v12 = vpop.f32.mrf.mxu0 }
 0x6e1   : > { %7035 = vmatmul.mubr.bf16.gmra.mxu1 %v6134_v21  ;;  %v13266_v43 = vadd.f32 %v7776_v12, %v7775_v46  ;;  %v6158_v5 = vpack.c.bf16 %v6094_v60, %v6086_v52 }
 0x6e2   : > { %7042 = vmatprep.mubr.bf16.mxu1 %v6143_v7  ;;  %v7778_v31 = vpop.f32.mrf.mxu0 }
 0x6e4   : > { %v7779_v1 = vpop.f32.mrf.mxu0 }
 0x6e5   : > { %v13274_v29 = vadd.f32 %v7779_v1, %v7778_v31 }
 0x6e9   : > { %7043 = vmatmul.mubr.bf16.gmra.mxu1 %v6142_v40 }
 0x6ea   : > { %7050 = vmatprep.mubr.bf16.mxu1 %v6151_v11 }
 0x6f1   : > { %7051 = vmatmul.mubr.bf16.gmra.mxu1 %v6150_v23 }
 0x6f2   : > { %7058 = vmatprep.mubr.bf16.mxu1 %v6159_v63 }
 0x6f4   : > { %v7781_v42 = vpop.f32.mrf.mxu0 }
 0x6f6   : > { %v7782_v51 = vpop.f32.mrf.mxu0 }
 0x6f7   : > { %v13280_v20 = vadd.f32 %v7782_v51, %v7781_v42 }
 0x6f8   : > { %v7784_v22 = vpop.f32.mrf.mxu0 }
 0x6f9   : > { %7059 = vmatmul.mubr.bf16.gmra.mxu1 %v6158_v5  ;;  %14491 = vst [vmem:[#allocation14_spill] sm:$0xff] %v13280_v20 }
 0x6fa   : > { %v7785_v54 = vpop.f32.mrf.mxu0 }
 0x6fb   : > { %v13282_v21 = vadd.f32 %v7785_v54, %v7784_v22 }
 0x6fd   : > { %14492 = vst [vmem:[#allocation41_spill] sm:$0xff] %v13282_v21  ;;  %v7787_v55 = vpop.f32.mrf.mxu0 }
 0x6ff   : > { %v7788_v14 = vpop.f32.mrf.mxu0 }
 0x700   : > { %v13284_v4 = vadd.f32 %v7788_v14, %v7787_v55 }
 0x701   : > { %v13315_v30 = vpop.f32.mrf.mxu0 }
 0x702   : > { %14493 = vst [vmem:[#allocation84_spill] sm:$0xff] %v13284_v4  ;;  %v7809_v47 = vpop.f32.mrf.mxu1  ;;  %14494 = vst [vmem:[#allocation71_spill] sm:$0xff] %v13315_v30 }
 0x703   : > { %v13319_v31 = vpop.f32.mrf.mxu0 }
 0x704   : > { %v7810_v27 = vpop.f32.mrf.mxu1  ;;  %14495 = vst [vmem:[#allocation88_spill] sm:$0xff] %v13319_v31 }
 0x705   : > { %v7811_v7 = vadd.f32 %v7810_v27, %v7809_v47 }
 0x706   : > { %v7812_v48 = vpop.f32.mrf.mxu1 }
 0x707   : > { %v6811_v8 = vadd.f32 %v7811_v7, %v6714_v2 }
 0x708   : > { %v7813_v16 = vpop.f32.mrf.mxu1 }
 0x709   : > { %v7814_v57 = vadd.f32 %v7813_v16, %v7812_v48 }
 0x70b   : > { %v6814_v46 = vadd.f32 %v7814_v57, %v6717_v45 }
 0x70d   : > { %v7815_v0 = vpop.f32.mrf.mxu1 }
 0x70f   : > { %v7816_v15 = vpop.f32.mrf.mxu1 }
 0x711   : > { %v13295_v10 = vpop.f32.mrf.mxu1 }
 0x713   : > { %v13297_v61 = vpop.f32.mrf.mxu1 }
 0x715   : > { %v13299_v59 = vpop.f32.mrf.mxu1 }
 0x717   : > { %v13301_v3 = vpop.f32.mrf.mxu1 }
 0x719   : > { %v13303_v26 = vpop.f32.mrf.mxu1 }
 0x71b   : > { %v13305_v12 = vpop.f32.mrf.mxu1 }
 0x71d   : > { %v13307_v17 = vpop.f32.mrf.mxu1 }
 0x71f   : > { %v13309_v33 = vpop.f32.mrf.mxu1 }
 0x721   : > { %v13311_v24 = vpop.f32.mrf.mxu1 }
 0x723   : > { %v13313_v40 = vpop.f32.mrf.mxu1 }
 0x725   : > { %v13317_v28 = vpop.f32.mrf.mxu1 }
 0x727   : > { %v13321_v18 = vpop.f32.mrf.mxu1 }
 0x729   : > { %v13323_v34 = vpop.f32.mrf.mxu1 }
 0x72b   : > { %v13327_v62 = vpop.f32.mrf.mxu1 }
 0x72e   : > { %v13331_v23 = vpop.f32.mrf.mxu1 }
 0x730   : > { %v13333_v60 = vpop.f32.mrf.mxu1 }
 0x732   : > { %v13335_v5 = vpop.f32.mrf.mxu1 }
 0x734   : > { %v13341_v54 = vpop.f32.mrf.mxu1 }
 0x744   : > { %v13347_v47 = vpop.f32.mrf.mxu1 }
 0x745   : > { %14496 = vst [vmem:[#allocation89_spill] sm:$0xff] %v13347_v47 }
 0x746   : > { %v13353_v7 = vpop.f32.mrf.mxu1 }
 0x747   : > { %14497 = vst [vmem:[#allocation69_spill] sm:$0xff] %v13353_v7  ;;  %v6722_v7 = vadd.f32 %v13140_v37, %v13289_v50  ;;  %v7823_v37 = vadd.f32 %v13301_v3, %v13299_v59  ;;  %v7826_v3 = vadd.f32 %v13305_v12, %v13303_v26 }
 0x748   : > { %v13359_v16 = vpop.f32.mrf.mxu1 }
 0x749   : > { %14498 = vst [vmem:[#allocation82_spill] sm:$0xff] %v13359_v16  ;;  %v7817_v16 = vadd.f32 %v7816_v15, %v7815_v0  ;;  %v6725_v0 = vadd.f32 %v13185_v13, %v13289_v50 }
 0x750   : > { %v7873_v58 = vpop.f32.mrf.mxu0 }
 0x752   : > { %v7874_v11 = vpop.f32.mrf.mxu0 }
 0x753   : > { %v7875_v41 = vadd.f32 %v7874_v11, %v7873_v58 }
 0x754   : > { %v7876_v1 = vpop.f32.mrf.mxu0 }
 0x755   : > { %v13325_v56 = vadd.f32 %v7875_v41, %v6811_v8 }
 0x756   : > { %v7877_v19 = vpop.f32.mrf.mxu0 }
 0x757   : > { %v7878_v9 = vadd.f32 %v7877_v19, %v7876_v1 }
 0x758   : > { %v7879_v39 = vpop.f32.mrf.mxu0 }
 0x759   : > { %v13329_v6 = vadd.f32 %v7878_v9, %v6814_v46  ;;  %v13365_v46 = vpop.f32.mrf.mxu1 }
 0x75a   : > { %v7880_v44 = vpop.f32.mrf.mxu0  ;;  %14499 = vst [vmem:[#allocation38_spill] sm:$0xff] %v13365_v46 }
 0x75b   : > { %v13371_v41 = vpop.f32.mrf.mxu1  ;;  %v7881_v47 = vadd.f32 %v7880_v44, %v7879_v39 }
 0x75c   : > { %v7882_v53 = vpop.f32.mrf.mxu0  ;;  %14500 = vst [vmem:[#allocation77_spill] sm:$0xff] %v13371_v41 }
 0x75d   : > { %v13377_v9 = vpop.f32.mrf.mxu1 }
 0x75e   : > { %v7883_v63 = vpop.f32.mrf.mxu0  ;;  %14503 = vst [vmem:[#allocation91_spill] sm:$0xff] %v13377_v9 }
 0x75f   : > { %v13383_v4 = vpop.f32.mrf.mxu1 }
 0x760   : > { %v7885_v52 = vpop.f32.mrf.mxu0  ;;  %14506 = vst [vmem:[#allocation19_spill] sm:$0xff] %v13383_v4  ;;  %v7820_v4 = vadd.f32 %v13297_v61, %v13295_v10  ;;  %v6730_v10 = vadd.f32 %v13199_v35, %v13289_v50 }
 0x761   : > { %v13389_v20 = vpop.f32.mrf.mxu1 }
 0x762   : > { %v7886_v42 = vpop.f32.mrf.mxu0  ;;  %14509 = vst [vmem:[#allocation35_spill] sm:$0xff] %v13389_v20  ;;  %v7884_v20 = vadd.f32 %v7883_v63, %v7882_v53 }
 0x763   : > { %v7887_v61 = vadd.f32 %v7886_v42, %v7885_v52 }
 0x764   : > { %v13337_v51 = vpop.f32.mrf.mxu0 }
 0x766   : > { %v13339_v22 = vpop.f32.mrf.mxu0 }
 0x768   : > { %v13343_v55 = vpop.f32.mrf.mxu0 }
 0x76a   : > { %v13345_v14 = vpop.f32.mrf.mxu0 }
 0x76c   : > { %v13349_v27 = vpop.f32.mrf.mxu0 }
 0x76e   : > { %v13351_v2 = vpop.f32.mrf.mxu0 }
 0x770   : > { %v13355_v48 = vpop.f32.mrf.mxu0 }
 0x772   : > { %v13357_v8 = vpop.f32.mrf.mxu0 }
 0x774   : > { %v13361_v45 = vpop.f32.mrf.mxu0 }
 0x776   : > { %v13363_v57 = vpop.f32.mrf.mxu0 }
 0x778   : > { %v13367_v58 = vpop.f32.mrf.mxu0 }
 0x77a   : > { %v13369_v11 = vpop.f32.mrf.mxu0 }
 0x77c   : > { %v13373_v1 = vpop.f32.mrf.mxu0 }
 0x77d   : > { %14501 = vst [vmem:[#allocation12_spill] sm:$0xff] %v13373_v1 }
 0x77e   : > { %v13375_v19 = vpop.f32.mrf.mxu0 }
 0x77f   : > { %14502 = vst [vmem:[#allocation90_spill] sm:$0xff] %v13375_v19  ;;  %v6819_v19 = vadd.f32 %v7817_v16, %v6722_v7 }
 0x780   : > { %v13379_v31 = vpop.f32.mrf.mxu0 }
 0x781   : > { %14504 = vst [vmem:[#allocation68_spill] sm:$0xff] %v13379_v31  ;;  %v6916_v15 = vadd.f32 %v7881_v47, %v6819_v19  ;;  %v6827_v47 = vadd.f32 %v7823_v37, %v6730_v10 }
 0x782   : > { %v13381_v30 = vpop.f32.mrf.mxu0 }
 0x783   : > { %14505 = vst [vmem:[#allocation78_spill] sm:$0xff] %v13381_v30 }
 0x784   : > { %v13385_v21 = vpop.f32.mrf.mxu0 }
 0x785   : > { %14507 = vst [vmem:[#allocation92_spill] sm:$0xff] %v13385_v21 }
 0x786   : > { %v13387_v46 = vpop.f32.mrf.mxu0 }
 0x787   : > { %14508 = vst [vmem:[#allocation93_spill] sm:$0xff] %v13387_v46 }
 0x788   : > { %v13391_v41 = vpop.f32.mrf.mxu0 }
 0x789   : > { %14510 = vst [vmem:[#allocation60_spill] sm:$0xff] %v13391_v41  ;;  %v7943_v31 = vpop.f32.mrf.mxu1 }
 0x78a   : > { %v13395_v9 = vpop.f32.mrf.mxu0 }
 0x78b   : > { %14511 = vst [vmem:[#allocation70_spill] sm:$0xff] %v13395_v9  ;;  %v7944_v21 = vpop.f32.mrf.mxu1  ;;  %v6822_v9 = vadd.f32 %v7820_v4, %v6725_v0  ;;  %v6924_v4 = vadd.f32 %v7887_v61, %v6827_v47  ;;  %v6741_v47 = vadd.f32 %v13222_v49, %v13289_v50  ;;  %v6746_v49 = vadd.f32 %v13228_v36, %v13289_v50 }
 0x78c   : > { %v13399_v30 = vpop.f32.mrf.mxu0  ;;  %v7945_v41 = vadd.f32 %v7944_v21, %v7943_v31  ;;  %v6749_v36 = vadd.f32 %v13242_v32, %v13289_v50 }
 0x78d   : > { %14512 = vst [vmem:[#allocation62_spill] sm:$0xff] %v13399_v30  ;;  %v7946_v44 = vpop.f32.mrf.mxu1  ;;  %v6919_v46 = vadd.f32 %v7884_v20, %v6822_v9  ;;  %v6733_v20 = vadd.f32 %v13201_v25, %v13289_v50 }
 0x78e   : > { %v13405_v39 = vpop.f32.mrf.mxu0  ;;  %v7013_v7 = vadd.f32 %v7945_v41, %v6916_v15 }
 0x78f   : > { %v7947_v30 = vpop.f32.mrf.mxu1  ;;  %v6830_v37 = vadd.f32 %v7826_v3, %v6733_v20 }
 0x790   : > { %v7937_v16 = vpop.f32.mrf.mxu0  ;;  %v7069_v1 = vsub.f32 0.0, %v7013_v7  ;;  %v7948_v13 = vadd.f32 %v7947_v30, %v7946_v44  ;;  %v7829_v30 = vadd.f32 %v13309_v33, %v13307_v17  ;;  %v7893_v44 = vadd.f32 %v13345_v14, %v13343_v55 }
 0x791   : > { %v7949_v21 = vpop.f32.mrf.mxu1 }
 0x792   : > { %v7938_v53 = vpop.f32.mrf.mxu0  ;;  %v7087_v63 = vmul.f32 1.442695, %v7069_v1  ;;  %v7016_v59 = vadd.f32 %v7948_v13, %v6919_v46  ;;  %v7890_v46 = vadd.f32 %v13339_v22, %v13337_v51 }
 0x793   : > { %v7939_v31 = vadd.f32 %v7938_v53, %v7937_v16  ;;  %v7950_v19 = vpop.f32.mrf.mxu1  ;;  %v7832_v16 = vadd.f32 %v13313_v40, %v13311_v24  ;;  %v7835_v24 = vadd.f32 %v13321_v18, %v13317_v28 }
 0x794   : > { %v7940_v41 = vpop.f32.mrf.mxu0  ;;  %8316 = vpow2.f32 %v7087_v63  ;;  %v7070_v52 = vsub.f32 0.0, %v7016_v59  ;;  %v7951_v42 = vadd.f32 %v7950_v19, %v7949_v21  ;;  %v6927_v22 = vadd.f32 %v7890_v46, %v6830_v37 }
 0x795   : > { %v7005_v35 = vadd.f32 %v7939_v31, %v13325_v56  ;;  %v7952_v9 = vpop.f32.mrf.mxu1  ;;  %v6738_v56 = vadd.f32 %v13207_v38, %v13289_v50  ;;  %v6838_v3 = vadd.f32 %v7832_v16, %v6741_v47  ;;  %v6843_v28 = vadd.f32 %v7835_v24, %v6746_v49  ;;  %v14517_v24 = vld [vmem:[#allocation14_spill] sm:$0xff]  ;;  %v14518_v49 = vld [vmem:[#allocation68_spill] sm:$0xff] }
 0x796   : > { %v7941_v1 = vpop.f32.mrf.mxu0  ;;  %v7089_v0 = vmul.f32 1.442695, %v7070_v52  ;;  %v7021_v15 = vadd.f32 %v7951_v42, %v6924_v4  ;;  %v7838_v42 = vadd.f32 %v13327_v62, %v13323_v34  ;;  %v7841_v34 = vadd.f32 %v13333_v60, %v13331_v23 }
 0x797   : > { %v7067_v26 = vsub.f32 0.0, %v7005_v35  ;;  %v7942_v12 = vadd.f32 %v7941_v1, %v7940_v41  ;;  %v7953_v25 = vpop.f32.mrf.mxu1  ;;  %v6835_v51 = vadd.f32 %v7829_v30, %v6738_v56  ;;  %v7902_v1 = vadd.f32 %v13363_v57, %v13361_v45 }
 0x798   : > { %8318 = vpow2.f32 %v7089_v0  ;;  %v7071_v33 = vsub.f32 0.0, %v7021_v15  ;;  %v7954_v10 = vadd.f32 %v7953_v25, %v7952_v9  ;;  %v6846_v0 = vadd.f32 %v7838_v42, %v6749_v36 }
 0x799   : > { %v7083_v7 = vmul.f32 1.442695, %v7067_v26  ;;  %v7008_v17 = vadd.f32 %v7942_v12, %v13329_v6  ;;  %v7955_v61 = vpop.f32.mrf.mxu1  ;;  %v6932_v55 = vadd.f32 %v7893_v44, %v6835_v51  ;;  %v7896_v6 = vadd.f32 %v13351_v2, %v13349_v27 }
 0x79a   : > { %v7091_v38 = vmul.f32 1.442695, %v7071_v33  ;;  %v7024_v14 = vadd.f32 %v7954_v10, %v6927_v22  ;;  %v7899_v27 = vadd.f32 %v13357_v8, %v13355_v48  ;;  %v6754_v45 = vadd.f32 %v13266_v43, %v13289_v50 }
 0x79b   : > { %8320 = vpow2.f32 %v7083_v7  ;;  %v7068_v13 = vsub.f32 0.0, %v7008_v17  ;;  %v7956_v53 = vpop.f32.mrf.mxu1  ;;  %v6935_v19 = vadd.f32 %v7896_v6, %v6838_v3  ;;  %v6943_v57 = vadd.f32 %v7902_v1, %v6846_v0  ;;  %v14516_v6 = vld [vmem:[#allocation69_spill] sm:$0xff] }
 0x79c   : > { %8322 = vpow2.f32 %v7091_v38  ;;  %v7957_v31 = vadd.f32 %v7956_v53, %v7955_v61  ;;  %v7072_v63 = vsub.f32 0.0, %v7024_v14  ;;  %v6940_v48 = vadd.f32 %v7899_v27, %v6843_v28  ;;  %v14514_v38 = vld [vmem:[#allocation90_spill] sm:$0xff]  ;;  %v14515_v53 = vld [vmem:[#allocation89_spill] sm:$0xff] }
 0x79d   : > { %v7085_v21 = vmul.f32 1.442695, %v7068_v13  ;;  %v7958_v59 = vpop.f32.mrf.mxu1  ;;  %v7905_v44 = vadd.f32 %v13369_v11, %v13367_v58  ;;  %v6851_v60 = vadd.f32 %v7841_v34, %v6754_v45  ;;  %v7844_v51 = vadd.f32 %v13341_v54, %v13335_v5  ;;  %v14513_v13 = vld [vmem:[#allocation12_spill] sm:$0xff]  ;;  %v14525_v45 = vld [vmem:[#allocation77_spill] sm:$0xff] }
 0x79e   : > { %v7029_v40 = vadd.f32 %v7957_v31, %v6932_v55  ;;  %v7093_v4 = vmul.f32 1.442695, %v7072_v63  ;;  %v6757_v58 = vadd.f32 %v13274_v29, %v13289_v50  ;;  %v7908_v47 = vadd.f32 %v14514_v38, %v14513_v13  ;;  %v14523_v34 = vld [vmem:[#allocation92_spill] sm:$0xff] }
 0x79f   : > { %8324 = vpow2.f32 %v7085_v21  ;;  %v7959_v41 = vpop.f32.mrf.mxu1  ;;  %v6948_v11 = vadd.f32 %v7905_v44, %v6851_v60  ;;  %v7847_v21 = vadd.f32 %v14516_v6, %v14515_v53 }
 0x7a0   : > { %v7073_v2 = vsub.f32 0.0, %v7029_v40  ;;  %v7960_v35 = vadd.f32 %v7959_v41, %v7958_v59  ;;  %8326 = vpow2.f32 %v7093_v4  ;;  %v6854_v59 = vadd.f32 %v7844_v51, %v6757_v58  ;;  %v14519_v4 = vld [vmem:[#allocation78_spill] sm:$0xff]  ;;  %v14527_v51 = vld [vmem:[#allocation84_spill] sm:$0xff] }
 0x7a1   : > { %v8317_v52 = vpop.eup %8316  ;;  %v7961_v20 = vpop.f32.mrf.mxu1  ;;  %v6762_v40 = vadd.f32 %v14517_v24, %v13289_v50  ;;  %v7911_v41 = vadd.f32 %v14519_v4, %v14518_v49  ;;  %v14531_v58 = vld [vmem:[#allocation70_spill] sm:$0xff] }
 0x7a2   : > { %v7117_v18 = vadd.f32 1.0, %v8317_v52  ;;  %v7095_v30 = vmul.f32 1.442695, %v7073_v2  ;;  %v7032_v46 = vadd.f32 %v7960_v35, %v6935_v19  ;;  %v6951_v2 = vadd.f32 %v7908_v47, %v6854_v59 }
 0x7a3   : > { %v7962_v9 = vpop.f32.mrf.mxu1 }
 0x7a4   : > { %8328 = vrcp.f32 %v7117_v18  ;;  %v7074_v8 = vsub.f32 0.0, %v7032_v46  ;;  %v7963_v26 = vadd.f32 %v7962_v9, %v7961_v20  ;;  %v6859_v20 = vadd.f32 %v7847_v21, %v6762_v40  ;;  %v14521_v46 = vld [vmem:[#allocation38_spill] sm:$0xff]  ;;  %v14532_v21 = vld [vmem:[#allocation19_spill] sm:$0xff] }
 0x7a5   : > { %v8319_v12 = vpop.eup %8318  ;;  %8330 = vpow2.f32 %v7095_v30  ;;  %v7964_v62 = vpop.f32.mrf.mxu1  ;;  %v14520_v30 = vld [vmem:[#allocation82_spill] sm:$0xff] }
 0x7a6   : > { %v7118_v15 = vadd.f32 1.0, %v8319_v12  ;;  %v7097_v56 = vmul.f32 1.442695, %v7074_v8  ;;  %v7037_v37 = vadd.f32 %v7963_v26, %v6940_v48  ;;  %v7850_v36 = vadd.f32 %v14521_v46, %v14520_v30  ;;  %v14522_v48 = vld [vmem:[#allocation41_spill] sm:$0xff] }
 0x7a7   : > { %v7965_v25 = vpop.f32.mrf.mxu1  ;;  %v6765_v8 = vadd.f32 %v14522_v48, %v13289_v50  ;;  %v6956_v26 = vadd.f32 %v7911_v41, %v6859_v20  ;;  %v14534_v41 = vld [vmem:[#allocation62_spill] sm:$0xff] }
 0x7a8   : > { %v8321_v32 = vpop.eup %8320  ;;  %8332 = vrcp.f32 %v7118_v15  ;;  %v7075_v17 = vsub.f32 0.0, %v7037_v37  ;;  %v7966_v33 = vadd.f32 %v7965_v25, %v7964_v62  ;;  %v14524_v62 = vld [vmem:[#allocation93_spill] sm:$0xff] }
 0x7a9   : > { %v7115_v7 = vadd.f32 1.0, %v8321_v32  ;;  %v8323_v23 = vpop.eup %8322  ;;  %8334 = vpow2.f32 %v7097_v56  ;;  %v7967_v22 = vpop.f32.mrf.mxu1  ;;  %v7914_v15 = vadd.f32 %v14524_v62, %v14523_v34 }
 0x7aa   : > { %v7119_v43 = vadd.f32 1.0, %v8323_v23  ;;  %v7099_v10 = vmul.f32 1.442695, %v7075_v17  ;;  %v7040_v61 = vadd.f32 %v7966_v33, %v6943_v57  ;;  %v14526_v57 = vld [vmem:[#allocation91_spill] sm:$0xff]  ;;  %v6862_v17 = vadd.f32 %v7850_v36, %v6765_v8 }
 0x7ab   : > { %8336 = vrcp.f32 %v7115_v7  ;;  %v7968_v55 = vpop.f32.mrf.mxu1  ;;  %v7853_v44 = vadd.f32 %v14526_v57, %v14525_v45 }
 0x7ac   : > { %v8325_v16 = vpop.eup %8324  ;;  %8338 = vrcp.f32 %v7119_v43  ;;  %v7076_v5 = vsub.f32 0.0, %v7040_v61  ;;  %v7969_v54 = vadd.f32 %v7968_v55, %v7967_v22  ;;  %v6770_v22 = vadd.f32 %v14527_v51, %v13289_v50  ;;  %v14528_v43 = vld [vmem:[#allocation71_spill] sm:$0xff] }
 0x7ad   : > { %v7116_v14 = vadd.f32 1.0, %v8325_v16  ;;  %8340 = vpow2.f32 %v7099_v10  ;;  %v7970_v31 = vpop.f32.mrf.mxu1  ;;  %v8327_v63 = vpop.eup %8326  ;;  %v14529_v10 = vld [vmem:[#allocation88_spill] sm:$0xff]  ;;  %v6959_v47 = vadd.f32 %v7914_v15, %v6862_v17 }
 0x7ae   : > { %v7101_v29 = vmul.f32 1.442695, %v7076_v5  ;;  %v7045_v3 = vadd.f32 %v7969_v54, %v6948_v11  ;;  %v7120_v19 = vadd.f32 1.0, %v8327_v63  ;;  %v7792_v61 = vadd.f32 %v14529_v10, %v14528_v43  ;;  %v14530_v16 = vld [vmem:[#allocation60_spill] sm:$0xff] }
 0x7af   : > { %8342 = vrcp.f32 %v7116_v14  ;;  %v7971_v27 = vpop.f32.mrf.mxu1  ;;  %v7917_v11 = vadd.f32 %v14531_v58, %v14530_v16  ;;  %v6867_v54 = vadd.f32 %v7853_v44, %v6770_v22 }
 0x7b0   : > { %8344 = vpow2.f32 %v7101_v29  ;;  %v7077_v35 = vsub.f32 0.0, %v7045_v3  ;;  %v7972_v52 = vadd.f32 %v7971_v27, %v7970_v31  ;;  %v14533_v31 = vld [vmem:[#allocation35_spill] sm:$0xff]  ;;  %v6773_v24 = vadd.f32 %v7792_v61, %v13289_v50 }
 0x7b1   : > { %v8329_v42 = vpop.eup %8328  ;;  %8346 = vrcp.f32 %v7120_v19  ;;  %v7973_v28 = vpop.f32.mrf.mxu1  ;;  %v7856_v63 = vadd.f32 %v14533_v31, %v14532_v21  ;;  %v6964_v40 = vadd.f32 %v7917_v11, %v6867_v54  ;;  %v7920_v19 = vadd.f32 %v13405_v39, %v14534_v41 }
 0x7b2   : > { %v8331_v18 = vpop.eup %8330  ;;  %7165 = vst [vmem:[%s13464_s22 + $0x10] sm:$0xff] %v8329_v42  ;;  %v7103_v1 = vmul.f32 1.442695, %v7077_v35  ;;  %v7048_v9 = vadd.f32 %v7972_v52, %v6951_v2 }
 0x7b3   : > { %v7121_v12 = vadd.f32 1.0, %v8331_v18  ;;  %v7974_v0 = vpop.f32.mrf.mxu1  ;;  %v6870_v20 = vadd.f32 %v7856_v63, %v6773_v24 }
 0x7b4   : > { %8348 = vpow2.f32 %v7103_v1  ;;  %v7078_v56 = vsub.f32 0.0, %v7048_v9  ;;  %v7975_v37 = vadd.f32 %v7974_v0, %v7973_v28 }
 0x7b5   : > { %v8333_v32 = vpop.eup %8332  ;;  %8350 = vrcp.f32 %v7121_v12  ;;  %v7976_v25 = vpop.f32.mrf.mxu1  ;;  %v6967_v46 = vadd.f32 %v7920_v19, %v6870_v20 }
 0x7b6   : > { %v8335_v7 = vpop.eup %8334  ;;  %7166 = vst [vmem:[%s13464_s22 + $0x18] sm:$0xff] %v8333_v32  ;;  %v7105_v33 = vmul.f32 1.442695, %v7078_v56  ;;  %v7053_v23 = vadd.f32 %v7975_v37, %v6956_v26 }
 0x7b7   : > { %v7122_v13 = vadd.f32 1.0, %v8335_v7  ;;  %v7977_v38 = vpop.f32.mrf.mxu1 }
 0x7b8   : > { %v8337_v60 = vpop.eup %8336  ;;  %8352 = vpow2.f32 %v7105_v33  ;;  %v7079_v55 = vsub.f32 0.0, %v7053_v23  ;;  %v7978_v14 = vadd.f32 %v7977_v38, %v7976_v25 }
 0x7b9   : > { %7163 = vst [vmem:[%s13464_s22] sm:$0xff] %v8337_v60  ;;  %v8339_v5 = vpop.eup %8338  ;;  %8354 = vrcp.f32 %v7122_v13  ;;  %v7979_v53 = vpop.f32.mrf.mxu1 }
 0x7ba   : > { %v8341_v6 = vpop.eup %8340  ;;  %7167 = vst [vmem:[%s13464_s22 + $0x20] sm:$0xff] %v8339_v5  ;;  %v7107_v59 = vmul.f32 1.442695, %v7079_v55  ;;  %v7056_v29 = vadd.f32 %v7978_v14, %v6959_v47 }
 0x7bb   : > { %v7123_v49 = vadd.f32 1.0, %v8341_v6  ;;  %v7980_v4 = vpop.f32.mrf.mxu1 }
 0x7bc   : > { %v8343_v3 = vpop.eup %8342  ;;  %8356 = vpow2.f32 %v7107_v59  ;;  %v7080_v27 = vsub.f32 0.0, %v7056_v29  ;;  %v7981_v2 = vadd.f32 %v7980_v4, %v7979_v53 }
 0x7bd   : > { %7164 = vst [vmem:[%s13464_s22 + $0x8] sm:$0xff] %v8343_v3  ;;  %v8345_v35 = vpop.eup %8344  ;;  %8358 = vrcp.f32 %v7123_v49  ;;  %v7982_v52 = vpop.f32.mrf.mxu1 }
 0x7be   : > { %v8347_v42 = vpop.eup %8346  ;;  %v7124_v28 = vadd.f32 1.0, %v8345_v35  ;;  %v7109_v18 = vmul.f32 1.442695, %v7080_v27  ;;  %v7061_v50 = vadd.f32 %v7981_v2, %v6964_v40 }
 0x7bf   : > { %7168 = vst [vmem:[%s13464_s22 + $0x28] sm:$0xff] %v8347_v42  ;;  %v7983_v30 = vpop.f32.mrf.mxu1 }
 0x7c0   : > { %8360 = vrcp.f32 %v7124_v28  ;;  %v7081_v36 = vsub.f32 0.0, %v7061_v50  ;;  %v7984_v39 = vadd.f32 %v7983_v30, %v7982_v52 }
 0x7c1   : > { %v8349_v1 = vpop.eup %8348  ;;  %8362 = vpow2.f32 %v7109_v18 }
 0x7c2   : > { %v8351_v9 = vpop.eup %8350  ;;  %v7125_v48 = vadd.f32 1.0, %v8349_v1  ;;  %v7111_v8 = vmul.f32 1.442695, %v7081_v36  ;;  %v7064_v26 = vadd.f32 %v7984_v39, %v6967_v46 }
 0x7c3   : > { %7169 = vst [vmem:[%s13464_s22 + $0x30] sm:$0xff] %v8351_v9 }
 0x7c4   : > { %8364 = vrcp.f32 %v7125_v48  ;;  %v7082_v12 = vsub.f32 0.0, %v7064_v26 }
 0x7c5   : > { %v8353_v0 = vpop.eup %8352  ;;  %8366 = vpow2.f32 %v7111_v8 }
 0x7c6   : > { %v8355_v34 = vpop.eup %8354  ;;  %v7126_v62 = vadd.f32 1.0, %v8353_v0  ;;  %v7113_v15 = vmul.f32 1.442695, %v7082_v12 }
 0x7c7   : > { %7170 = vst [vmem:[%s13464_s22 + $0x38] sm:$0xff] %v8355_v34 }
 0x7c8   : > { %8368 = vrcp.f32 %v7126_v62 }
 0x7c9   : > { %v8357_v56 = vpop.eup %8356  ;;  %8370 = vpow2.f32 %v7113_v15 }
 0x7ca   : > { %v8359_v37 = vpop.eup %8358  ;;  %v7127_v32 = vadd.f32 1.0, %v8357_v56 }
 0x7cb   : > { %7171 = vst [vmem:[%s13464_s22 + $0x40] sm:$0xff] %v8359_v37 }
 0x7cc   : > { %8372 = vrcp.f32 %v7127_v32 }
 0x7cd   : > { %v8361_v45 = vpop.eup %8360 }
 0x7ce   : > { %v8363_v57 = vpop.eup %8362  ;;  %7172 = vst [vmem:[%s13464_s22 + $0x48] sm:$0xff] %v8361_v45 }
 0x7cf   : > { %v7128_v44 = vadd.f32 1.0, %v8363_v57 }
 0x7d1   : > { %v8365_v25 = vpop.eup %8364  ;;  %8374 = vrcp.f32 %v7128_v44 }
 0x7d2   : > { %v8367_v7 = vpop.eup %8366  ;;  %7173 = vst [vmem:[%s13464_s22 + $0x50] sm:$0xff] %v8365_v25 }
 0x7d3   : > { %v7129_v17 = vadd.f32 1.0, %v8367_v7 }
 0x7d5   : > { %v8369_v33 = vpop.eup %8368  ;;  %8376 = vrcp.f32 %v7129_v17 }
 0x7d6   : > { %v8371_v23 = vpop.eup %8370  ;;  %7174 = vst [vmem:[%s13464_s22 + $0x58] sm:$0xff] %v8369_v33 }
 0x7d7   : > { %v7130_v60 = vadd.f32 1.0, %v8371_v23 }
 0x7d9   : > { %v8373_v51 = vpop.eup %8372  ;;  %8378 = vrcp.f32 %v7130_v60 }
 0x7da   : > { %7175 = vst [vmem:[%s13464_s22 + $0x60] sm:$0xff] %v8373_v51 }
 0x7de   : > { %v8375_v22 = vpop.eup %8374 }
 0x7df   : > { %7176 = vst [vmem:[%s13464_s22 + $0x68] sm:$0xff] %v8375_v22 }
 0x7e2   : > { %v8377_v43 = vpop.eup %8376 }
 0x7e3   : > { %7177 = vst [vmem:[%s13464_s22 + $0x70] sm:$0xff] %v8377_v43 }
 0x7e6   : > { %v8379_v10 = vpop.eup %8378 }
 0x7e7   : > { %7178 = vst [vmem:[%s13464_s22 + $0x78] sm:$0xff] %v8379_v10 }
 0x7e8   : > { %8474 = shalt.err (!%p8471_p11)
}
 0x7e9   : > { %s8475_s15 = scalar_lea.hbm %s13503_s8, 2048  ;;  %s8479_s21 = scalar_lea.hbm %s13557_s7, 4096 }
 0x7ea   : > { %p8476_p0 = scmp.ne.s32.totalorder %s13503_s8, %s8475_s15  ;;  %p8480_p3 = scmp.lt.s32.totalorder %s13503_s8, %s13557_s7 }
 0x7eb   : > { %p8481_p2 = scmp.lt.s32.totalorder %s8479_s21, %s8475_s15 }
 0x7ec   : > { %p8477_p1 = pnand %p8476_p0, %p8622_p5 }
 0x7ed   : > { %p8482_p4 = por %p8481_p2, %p8480_p3 }
 0x7ee   : > { %p8478_p13 = pneg %p8477_p1 }
 0x7f0   : > { %p8483_p10 = pnand %p8482_p4, %p8478_p13 }
 0x7f2   : > { %8486 = shalt.err (!%p8483_p10)
}
 0x7f3   : > { %s8542_s16 = smov 128   ;;  %s8543_s29 = smov 8  }
 0x7f4   : > { %8033 = dma.vmem_to_hbm [thread:$0]  (%p8622_p5), %s13505_s18, 2048, %s13503_s8, %s13510_s13, %s8542_s16, %s8542_s16, %s8543_s29  }
 0x7f5 PF: > { %p8055_p12 = scmp.ge.s32.totalorder %s8529_s27, 2  ;;  %s7208_s9 = sand.u32 1, %s8517_s24  }
 0x7f6   : > { %p14535_p7 = scmp.ne.s32.totalorder %s13860_s12, 0  ;;  %s7209_s28 = scalar_lea.sflag [#allocation4], %s7208_s9 }
 0x7f8   : > { %p8046_p6 = pnand %p8055_p12, %p14535_p7 }
 0x7fa   : > { %p8047_p9 = pneg %p8046_p6 }
 0x7fc   : > { %8512 = dma.done.wait (%p8047_p9), %s7209_s28, 2048  }
 0x7fd   : > { %8514 = vsyncadd (%p8047_p9), %s7209_s28, 4294965248  ;;  %p19_p8 = scmp.ge.s32.totalorder %s8609_s30, 4   ;;  %s14536_s24 = smov %s8521_s25 }
 0x7fe   : > { %s14537_s25 = smov %s8525_s26  ;;  %s14538_s26 = smov %s8620_s10 }
 0x7ff   : > { %s14539_s27 = smov %s8609_s30  ;;  %21 = sbr.rel (!%p19_p8) target bundleno = 5 (0x5), region = 96 }
 0x804   :  { %7214 = vsyncpa [#allocation3], 1 }
 0x805   :  { %7216 = vsyncpa [#allocation3 + $0x1], 1 }
 0x806   :  { %7217 = vsyncpa [#allocation6], 1 }
 0x807   :  { %7218 = vsyncpa [#allocation4], 1 }
 0x808   :  { %7220 = vsyncpa [#allocation4 + $0x1], 1 }

</bundles_post_ra>
